<compile_context>
chip_gen: v7x
topology: tpu7x:2x2x1
jax: 0.10.0
libtpu: 0.0.40
codegen_flags: <defaults>
</compile_context>

<pallas_src>
import jax
import jax.numpy as jnp
from jax.experimental import pallas as pl
from jax.experimental.pallas import tpu as pltpu


KH = KW = 3
CHANNELS = (1, 32, 64, 128, 256)


def _make_fused_kernel(W, P, P_PAD):
    """Fused 4-layer conv3x3(VALID)+ReLU kernel for one batch element."""
    taps = [(ky, kx) for ky in range(KH) for kx in range(KW)]

    def kernel(x_ref, w0_ref, w1_ref, w2_ref, w3_ref,
               b0_ref, b1_ref, b2_ref, b3_ref, o_ref):
        # ---- layer 0 (Cin=1): 9 VPU broadcast multiply-adds, all f32 ----
        x2d = x_ref[0]                                       # (P_PAD, 1) f32
        acc = jnp.zeros((P, CHANNELS[1]), jnp.float32)
        for k, (ky, kx) in enumerate(taps):
            s = ky * W + kx
            acc = acc + x2d[s:s + P, :] * w0_ref[k:k + 1, :]  # (P, 32) f32
        h = jnp.maximum(acc + b0_ref[...], 0.0)

        # ---- layers 1..3: bf16 MXU matmuls with f32 accumulation ----
        def conv_relu(h_prev, w_ref, b_ref, cout):
            cin = h_prev.shape[-1]
            # fixed-width flat layout + zero tail so every tap is a static slice
            buf = jnp.concatenate(
                [h_prev, jnp.zeros((P_PAD - P, cin), jnp.float32)], axis=0)
            acc = jnp.zeros((P, cout), jnp.float32)
            for k, (ky, kx) in enumerate(taps):
                s = ky * W + kx
                lhs = buf[s:s + P, :].astype(jnp.bfloat16)    # (P, cin)
                acc = acc + jnp.dot(lhs, w_ref[k],
                                    preferred_element_type=jnp.float32)
            return jnp.maximum(acc + b_ref[...], 0.0)

        h = conv_relu(h, w1_ref, b1_ref, CHANNELS[2])
        h = conv_relu(h, w2_ref, b2_ref, CHANNELS[3])
        h = conv_relu(h, w3_ref, b3_ref, CHANNELS[4])

        o_ref[0] = h                                          # (P, 256) f32

    return kernel


def testnet_forward_pallas(x_nchw, params):
    N, Cin, H, W = x_nchw.shape
    P = H * W
    tail = -(-(2 * W + 2) // 16) * 16      # zero tail >= max tap shift (2W+2)
    P_PAD = P + tail

    # NCHW -> NHWC -> flattened spatial (row width W) with zero tail.
    x_flat = jnp.transpose(x_nchw, (0, 2, 3, 1)).reshape(N, P, Cin)
    x_buf = jnp.pad(x_flat.astype(jnp.float32), ((0, 0), (0, tail), (0, 0)))

    (w0, b0), (w1, b1), (w2, b2), (w3, b3) = params
    # HWIO (3,3,Cin,Cout) -> (9, Cin, Cout); layer 0 stays f32 (VPU path),
    # layers 1-3 are cast to bf16 (MXU-native, halves weight DMA bytes).
    w0f = w0.reshape(KH * KW, CHANNELS[1]).astype(jnp.float32)
    w1b = w1.reshape(KH * KW, CHANNELS[1], CHANNELS[2]).astype(jnp.bfloat16)
    w2b = w2.reshape(KH * KW, CHANNELS[2], CHANNELS[3]).astype(jnp.bfloat16)
    w3b = w3.reshape(KH * KW, CHANNELS[3], CHANNELS[4]).astype(jnp.bfloat16)
    b0r = b0.reshape(1, -1).astype(jnp.float32)
    b1r = b1.reshape(1, -1).astype(jnp.float32)
    b2r = b2.reshape(1, -1).astype(jnp.float32)
    b3r = b3.reshape(1, -1).astype(jnp.float32)

    flops = 2 * N * KH * KW * P * sum(
        CHANNELS[i] * CHANNELS[i + 1] for i in range(4))
    bytes_accessed = (x_buf.size * 4 + w0f.size * 4
                      + (w1b.size + w2b.size + w3b.size) * 2
                      + (b0r.size + b1r.size + b2r.size + b3r.size) * 4
                      + N * P * CHANNELS[4] * 4)

    def whole(shape):
        return pl.BlockSpec(shape, lambda n, _r=len(shape): (0,) * _r)

    out_full = pl.pallas_call(
        _make_fused_kernel(W, P, P_PAD),
        out_shape=jax.ShapeDtypeStruct((N, P, CHANNELS[4]), jnp.float32),
        grid=(N,),
        in_specs=[
            pl.BlockSpec((1, P_PAD, Cin), lambda n: (n, 0, 0)),
            whole(w0f.shape), whole(w1b.shape),
            whole(w2b.shape), whole(w3b.shape),
            whole(b0r.shape), whole(b1r.shape),
            whole(b2r.shape), whole(b3r.shape),
        ],
        out_specs=pl.BlockSpec((1, P, CHANNELS[4]), lambda n: (n, 0, 0)),
        compiler_params=pltpu.CompilerParams(
            dimension_semantics=("parallel",)),
        cost_estimate=pl.CostEstimate(
            flops=int(flops), transcendentals=0,
            bytes_accessed=int(bytes_accessed)),
    )(x_buf, w0f, w1b, w2b, w3b, b0r, b1r, b2r, b3r)

    # Extract the valid (H-8, W-8) window of layer 3, back to NCHW.
    Ho = H - 4 * (KH - 1)
    Wo = W - 4 * (KW - 1)
    out = out_full.reshape(N, H, W, CHANNELS[4])[:, :Ho, :Wo, :]
    return jnp.transpose(out, (0, 3, 1, 2))


def init_params(key):
    # Conv weights in HWIO (KH, KW, Cin, Cout); deterministic init.
    shapes = [(3, 3, 1, 32), (3, 3, 32, 64), (3, 3, 64, 128), (3, 3, 128, 256)]
    params = []
    for i, s in enumerate(shapes):
        kw, kb = jax.random.split(jax.random.fold_in(key, i))
        fan_in = s[0] * s[1] * s[2]
        w = jax.random.normal(kw, s, jnp.float32) * (2.0 / fan_in) ** 0.5
        b = jax.random.normal(kb, (s[3],), jnp.float32) * 0.01
        params.append((w, b))
    return params


@jax.jit
def testnet_forward(x_nchw, params):
    return testnet_forward_pallas(x_nchw, params)


def reference_forward(x_nchw, params):
    # Pure-JAX reference (XLA conv) for correctness check.
    x = x_nchw
    for w, b in params:
        x = jax.lax.conv_general_dilated(
            x, w, window_strides=(1, 1), padding="VALID",
            dimension_numbers=("NCHW", "HWIO", "NCHW"))
        x = jax.nn.relu(x + b.reshape(1, -1, 1, 1))
    return x


if __name__ == "__main__":
    key = jax.random.PRNGKey(0)
    kx, kp = jax.random.split(key)
    x = jax.random.normal(kx, (2, 1, 16, 16), jnp.float32)  # NCHW, like PyTorch
    params = init_params(kp)

    out = testnet_forward(x, params)
    out = jax.block_until_ready(out)
    assert out.shape == (2, 256, 8, 8), out.shape
    assert bool(jnp.isfinite(out).all())

    ref = reference_forward(x, params)
    # Tolerance reflects bf16 MXU operands (f32 accumulation) in layers 1-3,
    # as recommended by the perf review.
    assert jnp.allclose(out, ref, rtol=2e-2, atol=2e-2), (
        "max abs err", float(jnp.max(jnp.abs(out - ref))))

    print("KERNEL_OK")
</pallas_src>

<mosaic_0001>
module attributes {stable_mosaic.version = 11 : i64} {
  func.func @kernel(%arg0: i32, %arg1: memref<1x304x1xf32, #tpu.memory_space<vmem>>, %arg2: memref<9x32xf32, #tpu.memory_space<vmem>>, %arg3: memref<9x32x64xbf16, #tpu.memory_space<vmem>>, %arg4: memref<9x64x128xbf16, #tpu.memory_space<vmem>>, %arg5: memref<9x128x256xbf16, #tpu.memory_space<vmem>>, %arg6: memref<1x32xf32, #tpu.memory_space<vmem>>, %arg7: memref<1x64xf32, #tpu.memory_space<vmem>>, %arg8: memref<1x128xf32, #tpu.memory_space<vmem>>, %arg9: memref<1x256xf32, #tpu.memory_space<vmem>>, %arg10: memref<1x256x256xf32, #tpu.memory_space<vmem>>) attributes {dimension_semantics = [#tpu.dimension_semantics<parallel>], iteration_bounds = array<i64: 2>, scalar_prefetch = 0 : i64, scratch_operands = 0 : i64, tpu.core_type = #tpu.core_type<tc>, window_params = [{transform_indices = @transform_0, window_bounds = array<i64: 1, 304, 1>}, {pipeline_mode = #tpu.pipeline_mode<synchronous>, transform_indices = @transform_1, window_bounds = array<i64: 9, 32>}, {pipeline_mode = #tpu.pipeline_mode<synchronous>, transform_indices = @transform_2, window_bounds = array<i64: 9, 32, 64>}, {pipeline_mode = #tpu.pipeline_mode<synchronous>, transform_indices = @transform_3, window_bounds = array<i64: 9, 64, 128>}, {pipeline_mode = #tpu.pipeline_mode<synchronous>, transform_indices = @transform_4, window_bounds = array<i64: 9, 128, 256>}, {pipeline_mode = #tpu.pipeline_mode<synchronous>, transform_indices = @transform_5, window_bounds = array<i64: 1, 32>}, {pipeline_mode = #tpu.pipeline_mode<synchronous>, transform_indices = @transform_6, window_bounds = array<i64: 1, 64>}, {pipeline_mode = #tpu.pipeline_mode<synchronous>, transform_indices = @transform_7, window_bounds = array<i64: 1, 128>}, {pipeline_mode = #tpu.pipeline_mode<synchronous>, transform_indices = @transform_8, window_bounds = array<i64: 1, 256>}, {transform_indices = @transform_9, window_bounds = array<i64: 1, 256, 256>}]} {
    %c0 = arith.constant 0 : index
    %c0_0 = arith.constant 0 : index
    %c0_1 = arith.constant 0 : index
    %0 = vector.load %arg1[%c0, %c0_0, %c0_1] : memref<1x304x1xf32, #tpu.memory_space<vmem>>, vector<1x304x1xf32>
    %1 = vector.shape_cast %0 : vector<1x304x1xf32> to vector<304x1xf32>
    %cst = arith.constant 0.000000e+00 : f32
    %2 = vector.broadcast %cst : f32 to vector<256x32xf32>
    %3 = vector.extract_strided_slice %1 {offsets = [0, 0], sizes = [256, 1], strides = [1, 1]} : vector<304x1xf32> to vector<256x1xf32>
    %c0_2 = arith.constant 0 : index
    %c0_3 = arith.constant 0 : index
    %4 = vector.load %arg2[%c0_2, %c0_3] : memref<9x32xf32, #tpu.memory_space<vmem>>, vector<1x32xf32>
    %5 = vector.broadcast %3 : vector<256x1xf32> to vector<256x32xf32>
    %6 = vector.broadcast %4 : vector<1x32xf32> to vector<256x32xf32>
    %7 = arith.mulf %5, %6 : vector<256x32xf32>
    %8 = arith.addf %2, %7 : vector<256x32xf32>
    %9 = vector.extract_strided_slice %1 {offsets = [1, 0], sizes = [256, 1], strides = [1, 1]} : vector<304x1xf32> to vector<256x1xf32>
    %c1 = arith.constant 1 : index
    %c0_4 = arith.constant 0 : index
    %10 = vector.load %arg2[%c1, %c0_4] : memref<9x32xf32, #tpu.memory_space<vmem>>, vector<1x32xf32>
    %11 = vector.broadcast %9 : vector<256x1xf32> to vector<256x32xf32>
    %12 = vector.broadcast %10 : vector<1x32xf32> to vector<256x32xf32>
    %13 = arith.mulf %11, %12 : vector<256x32xf32>
    %14 = arith.addf %8, %13 : vector<256x32xf32>
    %15 = vector.extract_strided_slice %1 {offsets = [2, 0], sizes = [256, 1], strides = [1, 1]} : vector<304x1xf32> to vector<256x1xf32>
    %c2 = arith.constant 2 : index
    %c0_5 = arith.constant 0 : index
    %16 = vector.load %arg2[%c2, %c0_5] : memref<9x32xf32, #tpu.memory_space<vmem>>, vector<1x32xf32>
    %17 = vector.broadcast %15 : vector<256x1xf32> to vector<256x32xf32>
    %18 = vector.broadcast %16 : vector<1x32xf32> to vector<256x32xf32>
    %19 = arith.mulf %17, %18 : vector<256x32xf32>
    %20 = arith.addf %14, %19 : vector<256x32xf32>
    %21 = vector.extract_strided_slice %1 {offsets = [16, 0], sizes = [256, 1], strides = [1, 1]} : vector<304x1xf32> to vector<256x1xf32>
    %c3 = arith.constant 3 : index
    %c0_6 = arith.constant 0 : index
    %22 = vector.load %arg2[%c3, %c0_6] : memref<9x32xf32, #tpu.memory_space<vmem>>, vector<1x32xf32>
    %23 = vector.broadcast %21 : vector<256x1xf32> to vector<256x32xf32>
    %24 = vector.broadcast %22 : vector<1x32xf32> to vector<256x32xf32>
    %25 = arith.mulf %23, %24 : vector<256x32xf32>
    %26 = arith.addf %20, %25 : vector<256x32xf32>
    %27 = vector.extract_strided_slice %1 {offsets = [17, 0], sizes = [256, 1], strides = [1, 1]} : vector<304x1xf32> to vector<256x1xf32>
    %c4 = arith.constant 4 : index
    %c0_7 = arith.constant 0 : index
    %28 = vector.load %arg2[%c4, %c0_7] : memref<9x32xf32, #tpu.memory_space<vmem>>, vector<1x32xf32>
    %29 = vector.broadcast %27 : vector<256x1xf32> to vector<256x32xf32>
    %30 = vector.broadcast %28 : vector<1x32xf32> to vector<256x32xf32>
    %31 = arith.mulf %29, %30 : vector<256x32xf32>
    %32 = arith.addf %26, %31 : vector<256x32xf32>
    %33 = vector.extract_strided_slice %1 {offsets = [18, 0], sizes = [256, 1], strides = [1, 1]} : vector<304x1xf32> to vector<256x1xf32>
    %c5 = arith.constant 5 : index
    %c0_8 = arith.constant 0 : index
    %34 = vector.load %arg2[%c5, %c0_8] : memref<9x32xf32, #tpu.memory_space<vmem>>, vector<1x32xf32>
    %35 = vector.broadcast %33 : vector<256x1xf32> to vector<256x32xf32>
    %36 = vector.broadcast %34 : vector<1x32xf32> to vector<256x32xf32>
    %37 = arith.mulf %35, %36 : vector<256x32xf32>
    %38 = arith.addf %32, %37 : vector<256x32xf32>
    %39 = vector.extract_strided_slice %1 {offsets = [32, 0], sizes = [256, 1], strides = [1, 1]} : vector<304x1xf32> to vector<256x1xf32>
    %c6 = arith.constant 6 : index
    %c0_9 = arith.constant 0 : index
    %40 = vector.load %arg2[%c6, %c0_9] : memref<9x32xf32, #tpu.memory_space<vmem>>, vector<1x32xf32>
    %41 = vector.broadcast %39 : vector<256x1xf32> to vector<256x32xf32>
    %42 = vector.broadcast %40 : vector<1x32xf32> to vector<256x32xf32>
    %43 = arith.mulf %41, %42 : vector<256x32xf32>
    %44 = arith.addf %38, %43 : vector<256x32xf32>
    %45 = vector.extract_strided_slice %1 {offsets = [33, 0], sizes = [256, 1], strides = [1, 1]} : vector<304x1xf32> to vector<256x1xf32>
    %c7 = arith.constant 7 : index
    %c0_10 = arith.constant 0 : index
    %46 = vector.load %arg2[%c7, %c0_10] : memref<9x32xf32, #tpu.memory_space<vmem>>, vector<1x32xf32>
    %47 = vector.broadcast %45 : vector<256x1xf32> to vector<256x32xf32>
    %48 = vector.broadcast %46 : vector<1x32xf32> to vector<256x32xf32>
    %49 = arith.mulf %47, %48 : vector<256x32xf32>
    %50 = arith.addf %44, %49 : vector<256x32xf32>
    %51 = vector.extract_strided_slice %1 {offsets = [34, 0], sizes = [256, 1], strides = [1, 1]} : vector<304x1xf32> to vector<256x1xf32>
    %c8 = arith.constant 8 : index
    %c0_11 = arith.constant 0 : index
    %52 = vector.load %arg2[%c8, %c0_11] : memref<9x32xf32, #tpu.memory_space<vmem>>, vector<1x32xf32>
    %53 = vector.broadcast %51 : vector<256x1xf32> to vector<256x32xf32>
    %54 = vector.broadcast %52 : vector<1x32xf32> to vector<256x32xf32>
    %55 = arith.mulf %53, %54 : vector<256x32xf32>
    %56 = arith.addf %50, %55 : vector<256x32xf32>
    %c0_12 = arith.constant 0 : index
    %c0_13 = arith.constant 0 : index
    %57 = vector.load %arg6[%c0_12, %c0_13] : memref<1x32xf32, #tpu.memory_space<vmem>>, vector<1x32xf32>
    %58 = vector.broadcast %57 : vector<1x32xf32> to vector<256x32xf32>
    %59 = arith.addf %56, %58 : vector<256x32xf32>
    %cst_14 = arith.constant 0.000000e+00 : f32
    %60 = vector.broadcast %cst_14 : f32 to vector<256x32xf32>
    %61 = arith.maximumf %59, %60 : vector<256x32xf32>
    %cst_15 = arith.constant 0.000000e+00 : f32
    %62 = vector.broadcast %cst_15 : f32 to vector<48x32xf32>
    %63 = tpu.concatenate %61, %62 in 0 : vector<256x32xf32>, vector<48x32xf32> -> vector<304x32xf32>
    %cst_16 = arith.constant 0.000000e+00 : f32
    %64 = vector.broadcast %cst_16 : f32 to vector<256x64xf32>
    %65 = vector.extract_strided_slice %63 {offsets = [0, 0], sizes = [256, 32], strides = [1, 1]} : vector<304x32xf32> to vector<256x32xf32>
    %66 = arith.truncf %65 : vector<256x32xf32> to vector<256x32xbf16>
    %c0_17 = arith.constant 0 : index
    %c0_18 = arith.constant 0 : index
    %c0_19 = arith.constant 0 : index
    %67 = vector.load %arg3[%c0_17, %c0_18, %c0_19] : memref<9x32x64xbf16, #tpu.memory_space<vmem>>, vector<1x32x64xbf16>
    %68 = vector.shape_cast %67 : vector<1x32x64xbf16> to vector<32x64xbf16>
    %cst_20 = arith.constant dense<0.000000e+00> : vector<256x64xf32>
    %69 = tpu.matmul %66, %68, %cst_20 {dimension_numbers = #tpu.dot_dimension_numbers<[1], [0], [0], [1], [0, 0, 1, 1], [], []>} : vector<256x32xbf16>, vector<32x64xbf16>, vector<256x64xf32> -> vector<256x64xf32>
    %70 = arith.addf %64, %69 : vector<256x64xf32>
    %71 = vector.extract_strided_slice %63 {offsets = [1, 0], sizes = [256, 32], strides = [1, 1]} : vector<304x32xf32> to vector<256x32xf32>
    %72 = arith.truncf %71 : vector<256x32xf32> to vector<256x32xbf16>
    %c1_21 = arith.constant 1 : index
    %c0_22 = arith.constant 0 : index
    %c0_23 = arith.constant 0 : index
    %73 = vector.load %arg3[%c1_21, %c0_22, %c0_23] : memref<9x32x64xbf16, #tpu.memory_space<vmem>>, vector<1x32x64xbf16>
    %74 = vector.shape_cast %73 : vector<1x32x64xbf16> to vector<32x64xbf16>
    %cst_24 = arith.constant dense<0.000000e+00> : vector<256x64xf32>
    %75 = tpu.matmul %72, %74, %cst_24 {dimension_numbers = #tpu.dot_dimension_numbers<[1], [0], [0], [1], [0, 0, 1, 1], [], []>} : vector<256x32xbf16>, vector<32x64xbf16>, vector<256x64xf32> -> vector<256x64xf32>
    %76 = arith.addf %70, %75 : vector<256x64xf32>
    %77 = vector.extract_strided_slice %63 {offsets = [2, 0], sizes = [256, 32], strides = [1, 1]} : vector<304x32xf32> to vector<256x32xf32>
    %78 = arith.truncf %77 : vector<256x32xf32> to vector<256x32xbf16>
    %c2_25 = arith.constant 2 : index
    %c0_26 = arith.constant 0 : index
    %c0_27 = arith.constant 0 : index
    %79 = vector.load %arg3[%c2_25, %c0_26, %c0_27] : memref<9x32x64xbf16, #tpu.memory_space<vmem>>, vector<1x32x64xbf16>
    %80 = vector.shape_cast %79 : vector<1x32x64xbf16> to vector<32x64xbf16>
    %cst_28 = arith.constant dense<0.000000e+00> : vector<256x64xf32>
    %81 = tpu.matmul %78, %80, %cst_28 {dimension_numbers = #tpu.dot_dimension_numbers<[1], [0], [0], [1], [0, 0, 1, 1], [], []>} : vector<256x32xbf16>, vector<32x64xbf16>, vector<256x64xf32> -> vector<256x64xf32>
    %82 = arith.addf %76, %81 : vector<256x64xf32>
    %83 = vector.extract_strided_slice %63 {offsets = [16, 0], sizes = [256, 32], strides = [1, 1]} : vector<304x32xf32> to vector<256x32xf32>
    %84 = arith.truncf %83 : vector<256x32xf32> to vector<256x32xbf16>
    %c3_29 = arith.constant 3 : index
    %c0_30 = arith.constant 0 : index
    %c0_31 = arith.constant 0 : index
    %85 = vector.load %arg3[%c3_29, %c0_30, %c0_31] : memref<9x32x64xbf16, #tpu.memory_space<vmem>>, vector<1x32x64xbf16>
    %86 = vector.shape_cast %85 : vector<1x32x64xbf16> to vector<32x64xbf16>
    %cst_32 = arith.constant dense<0.000000e+00> : vector<256x64xf32>
    %87 = tpu.matmul %84, %86, %cst_32 {dimension_numbers = #tpu.dot_dimension_numbers<[1], [0], [0], [1], [0, 0, 1, 1], [], []>} : vector<256x32xbf16>, vector<32x64xbf16>, vector<256x64xf32> -> vector<256x64xf32>
    %88 = arith.addf %82, %87 : vector<256x64xf32>
    %89 = vector.extract_strided_slice %63 {offsets = [17, 0], sizes = [256, 32], strides = [1, 1]} : vector<304x32xf32> to vector<256x32xf32>
    %90 = arith.truncf %89 : vector<256x32xf32> to vector<256x32xbf16>
    %c4_33 = arith.constant 4 : index
    %c0_34 = arith.constant 0 : index
    %c0_35 = arith.constant 0 : index
    %91 = vector.load %arg3[%c4_33, %c0_34, %c0_35] : memref<9x32x64xbf16, #tpu.memory_space<vmem>>, vector<1x32x64xbf16>
    %92 = vector.shape_cast %91 : vector<1x32x64xbf16> to vector<32x64xbf16>
    %cst_36 = arith.constant dense<0.000000e+00> : vector<256x64xf32>
    %93 = tpu.matmul %90, %92, %cst_36 {dimension_numbers = #tpu.dot_dimension_numbers<[1], [0], [0], [1], [0, 0, 1, 1], [], []>} : vector<256x32xbf16>, vector<32x64xbf16>, vector<256x64xf32> -> vector<256x64xf32>
    %94 = arith.addf %88, %93 : vector<256x64xf32>
    %95 = vector.extract_strided_slice %63 {offsets = [18, 0], sizes = [256, 32], strides = [1, 1]} : vector<304x32xf32> to vector<256x32xf32>
    %96 = arith.truncf %95 : vector<256x32xf32> to vector<256x32xbf16>
    %c5_37 = arith.constant 5 : index
    %c0_38 = arith.constant 0 : index
    %c0_39 = arith.constant 0 : index
    %97 = vector.load %arg3[%c5_37, %c0_38, %c0_39] : memref<9x32x64xbf16, #tpu.memory_space<vmem>>, vector<1x32x64xbf16>
    %98 = vector.shape_cast %97 : vector<1x32x64xbf16> to vector<32x64xbf16>
    %cst_40 = arith.constant dense<0.000000e+00> : vector<256x64xf32>
    %99 = tpu.matmul %96, %98, %cst_40 {dimension_numbers = #tpu.dot_dimension_numbers<[1], [0], [0], [1], [0, 0, 1, 1], [], []>} : vector<256x32xbf16>, vector<32x64xbf16>, vector<256x64xf32> -> vector<256x64xf32>
    %100 = arith.addf %94, %99 : vector<256x64xf32>
    %101 = vector.extract_strided_slice %63 {offsets = [32, 0], sizes = [256, 32], strides = [1, 1]} : vector<304x32xf32> to vector<256x32xf32>
    %102 = arith.truncf %101 : vector<256x32xf32> to vector<256x32xbf16>
    %c6_41 = arith.constant 6 : index
    %c0_42 = arith.constant 0 : index
    %c0_43 = arith.constant 0 : index
    %103 = vector.load %arg3[%c6_41, %c0_42, %c0_43] : memref<9x32x64xbf16, #tpu.memory_space<vmem>>, vector<1x32x64xbf16>
    %104 = vector.shape_cast %103 : vector<1x32x64xbf16> to vector<32x64xbf16>
    %cst_44 = arith.constant dense<0.000000e+00> : vector<256x64xf32>
    %105 = tpu.matmul %102, %104, %cst_44 {dimension_numbers = #tpu.dot_dimension_numbers<[1], [0], [0], [1], [0, 0, 1, 1], [], []>} : vector<256x32xbf16>, vector<32x64xbf16>, vector<256x64xf32> -> vector<256x64xf32>
    %106 = arith.addf %100, %105 : vector<256x64xf32>
    %107 = vector.extract_strided_slice %63 {offsets = [33, 0], sizes = [256, 32], strides = [1, 1]} : vector<304x32xf32> to vector<256x32xf32>
    %108 = arith.truncf %107 : vector<256x32xf32> to vector<256x32xbf16>
    %c7_45 = arith.constant 7 : index
    %c0_46 = arith.constant 0 : index
    %c0_47 = arith.constant 0 : index
    %109 = vector.load %arg3[%c7_45, %c0_46, %c0_47] : memref<9x32x64xbf16, #tpu.memory_space<vmem>>, vector<1x32x64xbf16>
    %110 = vector.shape_cast %109 : vector<1x32x64xbf16> to vector<32x64xbf16>
    %cst_48 = arith.constant dense<0.000000e+00> : vector<256x64xf32>
    %111 = tpu.matmul %108, %110, %cst_48 {dimension_numbers = #tpu.dot_dimension_numbers<[1], [0], [0], [1], [0, 0, 1, 1], [], []>} : vector<256x32xbf16>, vector<32x64xbf16>, vector<256x64xf32> -> vector<256x64xf32>
    %112 = arith.addf %106, %111 : vector<256x64xf32>
    %113 = vector.extract_strided_slice %63 {offsets = [34, 0], sizes = [256, 32], strides = [1, 1]} : vector<304x32xf32> to vector<256x32xf32>
    %114 = arith.truncf %113 : vector<256x32xf32> to vector<256x32xbf16>
    %c8_49 = arith.constant 8 : index
    %c0_50 = arith.constant 0 : index
    %c0_51 = arith.constant 0 : index
    %115 = vector.load %arg3[%c8_49, %c0_50, %c0_51] : memref<9x32x64xbf16, #tpu.memory_space<vmem>>, vector<1x32x64xbf16>
    %116 = vector.shape_cast %115 : vector<1x32x64xbf16> to vector<32x64xbf16>
    %cst_52 = arith.constant dense<0.000000e+00> : vector<256x64xf32>
    %117 = tpu.matmul %114, %116, %cst_52 {dimension_numbers = #tpu.dot_dimension_numbers<[1], [0], [0], [1], [0, 0, 1, 1], [], []>} : vector<256x32xbf16>, vector<32x64xbf16>, vector<256x64xf32> -> vector<256x64xf32>
    %118 = arith.addf %112, %117 : vector<256x64xf32>
    %c0_53 = arith.constant 0 : index
    %c0_54 = arith.constant 0 : index
    %119 = vector.load %arg7[%c0_53, %c0_54] : memref<1x64xf32, #tpu.memory_space<vmem>>, vector<1x64xf32>
    %120 = vector.broadcast %119 : vector<1x64xf32> to vector<256x64xf32>
    %121 = arith.addf %118, %120 : vector<256x64xf32>
    %cst_55 = arith.constant 0.000000e+00 : f32
    %122 = vector.broadcast %cst_55 : f32 to vector<256x64xf32>
    %123 = arith.maximumf %121, %122 : vector<256x64xf32>
    %cst_56 = arith.constant 0.000000e+00 : f32
    %124 = vector.broadcast %cst_56 : f32 to vector<48x64xf32>
    %125 = tpu.concatenate %123, %124 in 0 : vector<256x64xf32>, vector<48x64xf32> -> vector<304x64xf32>
    %cst_57 = arith.constant 0.000000e+00 : f32
    %126 = vector.broadcast %cst_57 : f32 to vector<256x128xf32>
    %127 = vector.extract_strided_slice %125 {offsets = [0, 0], sizes = [256, 64], strides = [1, 1]} : vector<304x64xf32> to vector<256x64xf32>
    %128 = arith.truncf %127 : vector<256x64xf32> to vector<256x64xbf16>
    %c0_58 = arith.constant 0 : index
    %c0_59 = arith.constant 0 : index
    %c0_60 = arith.constant 0 : index
    %129 = vector.load %arg4[%c0_58, %c0_59, %c0_60] : memref<9x64x128xbf16, #tpu.memory_space<vmem>>, vector<1x64x128xbf16>
    %130 = vector.shape_cast %129 : vector<1x64x128xbf16> to vector<64x128xbf16>
    %cst_61 = arith.constant dense<0.000000e+00> : vector<256x128xf32>
    %131 = tpu.matmul %128, %130, %cst_61 {dimension_numbers = #tpu.dot_dimension_numbers<[1], [0], [0], [1], [0, 0, 1, 1], [], []>} : vector<256x64xbf16>, vector<64x128xbf16>, vector<256x128xf32> -> vector<256x128xf32>
    %132 = arith.addf %126, %131 : vector<256x128xf32>
    %133 = vector.extract_strided_slice %125 {offsets = [1, 0], sizes = [256, 64], strides = [1, 1]} : vector<304x64xf32> to vector<256x64xf32>
    %134 = arith.truncf %133 : vector<256x64xf32> to vector<256x64xbf16>
    %c1_62 = arith.constant 1 : index
    %c0_63 = arith.constant 0 : index
    %c0_64 = arith.constant 0 : index
    %135 = vector.load %arg4[%c1_62, %c0_63, %c0_64] : memref<9x64x128xbf16, #tpu.memory_space<vmem>>, vector<1x64x128xbf16>
    %136 = vector.shape_cast %135 : vector<1x64x128xbf16> to vector<64x128xbf16>
    %cst_65 = arith.constant dense<0.000000e+00> : vector<256x128xf32>
    %137 = tpu.matmul %134, %136, %cst_65 {dimension_numbers = #tpu.dot_dimension_numbers<[1], [0], [0], [1], [0, 0, 1, 1], [], []>} : vector<256x64xbf16>, vector<64x128xbf16>, vector<256x128xf32> -> vector<256x128xf32>
    %138 = arith.addf %132, %137 : vector<256x128xf32>
    %139 = vector.extract_strided_slice %125 {offsets = [2, 0], sizes = [256, 64], strides = [1, 1]} : vector<304x64xf32> to vector<256x64xf32>
    %140 = arith.truncf %139 : vector<256x64xf32> to vector<256x64xbf16>
    %c2_66 = arith.constant 2 : index
    %c0_67 = arith.constant 0 : index
    %c0_68 = arith.constant 0 : index
    %141 = vector.load %arg4[%c2_66, %c0_67, %c0_68] : memref<9x64x128xbf16, #tpu.memory_space<vmem>>, vector<1x64x128xbf16>
    %142 = vector.shape_cast %141 : vector<1x64x128xbf16> to vector<64x128xbf16>
    %cst_69 = arith.constant dense<0.000000e+00> : vector<256x128xf32>
    %143 = tpu.matmul %140, %142, %cst_69 {dimension_numbers = #tpu.dot_dimension_numbers<[1], [0], [0], [1], [0, 0, 1, 1], [], []>} : vector<256x64xbf16>, vector<64x128xbf16>, vector<256x128xf32> -> vector<256x128xf32>
    %144 = arith.addf %138, %143 : vector<256x128xf32>
    %145 = vector.extract_strided_slice %125 {offsets = [16, 0], sizes = [256, 64], strides = [1, 1]} : vector<304x64xf32> to vector<256x64xf32>
    %146 = arith.truncf %145 : vector<256x64xf32> to vector<256x64xbf16>
    %c3_70 = arith.constant 3 : index
    %c0_71 = arith.constant 0 : index
    %c0_72 = arith.constant 0 : index
    %147 = vector.load %arg4[%c3_70, %c0_71, %c0_72] : memref<9x64x128xbf16, #tpu.memory_space<vmem>>, vector<1x64x128xbf16>
    %148 = vector.shape_cast %147 : vector<1x64x128xbf16> to vector<64x128xbf16>
    %cst_73 = arith.constant dense<0.000000e+00> : vector<256x128xf32>
    %149 = tpu.matmul %146, %148, %cst_73 {dimension_numbers = #tpu.dot_dimension_numbers<[1], [0], [0], [1], [0, 0, 1, 1], [], []>} : vector<256x64xbf16>, vector<64x128xbf16>, vector<256x128xf32> -> vector<256x128xf32>
    %150 = arith.addf %144, %149 : vector<256x128xf32>
    %151 = vector.extract_strided_slice %125 {offsets = [17, 0], sizes = [256, 64], strides = [1, 1]} : vector<304x64xf32> to vector<256x64xf32>
    %152 = arith.truncf %151 : vector<256x64xf32> to vector<256x64xbf16>
    %c4_74 = arith.constant 4 : index
    %c0_75 = arith.constant 0 : index
    %c0_76 = arith.constant 0 : index
    %153 = vector.load %arg4[%c4_74, %c0_75, %c0_76] : memref<9x64x128xbf16, #tpu.memory_space<vmem>>, vector<1x64x128xbf16>
    %154 = vector.shape_cast %153 : vector<1x64x128xbf16> to vector<64x128xbf16>
    %cst_77 = arith.constant dense<0.000000e+00> : vector<256x128xf32>
    %155 = tpu.matmul %152, %154, %cst_77 {dimension_numbers = #tpu.dot_dimension_numbers<[1], [0], [0], [1], [0, 0, 1, 1], [], []>} : vector<256x64xbf16>, vector<64x128xbf16>, vector<256x128xf32> -> vector<256x128xf32>
    %156 = arith.addf %150, %155 : vector<256x128xf32>
    %157 = vector.extract_strided_slice %125 {offsets = [18, 0], sizes = [256, 64], strides = [1, 1]} : vector<304x64xf32> to vector<256x64xf32>
    %158 = arith.truncf %157 : vector<256x64xf32> to vector<256x64xbf16>
    %c5_78 = arith.constant 5 : index
    %c0_79 = arith.constant 0 : index
    %c0_80 = arith.constant 0 : index
    %159 = vector.load %arg4[%c5_78, %c0_79, %c0_80] : memref<9x64x128xbf16, #tpu.memory_space<vmem>>, vector<1x64x128xbf16>
    %160 = vector.shape_cast %159 : vector<1x64x128xbf16> to vector<64x128xbf16>
    %cst_81 = arith.constant dense<0.000000e+00> : vector<256x128xf32>
    %161 = tpu.matmul %158, %160, %cst_81 {dimension_numbers = #tpu.dot_dimension_numbers<[1], [0], [0], [1], [0, 0, 1, 1], [], []>} : vector<256x64xbf16>, vector<64x128xbf16>, vector<256x128xf32> -> vector<256x128xf32>
    %162 = arith.addf %156, %161 : vector<256x128xf32>
    %163 = vector.extract_strided_slice %125 {offsets = [32, 0], sizes = [256, 64], strides = [1, 1]} : vector<304x64xf32> to vector<256x64xf32>
    %164 = arith.truncf %163 : vector<256x64xf32> to vector<256x64xbf16>
    %c6_82 = arith.constant 6 : index
    %c0_83 = arith.constant 0 : index
    %c0_84 = arith.constant 0 : index
    %165 = vector.load %arg4[%c6_82, %c0_83, %c0_84] : memref<9x64x128xbf16, #tpu.memory_space<vmem>>, vector<1x64x128xbf16>
    %166 = vector.shape_cast %165 : vector<1x64x128xbf16> to vector<64x128xbf16>
    %cst_85 = arith.constant dense<0.000000e+00> : vector<256x128xf32>
    %167 = tpu.matmul %164, %166, %cst_85 {dimension_numbers = #tpu.dot_dimension_numbers<[1], [0], [0], [1], [0, 0, 1, 1], [], []>} : vector<256x64xbf16>, vector<64x128xbf16>, vector<256x128xf32> -> vector<256x128xf32>
    %168 = arith.addf %162, %167 : vector<256x128xf32>
    %169 = vector.extract_strided_slice %125 {offsets = [33, 0], sizes = [256, 64], strides = [1, 1]} : vector<304x64xf32> to vector<256x64xf32>
    %170 = arith.truncf %169 : vector<256x64xf32> to vector<256x64xbf16>
    %c7_86 = arith.constant 7 : index
    %c0_87 = arith.constant 0 : index
    %c0_88 = arith.constant 0 : index
    %171 = vector.load %arg4[%c7_86, %c0_87, %c0_88] : memref<9x64x128xbf16, #tpu.memory_space<vmem>>, vector<1x64x128xbf16>
    %172 = vector.shape_cast %171 : vector<1x64x128xbf16> to vector<64x128xbf16>
    %cst_89 = arith.constant dense<0.000000e+00> : vector<256x128xf32>
    %173 = tpu.matmul %170, %172, %cst_89 {dimension_numbers = #tpu.dot_dimension_numbers<[1], [0], [0], [1], [0, 0, 1, 1], [], []>} : vector<256x64xbf16>, vector<64x128xbf16>, vector<256x128xf32> -> vector<256x128xf32>
    %174 = arith.addf %168, %173 : vector<256x128xf32>
    %175 = vector.extract_strided_slice %125 {offsets = [34, 0], sizes = [256, 64], strides = [1, 1]} : vector<304x64xf32> to vector<256x64xf32>
    %176 = arith.truncf %175 : vector<256x64xf32> to vector<256x64xbf16>
    %c8_90 = arith.constant 8 : index
    %c0_91 = arith.constant 0 : index
    %c0_92 = arith.constant 0 : index
    %177 = vector.load %arg4[%c8_90, %c0_91, %c0_92] : memref<9x64x128xbf16, #tpu.memory_space<vmem>>, vector<1x64x128xbf16>
    %178 = vector.shape_cast %177 : vector<1x64x128xbf16> to vector<64x128xbf16>
    %cst_93 = arith.constant dense<0.000000e+00> : vector<256x128xf32>
    %179 = tpu.matmul %176, %178, %cst_93 {dimension_numbers = #tpu.dot_dimension_numbers<[1], [0], [0], [1], [0, 0, 1, 1], [], []>} : vector<256x64xbf16>, vector<64x128xbf16>, vector<256x128xf32> -> vector<256x128xf32>
    %180 = arith.addf %174, %179 : vector<256x128xf32>
    %c0_94 = arith.constant 0 : index
    %c0_95 = arith.constant 0 : index
    %181 = vector.load %arg8[%c0_94, %c0_95] : memref<1x128xf32, #tpu.memory_space<vmem>>, vector<1x128xf32>
    %182 = vector.broadcast %181 : vector<1x128xf32> to vector<256x128xf32>
    %183 = arith.addf %180, %182 : vector<256x128xf32>
    %cst_96 = arith.constant 0.000000e+00 : f32
    %184 = vector.broadcast %cst_96 : f32 to vector<256x128xf32>
    %185 = arith.maximumf %183, %184 : vector<256x128xf32>
    %cst_97 = arith.constant 0.000000e+00 : f32
    %186 = vector.broadcast %cst_97 : f32 to vector<48x128xf32>
    %187 = tpu.concatenate %185, %186 in 0 : vector<256x128xf32>, vector<48x128xf32> -> vector<304x128xf32>
    %cst_98 = arith.constant 0.000000e+00 : f32
    %188 = vector.broadcast %cst_98 : f32 to vector<256x256xf32>
    %189 = vector.extract_strided_slice %187 {offsets = [0, 0], sizes = [256, 128], strides = [1, 1]} : vector<304x128xf32> to vector<256x128xf32>
    %190 = arith.truncf %189 : vector<256x128xf32> to vector<256x128xbf16>
    %c0_99 = arith.constant 0 : index
    %c0_100 = arith.constant 0 : index
    %c0_101 = arith.constant 0 : index
    %191 = vector.load %arg5[%c0_99, %c0_100, %c0_101] : memref<9x128x256xbf16, #tpu.memory_space<vmem>>, vector<1x128x256xbf16>
    %192 = vector.shape_cast %191 : vector<1x128x256xbf16> to vector<128x256xbf16>
    %cst_102 = arith.constant dense<0.000000e+00> : vector<256x256xf32>
    %193 = tpu.matmul %190, %192, %cst_102 {dimension_numbers = #tpu.dot_dimension_numbers<[1], [0], [0], [1], [0, 0, 1, 1], [], []>} : vector<256x128xbf16>, vector<128x256xbf16>, vector<256x256xf32> -> vector<256x256xf32>
    %194 = arith.addf %188, %193 : vector<256x256xf32>
    %195 = vector.extract_strided_slice %187 {offsets = [1, 0], sizes = [256, 128], strides = [1, 1]} : vector<304x128xf32> to vector<256x128xf32>
    %196 = arith.truncf %195 : vector<256x128xf32> to vector<256x128xbf16>
    %c1_103 = arith.constant 1 : index
    %c0_104 = arith.constant 0 : index
    %c0_105 = arith.constant 0 : index
    %197 = vector.load %arg5[%c1_103, %c0_104, %c0_105] : memref<9x128x256xbf16, #tpu.memory_space<vmem>>, vector<1x128x256xbf16>
    %198 = vector.shape_cast %197 : vector<1x128x256xbf16> to vector<128x256xbf16>
    %cst_106 = arith.constant dense<0.000000e+00> : vector<256x256xf32>
    %199 = tpu.matmul %196, %198, %cst_106 {dimension_numbers = #tpu.dot_dimension_numbers<[1], [0], [0], [1], [0, 0, 1, 1], [], []>} : vector<256x128xbf16>, vector<128x256xbf16>, vector<256x256xf32> -> vector<256x256xf32>
    %200 = arith.addf %194, %199 : vector<256x256xf32>
    %201 = vector.extract_strided_slice %187 {offsets = [2, 0], sizes = [256, 128], strides = [1, 1]} : vector<304x128xf32> to vector<256x128xf32>
    %202 = arith.truncf %201 : vector<256x128xf32> to vector<256x128xbf16>
    %c2_107 = arith.constant 2 : index
    %c0_108 = arith.constant 0 : index
    %c0_109 = arith.constant 0 : index
    %203 = vector.load %arg5[%c2_107, %c0_108, %c0_109] : memref<9x128x256xbf16, #tpu.memory_space<vmem>>, vector<1x128x256xbf16>
    %204 = vector.shape_cast %203 : vector<1x128x256xbf16> to vector<128x256xbf16>
    %cst_110 = arith.constant dense<0.000000e+00> : vector<256x256xf32>
    %205 = tpu.matmul %202, %204, %cst_110 {dimension_numbers = #tpu.dot_dimension_numbers<[1], [0], [0], [1], [0, 0, 1, 1], [], []>} : vector<256x128xbf16>, vector<128x256xbf16>, vector<256x256xf32> -> vector<256x256xf32>
    %206 = arith.addf %200, %205 : vector<256x256xf32>
    %207 = vector.extract_strided_slice %187 {offsets = [16, 0], sizes = [256, 128], strides = [1, 1]} : vector<304x128xf32> to vector<256x128xf32>
    %208 = arith.truncf %207 : vector<256x128xf32> to vector<256x128xbf16>
    %c3_111 = arith.constant 3 : index
    %c0_112 = arith.constant 0 : index
    %c0_113 = arith.constant 0 : index
    %209 = vector.load %arg5[%c3_111, %c0_112, %c0_113] : memref<9x128x256xbf16, #tpu.memory_space<vmem>>, vector<1x128x256xbf16>
    %210 = vector.shape_cast %209 : vector<1x128x256xbf16> to vector<128x256xbf16>
    %cst_114 = arith.constant dense<0.000000e+00> : vector<256x256xf32>
    %211 = tpu.matmul %208, %210, %cst_114 {dimension_numbers = #tpu.dot_dimension_numbers<[1], [0], [0], [1], [0, 0, 1, 1], [], []>} : vector<256x128xbf16>, vector<128x256xbf16>, vector<256x256xf32> -> vector<256x256xf32>
    %212 = arith.addf %206, %211 : vector<256x256xf32>
    %213 = vector.extract_strided_slice %187 {offsets = [17, 0], sizes = [256, 128], strides = [1, 1]} : vector<304x128xf32> to vector<256x128xf32>
    %214 = arith.truncf %213 : vector<256x128xf32> to vector<256x128xbf16>
    %c4_115 = arith.constant 4 : index
    %c0_116 = arith.constant 0 : index
    %c0_117 = arith.constant 0 : index
    %215 = vector.load %arg5[%c4_115, %c0_116, %c0_117] : memref<9x128x256xbf16, #tpu.memory_space<vmem>>, vector<1x128x256xbf16>
    %216 = vector.shape_cast %215 : vector<1x128x256xbf16> to vector<128x256xbf16>
    %cst_118 = arith.constant dense<0.000000e+00> : vector<256x256xf32>
    %217 = tpu.matmul %214, %216, %cst_118 {dimension_numbers = #tpu.dot_dimension_numbers<[1], [0], [0], [1], [0, 0, 1, 1], [], []>} : vector<256x128xbf16>, vector<128x256xbf16>, vector<256x256xf32> -> vector<256x256xf32>
    %218 = arith.addf %212, %217 : vector<256x256xf32>
    %219 = vector.extract_strided_slice %187 {offsets = [18, 0], sizes = [256, 128], strides = [1, 1]} : vector<304x128xf32> to vector<256x128xf32>
    %220 = arith.truncf %219 : vector<256x128xf32> to vector<256x128xbf16>
    %c5_119 = arith.constant 5 : index
    %c0_120 = arith.constant 0 : index
    %c0_121 = arith.constant 0 : index
    %221 = vector.load %arg5[%c5_119, %c0_120, %c0_121] : memref<9x128x256xbf16, #tpu.memory_space<vmem>>, vector<1x128x256xbf16>
    %222 = vector.shape_cast %221 : vector<1x128x256xbf16> to vector<128x256xbf16>
    %cst_122 = arith.constant dense<0.000000e+00> : vector<256x256xf32>
    %223 = tpu.matmul %220, %222, %cst_122 {dimension_numbers = #tpu.dot_dimension_numbers<[1], [0], [0], [1], [0, 0, 1, 1], [], []>} : vector<256x128xbf16>, vector<128x256xbf16>, vector<256x256xf32> -> vector<256x256xf32>
    %224 = arith.addf %218, %223 : vector<256x256xf32>
    %225 = vector.extract_strided_slice %187 {offsets = [32, 0], sizes = [256, 128], strides = [1, 1]} : vector<304x128xf32> to vector<256x128xf32>
    %226 = arith.truncf %225 : vector<256x128xf32> to vector<256x128xbf16>
    %c6_123 = arith.constant 6 : index
    %c0_124 = arith.constant 0 : index
    %c0_125 = arith.constant 0 : index
    %227 = vector.load %arg5[%c6_123, %c0_124, %c0_125] : memref<9x128x256xbf16, #tpu.memory_space<vmem>>, vector<1x128x256xbf16>
    %228 = vector.shape_cast %227 : vector<1x128x256xbf16> to vector<128x256xbf16>
    %cst_126 = arith.constant dense<0.000000e+00> : vector<256x256xf32>
    %229 = tpu.matmul %226, %228, %cst_126 {dimension_numbers = #tpu.dot_dimension_numbers<[1], [0], [0], [1], [0, 0, 1, 1], [], []>} : vector<256x128xbf16>, vector<128x256xbf16>, vector<256x256xf32> -> vector<256x256xf32>
    %230 = arith.addf %224, %229 : vector<256x256xf32>
    %231 = vector.extract_strided_slice %187 {offsets = [33, 0], sizes = [256, 128], strides = [1, 1]} : vector<304x128xf32> to vector<256x128xf32>
    %232 = arith.truncf %231 : vector<256x128xf32> to vector<256x128xbf16>
    %c7_127 = arith.constant 7 : index
    %c0_128 = arith.constant 0 : index
    %c0_129 = arith.constant 0 : index
    %233 = vector.load %arg5[%c7_127, %c0_128, %c0_129] : memref<9x128x256xbf16, #tpu.memory_space<vmem>>, vector<1x128x256xbf16>
    %234 = vector.shape_cast %233 : vector<1x128x256xbf16> to vector<128x256xbf16>
    %cst_130 = arith.constant dense<0.000000e+00> : vector<256x256xf32>
    %235 = tpu.matmul %232, %234, %cst_130 {dimension_numbers = #tpu.dot_dimension_numbers<[1], [0], [0], [1], [0, 0, 1, 1], [], []>} : vector<256x128xbf16>, vector<128x256xbf16>, vector<256x256xf32> -> vector<256x256xf32>
    %236 = arith.addf %230, %235 : vector<256x256xf32>
    %237 = vector.extract_strided_slice %187 {offsets = [34, 0], sizes = [256, 128], strides = [1, 1]} : vector<304x128xf32> to vector<256x128xf32>
    %238 = arith.truncf %237 : vector<256x128xf32> to vector<256x128xbf16>
    %c8_131 = arith.constant 8 : index
    %c0_132 = arith.constant 0 : index
    %c0_133 = arith.constant 0 : index
    %239 = vector.load %arg5[%c8_131, %c0_132, %c0_133] : memref<9x128x256xbf16, #tpu.memory_space<vmem>>, vector<1x128x256xbf16>
    %240 = vector.shape_cast %239 : vector<1x128x256xbf16> to vector<128x256xbf16>
    %cst_134 = arith.constant dense<0.000000e+00> : vector<256x256xf32>
    %241 = tpu.matmul %238, %240, %cst_134 {dimension_numbers = #tpu.dot_dimension_numbers<[1], [0], [0], [1], [0, 0, 1, 1], [], []>} : vector<256x128xbf16>, vector<128x256xbf16>, vector<256x256xf32> -> vector<256x256xf32>
    %242 = arith.addf %236, %241 : vector<256x256xf32>
    %c0_135 = arith.constant 0 : index
    %c0_136 = arith.constant 0 : index
    %243 = vector.load %arg9[%c0_135, %c0_136] : memref<1x256xf32, #tpu.memory_space<vmem>>, vector<1x256xf32>
    %244 = vector.broadcast %243 : vector<1x256xf32> to vector<256x256xf32>
    %245 = arith.addf %242, %244 : vector<256x256xf32>
    %cst_137 = arith.constant 0.000000e+00 : f32
    %246 = vector.broadcast %cst_137 : f32 to vector<256x256xf32>
    %247 = arith.maximumf %245, %246 : vector<256x256xf32>
    %c0_138 = arith.constant 0 : index
    %c0_139 = arith.constant 0 : index
    %c0_140 = arith.constant 0 : index
    %248 = vector.load %arg10[%c0_138, %c0_139, %c0_140] : memref<1x256x256xf32, #tpu.memory_space<vmem>>, vector<1x256x256xf32>
    %249 = vector.shape_cast %248 : vector<1x256x256xf32> to vector<256x256xf32>
    %250 = vector.shape_cast %247 : vector<256x256xf32> to vector<1x256x256xf32>
    tpu.vector_store %arg10[%c0_138, %c0_139, %c0_140], %250 {strides = array<i32>} : memref<1x256x256xf32, #tpu.memory_space<vmem>>, vector<1x256x256xf32>,
    return
  }
  func.func @transform_0(%arg0: i32) -> (i32, i32, i32) {
    %c0_i32 = arith.constant 0 : i32
    %c0_i32_0 = arith.constant 0 : i32
    %c0_i32_1 = arith.constant 0 : i32
    return %arg0, %c0_i32, %c0_i32_0 : i32, i32, i32
  }
  func.func @transform_1(%arg0: i32) -> (i32, i32) {
    %c0_i32 = arith.constant 0 : i32
    %c0_i32_0 = arith.constant 0 : i32
    %c0_i32_1 = arith.constant 0 : i32
    return %c0_i32, %c0_i32_0 : i32, i32
  }
  func.func @transform_2(%arg0: i32) -> (i32, i32, i32) {
    %c0_i32 = arith.constant 0 : i32
    %c0_i32_0 = arith.constant 0 : i32
    %c0_i32_1 = arith.constant 0 : i32
    %c0_i32_2 = arith.constant 0 : i32
    return %c0_i32, %c0_i32_0, %c0_i32_1 : i32, i32, i32
  }
  func.func @transform_3(%arg0: i32) -> (i32, i32, i32) {
    %c0_i32 = arith.constant 0 : i32
    %c0_i32_0 = arith.constant 0 : i32
    %c0_i32_1 = arith.constant 0 : i32
    %c0_i32_2 = arith.constant 0 : i32
    return %c0_i32, %c0_i32_0, %c0_i32_1 : i32, i32, i32
  }
  func.func @transform_4(%arg0: i32) -> (i32, i32, i32) {
    %c0_i32 = arith.constant 0 : i32
    %c0_i32_0 = arith.constant 0 : i32
    %c0_i32_1 = arith.constant 0 : i32
    %c0_i32_2 = arith.constant 0 : i32
    return %c0_i32, %c0_i32_0, %c0_i32_1 : i32, i32, i32
  }
  func.func @transform_5(%arg0: i32) -> (i32, i32) {
    %c0_i32 = arith.constant 0 : i32
    %c0_i32_0 = arith.constant 0 : i32
    %c0_i32_1 = arith.constant 0 : i32
    return %c0_i32, %c0_i32_0 : i32, i32
  }
  func.func @transform_6(%arg0: i32) -> (i32, i32) {
    %c0_i32 = arith.constant 0 : i32
    %c0_i32_0 = arith.constant 0 : i32
    %c0_i32_1 = arith.constant 0 : i32
    return %c0_i32, %c0_i32_0 : i32, i32
  }
  func.func @transform_7(%arg0: i32) -> (i32, i32) {
    %c0_i32 = arith.constant 0 : i32
    %c0_i32_0 = arith.constant 0 : i32
    %c0_i32_1 = arith.constant 0 : i32
    return %c0_i32, %c0_i32_0 : i32, i32
  }
  func.func @transform_8(%arg0: i32) -> (i32, i32) {
    %c0_i32 = arith.constant 0 : i32
    %c0_i32_0 = arith.constant 0 : i32
    %c0_i32_1 = arith.constant 0 : i32
    return %c0_i32, %c0_i32_0 : i32, i32
  }
  func.func @transform_9(%arg0: i32) -> (i32, i32, i32) {
    %c0_i32 = arith.constant 0 : i32
    %c0_i32_0 = arith.constant 0 : i32
    %c0_i32_1 = arith.constant 0 : i32
    return %arg0, %c0_i32, %c0_i32_0 : i32, i32, i32
  }
}

</mosaic_0001>

<bundles_post_ra>
// kernel: testnet_forward.1
= control target key start
LH: loop header
LB: loop body
LE: loop exit
PB: predicated region body
PF: predicated region fallthrough
CT: control target
= control target key end

     0   :  { %s13315_s30 = smov 0   ;;  %s17875_s0 = inlined_call_operand.vmem [shape: f32[2,304,1], index: 0, kind: input, shape index: {}]   ;;  %s17876_s1 = inlined_call_operand.vmem [shape: f32[9,32], index: 1, kind: input, shape index: {}]   ;;  %s17877_s2 = inlined_call_operand.vmem [shape: bf16[9,32,64], index: 2, kind: input, shape index: {}]   ;;  %s17878_s3 = inlined_call_operand.vmem [shape: bf16[9,64,128], index: 3, kind: input, shape index: {}]   ;;  %s17879_s4 = inlined_call_operand.vmem [shape: bf16[9,128,256], index: 4, kind: input, shape index: {}]   ;;  %s17880_s5 = inlined_call_operand.vmem [shape: f32[1,32], index: 5, kind: input, shape index: {}]   ;;  %s17881_s6 = inlined_call_operand.vmem [shape: f32[1,64], index: 6, kind: input, shape index: {}]   ;;  %s17882_s7 = inlined_call_operand.vmem [shape: f32[1,128], index: 7, kind: input, shape index: {}]   ;;  %s17883_s8 = inlined_call_operand.vmem [shape: f32[1,256], index: 8, kind: input, shape index: {}]   ;;  %s17884_s9 = inlined_call_operand.vmem [shape: f32[2,256,256], index: 9, kind: output, shape index: {}]  }
   0x1 LB: > { %s10184_s10 = sadd.s32 4294967295, %s13261_s30   ;;  %p10188_p0 = scmp.ge.s32.totalorder %s13261_s30, 1  ;;  %s13261_s30 = sphi %s13315_s30, %s19_s30  }
   0x2   : > { %p287_p1 = scmp.lt.s32.totalorder %s13261_s30, 3 }
   0x4   : > { %p288_p2 = pnand %p10188_p0, %p287_p1 }
   0x6   : > { %291 = sbr.rel (%p288_p2) target bundleno = 2699 (0xa8b), region = 56 }
   0xd   : > { %p323_p3 = scmp.lt.s32.totalorder %s10184_s10, 1  ;;  %v17885_v0 = vmov 0   ;;  %v12974_v33 = vld [vmem:[%s17877_s2] sm:$0xff]   ;;  %v12975_v38 = vld [vmem:[%s17877_s2 + $0x8] sm:$0xff]   ;;  %v12977_v41 = vld [vmem:[%s17877_s2 + $0x10] sm:$0xff]   ;;  %vm877_vm0 = vcmask 1045504  }
   0xe   : > { %12973 = vset.pattern.permute.xlu1 %v17885_v0  ;;  %12972 = vset.pattern.permute.xlu0 %v17885_v0  ;;  %v13379_v40 = vld [vmem:[%s17877_s2 + $0x20] sm:$0xff]   ;;  %v12978_v44 = vld [vmem:[%s17877_s2 + $0x18] sm:$0xff]   ;;  %vm676_vm1 = vcmask 1046528   ;;  %vm2207_vm2 = vcmask 261120   ;;  %vm2062_vm3 = vsmask.f32 7424 }
   0xf   : > { %s18617_s10 = smov (!%p323_p3, %s10184_s10), 1  ;;  %11289 = vmatprep.subr.bf16.mxu0 %v12974_v33  ;;  %18035 = vst [vmem:[#allocation2_spill] sm:$0xff] %v13379_v40  ;;  %11253 = vmatprep.subr.bf16.mxu1 %v12977_v41  ;;  %v13391_v45 = vld [vmem:[%s17876_s1 + $0x4] ss:$0 sm:$0xff]  ;;  %v13396_v46 = vld [vmem:[%s17876_s1 + $0x5] ss:$0 sm:$0xff] }
  0x10   : > { %s12961_s11 = smul.u32 304, %s18617_s10  ;;  %11290 = vmatpush3.bf16.msra.mxu0 %v12974_v33  ;;  %11254 = vmatpush3.bf16.msra.mxu1 %v12977_v41  ;;  %v13401_v47 = vld [vmem:[%s17876_s1 + $0x1] ss:$0 sm:$0xff]  ;;  %v13406_v48 = vld [vmem:[%s17876_s1 + $0x2] ss:$0 sm:$0xff]  ;;  %vm4460_vm4 = vcmask 523264  }
  0x11   : > { %11291 = vmatprep.subr.bf16.mxu0 %v12975_v38  ;;  %11255 = vmatprep.subr.bf16.mxu1 %v12978_v44  ;;  %v13411_v49 = vld [vmem:[%s17876_s1 + $0x3] ss:$0 sm:$0xff]  ;;  %v13418_v52 = vld [vmem:[%s17876_s1] ss:$0 sm:$0xff]  ;;  %s10910_s22 = sshll.u32 %s18617_s10, 9 }
  0x12   : > { %s13331_s14 = scalar_lea.vmem %s17875_s0, %s12961_s11  ;;  %s17682_s25 = scalar_lea.vmem %s17884_s9, %s10910_s22 }
  0x13   : > { %v336_v1 = vld [vmem:[%s13331_s14 + $0x10] sm:$0xff]  ;;  %v334_v2 = vld [vmem:[%s13331_s14] sm:$0xff]  ;;  %v337_v3 = vld [vmem:[%s13331_s14 + $0x18] sm:$0xff] }
  0x14   : > { %384 = vperm.xlu1 %12973, %v336_v1   ;;  %374 = vperm.xlu0 %12972, %v334_v2   ;;  %v335_v4 = vld [vmem:[%s13331_s14 + $0x8] sm:$0xff]  ;;  %v338_v6 = vld [vmem:[%s13331_s14 + $0x20] sm:$0xff]  ;;  %v341_v7 = vld [vmem:[%s13331_s14 + $0x38] sm:$0xff] }
  0x15   : > { %v339_v5 = vld [vmem:[%s13331_s14 + $0x28] sm:$0xff]  ;;  %v340_v8 = vld [vmem:[%s13331_s14 + $0x30] sm:$0xff]  ;;  %v342_v10 = vld [vmem:[%s13331_s14 + $0x40] sm:$0xff]  ;;  %11292 = vmatpush3.bf16.msra.mxu0 %v12975_v38  ;;  %11256 = vmatpush3.bf16.msra.mxu1 %v12978_v44 }
  0x16   : > { %v343_v9 = vld [vmem:[%s13331_s14 + $0x48] sm:$0xff]  ;;  %v345_v11 = vld [vmem:[%s13331_s14 + $0x58] sm:$0xff]  ;;  %v344_v12 = vld [vmem:[%s13331_s14 + $0x50] sm:$0xff]  ;;  %11325 = vmatprep.subr.bf16.mxu0 %v13379_v40 }
  0x17   : > { %v347_v13 = vld [vmem:[%s13331_s14 + $0x68] sm:$0xff]  ;;  %v346_v14 = vld [vmem:[%s13331_s14 + $0x60] sm:$0xff]  ;;  %v349_v15 = vld [vmem:[%s13331_s14 + $0x78] sm:$0xff] }
  0x18   : > { %389 = vperm.xlu1 %12973, %v337_v3   ;;  %379 = vperm.xlu0 %12972, %v335_v4   ;;  %v348_v16 = vld [vmem:[%s13331_s14 + $0x70] sm:$0xff]  ;;  %v351_v17 = vld [vmem:[%s13331_s14 + $0x88] sm:$0xff]  ;;  %v350_v18 = vld [vmem:[%s13331_s14 + $0x80] sm:$0xff] }
  0x19   : > { %v353_v19 = vld [vmem:[%s13331_s14 + $0x98] sm:$0xff]  ;;  %v352_v20 = vld [vmem:[%s13331_s14 + $0x90] sm:$0xff]  ;;  %v355_v21 = vld [vmem:[%s13331_s14 + $0xa8] sm:$0xff] }
  0x1a   : > { %v354_v22 = vld [vmem:[%s13331_s14 + $0xa0] sm:$0xff]  ;;  %v357_v23 = vld [vmem:[%s13331_s14 + $0xb8] sm:$0xff]  ;;  %v356_v24 = vld [vmem:[%s13331_s14 + $0xb0] sm:$0xff] }
  0x1b   : > { %v359_v25 = vld [vmem:[%s13331_s14 + $0xc8] sm:$0xff]  ;;  %v358_v26 = vld [vmem:[%s13331_s14 + $0xc0] sm:$0xff]  ;;  %v361_v27 = vld [vmem:[%s13331_s14 + $0xd8] sm:$0xff] }
  0x1c   : > { %399 = vperm.xlu1 %12973, %v339_v5   ;;  %394 = vperm.xlu0 %12972, %v338_v6   ;;  %v360_v28 = vld [vmem:[%s13331_s14 + $0xd0] sm:$0xff]  ;;  %v363_v29 = vld [vmem:[%s13331_s14 + $0xe8] sm:$0xff]  ;;  %v362_v30 = vld [vmem:[%s13331_s14 + $0xe0] sm:$0xff] }
  0x1d   : > { %v365_v31 = vld [vmem:[%s13331_s14 + $0xf8] sm:$0xff]  ;;  %v364_v32 = vld [vmem:[%s13331_s14 + $0xf0] sm:$0xff]  ;;  %v367_v34 = vld [vmem:[%s13331_s14 + $0x108] sm:$0xff] }
  0x1e   : > { %v366_v35 = vld [vmem:[%s13331_s14 + $0x100] sm:$0xff]  ;;  %v369_v36 = vld [vmem:[%s13331_s14 + $0x118] sm:$0xff]  ;;  %v368_v37 = vld [vmem:[%s13331_s14 + $0x110] sm:$0xff] }
  0x1f   : > { %v370_v39 = vld [vmem:[%s13331_s14 + $0x120] sm:$0xff] }
  0x20   : > { %409 = vperm.xlu1 %12973, %v341_v7   ;;  %404 = vperm.xlu0 %12972, %v340_v8  }
  0x24   : > { %419 = vperm.xlu1 %12973, %v343_v9   ;;  %414 = vperm.xlu0 %12972, %v342_v10  }
  0x28   : > { %429 = vperm.xlu1 %12973, %v345_v11   ;;  %424 = vperm.xlu0 %12972, %v344_v12  }
  0x2c   : > { %439 = vperm.xlu1 %12973, %v347_v13   ;;  %434 = vperm.xlu0 %12972, %v346_v14  }
  0x30   : > { %449 = vperm.xlu1 %12973, %v349_v15   ;;  %444 = vperm.xlu0 %12972, %v348_v16  }
  0x34   : > { %459 = vperm.xlu1 %12973, %v351_v17   ;;  %454 = vperm.xlu0 %12972, %v350_v18  }
  0x38   : > { %469 = vperm.xlu1 %12973, %v353_v19   ;;  %464 = vperm.xlu0 %12972, %v352_v20  }
  0x3c   : > { %479 = vperm.xlu1 %12973, %v355_v21   ;;  %474 = vperm.xlu0 %12972, %v354_v22  }
  0x40   : > { %489 = vperm.xlu1 %12973, %v357_v23   ;;  %484 = vperm.xlu0 %12972, %v356_v24  }
  0x44   : > { %499 = vperm.xlu1 %12973, %v359_v25   ;;  %494 = vperm.xlu0 %12972, %v358_v26  }
  0x48   : > { %509 = vperm.xlu1 %12973, %v361_v27   ;;  %504 = vperm.xlu0 %12972, %v360_v28  }
  0x4c   : > { %519 = vperm.xlu1 %12973, %v363_v29   ;;  %514 = vperm.xlu0 %12972, %v362_v30  }
  0x50   : > { %529 = vperm.xlu1 %12973, %v365_v31   ;;  %524 = vperm.xlu0 %12972, %v364_v32  }
  0x54   : > { %1010 = vperm.xlu1 %12973, %v367_v34   ;;  %603 = vperm.xlu0 %12972, %v366_v35  }
  0x58   : > { %1489 = vperm.xlu1 %12973, %v369_v36   ;;  %1084 = vperm.xlu0 %12972, %v368_v37  }
  0x5c   : > { %1563 = vperm.xlu0 %12972, %v370_v39  }
  0x93   : > { %v385_v42 = vpop.permute.xlu1 %384  ;;  %v375_v43 = vpop.permute.xlu0 %374 }
  0x94   : > { %v813_v50 = vmul.f32 %v13406_v48, %v385_v42  ;;  %v612_v51 = vmul.f32 %v13401_v47, %v385_v42  ;;  %v1091_v53 = vmul.f32 %v13391_v45, %v385_v42  ;;  %v1291_v54 = vmul.f32 %v13396_v46, %v385_v42 }
  0x95   : > { %v610_v55 = vmul.f32 %v13401_v47, %v375_v43  ;;  %v538_v58 = vmul.f32 %v13418_v52, %v385_v42  ;;  %v811_v59 = vmul.f32 %v13406_v48, %v375_v43  ;;  %v1017_v62 = vmul.f32 %v13411_v49, %v385_v42 }
  0x96   : > { %v680_v2 = vrot.slane %v612_v51, 1  ;;  %v881_v3 = vrot.slane %v813_v50, 2  ;;  %v536_v4 = vmul.f32 %v13418_v52, %v375_v43  ;;  %v1157_v7 = vrot.slane %v1091_v53, 1 }
  0x97   : > { %v390_v56 = vpop.permute.xlu1 %389  ;;  %v380_v57 = vpop.permute.xlu0 %379  ;;  %v1357_v8 = vrot.slane %v1291_v54, 2  ;;  %v677_v9 = vrot.slane %v610_v55, 1  ;;  %v878_v12 = vrot.slane %v811_v59, 2 }
  0x98   : > { %v13426_v60 = vmul.f32 %v13401_v47, %v390_v56  ;;  %v13429_v61 = vmul.f32 %v13406_v48, %v390_v56  ;;  %v13433_v63 = vmul.f32 %v13391_v45, %v390_v56  ;;  %v13436_v1 = vmul.f32 %v13396_v46, %v390_v56 }
  0x99   : > { %v611_v6 = vmul.f32 %v13401_v47, %v380_v57  ;;  %v812_v10 = vmul.f32 %v13406_v48, %v380_v57  ;;  %v537_v18 = vmul.f32 %v13418_v52, %v380_v57  ;;  %v13450_v20 = vmul.f32 %v13418_v52, %v390_v56 }
  0x9a   : > { %v682_v5 = vrot.slane %v13426_v60, 1  ;;  %v17888_v13 = vrot.slane %v13429_v61, 2  ;;  %v17891_v16 = vrot.slane %v13433_v63, 1  ;;  %v17890_v17 = vrot.slane %v13436_v1, 2 }
  0x9b   : > { %v13442_v11 = vpop.permute.xlu1 %399  ;;  %v678_v15 = vrot.slane %v611_v6, 1  ;;  %v879_v19 = vrot.slane %v812_v10, 2  ;;  %v1018_v25 = vmul.f32 %v13411_v49, %v390_v56  ;;  %v13459_v28 = vpop.permute.xlu0 %394 }
  0x9c   : > { %v683_v14 = vsel %vm676_vm1, %v680_v2, %v682_v5  ;;  %v13456_v23 = vmul.f32 %v13401_v47, %v13442_v11  ;;  %v884_v29 = vsel %vm877_vm0, %v881_v3, %v17888_v13  ;;  %v13468_v32 = vmul.f32 %v13406_v48, %v13442_v11 }
  0x9d   : > { %v679_v21 = vsel %vm676_vm1, %v677_v9, %v678_v15  ;;  %v681_v22 = vsel %vm676_vm1, %v678_v15, %v680_v2  ;;  %v776_v24 = vadd.f32 %v683_v14, %v538_v58  ;;  %v880_v30 = vsel %vm877_vm0, %v878_v12, %v879_v19 }
  0x9e   : > { %v774_v26 = vadd.f32 %v679_v21, %v536_v4  ;;  %v775_v27 = vadd.f32 %v681_v22, %v537_v18  ;;  %v882_v31 = vsel %vm877_vm0, %v879_v19, %v881_v3  ;;  %v1159_v33 = vsel %vm676_vm1, %v1157_v7, %v17891_v16 }
  0x9f   : > { %v1359_v34 = vsel %vm877_vm0, %v1357_v8, %v17890_v17  ;;  %v686_v37 = vrot.slane %v13456_v23, 1  ;;  %v13479_v38 = vmul.f32 %v13391_v45, %v13442_v11  ;;  %v614_v39 = vmul.f32 %v13401_v47, %v13459_v28  ;;  %v13487_v42 = vpop.permute.xlu1 %409  ;;  %v13525_v6 = vpop.permute.xlu0 %404 }
  0xa0   : > { %v975_v35 = vadd.f32 %v880_v30, %v774_v26  ;;  %v976_v36 = vadd.f32 %v882_v31, %v775_v27  ;;  %v13485_v41 = vmul.f32 %v13406_v48, %v13459_v28  ;;  %v13489_v43 = vadd.f32 %v884_v29, %v776_v24 }
  0xa1   : > { %v541_v50 = vmul.f32 %v13418_v52, %v13442_v11  ;;  %v13495_v51 = vmul.f32 %v13396_v46, %v13442_v11  ;;  %v887_v53 = vrot.slane %v13468_v32, 2  ;;  %v13500_v54 = vmul.f32 %v13411_v49, %v13442_v11 }
  0xa2   : > { %v1049_v44 = vadd.f32 %v1017_v62, %v975_v35  ;;  %v684_v55 = vrot.slane %v614_v39, 1  ;;  %v17889_v56 = vrot.slane %v13485_v41, 2  ;;  %v13503_v57 = vadd.f32 %v1018_v25, %v976_v36 }
  0xa3   : > { %v540_v58 = vmul.f32 %v13418_v52, %v13459_v28  ;;  %v13509_v59 = vmul.f32 %v13411_v49, %v13459_v28  ;;  %v13513_v60 = vmul.f32 %v13401_v47, %v13487_v42  ;;  %v13519_v3 = vmul.f32 %v13391_v45, %v13459_v28  ;;  %v420_v23 = vpop.permute.xlu1 %419 }
  0xa4   : > { %v687_v2 = vsel %vm676_vm1, %v684_v55, %v686_v37  ;;  %v13523_v4 = vmul.f32 %v13391_v45, %v13487_v42  ;;  %v1254_v7 = vadd.f32 %v1159_v33, %v1049_v44  ;;  %v13530_v10 = vmul.f32 %v13418_v52, %v13487_v42 }
  0xa5   : > { %v778_v9 = vadd.f32 %v687_v2, %v540_v58  ;;  %v13533_v12 = vsel %vm676_vm1, %v682_v5, %v684_v55  ;;  %v13537_v14 = vmul.f32 %v13406_v48, %v13487_v42  ;;  %v13541_v15 = vmul.f32 %v13411_v49, %v13487_v42 }
  0xa6   : > { %v888_v18 = vsel %vm877_vm0, %v17889_v56, %v887_v53  ;;  %v690_v19 = vrot.slane %v13513_v60, 1  ;;  %v616_v22 = vmul.f32 %v13401_v47, %v13525_v6  ;;  %v817_v5 = vmul.f32 %v13406_v48, %v13525_v6 }
  0xa7   : > { %v979_v21 = vadd.f32 %v888_v18, %v778_v9  ;;  %v17892_v25 = vrot.slane %v13523_v4, 1  ;;  %v13555_v26 = vmul.f32 %v13396_v46, %v13487_v42  ;;  %v13559_v27 = vmul.f32 %v13391_v45, %v13525_v6  ;;  %v13621_v9 = vld [vmem:[%s17876_s1 + $0x7] ss:$0 sm:$0xff] }
  0xa8   : > { %v542_v29 = vmul.f32 %v13418_v52, %v13525_v6  ;;  %v688_v30 = vrot.slane %v616_v22, 1  ;;  %v1021_v31 = vmul.f32 %v13411_v49, %v13525_v6  ;;  %v13567_v32 = vmul.f32 %v13396_v46, %v13525_v6 }
  0xa9   : > { %18036 = vst [vmem:[#allocation3_spill] sm:$0xff] %v13555_v26  ;;  %v889_v33 = vrot.slane %v817_v5, 2  ;;  %v17887_v35 = vrot.slane %v13559_v27, 1  ;;  %v13571_v36 = vmul.f32 %v13401_v47, %v420_v23  ;;  %v13574_v39 = vmul.f32 %v13406_v48, %v420_v23 }
  0xaa   : > { %v891_v44 = vrot.slane %v13537_v14, 2  ;;  %v689_v55 = vsel %vm676_vm1, %v686_v37, %v688_v30  ;;  %v691_v58 = vsel %vm676_vm1, %v688_v30, %v690_v19  ;;  %v1053_v60 = vadd.f32 %v1021_v31, %v979_v21  ;;  %v13592_v37 = vpop.permute.xlu0 %414 }
  0xab   : > { %v13579_v2 = vadd.f32 %v1359_v34, %v1254_v7  ;;  %v779_v18 = vadd.f32 %v689_v55, %v541_v50  ;;  %v780_v22 = vadd.f32 %v691_v58, %v542_v29  ;;  %v13584_v0 = vmul.f32 %v13418_v52, %v420_v23  ;;  %v13603_v7 = vld [vmem:[%s17876_s1 + $0x6] ss:$0 sm:$0xff] }
  0xac   : > { %v13587_v8 = vmul.f32 %v13411_v49, %v420_v23  ;;  %v13590_v14 = vmul.f32 %v13391_v45, %v420_v23  ;;  %v890_v34 = vsel %vm877_vm0, %v887_v53, %v889_v33  ;;  %v1167_v50 = vsel %vm676_vm1, %v17887_v35, %v17892_v25 }
  0xad   : > { %v17896_v21 = vrot.slane %v13571_v36, 1  ;;  %v13607_v30 = vadd.f32 %v1167_v50, %v1053_v60  ;;  %v13610_v31 = vmul.f32 %v13396_v46, %v420_v23  ;;  %v13613_v53 = vmul.f32 %v13603_v7, %v420_v23  ;;  %v13626_v60 = vld [vmem:[%s17876_s1 + $0x8] ss:$0 sm:$0xff] }
  0xae   : > { %18037 = vst [vmem:[#allocation4_spill] sm:$0xff] %v13587_v8  ;;  %v892_v55 = vsel %vm877_vm0, %v889_v33, %v891_v44  ;;  %v13616_v58 = vadd.f32 %v890_v34, %v779_v18  ;;  %v618_v5 = vmul.f32 %v13401_v47, %v13592_v37  ;;  %v819_v35 = vmul.f32 %v13406_v48, %v13592_v37  ;;  %v430_v33 = vpop.permute.xlu1 %429 }
  0xaf   : > { %18038 = vst [vmem:[#allocation5_spill] sm:$0xff] %v13607_v30  ;;  %18039 = vst [vmem:[#allocation6_spill] sm:$0xff] %v13610_v31  ;;  %v981_v50 = vadd.f32 %v892_v55, %v780_v22  ;;  %v13634_v34 = vmul.f32 %v13621_v9, %v420_v23  ;;  %v13637_v62 = vmul.f32 %v13626_v60, %v420_v23 }
  0xb0   : > { %18040 = vst [vmem:[#allocation7_spill] sm:$0xff] %v13613_v53  ;;  %v1097_v13 = vmul.f32 %v13391_v45, %v13592_v37  ;;  %v692_v56 = vrot.slane %v618_v5, 1  ;;  %v893_v22 = vrot.slane %v819_v35, 2  ;;  %v1023_v55 = vmul.f32 %v13411_v49, %v13592_v37 }
  0xb1   : > { %18041 = vst [vmem:[#allocation8_spill] sm:$0xff] %v13634_v34  ;;  %18042 = vst [vmem:[#allocation9_spill] sm:$0xff] %v13637_v62  ;;  %v13645_v17 = vmul.f32 %v13396_v46, %v13592_v37  ;;  %v544_v24 = vmul.f32 %v13418_v52, %v13592_v37  ;;  %v13651_v23 = vmul.f32 %v13401_v47, %v430_v33  ;;  %v18057_v62 = vrot.slane %v13571_v36, 1 }
  0xb2   : > { %v1168_v29 = vrot.slane %v1097_v13, 1  ;;  %v693_v18 = vsel %vm676_vm1, %v690_v19, %v692_v56  ;;  %v695_v35 = vsel %vm676_vm1, %v692_v56, %v17896_v21  ;;  %v1055_v5 = vadd.f32 %v1023_v55, %v981_v50  ;;  %v425_v50 = vpop.permute.xlu0 %424 }
  0xb3   : > { %18043 = vst [vmem:[#allocation10_spill] sm:$0xff] %v13645_v17  ;;  %v13658_v25 = vmul.f32 %v13406_v48, %v430_v33  ;;  %v781_v31 = vadd.f32 %v693_v18, %v13530_v10  ;;  %v13665_v13 = vmul.f32 %v13603_v7, %v13592_v37  ;;  %v782_v53 = vadd.f32 %v695_v35, %v544_v24 }
  0xb4   : > { %v894_v19 = vsel %vm877_vm0, %v891_v44, %v893_v22  ;;  %v13670_v56 = vmul.f32 %v13418_v52, %v430_v33  ;;  %v18045_v55 = vrot.slane %v13523_v4, 1  ;;  %v18047_v10 = vrot.slane %v13590_v14, 1 }
  0xb5   : > { %18044 = vst [vmem:[#allocation11_spill] sm:$0xff] %v13665_v13  ;;  %v13682_v24 = vmul.f32 %v13391_v45, %v430_v33  ;;  %v13684_v44 = vadd.f32 %v894_v19, %v781_v31  ;;  %v13690_v4 = vmul.f32 %v13411_v49, %v430_v33  ;;  %v13696_v21 = vmul.f32 %v13603_v7, %v430_v33 }
  0xb6   : > { %v13675_v8 = vsel %vm676_vm1, %v18045_v55, %v1168_v29  ;;  %v1171_v18 = vsel %vm676_vm1, %v1168_v29, %v18047_v10  ;;  %v13693_v55 = vmul.f32 %v13396_v46, %v430_v33  ;;  %v18053_v29 = vrot.slane %v13574_v39, 2 }
  0xb7   : > { %18046 = vst [vmem:[#allocation12_spill] sm:$0xff] %v13675_v8  ;;  %18048 = vst [vmem:[#allocation13_spill] sm:$0xff] %v13684_v44  ;;  %v13686_v35 = vadd.f32 %v1171_v18, %v1055_v5  ;;  %v620_v31 = vmul.f32 %v13401_v47, %v425_v50  ;;  %v13703_v5 = vmul.f32 %v13621_v9, %v430_v33 }
  0xb8   : > { %18050 = vst [vmem:[#allocation15_spill] sm:$0xff] %v13690_v4  ;;  %18051 = vst [vmem:[#allocation16_spill] sm:$0xff] %v13693_v55  ;;  %v896_v10 = vsel %vm877_vm0, %v893_v22, %v18053_v29  ;;  %v821_v18 = vmul.f32 %v13406_v48, %v425_v50  ;;  %v1099_v40 = vmul.f32 %v13391_v45, %v425_v50 }
  0xb9   : > { %18049 = vst [vmem:[#allocation14_spill] sm:$0xff] %v13686_v35  ;;  %18052 = vst [vmem:[#allocation17_spill] sm:$0xff] %v13696_v21  ;;  %v983_v19 = vadd.f32 %v896_v10, %v782_v53  ;;  %v13709_v4 = vmul.f32 %v13626_v60, %v430_v33  ;;  %v696_v21 = vrot.slane %v620_v31, 1  ;;  %v13712_v35 = vmul.f32 %v13396_v46, %v425_v50  ;;  %v440_v10 = vpop.permute.xlu1 %439 }
  0xba   : > { %18054 = vst [vmem:[#allocation18_spill] sm:$0xff] %v13703_v5  ;;  %v546_v22 = vmul.f32 %v13418_v52, %v425_v50  ;;  %v897_v29 = vrot.slane %v821_v18, 2  ;;  %v1025_v44 = vmul.f32 %v13411_v49, %v425_v50  ;;  %v13717_v53 = vmul.f32 %v13621_v9, %v425_v50 }
  0xbb   : > { %18055 = vst [vmem:[#allocation19_spill] sm:$0xff] %v13709_v4  ;;  %18056 = vst [vmem:[#allocation20_spill] sm:$0xff] %v13712_v35  ;;  %v697_v16 = vsel %vm676_vm1, %v18057_v62, %v696_v21  ;;  %v18058_v33 = vrot.slane %v13651_v23, 1  ;;  %v1172_v34 = vrot.slane %v1099_v40, 1  ;;  %v13726_v13 = vmul.f32 %v13626_v60, %v425_v50 }
  0xbc   : > { %v783_v30 = vadd.f32 %v697_v16, %v13584_v0  ;;  %v1057_v8 = vadd.f32 %v1025_v44, %v983_v19  ;;  %v13734_v62 = vmul.f32 %v13603_v7, %v425_v50  ;;  %v13744_v0 = vmul.f32 %v13406_v48, %v440_v10 }
  0xbd   : > { %v699_v31 = vsel %vm676_vm1, %v696_v21, %v18058_v33  ;;  %v13737_v21 = vmul.f32 %v13401_v47, %v440_v10  ;;  %v18060_v33 = vrot.slane %v13574_v39, 2  ;;  %v18061_v16 = vrot.slane %v13590_v14, 1  ;;  %v450_v4 = vpop.permute.xlu1 %449 }
  0xbe   : > { %18059 = vst [vmem:[#allocation21_spill] sm:$0xff] %v13734_v62  ;;  %v784_v40 = vadd.f32 %v699_v31, %v546_v22  ;;  %v18063_v50 = vrot.slane %v13682_v24, 1  ;;  %v13756_v39 = vmul.f32 %v13391_v45, %v440_v10  ;;  %v435_v31 = vpop.permute.xlu0 %434  ;;  %v13763_v36 = vmul.f32 %v13418_v52, %v440_v10 }
  0xbf   : > { %v898_v18 = vsel %vm877_vm0, %v18060_v33, %v897_v29  ;;  %v13749_v44 = vsel %vm676_vm1, %v18061_v16, %v1172_v34  ;;  %v13766_v14 = vmul.f32 %v13396_v46, %v440_v10  ;;  %v18069_v22 = vrot.slane %v13658_v25, 2 }
  0xc0   : > { %18062 = vst [vmem:[#allocation22_spill] sm:$0xff] %v13749_v44  ;;  %v1175_v19 = vsel %vm676_vm1, %v1172_v34, %v18063_v50  ;;  %v13758_v33 = vadd.f32 %v898_v18, %v783_v30  ;;  %v13770_v34 = vmul.f32 %v13411_v49, %v440_v10  ;;  %v13773_v50 = vmul.f32 %v13603_v7, %v440_v10 }
  0xc1   : > { %v13760_v26 = vadd.f32 %v1175_v19, %v1057_v8  ;;  %18066 = vst [vmem:[#allocation25_spill] sm:$0xff] %v13766_v14  ;;  %v900_v30 = vsel %vm877_vm0, %v897_v29, %v18069_v22  ;;  %v622_v19 = vmul.f32 %v13401_v47, %v435_v31  ;;  %v823_v17 = vmul.f32 %v13406_v48, %v435_v31 }
  0xc2   : > { %18064 = vst [vmem:[#allocation23_spill] sm:$0xff] %v13758_v33  ;;  %18067 = vst [vmem:[#allocation26_spill] sm:$0xff] %v13770_v34  ;;  %v985_v18 = vadd.f32 %v900_v30, %v784_v40  ;;  %v13783_v16 = vmul.f32 %v13621_v9, %v440_v10  ;;  %v13786_v34 = vmul.f32 %v13626_v60, %v440_v10  ;;  %v18074_v10 = vrot.slane %v13651_v23, 1  ;;  %v445_v35 = vpop.permute.xlu0 %444 }
  0xc3   : > { %18065 = vst [vmem:[#allocation24_spill] sm:$0xff] %v13760_v26  ;;  %18068 = vst [vmem:[#allocation27_spill] sm:$0xff] %v13773_v50  ;;  %v1101_v50 = vmul.f32 %v13391_v45, %v435_v31  ;;  %v700_v29 = vrot.slane %v622_v19, 1  ;;  %v1027_v22 = vmul.f32 %v13411_v49, %v435_v31  ;;  %v13792_v40 = vmul.f32 %v13396_v46, %v435_v31 }
  0xc4   : > { %18070 = vst [vmem:[#allocation28_spill] sm:$0xff] %v13783_v16  ;;  %18071 = vst [vmem:[#allocation29_spill] sm:$0xff] %v13786_v34  ;;  %v548_v30 = vmul.f32 %v13418_v52, %v435_v31  ;;  %v901_v8 = vrot.slane %v823_v17, 2  ;;  %v13796_v33 = vmul.f32 %v13621_v9, %v435_v31  ;;  %v18075_v55 = vrot.slane %v13737_v21, 1 }
  0xc5   : > { %18072 = vst [vmem:[#allocation30_spill] sm:$0xff] %v13792_v40  ;;  %v1176_v26 = vrot.slane %v1101_v50, 1  ;;  %v701_v62 = vsel %vm676_vm1, %v18074_v10, %v700_v29  ;;  %v1059_v14 = vadd.f32 %v1027_v22, %v985_v18  ;;  %v13805_v5 = vmul.f32 %v13626_v60, %v435_v31 }
  0xc6   : > { %18073 = vst [vmem:[#allocation31_spill] sm:$0xff] %v13796_v33  ;;  %v703_v19 = vsel %vm676_vm1, %v700_v29, %v18075_v55  ;;  %v785_v50 = vadd.f32 %v701_v62, %v13670_v56  ;;  %v13811_v44 = vmul.f32 %v13603_v7, %v435_v31  ;;  %v13815_v10 = vmul.f32 %v13418_v52, %v450_v4 }
  0xc7   : > { %18076 = vst [vmem:[#allocation32_spill] sm:$0xff] %v13805_v5  ;;  %v13818_v55 = vmul.f32 %v13401_v47, %v450_v4  ;;  %v13821_v18 = vmul.f32 %v13406_v48, %v450_v4  ;;  %v786_v29 = vadd.f32 %v703_v19, %v548_v30  ;;  %v18078_v22 = vrot.slane %v13658_v25, 2 }
  0xc8   : > { %18077 = vst [vmem:[#allocation33_spill] sm:$0xff] %v13811_v44  ;;  %v18079_v56 = vrot.slane %v13756_v39, 1  ;;  %v18080_v23 = vrot.slane %v13682_v24, 1  ;;  %v13839_v25 = vmul.f32 %v13391_v45, %v450_v4  ;;  %v13848_v31 = vmul.f32 %v13396_v46, %v450_v4 }
  0xc9   : > { %v902_v17 = vsel %vm877_vm0, %v18078_v22, %v901_v8  ;;  %v13852_v24 = vmul.f32 %v13603_v7, %v450_v4  ;;  %v13862_v30 = vmul.f32 %v13406_v48, %v445_v35  ;;  %v1103_v22 = vmul.f32 %v13391_v45, %v445_v35 }
  0xca   : > { %v1179_v62 = vsel %vm676_vm1, %v1176_v26, %v18079_v56  ;;  %v13833_v34 = vsel %vm676_vm1, %v18080_v23, %v1176_v26  ;;  %v13841_v19 = vadd.f32 %v902_v17, %v785_v50  ;;  %v13845_v56 = vmul.f32 %v13411_v49, %v450_v4  ;;  %18085 = vst [vmem:[#allocation38_spill] sm:$0xff] %v13848_v31 }
  0xcb   : > { %18081 = vst [vmem:[#allocation34_spill] sm:$0xff] %v13833_v34  ;;  %v13835_v16 = vadd.f32 %v1179_v62, %v1059_v14  ;;  %18086 = vst [vmem:[#allocation39_spill] sm:$0xff] %v13852_v24  ;;  %v18087_v14 = vrot.slane %v13744_v0, 2  ;;  %v624_v17 = vmul.f32 %v13401_v47, %v445_v35  ;;  %v13859_v50 = vmul.f32 %v13621_v9, %v450_v4 }
  0xcc   : > { %18083 = vst [vmem:[#allocation36_spill] sm:$0xff] %v13841_v19  ;;  %18084 = vst [vmem:[#allocation37_spill] sm:$0xff] %v13845_v56  ;;  %v13867_v56 = vmul.f32 %v13626_v60, %v450_v4  ;;  %v460_v19 = vpop.permute.xlu1 %459  ;;  %v18092_v44 = vrot.slane %v13737_v21, 1  ;;  %v18093_v4 = vrot.slane %v13818_v55, 1  ;;  %v1180_v40 = vrot.slane %v1103_v22, 1 }
  0xcd   : > { %18082 = vst [vmem:[#allocation35_spill] sm:$0xff] %v13835_v16  ;;  %v904_v23 = vsel %vm877_vm0, %v901_v8, %v18087_v14  ;;  %18088 = vst [vmem:[#allocation40_spill] sm:$0xff] %v13859_v50  ;;  %v704_v24 = vrot.slane %v624_v17, 1  ;;  %v13870_v16 = vmul.f32 %v13396_v46, %v445_v35  ;;  %v13885_v34 = vmul.f32 %v13626_v60, %v445_v35 }
  0xce   : > { %v987_v62 = vadd.f32 %v904_v23, %v786_v29  ;;  %18089 = vst [vmem:[#allocation41_spill] sm:$0xff] %v13867_v56  ;;  %v1029_v29 = vmul.f32 %v13411_v49, %v445_v35  ;;  %v13876_v23 = vmul.f32 %v13621_v9, %v445_v35  ;;  %v550_v14 = vmul.f32 %v13418_v52, %v445_v35 }
  0xcf   : > { %18090 = vst [vmem:[#allocation42_spill] sm:$0xff] %v13870_v16  ;;  %v705_v26 = vsel %vm676_vm1, %v18092_v44, %v704_v24  ;;  %v707_v17 = vsel %vm676_vm1, %v704_v24, %v18093_v4  ;;  %18094 = vst [vmem:[#allocation44_spill] sm:$0xff] %v13885_v34  ;;  %v13893_v44 = vmul.f32 %v13603_v7, %v445_v35  ;;  %v18096_v4 = vrot.slane %v13862_v30, 2 }
  0xd0   : > { %18091 = vst [vmem:[#allocation43_spill] sm:$0xff] %v13876_v23  ;;  %v787_v31 = vadd.f32 %v705_v26, %v13763_v36  ;;  %v1061_v5 = vadd.f32 %v1029_v29, %v987_v62  ;;  %v13896_v24 = vmul.f32 %v13401_v47, %v460_v19  ;;  %v788_v22 = vadd.f32 %v707_v17, %v550_v14 }
  0xd1   : > { %18095 = vst [vmem:[#allocation45_spill] sm:$0xff] %v13893_v44  ;;  %v18097_v8 = vrot.slane %v13744_v0, 2  ;;  %v13905_v26 = vmul.f32 %v13406_v48, %v460_v19  ;;  %v18098_v62 = vrot.slane %v13756_v39, 1  ;;  %v18100_v29 = vrot.slane %v13839_v25, 1 }
  0xd2   : > { %v13917_v0 = vmul.f32 %v13418_v52, %v460_v19  ;;  %v13925_v39 = vmul.f32 %v13411_v49, %v460_v19  ;;  %v13931_v21 = vmul.f32 %v13396_v46, %v460_v19  ;;  %v1496_v36 = vmul.f32 %v13603_v7, %v13459_v28 }
  0xd3   : > { %v906_v50 = vsel %vm877_vm0, %v18097_v8, %v18096_v4  ;;  %v13910_v35 = vsel %vm676_vm1, %v18098_v62, %v1180_v40  ;;  %v1183_v14 = vsel %vm676_vm1, %v1180_v40, %v18100_v29  ;;  %v13928_v62 = vmul.f32 %v13391_v45, %v460_v19 }
  0xd4   : > { %18099 = vst [vmem:[#allocation46_spill] sm:$0xff] %v13910_v35  ;;  %v13919_v8 = vadd.f32 %v906_v50, %v787_v31  ;;  %v13921_v4 = vadd.f32 %v1183_v14, %v1061_v5  ;;  %18103 = vst [vmem:[#allocation49_spill] sm:$0xff] %v13925_v39  ;;  %v18105_v40 = vrot.slane %v13519_v3, 1  ;;  %v18106_v29 = vrot.slane %v13433_v63, 1  ;;  %v455_v35 = vpop.permute.xlu0 %454 }
  0xd5   : > { %18104 = vst [vmem:[#allocation50_spill] sm:$0xff] %v13931_v21  ;;  %v13940_v5 = vmul.f32 %v13396_v46, %v13459_v28  ;;  %v13944_v14 = vmul.f32 %v13603_v7, %v460_v19  ;;  %v1570_v63 = vmul.f32 %v13621_v9, %v13459_v28  ;;  %v1528_v50 = vadd.f32 %v1496_v36, %v13579_v2 }
  0xd6   : > { %18101 = vst [vmem:[#allocation47_spill] sm:$0xff] %v13919_v8  ;;  %18102 = vst [vmem:[#allocation48_spill] sm:$0xff] %v13921_v4  ;;  %v1161_v31 = vsel %vm676_vm1, %v18106_v29, %v18105_v40  ;;  %v1571_v40 = vmul.f32 %v13621_v9, %v13442_v11  ;;  %v13956_v29 = vmul.f32 %v13621_v9, %v13525_v6 }
  0xd7   : > { %18107 = vst [vmem:[#allocation51_spill] sm:$0xff] %v13944_v14  ;;  %v1255_v17 = vadd.f32 %v1161_v31, %v13503_v57  ;;  %v1770_v57 = vmul.f32 %v13626_v60, %v13459_v28  ;;  %v1771_v31 = vmul.f32 %v13626_v60, %v13442_v11  ;;  %v13965_v33 = vmul.f32 %v13626_v60, %v13525_v6 }
  0xd8   : > { %v18108_v39 = vrot.slane %v13940_v5, 2  ;;  %v18109_v14 = vrot.slane %v13436_v1, 2  ;;  %v1636_v8 = vrot.slane %v1570_v63, 1  ;;  %v1637_v56 = vrot.slane %v1571_v40, 1 }
  0xd9   : > { %v17937_v2 = vrot.slane %v13956_v29, 1  ;;  %v1497_v28 = vmul.f32 %v13603_v7, %v13442_v11  ;;  %v1836_v44 = vrot.slane %v1770_v57, 2  ;;  %v1837_v16 = vrot.slane %v1771_v31, 2 }
  0xda   : > { %v1361_v4 = vsel %vm877_vm0, %v18109_v14, %v18108_v39  ;;  %v13976_v34 = vmul.f32 %v13621_v9, %v460_v19  ;;  %v13979_v23 = vmul.f32 %v13626_v60, %v460_v19  ;;  %v1638_v1 = vsel %vm676_vm1, %v1636_v8, %v1637_v56  ;;  %v13992_v19 = vld [vmem:[%s17880_s5] ss:$0 sm:$0xff] }
  0xdb   : > { %v1455_v36 = vadd.f32 %v1361_v4, %v1255_v17  ;;  %v17940_v39 = vrot.slane %v13965_v33, 2  ;;  %v1733_v63 = vadd.f32 %v1638_v1, %v1528_v50  ;;  %v1640_v11 = vsel %vm676_vm1, %v1637_v56, %v17937_v2 }
  0xdc   : > { %v1838_v40 = vsel %vm877_vm0, %v1836_v44, %v1837_v16  ;;  %v626_v8 = vmul.f32 %v13401_v47, %v455_v35  ;;  %v13996_v57 = vmul.f32 %v13406_v48, %v455_v35  ;;  %v18110_v50 = vrot.slane %v13821_v18, 2 }
  0xdd   : > { %v1529_v4 = vadd.f32 %v1497_v28, %v1455_v36  ;;  %v1933_v36 = vadd.f32 %v1838_v40, %v1733_v63  ;;  %v18111_v28 = vrot.slane %v13862_v30, 2  ;;  %v1105_v44 = vmul.f32 %v13391_v45, %v455_v35 }
  0xde   : > { %v1840_v17 = vsel %vm877_vm0, %v1837_v16, %v17940_v39  ;;  %v708_v14 = vrot.slane %v626_v8, 1  ;;  %v17941_v63 = vrot.slane %v13996_v57, 2  ;;  %v18112_v30 = vrot.slane %v13818_v55, 1 }
  0xdf   : > { %v1734_v31 = vadd.f32 %v1640_v11, %v1529_v4  ;;  %v908_v56 = vsel %vm877_vm0, %v18111_v28, %v18110_v50  ;;  %v1972_v4 = vadd.f32 %v13992_v19, %v1933_v36  ;;  %v14011_v11 = vmul.f32 %v13396_v46, %v455_v35 }
  0xe0   : > { %v989_v2 = vadd.f32 %v908_v56, %v788_v22  ;;  %v709_v40 = vsel %vm676_vm1, %v18112_v30, %v708_v14  ;;  %v18113_v50 = vrot.slane %v13896_v24, 1  ;;  %v1031_v16 = vmul.f32 %v13411_v49, %v455_v35  ;;  %v470_v56 = vpop.permute.xlu1 %469 }
  0xe1   : > { %v1934_v21 = vadd.f32 %v1840_v17, %v1734_v31  ;;  %v1184_v22 = vrot.slane %v1105_v44, 1  ;;  %v2004_v8 = vmax.f32 %v1972_v4, 0.0  ;;  %v789_v31 = vadd.f32 %v709_v40, %v13815_v10 }
  0xe2   : > { %v711_v28 = vsel %vm676_vm1, %v708_v14, %v18113_v50  ;;  %v14023_v36 = vmul.f32 %v13621_v9, %v455_v35  ;;  %v552_v30 = vmul.f32 %v13418_v52, %v455_v35  ;;  %v1063_v1 = vadd.f32 %v1031_v16, %v989_v2 }
  0xe3   : > { %v1973_v17 = vadd.f32 %v13992_v19, %v1934_v21  ;;  %v14028_v39 = vmul.f32 %v13626_v60, %v455_v35  ;;  %v18114_v21 = vrot.slane %v13821_v18, 2  ;;  %v14037_v4 = vmul.f32 %v13603_v7, %v455_v35 }
  0xe4   : > { %v790_v40 = vadd.f32 %v711_v28, %v552_v30  ;;  %v18115_v50 = vrot.slane %v13839_v25, 1  ;;  %v14045_v16 = vmul.f32 %v13401_v47, %v470_v56  ;;  %v18117_v55 = vrot.slane %v13928_v62, 1 }
  0xe5   : > { %v2005_v14 = vmax.f32 %v1973_v17, 0.0  ;;  %v910_v44 = vsel %vm877_vm0, %v18114_v21, %v17941_v63  ;;  %v14048_v17 = vmul.f32 %v13406_v48, %v470_v56  ;;  %v14065_v10 = vmul.f32 %v13391_v45, %v470_v56 }
  0xe6   : > { %v14042_v2 = vsel %vm676_vm1, %v18115_v50, %v1184_v22  ;;  %v14052_v21 = vadd.f32 %v910_v44, %v789_v31  ;;  %v1187_v35 = vsel %vm676_vm1, %v1184_v22, %v18117_v55  ;;  %v14062_v50 = vmul.f32 %v13418_v52, %v470_v56 }
  0xe7   : > { %v14050_v18 = vpack.c.bf16 %v2005_v14, %v2004_v8  ;;  %v14058_v25 = vadd.f32 %v1187_v35, %v1063_v1  ;;  %v14070_v8 = vmul.f32 %v13411_v49, %v470_v56  ;;  %v14073_v22 = vmul.f32 %v13396_v46, %v470_v56 }
  0xe8   : > { %v14076_v1 = vmul.f32 %v13603_v7, %v470_v56  ;;  %v777_v31 = vadd.f32 %v13533_v12, %v13450_v20  ;;  %v18121_v44 = vrot.slane %v13485_v41, 2  ;;  %v18122_v35 = vrot.slane %v13429_v61, 2 }
  0xe9   : > { %18116 = vst [vmem:[#allocation52_spill] sm:$0xff] %v14050_v18  ;;  %11293 = vmatprep.mubr.msk.bf16.mxu0 %vm2207_vm2, %v14050_v18  ;;  %18118 = vst [vmem:[#allocation53_spill] sm:$0xff] %v14070_v8  ;;  %v1051_v28 = vadd.f32 %v13509_v59, %v13489_v43  ;;  %v14090_v63 = vmul.f32 %v13621_v9, %v470_v56  ;;  %v14093_v8 = vmul.f32 %v13626_v60, %v470_v56 }
  0xea   : > { %18119 = vst [vmem:[#allocation54_spill] sm:$0xff] %v14073_v22  ;;  %18120 = vst [vmem:[#allocation55_spill] sm:$0xff] %v14076_v1  ;;  %v886_v30 = vsel %vm877_vm0, %v18122_v35, %v18121_v44  ;;  %v18124_v12 = vrot.slane %v13479_v38, 1  ;;  %v18125_v14 = vrot.slane %v13519_v3, 1  ;;  %v18126_v44 = vrot.slane %v13559_v27, 1  ;;  %v465_v27 = vpop.permute.xlu0 %464  ;;  %v18154_v22 = vld [vmem:[#allocation10_spill] sm:$0xff] }
  0xeb   : > { %18123 = vst [vmem:[#allocation56_spill] sm:$0xff] %v14093_v8  ;;  %v978_v20 = vadd.f32 %v886_v30, %v777_v31  ;;  %v1573_v56 = vmul.f32 %v13621_v9, %v13487_v42  ;;  %v18128_v31 = vrot.slane %v13495_v51, 2  ;;  %v18129_v3 = vrot.slane %v13940_v5, 2  ;;  %v18156_v8 = vld [vmem:[#allocation11_spill] sm:$0xff] }
  0xec   : > { %v1163_v41 = vsel %vm676_vm1, %v18125_v14, %v18124_v12  ;;  %v18127_v35 = vmov %v18124_v12  ;;  %v14116_v12 = vmul.f32 %v13621_v9, %v13592_v37  ;;  %v1773_v38 = vmul.f32 %v13626_v60, %v13487_v42 }
  0xed   : > { %v1165_v43 = vsel %vm676_vm1, %v18127_v35, %v18126_v44  ;;  %v1256_v59 = vadd.f32 %v1163_v41, %v1051_v28  ;;  %v1052_v30 = vadd.f32 %v13500_v54, %v978_v20  ;;  %v1363_v14 = vsel %vm877_vm0, %v18129_v3, %v18128_v31 }
  0xee   : > { %v1498_v41 = vmul.f32 %v13603_v7, %v13525_v6  ;;  %v1641_v44 = vrot.slane %v1573_v56, 1  ;;  %v14124_v54 = vmul.f32 %v13626_v60, %v13592_v37  ;;  %v18130_v35 = vrot.slane %v13567_v32, 2 }
  0xef   : > { %v1456_v28 = vadd.f32 %v1363_v14, %v1256_v59  ;;  %v1257_v20 = vadd.f32 %v1165_v43, %v1052_v30  ;;  %v1841_v61 = vrot.slane %v1773_v38, 2  ;;  %v1499_v59 = vmul.f32 %v13603_v7, %v13487_v42 }
  0xf0   : > { %v1365_v3 = vsel %vm877_vm0, %v18128_v31, %v18130_v35  ;;  %v17943_v6 = vrot.slane %v14116_v12, 1  ;;  %v628_v56 = vmul.f32 %v13401_v47, %v465_v27  ;;  %v18131_v55 = vrot.slane %v13956_v29, 1 }
  0xf1   : > { %v1530_v14 = vadd.f32 %v1498_v41, %v1456_v28  ;;  %v1457_v37 = vadd.f32 %v1365_v3, %v1257_v20  ;;  %v18132_v30 = vrot.slane %v13905_v26, 2  ;;  %v18133_v51 = vrot.slane %v13996_v57, 2 }
  0xf2   : > { %v1642_v43 = vsel %vm676_vm1, %v18131_v55, %v1641_v44  ;;  %v554_v38 = vmul.f32 %v13418_v52, %v465_v27  ;;  %v17942_v42 = vrot.slane %v14124_v54, 2  ;;  %v712_v28 = vrot.slane %v628_v56, 1 }
  0xf3   : > { %v912_v35 = vsel %vm877_vm0, %v18133_v51, %v18132_v30  ;;  %v1735_v31 = vadd.f32 %v1642_v43, %v1530_v14  ;;  %v14147_v41 = vmul.f32 %v13406_v48, %v465_v27  ;;  %v1531_v20 = vadd.f32 %v1499_v59, %v1457_v37 }
  0xf4   : > { %v18134_v29 = vrot.slane %v13965_v33, 2  ;;  %v991_v3 = vadd.f32 %v912_v35, %v790_v40  ;;  %v1107_v5 = vmul.f32 %v13391_v45, %v465_v27  ;;  %v1644_v57 = vsel %vm676_vm1, %v1641_v44, %v17943_v6 }
  0xf5   : > { %v18135_v14 = vrot.slane %v13896_v24, 1  ;;  %v913_v43 = vrot.slane %v14147_v41, 2  ;;  %v1736_v51 = vadd.f32 %v1644_v57, %v1531_v20  ;;  %v18136_v59 = vrot.slane %v14045_v16, 1  ;;  %v18151_v41 = vld [vmem:[#allocation12_spill] sm:$0xff] }
  0xf6   : > { %v1842_v55 = vsel %vm877_vm0, %v18134_v29, %v1841_v61  ;;  %v14165_v37 = vmul.f32 %v13396_v46, %v465_v27  ;;  %v1844_v44 = vsel %vm877_vm0, %v1841_v61, %v17942_v42  ;;  %v1033_v35 = vmul.f32 %v13411_v49, %v465_v27 }
  0xf7   : > { %v1935_v30 = vadd.f32 %v1842_v55, %v1735_v31  ;;  %v713_v56 = vsel %vm676_vm1, %v18135_v14, %v712_v28  ;;  %v715_v33 = vsel %vm676_vm1, %v712_v28, %v18136_v59  ;;  %v1188_v31 = vrot.slane %v1107_v5, 1  ;;  %v18152_v59 = vld [vmem:[#allocation5_spill] sm:$0xff] }
  0xf8   : > { %v791_v40 = vadd.f32 %v713_v56, %v13917_v0  ;;  %v1936_v29 = vadd.f32 %v1844_v44, %v1736_v51  ;;  %v14175_v28 = vmul.f32 %v13603_v7, %v465_v27  ;;  %v480_v0 = vpop.permute.xlu1 %479  ;;  %v792_v55 = vadd.f32 %v715_v33, %v554_v38 }
  0xf9   : > { %v1974_v24 = vadd.f32 %v13992_v19, %v1935_v30  ;;  %v18137_v57 = vrot.slane %v13905_v26, 2  ;;  %v1065_v61 = vadd.f32 %v1033_v35, %v991_v3  ;;  %v14181_v30 = vmul.f32 %v13621_v9, %v465_v27 }
  0xfa   : > { %v1975_v5 = vadd.f32 %v13992_v19, %v1936_v29  ;;  %v14188_v51 = vmul.f32 %v13626_v60, %v465_v27  ;;  %v18139_v38 = vrot.slane %v13928_v62, 1  ;;  %v14196_v3 = vmul.f32 %v13401_v47, %v480_v0 }
  0xfb   : > { %v914_v14 = vsel %vm877_vm0, %v18137_v57, %v913_v43  ;;  %v2006_v44 = vmax.f32 %v1974_v24, 0.0  ;;  %v14199_v33 = vmul.f32 %v13406_v48, %v480_v0  ;;  %v14205_v27 = vmul.f32 %v13418_v52, %v480_v0 }
  0xfc   : > { %v14184_v56 = vadd.f32 %v914_v14, %v791_v40  ;;  %v14193_v26 = vsel %vm676_vm1, %v18139_v38, %v1188_v31  ;;  %v2007_v35 = vmax.f32 %v1975_v5, 0.0  ;;  %v18140_v40 = vrot.slane %v14065_v10, 1 }
  0xfd   : > { %v14208_v24 = vmul.f32 %v13391_v45, %v480_v0  ;;  %v14214_v14 = vmul.f32 %v13396_v46, %v480_v0  ;;  %v14217_v38 = vmul.f32 %v13621_v9, %v480_v0  ;;  %v1054_v20 = vadd.f32 %v13541_v15, %v13616_v58 }
  0xfe   : > { %18138 = vst [vmem:[#allocation57_spill] sm:$0xff] %v14184_v56  ;;  %v1191_v29 = vsel %vm676_vm1, %v1188_v31, %v18140_v40  ;;  %v14219_v5 = vpack.c.bf16 %v2007_v35, %v2006_v44  ;;  %v14223_v40 = vmul.f32 %v13411_v49, %v480_v0  ;;  %v14233_v44 = vmul.f32 %v13603_v7, %v480_v0  ;;  %v18147_v35 = vld [vmem:[#allocation3_spill] sm:$0xff] }
  0xff   : > { %v14210_v62 = vadd.f32 %v1191_v29, %v1065_v61  ;;  %18142 = vst [vmem:[#allocation59_spill] sm:$0xff] %v14214_v14  ;;  %18143 = vst [vmem:[#allocation60_spill] sm:$0xff] %v14217_v38  ;;  %v475_v61 = vpop.permute.xlu0 %474  ;;  %v12979_v29 = vld [vmem:[%s17877_s2 + $0x28] sm:$0xff]   ;;  %v18148_v31 = vrot.slane %v18147_v35, 2  ;;  %v18149_v57 = vrot.slane %v13567_v32, 2  ;;  %v14244_v58 = vmul.f32 %v13626_v60, %v480_v0 }
 0x100   : > { %18144 = vst [vmem:[#allocation61_spill] sm:$0xff] %v14219_v5  ;;  %18145 = vst [vmem:[#allocation62_spill] sm:$0xff] %v14223_v40  ;;  %11294 = vmatmul.mubr.msk.bf16.vlgmr.msra.gmra.mrb[0].mxu0 %vm2207_vm2, %v14219_v5  ;;  %v1259_v6 = vadd.f32 %v18151_v41, %v1054_v20  ;;  %v630_v15 = vmul.f32 %v13401_v47, %v475_v61  ;;  %v18157_v41 = vld [vmem:[#allocation8_spill] sm:$0xff]  ;;  %v18162_v47 = vrot.slane %v14048_v17, 2 }
 0x101   : > { %18141 = vst [vmem:[#allocation58_spill] sm:$0xff] %v14210_v62  ;;  %18146 = vst [vmem:[#allocation63_spill] sm:$0xff] %v14233_v44  ;;  %v1367_v42 = vsel %vm877_vm0, %v18149_v57, %v18148_v31  ;;  %v18153_v62 = vld [vmem:[#allocation2_spill] sm:$0xff]  ;;  %v18155_v57 = vrot.slane %v18154_v22, 2  ;;  %v18158_v20 = vrot.slane %v18157_v41, 1  ;;  %v18160_v44 = vrot.slane %v13717_v53, 1 }
 0x102   : > { %18150 = vst [vmem:[#allocation3_spill] sm:$0xff] %v14244_v58  ;;  %v1458_v40 = vadd.f32 %v1367_v42, %v18152_v59  ;;  %11326 = vmatpush3.bf16.msra.mxu0 %v18153_v62  ;;  %v18159_v42 = vrot.slane %v14116_v12, 1  ;;  %v14264_v62 = vmul.f32 %v13406_v48, %v475_v61  ;;  %v18163_v12 = vld [vmem:[#allocation7_spill] sm:$0xff] }
 0x103   : > { %v1369_v56 = vsel %vm877_vm0, %v18148_v31, %v18155_v57  ;;  %11327 = vmatprep.subr.bf16.mxu0 %v12979_v29  ;;  %v18161_v35 = vmov %v18158_v20 }
 0x104   : > { %v1459_v0 = vadd.f32 %v1369_v56, %v1259_v6  ;;  %v1532_v1 = vadd.f32 %v18156_v8, %v1458_v40  ;;  %v1646_v59 = vsel %vm676_vm1, %v18159_v42, %v18158_v20  ;;  %v1648_v57 = vsel %vm676_vm1, %v18161_v35, %v18160_v44  ;;  %v18164_v20 = vld [vmem:[#allocation9_spill] sm:$0xff] }
 0x105   : > { %v916_v8 = vsel %vm877_vm0, %v913_v43, %v18162_v47  ;;  %v716_v6 = vrot.slane %v630_v15, 1  ;;  %v1109_v56 = vmul.f32 %v13391_v45, %v475_v61  ;;  %v18165_v48 = vrot.slane %v18164_v20, 2 }
 0x106   : > { %v1533_v40 = vadd.f32 %v18163_v12, %v1459_v0  ;;  %v1737_v31 = vadd.f32 %v1646_v59, %v1532_v1  ;;  %v18166_v42 = vrot.slane %v14124_v54, 2  ;;  %v993_v14 = vadd.f32 %v916_v8, %v792_v55  ;;  %11328 = vmatpush3.bf16.msra.mxu0 %v12979_v29  ;;  %v18185_v55 = vld [vmem:[#allocation4_spill] sm:$0xff] }
 0x107   : > { %v18167_v44 = vrot.slane %v14045_v16, 1  ;;  %v17950_v43 = vrot.slane %v14264_v62, 2  ;;  %v1035_v15 = vmul.f32 %v13411_v49, %v475_v61  ;;  %v1192_v45 = vrot.slane %v1109_v56, 1 }
 0x108   : > { %v1846_v32 = vsel %vm877_vm0, %v18166_v42, %v18165_v48  ;;  %v1738_v0 = vadd.f32 %v1648_v57, %v1533_v40  ;;  %v18168_v59 = vrot.slane %v14196_v3, 1  ;;  %v14290_v35 = vmul.f32 %v13396_v46, %v475_v61 }
 0x109   : > { %v717_v41 = vsel %vm676_vm1, %v18167_v44, %v716_v6  ;;  %v1937_v1 = vadd.f32 %v1846_v32, %v1737_v31  ;;  %v18170_v16 = vrot.slane %v13726_v13, 2  ;;  %v18171_v47 = vmov %v18165_v48  ;;  %v490_v48 = vpop.permute.xlu1 %489 }
 0x10a   : > { %v719_v54 = vsel %vm676_vm1, %v716_v6, %v18168_v59  ;;  %18169 = vst [vmem:[#allocation12_spill] sm:$0xff] %v14290_v35  ;;  %v556_v49 = vmul.f32 %v13418_v52, %v475_v61  ;;  %v14300_v29 = vmul.f32 %v13603_v7, %v475_v61  ;;  %v793_v6 = vadd.f32 %v717_v41, %v14062_v50 }
 0x10b   : > { %v1848_v8 = vsel %vm877_vm0, %v18171_v47, %v18170_v16  ;;  %v1976_v57 = vadd.f32 %v13992_v19, %v1937_v1  ;;  %v1067_v46 = vadd.f32 %v1035_v15, %v993_v14  ;;  %v18173_v12 = vrot.slane %v14048_v17, 2 }
 0x10c   : > { %18172 = vst [vmem:[#allocation5_spill] sm:$0xff] %v14300_v29  ;;  %v1938_v32 = vadd.f32 %v1848_v8, %v1738_v0  ;;  %v14304_v56 = vadd.f32 %v719_v54, %v556_v49  ;;  %v18174_v31 = vrot.slane %v14065_v10, 1  ;;  %v2066_v20 = vshll.u32 %v14050_v18, 16 }
 0x10d   : > { %v918_v40 = vsel %vm877_vm0, %v18173_v12, %v17950_v43  ;;  %v18176_v50 = vrot.slane %v14208_v24, 1  ;;  %v2071_v17 = vshll.u32 %v14219_v5, 16  ;;  %v14324_v41 = vmul.f32 %v13621_v9, %v475_v61 }
 0x10e   : > { %v14314_v52 = vsel %vm676_vm1, %v18174_v31, %v1192_v45  ;;  %v1977_v42 = vadd.f32 %v13992_v19, %v1938_v32  ;;  %v14327_v10 = vmul.f32 %v13626_v60, %v475_v61  ;;  %v2064_v15 = vshrl.u32 %v14050_v18, 16  ;;  %v14343_v61 = vld [vmem:[%s17876_s1 + $0x2] ss:$0 sm:$0xff]  ;;  %v14351_v32 = vld [vmem:[%s17876_s1 + $0x4] ss:$0 sm:$0xff]  ;;  %v485_v18 = vpop.permute.xlu0 %484 }
 0x10f   : > { %18175 = vst [vmem:[#allocation2_spill] sm:$0xff] %v14314_v52  ;;  %v1195_v14 = vsel %vm676_vm1, %v1192_v45, %v18176_v50  ;;  %18177 = vst [vmem:[#allocation10_spill] sm:$0xff] %v14324_v41  ;;  %v2068_v0 = vrot.slane %v2066_v20, 1  ;;  %v2008_v1 = vmax.f32 %v1976_v57, 0.0  ;;  %v2073_v54 = vrot.slane %v2071_v17, 1  ;;  %v18192_v50 = vld [vmem:[#allocation14_spill] sm:$0xff] }
 0x110   : > { %18178 = vst [vmem:[#allocation11_spill] sm:$0xff] %v14327_v10  ;;  %v2009_v59 = vmax.f32 %v1977_v42, 0.0  ;;  %v14333_v45 = vld [vmem:[%s17876_s1 + $0x1] ss:$0 sm:$0xff]  ;;  %v14338_v47 = vadd.f32 %v918_v40, %v793_v6  ;;  %v14346_v49 = vmul.f32 %v14343_v61, %v490_v48  ;;  %v14354_v57 = vmul.f32 %v14351_v32, %v490_v48  ;;  %v14364_v31 = vld [vmem:[%s17876_s1 + $0x5] ss:$0 sm:$0xff] }
 0x111   : > { %v14336_v16 = vmul.f32 %v14333_v45, %v490_v48  ;;  %v2069_v8 = vor.u32 %v2068_v0, %v2064_v15  ;;  %v14358_v6 = vadd.f32 %v1195_v14, %v1067_v46  ;;  %v2075_v40 = vshrl.u32 %v14219_v5, 16  ;;  %v14375_v46 = vld [vmem:[%s17876_s1] ss:$0 sm:$0xff] }
 0x112   : > { %18179 = vst [vmem:[#allocation8_spill] sm:$0xff] %v14338_v47  ;;  %v14356_v12 = vpack.c.bf16 %v2009_v59, %v2008_v1  ;;  %v14367_v20 = vmul.f32 %v14364_v31, %v490_v48  ;;  %v14378_v14 = vmul.f32 %v14375_v46, %v490_v48  ;;  %v14387_v1 = vld [vmem:[%s17876_s1 + $0x3] ss:$0 sm:$0xff]  ;;  %v18189_v0 = vrot.slane %v18154_v22, 2  ;;  %v18194_v47 = vld [vmem:[#allocation20_spill] sm:$0xff] }
 0x113   : > { %18181 = vst [vmem:[#allocation9_spill] sm:$0xff] %v14358_v6  ;;  %v2074_v17 = vsel %vm2062_vm3, %v2069_v8, %v2073_v54  ;;  %v2077_v15 = vor.u32 %v2075_v40, %v2073_v54  ;;  %v14390_v59 = vmul.f32 %v14387_v1, %v490_v48  ;;  %v18184_v8 = vld [vmem:[#allocation13_spill] sm:$0xff]  ;;  %v14397_v54 = vmul.f32 %v13621_v9, %v490_v48  ;;  %v18187_v40 = vld [vmem:[#allocation6_spill] sm:$0xff] }
 0x114   : > { %18180 = vst [vmem:[#allocation7_spill] sm:$0xff] %v14356_v12  ;;  %18182 = vst [vmem:[#allocation64_spill] sm:$0xff] %v14367_v20  ;;  %11297 = vmatprep.mubr.msk.bf16.mxu0 %vm2207_vm2, %v14356_v12  ;;  %11257 = vmatprep.mubr.msk.bf16.mxu1 %vm2207_vm2, %v2074_v17  ;;  %v1056_v44 = vadd.f32 %v18185_v55, %v18184_v8  ;;  %v18188_v17 = vrot.slane %v18187_v40, 2  ;;  %v18191_v55 = vld [vmem:[#allocation22_spill] sm:$0xff]  ;;  %v14411_v42 = vmul.f32 %v13626_v60, %v490_v48 }
 0x115   : > { %18183 = vst [vmem:[#allocation65_spill] sm:$0xff] %v14390_v59  ;;  %18186 = vst [vmem:[#allocation13_spill] sm:$0xff] %v14397_v54  ;;  %v14406_v59 = vmul.f32 %v13603_v7, %v490_v48  ;;  %v18195_v58 = vrot.slane %v18194_v47, 2  ;;  %v18199_v5 = vrot.slane %v13717_v53, 1  ;;  %v632_v40 = vmul.f32 %v14333_v45, %v485_v18 }
 0x116   : > { %v1371_v43 = vsel %vm877_vm0, %v18189_v0, %v18188_v17  ;;  %v1261_v8 = vadd.f32 %v18191_v55, %v1056_v44  ;;  %18193 = vst [vmem:[#allocation6_spill] sm:$0xff] %v14411_v42  ;;  %v18196_v38 = vmov %v18188_v17  ;;  %v18197_v0 = vld [vmem:[#allocation18_spill] sm:$0xff]  ;;  %v18200_v55 = vld [vmem:[#allocation21_spill] sm:$0xff]  ;;  %v18205_v53 = vrot.slane %v14264_v62, 2 }
 0x117   : > { %18190 = vst [vmem:[#allocation4_spill] sm:$0xff] %v14406_v59  ;;  %v1460_v6 = vadd.f32 %v1371_v43, %v18192_v50  ;;  %v1373_v22 = vsel %vm877_vm0, %v18196_v38, %v18195_v58  ;;  %v18198_v17 = vrot.slane %v18197_v0, 1  ;;  %v2079_v59 = vshll.u32 %v14356_v12, 16  ;;  %v18201_v50 = vld [vmem:[#allocation31_spill] sm:$0xff]  ;;  %v18241_v42 = vld [vmem:[#allocation33_spill] sm:$0xff] }
 0x118   : > { %v1461_v44 = vadd.f32 %v1373_v22, %v1261_v8  ;;  %v18202_v48 = vrot.slane %v18201_v50, 1  ;;  %v18204_v58 = vrot.slane %v14199_v33, 2  ;;  %v14438_v8 = vmul.f32 %v14343_v61, %v485_v18  ;;  %v18206_v22 = vld [vmem:[#allocation17_spill] sm:$0xff] }
 0x119   : > { %v1650_v20 = vsel %vm676_vm1, %v18199_v5, %v18198_v17  ;;  %v1534_v43 = vadd.f32 %v18200_v55, %v1460_v6  ;;  %v18203_v29 = vmov %v18198_v17  ;;  %v1111_v6 = vmul.f32 %v14351_v32, %v485_v18 }
 0x11a   : > { %v1652_v35 = vsel %vm676_vm1, %v18203_v29, %v18202_v48  ;;  %v920_v5 = vsel %vm877_vm0, %v18205_v53, %v18204_v58  ;;  %v1535_v17 = vadd.f32 %v18206_v22, %v1461_v44  ;;  %v720_v55 = vrot.slane %v632_v40, 1  ;;  %v18207_v48 = vld [vmem:[#allocation19_spill] sm:$0xff] }
 0x11b   : > { %v1739_v0 = vadd.f32 %v1650_v20, %v1534_v43  ;;  %v995_v29 = vadd.f32 %v920_v5, %v14304_v56  ;;  %v18208_v52 = vrot.slane %v18207_v48, 2  ;;  %v18209_v38 = vrot.slane %v13726_v13, 2 }
 0x11c   : > { %v921_v62 = vrot.slane %v14438_v8, 2  ;;  %v1037_v58 = vmul.f32 %v14387_v1, %v485_v18  ;;  %v14451_v53 = vmul.f32 %v14364_v31, %v485_v18  ;;  %v1740_v10 = vadd.f32 %v1652_v35, %v1535_v17 }
 0x11d   : > { %v1850_v54 = vsel %vm877_vm0, %v18209_v38, %v18208_v52  ;;  %v18211_v20 = vrot.slane %v14196_v3, 1  ;;  %v18212_v44 = vrot.slane %v14336_v16, 1  ;;  %v18213_v52 = vld [vmem:[#allocation32_spill] sm:$0xff]  ;;  %v18215_v38 = vrot.slane %v18207_v48, 2 }
 0x11e   : > { %18210 = vst [vmem:[#allocation22_spill] sm:$0xff] %v14451_v53  ;;  %v1939_v41 = vadd.f32 %v1850_v54, %v1739_v0  ;;  %v18214_v40 = vrot.slane %v18213_v52, 2  ;;  %v558_v8 = vmul.f32 %v14375_v46, %v485_v18  ;;  %v1196_v35 = vrot.slane %v1111_v6, 1  ;;  %v500_v0 = vpop.permute.xlu1 %499 }
 0x11f   : > { %v721_v56 = vsel %vm676_vm1, %v18211_v20, %v720_v55  ;;  %v723_v43 = vsel %vm676_vm1, %v720_v55, %v18212_v44  ;;  %v1069_v22 = vadd.f32 %v1037_v58, %v995_v29  ;;  %v14468_v17 = vmul.f32 %v13603_v7, %v485_v18  ;;  %v495_v44 = vpop.permute.xlu0 %494 }
 0x120   : > { %v1852_v5 = vsel %vm877_vm0, %v18215_v38, %v18214_v40  ;;  %v1978_v3 = vadd.f32 %v13992_v19, %v1939_v41  ;;  %v795_v55 = vadd.f32 %v721_v56, %v14205_v27  ;;  %v796_v20 = vadd.f32 %v723_v43, %v558_v8 }
 0x121   : > { %v1940_v54 = vadd.f32 %v1852_v5, %v1740_v10  ;;  %18216 = vst [vmem:[#allocation14_spill] sm:$0xff] %v14468_v17  ;;  %v14472_v13 = vrot.slane %v2079_v59, 1  ;;  %v18217_v40 = vrot.slane %v14199_v33, 2  ;;  %v14479_v41 = vmul.f32 %v13621_v9, %v485_v18 }
 0x122   : > { %v14482_v6 = vmul.f32 %v13626_v60, %v485_v18  ;;  %v18219_v29 = vrot.slane %v14208_v24, 1  ;;  %v18221_v59 = vrot.slane %v14354_v57, 1  ;;  %v14497_v56 = vmul.f32 %v14333_v45, %v500_v0 }
 0x123   : > { %v1979_v48 = vadd.f32 %v13992_v19, %v1940_v54  ;;  %v922_v10 = vsel %vm877_vm0, %v18217_v40, %v921_v62  ;;  %v14494_v33 = vsel %vm2062_vm3, %v2077_v15, %v14472_v13  ;;  %v2010_v43 = vmax.f32 %v1978_v3, 0.0 }
 0x124   : > { %18218 = vst [vmem:[#allocation20_spill] sm:$0xff] %v14482_v6  ;;  %v14487_v27 = vsel %vm676_vm1, %v18219_v29, %v1196_v35  ;;  %v1199_v58 = vsel %vm676_vm1, %v1196_v35, %v18221_v59  ;;  %18222 = vst [vmem:[#allocation21_spill] sm:$0xff] %v14494_v33  ;;  %11258 = vmatmul.mubr.msk.bf16.vlgmr.msra.gmra.mrb[0].mxu1 %vm2207_vm2, %v14494_v33  ;;  %v14502_v18 = vmul.f32 %v14343_v61, %v500_v0  ;;  %v18230_v29 = vld [vmem:[#allocation15_spill] sm:$0xff]  ;;  %v18235_v33 = vld [vmem:[#allocation24_spill] sm:$0xff] }
 0x125   : > { %18220 = vst [vmem:[#allocation18_spill] sm:$0xff] %v14487_v27  ;;  %v2011_v38 = vmax.f32 %v1979_v48, 0.0  ;;  %v14505_v24 = vmul.f32 %v14351_v32, %v500_v0  ;;  %v14507_v5 = vadd.f32 %v922_v10, %v795_v55  ;;  %v14509_v8 = vadd.f32 %v1199_v58, %v1069_v22  ;;  %v18229_v10 = vld [vmem:[#allocation23_spill] sm:$0xff]  ;;  %v18231_v58 = vld [vmem:[#allocation16_spill] sm:$0xff] }
 0x126   : > { %v14512_v15 = vmul.f32 %v14364_v31, %v500_v0  ;;  %v14515_v35 = vmul.f32 %v13621_v9, %v500_v0  ;;  %v14522_v40 = vmul.f32 %v14375_v46, %v500_v0  ;;  %v14526_v22 = vmul.f32 %v14387_v1, %v500_v0 }
 0x127   : > { %18223 = vst [vmem:[#allocation31_spill] sm:$0xff] %v14507_v5  ;;  %18224 = vst [vmem:[#allocation17_spill] sm:$0xff] %v14509_v8  ;;  %v14517_v54 = vpack.c.bf16 %v2011_v38, %v2010_v43  ;;  %v1058_v59 = vadd.f32 %v18230_v29, %v18229_v10  ;;  %v18232_v9 = vrot.slane %v18231_v58, 2  ;;  %v18233_v43 = vrot.slane %v18194_v47, 2  ;;  %v18238_v8 = vld [vmem:[#allocation30_spill] sm:$0xff] }
 0x128   : > { %18225 = vst [vmem:[#allocation19_spill] sm:$0xff] %v14512_v15  ;;  %18226 = vst [vmem:[#allocation32_spill] sm:$0xff] %v14515_v35  ;;  %v14540_v55 = vmul.f32 %v13603_v7, %v500_v0  ;;  %v14546_v47 = vmul.f32 %v13626_v60, %v500_v0  ;;  %v18239_v5 = vrot.slane %v18238_v8, 2  ;;  %v18240_v48 = vrot.slane %v18231_v58, 2 }
 0x129   : > { %18227 = vst [vmem:[#allocation66_spill] sm:$0xff] %v14517_v54  ;;  %18228 = vst [vmem:[#allocation67_spill] sm:$0xff] %v14526_v22  ;;  %v1375_v38 = vsel %vm877_vm0, %v18233_v43, %v18232_v9  ;;  %11298 = vmatmul.mubr.msk.bf16.gmra.mrb[4].mxu0 %vm2207_vm2, %v14517_v54  ;;  %v18237_v9 = vld [vmem:[#allocation34_spill] sm:$0xff]  ;;  %v634_v10 = vmul.f32 %v14333_v45, %v495_v44  ;;  %v18245_v0 = vrot.slane %v14346_v49, 2  ;;  %v18253_v15 = vrot.slane %v18213_v52, 2 }
 0x12a   : > { %18234 = vst [vmem:[#allocation23_spill] sm:$0xff] %v14540_v55  ;;  %v1462_v22 = vadd.f32 %v1375_v38, %v18235_v33  ;;  %18236 = vst [vmem:[#allocation15_spill] sm:$0xff] %v14546_v47  ;;  %v1263_v43 = vadd.f32 %v18237_v9, %v1058_v59  ;;  %v1377_v3 = vsel %vm877_vm0, %v18240_v48, %v18239_v5  ;;  %v18242_v55 = vld [vmem:[#allocation28_spill] sm:$0xff]  ;;  %v18244_v33 = vrot.slane %v18201_v50, 1  ;;  %v18247_v50 = vld [vmem:[#allocation27_spill] sm:$0xff] }
 0x12b   : > { %v18243_v17 = vrot.slane %v18242_v55, 1  ;;  %v924_v59 = vsel %vm877_vm0, %v921_v62, %v18245_v0  ;;  %v14565_v9 = vmul.f32 %v14343_v61, %v495_v44  ;;  %v1113_v5 = vmul.f32 %v14351_v32, %v495_v44  ;;  %v18251_v62 = vld [vmem:[#allocation29_spill] sm:$0xff] }
 0x12c   : > { %v1536_v7 = vadd.f32 %v18241_v42, %v1462_v22  ;;  %v1463_v60 = vadd.f32 %v1377_v3, %v1263_v43  ;;  %v997_v42 = vadd.f32 %v924_v59, %v796_v20  ;;  %v724_v22 = vrot.slane %v634_v10, 1 }
 0x12d   : > { %v1654_v38 = vsel %vm676_vm1, %v18244_v33, %v18243_v17  ;;  %v14569_v58 = vmul.f32 %v14364_v31, %v495_v44  ;;  %v18248_v33 = vld [vmem:[#allocation43_spill] sm:$0xff]  ;;  %v18250_v3 = vrot.slane %v18242_v55, 1  ;;  %v18252_v0 = vrot.slane %v18251_v62, 2 }
 0x12e   : > { %v1741_v48 = vadd.f32 %v1654_v38, %v1536_v7  ;;  %v1537_v17 = vadd.f32 %v18247_v50, %v1463_v60  ;;  %v18249_v29 = vrot.slane %v18248_v33, 1  ;;  %v1039_v20 = vmul.f32 %v14387_v1, %v495_v44 }
 0x12f   : > { %18246 = vst [vmem:[#allocation16_spill] sm:$0xff] %v14569_v58  ;;  %v1854_v35 = vsel %vm877_vm0, %v18253_v15, %v18252_v0  ;;  %v18254_v7 = vrot.slane %v14336_v16, 1  ;;  %v18255_v60 = vrot.slane %v14497_v56, 1  ;;  %v17975_v55 = vrot.slane %v14565_v9, 2  ;;  %v18256_v15 = vld [vmem:[#allocation44_spill] sm:$0xff] }
 0x130   : > { %v1656_v43 = vsel %vm676_vm1, %v18250_v3, %v18249_v29  ;;  %v1941_v10 = vadd.f32 %v1854_v35, %v1741_v48  ;;  %v560_v52 = vmul.f32 %v14375_v46, %v495_v44  ;;  %v1200_v3 = vrot.slane %v1113_v5, 1 }
 0x131   : > { %v725_v38 = vsel %vm676_vm1, %v18254_v7, %v724_v22  ;;  %v727_v59 = vsel %vm676_vm1, %v724_v22, %v18255_v60  ;;  %v1742_v50 = vadd.f32 %v1656_v43, %v1537_v17  ;;  %v18257_v0 = vrot.slane %v18256_v15, 2  ;;  %v14601_v22 = vld [vmem:[%s17876_s1 + $0x6] ss:$0 sm:$0xff] }
 0x132   : > { %v18258_v35 = vrot.slane %v18251_v62, 2  ;;  %v1071_v48 = vadd.f32 %v1039_v20, %v997_v42  ;;  %v14604_v60 = vmul.f32 %v14601_v22, %v495_v44  ;;  %v1980_v5 = vadd.f32 %v13992_v19, %v1941_v10  ;;  %v510_v62 = vpop.permute.xlu1 %509 }
 0x133   : > { %v797_v43 = vadd.f32 %v725_v38, %v14378_v14  ;;  %v798_v29 = vadd.f32 %v727_v59, %v560_v52  ;;  %v18260_v42 = vrot.slane %v14346_v49, 2  ;;  %v2083_v10 = vshrl.u32 %v14356_v12, 16 }
 0x134   : > { %v1856_v16 = vsel %vm877_vm0, %v18258_v35, %v18257_v0  ;;  %18259 = vst [vmem:[#allocation24_spill] sm:$0xff] %v14604_v60  ;;  %v14616_v0 = vld [vmem:[%s17876_s1 + $0x7] ss:$0 sm:$0xff]  ;;  %v2087_v14 = vshll.u32 %v14517_v54, 16  ;;  %v18262_v59 = vrot.slane %v14354_v57, 1  ;;  %v14644_v57 = vmul.f32 %v14333_v45, %v510_v62 }
 0x135   : > { %v1942_v17 = vadd.f32 %v1856_v16, %v1742_v50  ;;  %v926_v20 = vsel %vm877_vm0, %v18260_v42, %v17975_v55  ;;  %v14619_v35 = vmul.f32 %v14616_v0, %v495_v44  ;;  %v18264_v50 = vrot.slane %v14505_v24, 1  ;;  %v14635_v16 = vld [vmem:[%s17876_s1 + $0x8] ss:$0 sm:$0xff] }
 0x136   : > { %v14627_v49 = vsel %vm676_vm1, %v18262_v59, %v1200_v3  ;;  %v14638_v42 = vmul.f32 %v14635_v16, %v495_v44  ;;  %v2085_v7 = vor.u32 %v2083_v10, %v14472_v13  ;;  %v14647_v59 = vmul.f32 %v14343_v61, %v510_v62  ;;  %v18273_v44 = vld [vmem:[#allocation26_spill] sm:$0xff] }
 0x137   : > { %18261 = vst [vmem:[#allocation34_spill] sm:$0xff] %v14619_v35  ;;  %v1981_v38 = vadd.f32 %v13992_v19, %v1942_v17  ;;  %18263 = vst [vmem:[#allocation30_spill] sm:$0xff] %v14627_v49  ;;  %v1203_v52 = vsel %vm676_vm1, %v1200_v3, %v18264_v50  ;;  %v14641_v17 = vrot.slane %v2087_v14, 1  ;;  %v2012_v55 = vmax.f32 %v1980_v5, 0.0  ;;  %v12980_v5 = vld [vmem:[%s17877_s2 + $0x30] sm:$0xff]  }
 0x138   : > { %18265 = vst [vmem:[#allocation33_spill] sm:$0xff] %v14638_v42  ;;  %v14649_v50 = vadd.f32 %v926_v20, %v797_v43  ;;  %v14652_v12 = vmul.f32 %v14351_v32, %v510_v62  ;;  %v14654_v47 = vadd.f32 %v1203_v52, %v1071_v48  ;;  %v14662_v10 = vmul.f32 %v14364_v31, %v510_v62  ;;  %v18272_v52 = vld [vmem:[#allocation36_spill] sm:$0xff]  ;;  %v18284_v42 = vld [vmem:[#allocation45_spill] sm:$0xff] }
 0x139   : > { %v2013_v3 = vmax.f32 %v1981_v38, 0.0  ;;  %v14659_v13 = vsel %vm2062_vm3, %v2085_v7, %v14641_v17  ;;  %v14673_v48 = vmul.f32 %v14375_v46, %v510_v62  ;;  %v14676_v7 = vmul.f32 %v14387_v1, %v510_v62  ;;  %11361 = vmatprep.subr.bf16.mxu0 %v12980_v5  ;;  %v18285_v35 = vld [vmem:[#allocation40_spill] sm:$0xff] }
 0x13a   : > { %18266 = vst [vmem:[#allocation28_spill] sm:$0xff] %v14649_v50  ;;  %18267 = vst [vmem:[#allocation27_spill] sm:$0xff] %v14654_v47  ;;  %11261 = vmatprep.mubr.msk.bf16.mxu1 %vm2207_vm2, %v14659_v13  ;;  %v1060_v47 = vadd.f32 %v18273_v44, %v18272_v52  ;;  %v18276_v20 = vrot.slane %v18238_v8, 2  ;;  %v14691_v14 = vmul.f32 %v14601_v22, %v510_v62  ;;  %v18278_v44 = vld [vmem:[#allocation35_spill] sm:$0xff]  ;;  %v18286_v53 = vrot.slane %v18285_v35, 1 }
 0x13b   : > { %18268 = vst [vmem:[#allocation43_spill] sm:$0xff] %v14659_v13  ;;  %18269 = vst [vmem:[#allocation29_spill] sm:$0xff] %v14662_v10  ;;  %v14667_v43 = vpack.c.bf16 %v2013_v3, %v2012_v55  ;;  %v18274_v55 = vld [vmem:[#allocation25_spill] sm:$0xff]  ;;  %v505_v13 = vpop.permute.xlu0 %504  ;;  %v14694_v38 = vmul.f32 %v14616_v0, %v510_v62  ;;  %v14699_v8 = vmul.f32 %v14635_v16, %v510_v62  ;;  %v18287_v27 = vrot.slane %v18248_v33, 1 }
 0x13c   : > { %18271 = vst [vmem:[#allocation68_spill] sm:$0xff] %v14676_v7  ;;  %v18275_v3 = vrot.slane %v18274_v55, 2  ;;  %18277 = vst [vmem:[#allocation36_spill] sm:$0xff] %v14691_v14  ;;  %v18283_v49 = vrot.slane %v18274_v55, 2  ;;  %v18289_v62 = vmov %v18286_v53  ;;  %v18290_v55 = vrot.slane %v14502_v18, 2  ;;  %v18292_v33 = vld [vmem:[#allocation41_spill] sm:$0xff] }
 0x13d   : > { %18270 = vst [vmem:[#allocation44_spill] sm:$0xff] %v14667_v43  ;;  %11301 = vmatprep.mubr.msk.bf16.mxu0 %vm2207_vm2, %v14667_v43  ;;  %18279 = vst [vmem:[#allocation26_spill] sm:$0xff] %v14699_v8  ;;  %v18294_v35 = vrot.slane %v18256_v15, 2  ;;  %v18297_v15 = vrot.slane %v14644_v57, 1 }
 0x13e   : > { %v1379_v50 = vsel %vm877_vm0, %v18276_v20, %v18275_v3  ;;  %v18280_v20 = vld [vmem:[#allocation46_spill] sm:$0xff] }
 0x13f   : > { %v1464_v52 = vadd.f32 %v1379_v50, %v18278_v44  ;;  %v1265_v5 = vadd.f32 %v18280_v20, %v1060_v47  ;;  %v18281_v3 = vld [vmem:[#allocation42_spill] sm:$0xff]  ;;  %v1658_v50 = vsel %vm676_vm1, %v18287_v27, %v18286_v53  ;;  %v18288_v44 = vrot.slane %v14023_v36, 1 }
 0x140   : > { %v18282_v58 = vrot.slane %v18281_v3, 2  ;;  %v636_v20 = vmul.f32 %v14333_v45, %v505_v13  ;;  %v1115_v53 = vmul.f32 %v14351_v32, %v505_v13 }
 0x141   : > { %v1538_v14 = vadd.f32 %v18284_v42, %v1464_v52  ;;  %v1660_v47 = vsel %vm676_vm1, %v18289_v62, %v18288_v44  ;;  %v14725_v42 = vmul.f32 %v14343_v61, %v505_v13  ;;  %v18293_v52 = vrot.slane %v18292_v33, 2 }
 0x142   : > { %v1381_v7 = vsel %vm877_vm0, %v18283_v49, %v18282_v58  ;;  %v18291_v58 = vrot.slane %v14565_v9, 2  ;;  %v14755_v9 = vmul.f32 %v14601_v22, %v505_v13 }
 0x143   : > { %v1465_v60 = vadd.f32 %v1381_v7, %v1265_v5  ;;  %v1743_v27 = vadd.f32 %v1658_v50, %v1538_v14  ;;  %v1858_v44 = vsel %vm877_vm0, %v18294_v35, %v18293_v52  ;;  %v728_v7 = vrot.slane %v636_v20, 1  ;;  %v18295_v5 = vld [vmem:[#allocation39_spill] sm:$0xff] }
 0x144   : > { %v928_v49 = vsel %vm877_vm0, %v18291_v58, %v18290_v55  ;;  %v1041_v55 = vmul.f32 %v14387_v1, %v505_v13  ;;  %v14737_v58 = vmul.f32 %v14364_v31, %v505_v13  ;;  %v18296_v14 = vrot.slane %v14497_v56, 1  ;;  %18300 = vst [vmem:[#allocation25_spill] sm:$0xff] %v14755_v9 }
 0x145   : > { %v999_v62 = vadd.f32 %v928_v49, %v798_v29  ;;  %v1539_v10 = vadd.f32 %v18295_v5, %v1465_v60  ;;  %v1943_v6 = vadd.f32 %v1858_v44, %v1743_v27  ;;  %v731_v52 = vsel %vm676_vm1, %v728_v7, %v18297_v15 }
 0x146   : > { %v729_v50 = vsel %vm676_vm1, %v18296_v14, %v728_v7  ;;  %v1204_v29 = vrot.slane %v1115_v53, 1  ;;  %v562_v35 = vmul.f32 %v14375_v46, %v505_v13  ;;  %v18298_v5 = vrot.slane %v14028_v39, 2 }
 0x147   : > { %v1744_v49 = vadd.f32 %v1660_v47, %v1539_v10  ;;  %v18299_v27 = vrot.slane %v18292_v33, 2  ;;  %v799_v44 = vadd.f32 %v729_v50, %v14522_v40  ;;  %v1073_v14 = vadd.f32 %v1041_v55, %v999_v62  ;;  %v520_v47 = vpop.permute.xlu1 %519 }
 0x148   : > { %v1982_v7 = vadd.f32 %v13992_v19, %v1943_v6  ;;  %v800_v15 = vadd.f32 %v731_v52, %v562_v35  ;;  %v18301_v60 = vrot.slane %v14725_v42, 2  ;;  %v18302_v20 = vrot.slane %v14502_v18, 2 }
 0x149   : > { %v1860_v56 = vsel %vm877_vm0, %v18299_v27, %v18298_v5  ;;  %v18303_v5 = vrot.slane %v14505_v24, 1  ;;  %v2091_v62 = vshrl.u32 %v14517_v54, 16  ;;  %v2095_v55 = vshll.u32 %v14667_v43, 16 }
 0x14a   : > { %v1944_v53 = vadd.f32 %v1860_v56, %v1744_v49  ;;  %v930_v33 = vsel %vm877_vm0, %v18302_v20, %v18301_v60  ;;  %v18304_v50 = vrot.slane %v14652_v12, 1  ;;  %v14776_v49 = vmul.f32 %v14616_v0, %v505_v13 }
 0x14b   : > { %v14767_v40 = vsel %vm676_vm1, %v18303_v5, %v1204_v29  ;;  %v14779_v18 = vmul.f32 %v14635_v16, %v505_v13  ;;  %v14781_v24 = vadd.f32 %v930_v33, %v799_v44  ;;  %v2093_v20 = vor.u32 %v2091_v62, %v14641_v17  ;;  %v515_v33 = vpop.permute.xlu0 %514 }
 0x14c   : > { %v1983_v6 = vadd.f32 %v13992_v19, %v1944_v53  ;;  %v1207_v52 = vsel %vm676_vm1, %v1204_v29, %v18304_v50  ;;  %v14784_v60 = vrot.slane %v2095_v55, 1  ;;  %v14787_v35 = vmul.f32 %v14333_v45, %v520_v47  ;;  %v18312_v50 = vld [vmem:[#allocation47_spill] sm:$0xff] }
 0x14d   : > { %18305 = vst [vmem:[#allocation35_spill] sm:$0xff] %v14781_v24  ;;  %v2014_v27 = vmax.f32 %v1982_v7, 0.0  ;;  %v14790_v53 = vmul.f32 %v14343_v61, %v520_v47  ;;  %v14793_v29 = vmul.f32 %v14351_v32, %v520_v47  ;;  %v14795_v5 = vadd.f32 %v1207_v52, %v1073_v14  ;;  %v18313_v52 = vld [vmem:[#allocation37_spill] sm:$0xff] }
 0x14e   : > { %v2015_v56 = vmax.f32 %v1983_v6, 0.0  ;;  %v14799_v13 = vsel %vm2062_vm3, %v2093_v20, %v14784_v60  ;;  %v14802_v17 = vmul.f32 %v14364_v31, %v520_v47  ;;  %v14805_v44 = vmul.f32 %v14616_v0, %v520_v47 }
 0x14f   : > { %18306 = vst [vmem:[#allocation46_spill] sm:$0xff] %v14795_v5  ;;  %18307 = vst [vmem:[#allocation42_spill] sm:$0xff] %v14799_v13  ;;  %11262 = vmatmul.mubr.msk.bf16.gmra.mrb[4].mxu1 %vm2207_vm2, %v14799_v13  ;;  %v14814_v14 = vmul.f32 %v14375_v46, %v520_v47  ;;  %v14818_v6 = vmul.f32 %v14387_v1, %v520_v47  ;;  %v1062_v20 = vadd.f32 %v18313_v52, %v18312_v50 }
 0x150   : > { %18308 = vst [vmem:[#allocation45_spill] sm:$0xff] %v14802_v17  ;;  %18309 = vst [vmem:[#allocation40_spill] sm:$0xff] %v14805_v44  ;;  %v14807_v7 = vpack.c.bf16 %v2015_v56, %v2014_v27  ;;  %v18314_v27 = vld [vmem:[#allocation38_spill] sm:$0xff]  ;;  %v18316_v10 = vrot.slane %v18281_v3, 2  ;;  %v14832_v54 = vmul.f32 %v14601_v22, %v520_v47  ;;  %v14838_v3 = vmul.f32 %v14635_v16, %v520_v47 }
 0x151   : > { %18311 = vst [vmem:[#allocation39_spill] sm:$0xff] %v14818_v6  ;;  %v18315_v56 = vrot.slane %v18314_v27, 2  ;;  %v18318_v6 = vld [vmem:[#allocation48_spill] sm:$0xff]  ;;  %v18321_v13 = vrot.slane %v18314_v27, 2  ;;  %v638_v50 = vmul.f32 %v14333_v45, %v515_v33  ;;  %v18324_v52 = vrot.slane %v14181_v30, 1 }
 0x152   : > { %18310 = vst [vmem:[#allocation41_spill] sm:$0xff] %v14807_v7  ;;  %11302 = vmatmul.mubr.msk.bf16.gmra.mrb[8].mxu0 %vm2207_vm2, %v14807_v7  ;;  %18317 = vst [vmem:[#allocation47_spill] sm:$0xff] %v14832_v54  ;;  %v18322_v54 = vrot.slane %v13976_v34, 1  ;;  %v14859_v27 = vmul.f32 %v14343_v61, %v515_v33 }
 0x153   : > { %v1383_v62 = vsel %vm877_vm0, %v18316_v10, %v18315_v56  ;;  %18319 = vst [vmem:[#allocation37_spill] sm:$0xff] %v14838_v3  ;;  %v1267_v10 = vadd.f32 %v14042_v2, %v1062_v20  ;;  %v18320_v56 = vrot.slane %v14011_v11, 2 }
 0x154   : > { %v1466_v5 = vadd.f32 %v1383_v62, %v18318_v6  ;;  %v18323_v62 = vrot.slane %v14023_v36, 1  ;;  %v18325_v2 = vmov %v18322_v54  ;;  %v18327_v36 = vrot.slane %v14028_v39, 2 }
 0x155   : > { %v1385_v55 = vsel %vm877_vm0, %v18321_v13, %v18320_v56  ;;  %v1664_v20 = vsel %vm676_vm1, %v18325_v2, %v18324_v52  ;;  %v18326_v13 = vrot.slane %v13979_v23, 2  ;;  %v732_v56 = vrot.slane %v638_v50, 1  ;;  %v18330_v52 = vld [vmem:[#allocation51_spill] sm:$0xff] }
 0x156   : > { %v1540_v24 = vadd.f32 %v14037_v4, %v1466_v5  ;;  %v1662_v6 = vsel %vm676_vm1, %v18323_v62, %v18322_v54  ;;  %v1467_v47 = vadd.f32 %v1385_v55, %v1267_v10  ;;  %v1117_v4 = vmul.f32 %v14351_v32, %v515_v33 }
 0x157   : > { %v1862_v54 = vsel %vm877_vm0, %v18327_v36, %v18326_v13  ;;  %v18328_v55 = vrot.slane %v14647_v59, 2  ;;  %v18329_v10 = vrot.slane %v14725_v42, 2  ;;  %v933_v17 = vrot.slane %v14859_v27, 2 }
 0x158   : > { %v1745_v5 = vadd.f32 %v1662_v6, %v1540_v24  ;;  %v1541_v62 = vadd.f32 %v18330_v52, %v1467_v47  ;;  %v14875_v24 = vmul.f32 %v14364_v31, %v515_v33  ;;  %v18332_v39 = vrot.slane %v14644_v57, 1 }
 0x159   : > { %v932_v34 = vsel %vm877_vm0, %v18329_v10, %v18328_v55  ;;  %v18333_v36 = vrot.slane %v14787_v35, 1  ;;  %v1208_v44 = vrot.slane %v1117_v4, 1  ;;  %v564_v50 = vmul.f32 %v14375_v46, %v515_v33 }
 0x15a   : > { %v1001_v2 = vadd.f32 %v932_v34, %v800_v15  ;;  %18331 = vst [vmem:[#allocation38_spill] sm:$0xff] %v14875_v24  ;;  %v1945_v6 = vadd.f32 %v1862_v54, %v1745_v5  ;;  %v733_v13 = vsel %vm676_vm1, %v18332_v39, %v732_v56  ;;  %v1746_v55 = vadd.f32 %v1664_v20, %v1541_v62 }
 0x15b   : > { %v735_v42 = vsel %vm676_vm1, %v732_v56, %v18333_v36  ;;  %v801_v15 = vadd.f32 %v733_v13, %v14673_v48  ;;  %v1043_v47 = vmul.f32 %v14387_v1, %v515_v33  ;;  %v18334_v5 = vrot.slane %v14188_v51, 2  ;;  %v14907_v36 = vpop.permute.xlu1 %529 }
 0x15c   : > { %v18335_v57 = vrot.slane %v13979_v23, 2  ;;  %v1984_v10 = vadd.f32 %v13992_v19, %v1945_v6  ;;  %v14894_v34 = vmul.f32 %v14601_v22, %v515_v33  ;;  %v802_v4 = vadd.f32 %v735_v42, %v564_v50 }
 0x15d   : > { %v1075_v56 = vadd.f32 %v1043_v47, %v1001_v2  ;;  %v18337_v52 = vrot.slane %v14647_v59, 2  ;;  %v18338_v39 = vrot.slane %v14652_v12, 1  ;;  %v2099_v13 = vshrl.u32 %v14667_v43, 16  ;;  %v18377_v43 = vld [vmem:[#allocation54_spill] sm:$0xff] }
 0x15e   : > { %v1864_v54 = vsel %vm877_vm0, %v18335_v57, %v18334_v5  ;;  %18336 = vst [vmem:[#allocation48_spill] sm:$0xff] %v14894_v34  ;;  %v2103_v6 = vshll.u32 %v14807_v7, 16  ;;  %v14916_v50 = vmul.f32 %v14616_v0, %v515_v33  ;;  %v2016_v12 = vmax.f32 %v1984_v10, 0.0 }
 0x15f   : > { %v1946_v20 = vadd.f32 %v1864_v54, %v1746_v55  ;;  %v934_v62 = vsel %vm877_vm0, %v18337_v52, %v933_v17  ;;  %v14903_v23 = vsel %vm676_vm1, %v18338_v39, %v1208_v44  ;;  %v18341_v55 = vrot.slane %v14793_v29, 1 }
 0x160   : > { %18339 = vst [vmem:[#allocation51_spill] sm:$0xff] %v14903_v23  ;;  %v14910_v2 = vadd.f32 %v934_v62, %v801_v15  ;;  %18342 = vst [vmem:[#allocation70_spill] sm:$0xff] %v14916_v50  ;;  %v14919_v47 = vmul.f32 %v14635_v16, %v515_v33  ;;  %v2101_v5 = vor.u32 %v2099_v13, %v14784_v60  ;;  %v2105_v57 = vrot.slane %v2103_v6, 1  ;;  %v18349_v6 = vld [vmem:[#allocation50_spill] sm:$0xff] }
 0x161   : > { %v1985_v42 = vadd.f32 %v13992_v19, %v1946_v20  ;;  %v1211_v59 = vsel %vm676_vm1, %v1208_v44, %v18341_v55  ;;  %v14924_v19 = vmul.f32 %v14333_v45, %v14907_v36  ;;  %v14928_v15 = vmul.f32 %v14351_v32, %v14907_v36  ;;  %v18346_v20 = vld [vmem:[#allocation49_spill] sm:$0xff] }
 0x162   : > { %18340 = vst [vmem:[#allocation69_spill] sm:$0xff] %v14910_v2  ;;  %18343 = vst [vmem:[#allocation71_spill] sm:$0xff] %v14919_v47  ;;  %v14932_v44 = vmul.f32 %v14364_v31, %v14907_v36  ;;  %v14935_v10 = vsel %vm2062_vm3, %v2101_v5, %v2105_v57  ;;  %v14939_v60 = vmul.f32 %v14616_v0, %v14907_v36  ;;  %v18351_v55 = vrot.slane %v14011_v11, 2 }
 0x163   : > { %v2017_v54 = vmax.f32 %v1985_v42, 0.0  ;;  %18344 = vst [vmem:[#allocation72_spill] sm:$0xff] %v14935_v10  ;;  %v14943_v33 = vmul.f32 %v14635_v16, %v14907_v36  ;;  %v1064_v52 = vadd.f32 %v18346_v20, %v14052_v21  ;;  %v14949_v39 = vadd.f32 %v1211_v59, %v1075_v56  ;;  %11265 = vmatprep.mubr.msk.bf16.mxu1 %vm2207_vm2, %v14935_v10  ;;  %v18357_v20 = vld [vmem:[#allocation10_spill] sm:$0xff] }
 0x164   : > { %v18350_v42 = vrot.slane %v18349_v6, 2  ;;  %v14962_v21 = vmul.f32 %v14601_v22, %v14907_v36  ;;  %v18355_v48 = vrot.slane %v14090_v63, 1  ;;  %v18356_v13 = vrot.slane %v14181_v30, 1 }
 0x165   : > { %18345 = vst [vmem:[#allocation73_spill] sm:$0xff] %v14943_v33  ;;  %v14947_v62 = vpack.c.bf16 %v2017_v54, %v2016_v12  ;;  %18348 = vst [vmem:[#allocation74_spill] sm:$0xff] %v14949_v39  ;;  %v1269_v56 = vadd.f32 %v14193_v26, %v1064_v52  ;;  %v14966_v12 = vpop.permute.xlu0 %524  ;;  %v18358_v11 = vrot.slane %v18357_v20, 1  ;;  %v18364_v63 = vrot.slane %v14188_v51, 2  ;;  %v18368_v51 = vld [vmem:[#allocation11_spill] sm:$0xff] }
 0x166   : > { %v1387_v5 = vsel %vm877_vm0, %v18351_v55, %v18350_v42  ;;  %18352 = vst [vmem:[#allocation50_spill] sm:$0xff] %v14962_v21  ;;  %v18353_v42 = vrot.slane %v14165_v37, 2  ;;  %v18354_v55 = vrot.slane %v18349_v6, 2  ;;  %v1666_v54 = vsel %vm676_vm1, %v18356_v13, %v18355_v48 }
 0x167   : > { %18347 = vst [vmem:[#allocation49_spill] sm:$0xff] %v14947_v62  ;;  %v1468_v59 = vadd.f32 %v1387_v5, %v14058_v25  ;;  %11305 = vmatprep.mubr.msk.bf16.mxu0 %vm2207_vm2, %v14947_v62  ;;  %v18359_v10 = vmov %v18355_v48  ;;  %v14999_v30 = vmul.f32 %v14333_v45, %v14966_v12  ;;  %v18362_v48 = vld [vmem:[#allocation56_spill] sm:$0xff]  ;;  %v2107_v26 = vshrl.u32 %v14807_v7, 16 }
 0x168   : > { %v1389_v27 = vsel %vm877_vm0, %v18354_v55, %v18353_v42  ;;  %v1668_v6 = vsel %vm676_vm1, %v18359_v10, %v18358_v11  ;;  %v18360_v42 = vrot.slane %v14790_v53, 2  ;;  %v18363_v13 = vrot.slane %v18362_v48, 2 }
 0x169   : > { %v1469_v52 = vadd.f32 %v1389_v27, %v1269_v56  ;;  %v1542_v5 = vadd.f32 %v14175_v28, %v1468_v59  ;;  %v1119_v27 = vmul.f32 %v14351_v32, %v14966_v12  ;;  %v18361_v28 = vld [vmem:[#allocation55_spill] sm:$0xff]  ;;  %v15010_v11 = vmul.f32 %v14364_v31, %v14966_v12 }
 0x16a   : > { %v936_v55 = vsel %vm877_vm0, %v933_v17, %v18360_v42  ;;  %v1866_v10 = vsel %vm877_vm0, %v18364_v63, %v18363_v13  ;;  %v1045_v17 = vmul.f32 %v14387_v1, %v14966_v12  ;;  %v15018_v42 = vmul.f32 %v14635_v16, %v14966_v12 }
 0x16b   : > { %v1543_v56 = vadd.f32 %v18361_v28, %v1469_v52  ;;  %v1747_v59 = vadd.f32 %v1666_v54, %v1542_v5  ;;  %v1003_v25 = vadd.f32 %v936_v55, %v802_v4  ;;  %18365 = vst [vmem:[#allocation10_spill] sm:$0xff] %v15010_v11  ;;  %v15014_v4 = vmul.f32 %v14616_v0, %v14966_v12 }
 0x16c   : > { %v1212_v5 = vrot.slane %v1119_v27, 1  ;;  %18367 = vst [vmem:[#allocation56_spill] sm:$0xff] %v15018_v42  ;;  %v18369_v55 = vrot.slane %v18368_v51, 2  ;;  %v18370_v28 = vmov %v18363_v13  ;;  %v15027_v63 = vmul.f32 %v14601_v22, %v14966_v12  ;;  %v18382_v42 = vld [vmem:[#allocation12_spill] sm:$0xff] }
 0x16d   : > { %18366 = vst [vmem:[#allocation55_spill] sm:$0xff] %v15014_v4  ;;  %v1748_v54 = vadd.f32 %v1668_v6, %v1543_v56  ;;  %v1947_v52 = vadd.f32 %v1866_v10, %v1747_v59  ;;  %v2111_v6 = vshll.u32 %v14947_v62, 16  ;;  %v1011_v56 = vpop.permute.xlu1 %1010  ;;  %v15034_v59 = vld [vmem:[%s17880_s5] ss:$0 sm:$0xff]  ;;  %v2109_v33 = vor.u32 %v2107_v26, %v2105_v57  ;;  %v18375_v26 = vld [vmem:[#allocation57_spill] sm:$0xff] }
 0x16e   : > { %v1868_v13 = vsel %vm877_vm0, %v18370_v28, %v18369_v55  ;;  %18371 = vst [vmem:[#allocation11_spill] sm:$0xff] %v15027_v63  ;;  %v1077_v55 = vadd.f32 %v1045_v17, %v1003_v25  ;;  %v15054_v17 = vmul.f32 %v14364_v31, %v1011_v56  ;;  %v15057_v57 = vmul.f32 %v14616_v0, %v1011_v56 }
 0x16f   : > { %v1948_v27 = vadd.f32 %v1868_v13, %v1748_v54  ;;  %v1986_v10 = vadd.f32 %v15034_v59, %v1947_v52  ;;  %v2113_v7 = vrot.slane %v2111_v6, 1  ;;  %v18372_v54 = vrot.slane %v14793_v29, 1  ;;  %v18376_v6 = vld [vmem:[#allocation53_spill] sm:$0xff] }
 0x170   : > { %v15048_v52 = vmul.f32 %v14351_v32, %v1011_v56  ;;  %v1066_v29 = vadd.f32 %v18376_v6, %v18375_v26  ;;  %v15064_v63 = vmul.f32 %v14635_v16, %v1011_v56  ;;  %v18379_v48 = vrot.slane %v14165_v37, 2  ;;  %v18381_v26 = vld [vmem:[#allocation58_spill] sm:$0xff] }
 0x171   : > { %v1987_v21 = vadd.f32 %v15034_v59, %v1948_v27  ;;  %v15044_v13 = vsel %vm676_vm1, %v18372_v54, %v1212_v5  ;;  %v15051_v25 = vsel %vm2062_vm3, %v2109_v33, %v2113_v7  ;;  %v2018_v27 = vmax.f32 %v1986_v10, 0.0  ;;  %v18380_v10 = vld [vmem:[#allocation2_spill] sm:$0xff] }
 0x172   : > { %18373 = vst [vmem:[#allocation75_spill] sm:$0xff] %v15044_v13  ;;  %18374 = vst [vmem:[#allocation76_spill] sm:$0xff] %v15051_v25  ;;  %11266 = vmatmul.mubr.msk.bf16.gmra.mrb[8].mxu1 %vm2207_vm2, %v15051_v25  ;;  %v18378_v33 = vrot.slane %v18377_v43, 2  ;;  %v15072_v39 = vmul.f32 %v14387_v1, %v1011_v56  ;;  %v15075_v13 = vmul.f32 %v14601_v22, %v1011_v56  ;;  %v18383_v3 = vrot.slane %v18382_v42, 2  ;;  %v15090_v56 = vpop.permute.xlu0 %603 }
 0x173   : > { %v2019_v54 = vmax.f32 %v1987_v21, 0.0  ;;  %v1271_v21 = vadd.f32 %v18380_v10, %v1066_v29  ;;  %v18389_v2 = vrot.slane %v18357_v20, 1  ;;  %v15115_v43 = vmul.f32 %v14343_v61, %v15090_v56 }
 0x174   : > { %v1391_v28 = vsel %vm877_vm0, %v18379_v48, %v18378_v33  ;;  %v18384_v37 = vmov %v18378_v33  ;;  %v18385_v33 = vrot.slane %v14928_v15, 1  ;;  %v18393_v20 = vrot.slane %v14479_v41, 1 }
 0x175   : > { %v1470_v6 = vadd.f32 %v1391_v28, %v18381_v26  ;;  %v15079_v25 = vpack.c.bf16 %v2019_v54, %v2018_v27  ;;  %v1393_v48 = vsel %vm877_vm0, %v18384_v37, %v18383_v3  ;;  %v18386_v28 = vld [vmem:[#allocation5_spill] sm:$0xff]  ;;  %v18387_v3 = vld [vmem:[#allocation60_spill] sm:$0xff]  ;;  %v18395_v26 = vld [vmem:[#allocation3_spill] sm:$0xff] }
 0x176   : > { %v1215_v4 = vsel %vm676_vm1, %v1212_v5, %v18385_v33  ;;  %v1471_v10 = vadd.f32 %v1393_v48, %v1271_v21  ;;  %v18388_v37 = vrot.slane %v18387_v3, 1  ;;  %v18390_v33 = vrot.slane %v14932_v44, 2 }
 0x177   : > { %v1544_v27 = vadd.f32 %v18386_v28, %v1470_v6  ;;  %v1282_v54 = vadd.f32 %v1215_v4, %v1077_v55  ;;  %11306 = vmatmul.mubr.msk.bf16.gmra.mrb[12].mxu0 %vm2207_vm2, %v15079_v25  ;;  %v18391_v21 = vrot.slane %v15010_v11, 2  ;;  %v18392_v4 = vld [vmem:[#allocation63_spill] sm:$0xff]  ;;  %v15111_v28 = vmul.f32 %v14333_v45, %v15090_v56 }
 0x178   : > { %v1670_v5 = vsel %vm676_vm1, %v18389_v2, %v18388_v37  ;;  %v1545_v55 = vadd.f32 %v18392_v4, %v1471_v10  ;;  %v18394_v2 = vmov %v18388_v37  ;;  %v18396_v29 = vrot.slane %v18395_v26, 2 }
 0x179   : > { %v1415_v6 = vsel %vm877_vm0, %v18391_v21, %v18390_v33  ;;  %v1749_v48 = vadd.f32 %v1670_v5, %v1544_v27  ;;  %v1672_v37 = vsel %vm676_vm1, %v18394_v2, %v18393_v20  ;;  %v18397_v33 = vrot.slane %v18368_v51, 2  ;;  %v18398_v27 = vld [vmem:[#allocation20_spill] sm:$0xff]  ;;  %v1490_v51 = vpop.permute.xlu1 %1489 }
 0x17a   : > { %v18399_v5 = vrot.slane %v18398_v27, 2  ;;  %v18400_v45 = vmov %v18396_v29  ;;  %v1482_v4 = vadd.f32 %v1415_v6, %v1282_v54  ;;  %v1750_v11 = vadd.f32 %v1672_v37, %v1545_v55 }
 0x17b   : > { %v1870_v10 = vsel %vm877_vm0, %v18397_v33, %v18396_v29  ;;  %v15134_v3 = vmul.f32 %v14616_v0, %v15090_v56  ;;  %v15138_v20 = vmul.f32 %v14635_v16, %v15090_v56  ;;  %v1121_v29 = vmul.f32 %v14351_v32, %v15090_v56 }
 0x17c   : > { %v1872_v21 = vsel %vm877_vm0, %v18400_v45, %v18399_v5  ;;  %v1949_v34 = vadd.f32 %v1870_v10, %v1749_v48  ;;  %v1524_v26 = vmul.f32 %v14601_v22, %v15090_v56  ;;  %v2115_v2 = vshrl.u32 %v14947_v62, 16 }
 0x17d   : > { %18401 = vst [vmem:[#allocation57_spill] sm:$0xff] %v15138_v20  ;;  %v2119_v54 = vshll.u32 %v15079_v25, 16  ;;  %v1950_v6 = vadd.f32 %v1872_v21, %v1750_v11  ;;  %v15154_v45 = vmul.f32 %v14616_v0, %v1490_v51  ;;  %v18403_v21 = vld [vmem:[#allocation8_spill] sm:$0xff] }
 0x17e   : > { %v1988_v55 = vadd.f32 %v15034_v59, %v1949_v34  ;;  %v15149_v33 = vadd.f32 %v1524_v26, %v1482_v4  ;;  %v2117_v10 = vor.u32 %v2115_v2, %v2113_v7  ;;  %v18404_v34 = vld [vmem:[#allocation62_spill] sm:$0xff]  ;;  %v15166_v7 = vmul.f32 %v14601_v22, %v1490_v51  ;;  %v18407_v26 = vld [vmem:[#allocation59_spill] sm:$0xff] }
 0x17f   : > { %v15151_v5 = vrot.slane %v2119_v54, 1  ;;  %v1989_v47 = vadd.f32 %v15034_v59, %v1950_v6  ;;  %v1068_v24 = vadd.f32 %v18404_v34, %v18403_v21  ;;  %v15169_v4 = vmul.f32 %v14635_v16, %v1490_v51  ;;  %v18410_v21 = vld [vmem:[#allocation18_spill] sm:$0xff]  ;;  %v18411_v34 = vld [vmem:[#allocation9_spill] sm:$0xff] }
 0x180   : > { %18402 = vst [vmem:[#allocation53_spill] sm:$0xff] %v15149_v33  ;;  %18406 = vst [vmem:[#allocation2_spill] sm:$0xff] %v15166_v7  ;;  %v18408_v2 = vrot.slane %v18407_v26, 2  ;;  %v18409_v54 = vrot.slane %v18382_v42, 2  ;;  %v2020_v11 = vmax.f32 %v1988_v55, 0.0  ;;  %v18412_v33 = vld [vmem:[#allocation22_spill] sm:$0xff] }
 0x181   : > { %v15163_v37 = vsel %vm2062_vm3, %v2117_v10, %v15151_v5  ;;  %v2021_v48 = vmax.f32 %v1989_v47, 0.0  ;;  %v1273_v10 = vadd.f32 %v18410_v21, %v1068_v24  ;;  %v18413_v51 = vrot.slane %v18412_v33, 2  ;;  %v18415_v42 = vld [vmem:[#allocation13_spill] sm:$0xff] }
 0x182   : > { %18405 = vst [vmem:[#allocation54_spill] sm:$0xff] %v15163_v37  ;;  %v1395_v6 = vsel %vm877_vm0, %v18409_v54, %v18408_v2  ;;  %11269 = vmatprep.mubr.msk.bf16.mxu1 %vm2207_vm2, %v15163_v37  ;;  %v18414_v23 = vmov %v18408_v2  ;;  %v18416_v7 = vrot.slane %v18415_v42, 1  ;;  %v18417_v55 = vrot.slane %v14479_v41, 1  ;;  %v18430_v37 = vld [vmem:[#allocation33_spill] sm:$0xff] }
 0x183   : > { %v1472_v62 = vadd.f32 %v1395_v6, %v18411_v34  ;;  %v1397_v8 = vsel %vm877_vm0, %v18414_v23, %v18413_v51  ;;  %v566_v2 = vmul.f32 %v14375_v46, %v14966_v12  ;;  %v15193_v24 = vpack.c.bf16 %v2021_v48, %v2020_v11  ;;  %v18418_v6 = vld [vmem:[#allocation14_spill] sm:$0xff]  ;;  %v18426_v11 = vld [vmem:[#allocation4_spill] sm:$0xff] }
 0x184   : > { %v1674_v47 = vsel %vm676_vm1, %v18417_v55, %v18416_v7  ;;  %v1473_v54 = vadd.f32 %v1397_v8, %v1273_v10  ;;  %v18419_v34 = vrot.slane %v14999_v30, 1  ;;  %v18420_v26 = vrot.slane %v14787_v35, 1  ;;  %v18421_v51 = vld [vmem:[#allocation34_spill] sm:$0xff] }
 0x185   : > { %v1546_v21 = vadd.f32 %v18418_v6, %v1472_v62  ;;  %v18422_v20 = vrot.slane %v18421_v51, 1  ;;  %v18423_v41 = vmov %v18416_v7  ;;  %v18424_v55 = vrot.slane %v14924_v19, 1  ;;  %11309 = vmatprep.mubr.msk.bf16.mxu0 %vm2207_vm2, %v15193_v24 }
 0x186   : > { %v737_v23 = vsel %vm676_vm1, %v18420_v26, %v18419_v34  ;;  %v18425_v48 = vmov %v18419_v34  ;;  %v841_v62 = vmul.f32 %v14343_v61, %v14966_v12  ;;  %v15215_v35 = vmul.f32 %v14343_v61, %v14907_v36  ;;  %v18427_v34 = vld [vmem:[#allocation6_spill] sm:$0xff] }
 0x187   : > { %v1676_v7 = vsel %vm676_vm1, %v18423_v41, %v18422_v20  ;;  %v739_v8 = vsel %vm676_vm1, %v18425_v48, %v18424_v55  ;;  %v1547_v10 = vadd.f32 %v18426_v11, %v1473_v54  ;;  %v1751_v42 = vadd.f32 %v1674_v47, %v1546_v21 }
 0x188   : > { %v803_v20 = vadd.f32 %v737_v23, %v14814_v14  ;;  %v804_v6 = vadd.f32 %v739_v8, %v566_v2  ;;  %v18428_v30 = vrot.slane %v18427_v34, 2  ;;  %v18429_v26 = vrot.slane %v18398_v27, 2  ;;  %v1085_v2 = vpop.permute.xlu0 %1084 }
 0x189   : > { %v937_v12 = vrot.slane %v841_v62, 2  ;;  %v939_v55 = vrot.slane %v15215_v35, 2  ;;  %v1216_v61 = vrot.slane %v1121_v29, 1  ;;  %v1752_v48 = vadd.f32 %v1676_v7, %v1547_v10 }
 0x18a   : > { %v1874_v41 = vsel %vm877_vm0, %v18429_v26, %v18428_v30  ;;  %v18431_v50 = vrot.slane %v18430_v37, 2  ;;  %v18432_v9 = vmov %v18428_v30  ;;  %v1321_v14 = vmul.f32 %v14364_v31, %v15090_v56 }
 0x18b   : > { %v1951_v54 = vadd.f32 %v1874_v41, %v1751_v42  ;;  %v18433_v27 = vrot.slane %v14790_v53, 2  ;;  %v940_v29 = vsel %vm877_vm0, %v937_v12, %v939_v55  ;;  %v1046_v23 = vmul.f32 %v14387_v1, %v14907_v36 }
 0x18c   : > { %v1876_v47 = vsel %vm877_vm0, %v18432_v9, %v18431_v50  ;;  %v1047_v7 = vmul.f32 %v14387_v1, %v15090_v56  ;;  %v1005_v62 = vadd.f32 %v940_v29, %v804_v6  ;;  %v18434_v11 = vrot.slane %v14928_v15, 1  ;;  %v18439_v29 = vld [vmem:[#allocation65_spill] sm:$0xff] }
 0x18d   : > { %v938_v21 = vsel %vm877_vm0, %v18433_v27, %v937_v12  ;;  %v1952_v9 = vadd.f32 %v1876_v47, %v1752_v48  ;;  %v1990_v50 = vadd.f32 %v15034_v59, %v1951_v54  ;;  %v18435_v10 = vrot.slane %v15048_v52, 1 }
 0x18e   : > { %v1004_v8 = vadd.f32 %v938_v21, %v803_v20  ;;  %v1217_v53 = vsel %vm676_vm1, %v18434_v11, %v1216_v61  ;;  %v1416_v34 = vrot.slane %v1321_v14, 2  ;;  %v15252_v30 = vmul.f32 %v14351_v32, %v1085_v2 }
 0x18f   : > { %v1219_v42 = vsel %vm676_vm1, %v1216_v61, %v18435_v10  ;;  %v1991_v26 = vadd.f32 %v15034_v59, %v1952_v9  ;;  %v1079_v56 = vadd.f32 %v1047_v7, %v1005_v62  ;;  %v15256_v41 = vmul.f32 %v14364_v31, %v1085_v2 }
 0x190   : > { %v1078_v1 = vadd.f32 %v1046_v23, %v1004_v8  ;;  %v2022_v20 = vmax.f32 %v1990_v50, 0.0  ;;  %v18436_v15 = vrot.slane %v14932_v44, 2  ;;  %v1526_v12 = vmul.f32 %v14601_v22, %v1085_v2  ;;  %v18438_v44 = vld [vmem:[#allocation31_spill] sm:$0xff] }
 0x191   : > { %v1600_v61 = vmul.f32 %v14616_v0, %v1085_v2  ;;  %v2023_v48 = vmax.f32 %v1991_v26, 0.0  ;;  %v1284_v32 = vadd.f32 %v1219_v42, %v1079_v56  ;;  %v1800_v54 = vmul.f32 %v14635_v16, %v1085_v2 }
 0x192   : > { %v1417_v6 = vsel %vm877_vm0, %v18436_v15, %v1416_v34  ;;  %v1283_v47 = vadd.f32 %v1217_v53, %v1078_v1  ;;  %v18437_v14 = vrot.slane %v15054_v17, 2  ;;  %v2123_v31 = vshrl.u32 %v15079_v25, 16 }
 0x193   : > { %v2127_v21 = vshll.u32 %v15193_v24, 16  ;;  %v1070_v23 = vadd.f32 %v18439_v29, %v18438_v44  ;;  %v15271_v7 = vpack.c.bf16 %v2023_v48, %v2022_v20  ;;  %v1695_v50 = vrot.slane %v1600_v61, 1  ;;  %v18445_v48 = vld [vmem:[#allocation64_spill] sm:$0xff] }
 0x194   : > { %v1419_v27 = vsel %vm877_vm0, %v1416_v34, %v18437_v14  ;;  %v1483_v22 = vadd.f32 %v1417_v6, %v1283_v47  ;;  %v1897_v8 = vrot.slane %v15169_v4, 2  ;;  %v1895_v62 = vrot.slane %v1800_v54, 2  ;;  %v18444_v6 = vld [vmem:[#allocation30_spill] sm:$0xff] }
 0x195   : > { %v1484_v9 = vadd.f32 %v1419_v27, %v1284_v32  ;;  %v2125_v2 = vor.u32 %v2123_v31, %v15151_v5  ;;  %v2129_v11 = vrot.slane %v2127_v21, 1  ;;  %v18440_v53 = vrot.slane %v15134_v3, 1  ;;  %11310 = vmatmul.mubr.msk.bf16.gmra.mrb[16].mxu0 %vm2207_vm2, %v15271_v7  ;;  %v18452_v21 = vld [vmem:[#allocation17_spill] sm:$0xff] }
 0x196   : > { %v18441_v10 = vrot.slane %v14939_v60, 1  ;;  %v18442_v34 = vrot.slane %v15057_v57, 1  ;;  %v1557_v5 = vadd.f32 %v15075_v13, %v1483_v22  ;;  %v1220_v20 = vrot.slane %v15252_v30, 1  ;;  %v18449_v30 = vld [vmem:[#allocation16_spill] sm:$0xff] }
 0x197   : > { %v18443_v26 = vmov %v18440_v53  ;;  %v1558_v56 = vadd.f32 %v1526_v12, %v1484_v9  ;;  %v15294_v15 = vsel %vm2062_vm3, %v2125_v2, %v2129_v11  ;;  %v1275_v61 = vadd.f32 %v18444_v6, %v1070_v23  ;;  %v18456_v6 = vld [vmem:[#allocation23_spill] sm:$0xff] }
 0x198   : > { %v15280_v42 = vsel %vm676_vm1, %v18441_v10, %v18440_v53  ;;  %v15287_v1 = vsel %vm676_vm1, %v18443_v26, %v18442_v34  ;;  %v18446_v47 = vrot.slane %v18445_v48, 2  ;;  %v18447_v3 = vrot.slane %v18412_v33, 2  ;;  %11270 = vmatmul.mubr.msk.bf16.gmra.mrb[12].mxu1 %vm2207_vm2, %v15294_v15  ;;  %v18455_v53 = vld [vmem:[#allocation24_spill] sm:$0xff]  ;;  %v1564_v26 = vpop.permute.xlu0 %1563 }
 0x199   : > { %v1420_v54 = vrot.slane %v15256_v41, 2  ;;  %v18448_v14 = vmov %v18442_v34  ;;  %v18450_v12 = vrot.slane %v18449_v30, 2  ;;  %v18453_v33 = vrot.slane %v15154_v45, 1 }
 0x19a   : > { %v1399_v32 = vsel %vm877_vm0, %v18447_v3, %v18446_v47  ;;  %v1696_v13 = vsel %vm676_vm1, %v18448_v14, %v1695_v50  ;;  %v18451_v27 = vmov %v18446_v47  ;;  %v18454_v41 = vrot.slane %v15064_v63, 2 }
 0x19b   : > { %v1401_v31 = vsel %vm877_vm0, %v18451_v27, %v18450_v12  ;;  %v1474_v44 = vadd.f32 %v1399_v32, %v18452_v21  ;;  %v1698_v29 = vsel %vm676_vm1, %v1695_v50, %v18453_v33  ;;  %v1898_v23 = vsel %vm877_vm0, %v1895_v62, %v1897_v8  ;;  %v18457_v50 = vld [vmem:[#allocation32_spill] sm:$0xff] }
 0x19c   : > { %v1896_v57 = vsel %vm877_vm0, %v18454_v41, %v1895_v62  ;;  %v1475_v22 = vadd.f32 %v1401_v31, %v1275_v61  ;;  %v1762_v9 = vadd.f32 %v1696_v13, %v1557_v5  ;;  %v1763_v2 = vadd.f32 %v1698_v29, %v1558_v56  ;;  %v18464_v13 = vld [vmem:[#allocation15_spill] sm:$0xff] }
 0x19d   : > { %v1548_v10 = vadd.f32 %v18455_v53, %v1474_v44  ;;  %v567_v34 = vmul.f32 %v14375_v46, %v14907_v36  ;;  %v18458_v47 = vrot.slane %v18457_v50, 1  ;;  %v18459_v3 = vrot.slane %v18421_v51, 1 }
 0x19e   : > { %v1549_v48 = vadd.f32 %v18456_v6, %v1475_v22  ;;  %v18460_v14 = vrot.slane %v14776_v49, 1  ;;  %v18462_v56 = vrot.slane %v15111_v28, 1  ;;  %v18463_v61 = vrot.slane %v14924_v19, 1 }
 0x19f   : > { %v1678_v32 = vsel %vm676_vm1, %v18459_v3, %v18458_v47  ;;  %v18461_v62 = vmov %v18458_v47  ;;  %v18465_v12 = vrot.slane %v18464_v13, 2  ;;  %v18466_v27 = vrot.slane %v18430_v37, 2 }
 0x1a0   : > { %v1680_v5 = vsel %vm676_vm1, %v18461_v62, %v18460_v14  ;;  %v741_v46 = vsel %vm676_vm1, %v18463_v61, %v18462_v56  ;;  %v1753_v36 = vadd.f32 %v1678_v32, %v1548_v10  ;;  %v18467_v31 = vrot.slane %v14779_v18, 2 }
 0x1a1   : > { %v1878_v51 = vsel %vm877_vm0, %v18466_v27, %v18465_v12  ;;  %v18468_v21 = vmov %v18465_v12  ;;  %v805_v33 = vadd.f32 %v741_v46, %v567_v34  ;;  %v1754_v29 = vadd.f32 %v1680_v5, %v1549_v48 }
 0x1a2   : > { %v1880_v44 = vsel %vm877_vm0, %v18468_v21, %v18467_v31  ;;  %v18469_v28 = vrot.slane %v15115_v43, 2  ;;  %v1602_v41 = vmul.f32 %v14616_v0, %v1564_v26  ;;  %v1802_v37 = vmul.f32 %v14635_v16, %v1564_v26  ;;  %v18473_v26 = vld [vmem:[#allocation67_spill] sm:$0xff] }
 0x1a3   : > { %v1962_v22 = vadd.f32 %v1896_v57, %v1762_v9  ;;  %v1963_v53 = vadd.f32 %v1898_v23, %v1763_v2  ;;  %v1953_v10 = vadd.f32 %v1878_v51, %v1753_v36  ;;  %v1954_v50 = vadd.f32 %v1880_v44, %v1754_v29 }
 0x1a4   : > { %v942_v19 = vsel %vm877_vm0, %v939_v55, %v18469_v28  ;;  %v18470_v47 = vrot.slane %v15048_v52, 1  ;;  %v1699_v48 = vrot.slane %v1602_v41, 1  ;;  %v2131_v43 = vshrl.u32 %v15193_v24, 16  ;;  %v18472_v52 = vld [vmem:[#allocation28_spill] sm:$0xff]  ;;  %v18484_v28 = vld [vmem:[#allocation70_spill] sm:$0xff] }
 0x1a5   : > { %v1006_v6 = vadd.f32 %v942_v19, %v805_v33  ;;  %v1992_v35 = vadd.f32 %v15034_v59, %v1953_v10  ;;  %v18471_v0 = vrot.slane %v15054_v17, 2  ;;  %v2135_v57 = vshll.u32 %v15271_v7, 16  ;;  %v18483_v33 = vld [vmem:[#allocation25_spill] sm:$0xff]  ;;  %v18487_v10 = vld [vmem:[#allocation2_spill] sm:$0xff] }
 0x1a6   : > { %v1221_v34 = vsel %vm676_vm1, %v18470_v47, %v1220_v20  ;;  %v1993_v23 = vadd.f32 %v15034_v59, %v1954_v50  ;;  %v1899_v9 = vrot.slane %v1802_v37, 2  ;;  %v2133_v2 = vor.u32 %v2131_v43, %v2129_v11  ;;  %v18478_v11 = vld [vmem:[#allocation27_spill] sm:$0xff]  ;;  %v18488_v50 = vld [vmem:[#allocation26_spill] sm:$0xff] }
 0x1a7   : > { %v1080_v55 = vadd.f32 %v15072_v39, %v1006_v6  ;;  %v1421_v16 = vsel %vm877_vm0, %v18471_v0, %v1420_v54  ;;  %v1072_v20 = vadd.f32 %v18473_v26, %v18472_v52  ;;  %v18474_v32 = vrot.slane %v15154_v45, 1  ;;  %v18475_v39 = vld [vmem:[#allocation19_spill] sm:$0xff]  ;;  %v18493_v0 = vld [vmem:[#allocation36_spill] sm:$0xff] }
 0x1a8   : > { %v2137_v62 = vrot.slane %v2135_v57, 1  ;;  %v18476_v5 = vrot.slane %v18475_v39, 2  ;;  %v18477_v17 = vrot.slane %v18449_v30, 2  ;;  %v2024_v56 = vmax.f32 %v1992_v35, 0.0  ;;  %v18491_v43 = vld [vmem:[#allocation35_spill] sm:$0xff]  ;;  %v18492_v35 = vld [vmem:[#allocation68_spill] sm:$0xff] }
 0x1a9   : > { %v1285_v3 = vadd.f32 %v1221_v34, %v1080_v55  ;;  %v1700_v14 = vsel %vm676_vm1, %v18474_v32, %v1699_v48  ;;  %v2025_v61 = vmax.f32 %v1993_v23, 0.0  ;;  %v1277_v46 = vadd.f32 %v14767_v40, %v1072_v20  ;;  %v18494_v23 = vld [vmem:[#allocation29_spill] sm:$0xff]  ;;  %v18498_v39 = vld [vmem:[#allocation38_spill] sm:$0xff] }
 0x1aa   : > { %v1403_v54 = vsel %vm877_vm0, %v18477_v17, %v18476_v5  ;;  %v15383_v12 = vsel %vm2062_vm3, %v2133_v2, %v2137_v62  ;;  %v18479_v45 = vrot.slane %v14737_v58, 2  ;;  %v18480_v27 = vmov %v18476_v5 }
 0x1ab   : > { %v1476_v36 = vadd.f32 %v1403_v54, %v18478_v11  ;;  %v1485_v13 = vadd.f32 %v1421_v16, %v1285_v3  ;;  %v18481_v30 = vrot.slane %v14694_v38, 1  ;;  %v18482_v31 = vrot.slane %v14776_v49, 1  ;;  %11273 = vmatprep.mubr.msk.bf16.mxu1 %vm2207_vm2, %v15383_v12  ;;  %v18497_v3 = vld [vmem:[#allocation51_spill] sm:$0xff]  ;;  %v18501_v11 = vld [vmem:[#allocation46_spill] sm:$0xff] }
 0x1ac   : > { %v1405_v51 = vsel %vm877_vm0, %v18480_v27, %v18479_v45  ;;  %v15395_v44 = vpack.c.bf16 %v2025_v61, %v2024_v56  ;;  %v18485_v19 = vrot.slane %v18484_v28, 1  ;;  %v18489_v49 = vrot.slane %v18488_v50, 2 }
 0x1ad   : > { %v1682_v21 = vsel %vm676_vm1, %v18482_v31, %v18481_v30  ;;  %v1477_v40 = vadd.f32 %v1405_v51, %v1277_v46  ;;  %v1550_v29 = vadd.f32 %v18483_v33, %v1476_v36  ;;  %v18486_v41 = vmov %v18481_v30  ;;  %v18506_v33 = vld [vmem:[#allocation48_spill] sm:$0xff] }
 0x1ae   : > { %v1684_v37 = vsel %vm676_vm1, %v18486_v41, %v18485_v19  ;;  %v1559_v6 = vadd.f32 %v18487_v10, %v1485_v13  ;;  %v18490_v47 = vrot.slane %v14779_v18, 2  ;;  %v2139_v48 = vshrl.u32 %v15271_v7, 16  ;;  %11313 = vmatprep.mubr.msk.bf16.mxu0 %vm2207_vm2, %v15395_v44  ;;  %v18502_v13 = vld [vmem:[#allocation53_spill] sm:$0xff]  ;;  %v18507_v19 = vld [vmem:[#allocation47_spill] sm:$0xff] }
 0x1af   : > { %v1074_v55 = vadd.f32 %v18492_v35, %v18491_v43  ;;  %v1551_v38 = vadd.f32 %v18493_v0, %v1477_v40  ;;  %v1755_v16 = vadd.f32 %v1682_v21, %v1550_v29  ;;  %v2143_v57 = vshll.u32 %v15395_v44, 16  ;;  %v18514_v43 = vld [vmem:[#allocation37_spill] sm:$0xff] }
 0x1b0   : > { %v1882_v34 = vsel %vm877_vm0, %v18490_v47, %v18489_v49  ;;  %v18495_v2 = vrot.slane %v18494_v23, 2  ;;  %v18496_v52 = vmov %v18479_v45  ;;  %v1764_v26 = vadd.f32 %v1700_v14, %v1559_v6  ;;  %v18503_v14 = vld [vmem:[#allocation71_spill] sm:$0xff]  ;;  %v18520_v23 = vld [vmem:[#allocation69_spill] sm:$0xff] }
 0x1b1   : > { %v2141_v20 = vor.u32 %v2139_v48, %v2137_v62  ;;  %v1279_v32 = vadd.f32 %v18497_v3, %v1074_v55  ;;  %v18499_v5 = vrot.slane %v18498_v39, 2  ;;  %v1756_v56 = vadd.f32 %v1684_v37, %v1551_v38  ;;  %v18508_v37 = vld [vmem:[#allocation40_spill] sm:$0xff]  ;;  %v18522_v3 = vld [vmem:[#allocation45_spill] sm:$0xff] }
 0x1b2   : > { %v1407_v18 = vsel %vm877_vm0, %v18496_v52, %v18495_v2  ;;  %v18500_v17 = vmov %v18495_v2  ;;  %v1955_v61 = vadd.f32 %v1882_v34, %v1755_v16  ;;  %v2145_v46 = vrot.slane %v2143_v57, 1  ;;  %v18511_v34 = vld [vmem:[#allocation55_spill] sm:$0xff] }
 0x1b3   : > { %v1409_v54 = vsel %vm877_vm0, %v18500_v17, %v18499_v5  ;;  %v1478_v36 = vadd.f32 %v1407_v18, %v18501_v11  ;;  %v1761_v58 = vadd.f32 %v15287_v1, %v18502_v13  ;;  %v15433_v45 = vadd.f32 %v15034_v59, %v1962_v22  ;;  %v18521_v2 = vld [vmem:[#allocation39_spill] sm:$0xff] }
 0x1b4   : > { %v18504_v62 = vrot.slane %v18503_v14, 2  ;;  %v18505_v27 = vmov %v18489_v49  ;;  %v1479_v30 = vadd.f32 %v1409_v54, %v1279_v32  ;;  %v1994_v21 = vadd.f32 %v15034_v59, %v1955_v61  ;;  %v18524_v61 = vld [vmem:[#allocation75_spill] sm:$0xff] }
 0x1b5   : > { %v15442_v40 = vsel %vm2062_vm3, %v2141_v20, %v2145_v46  ;;  %v1552_v29 = vadd.f32 %v18506_v33, %v1478_v36  ;;  %v2002_v1 = vadd.f32 %v15034_v59, %v1963_v53  ;;  %v1900_v22 = vsel %vm877_vm0, %v1897_v8, %v1899_v9  ;;  %v18525_v36 = vld [vmem:[#allocation74_spill] sm:$0xff] }
 0x1b6   : > { %v1884_v51 = vsel %vm877_vm0, %v18505_v27, %v18504_v62  ;;  %11274 = vmatmul.mubr.msk.bf16.gmra.mrb[16].mxu1 %vm2207_vm2, %v15442_v40  ;;  %v1553_v41 = vadd.f32 %v18507_v19, %v1479_v30  ;;  %v18509_v10 = vrot.slane %v18508_v37, 1  ;;  %v18510_v6 = vrot.slane %v18484_v28, 1  ;;  %v18517_v28 = vld [vmem:[#allocation56_spill] sm:$0xff] }
 0x1b7   : > { %v1956_v31 = vadd.f32 %v1884_v51, %v1756_v56  ;;  %v1964_v49 = vadd.f32 %v1900_v22, %v1764_v26  ;;  %v18512_v53 = vrot.slane %v18511_v34, 1  ;;  %v18515_v35 = vrot.slane %v18514_v43, 2  ;;  %v18526_v51 = vld [vmem:[#allocation10_spill] sm:$0xff] }
 0x1b8   : > { %v1686_v50 = vsel %vm676_vm1, %v18510_v6, %v18509_v10  ;;  %v18513_v4 = vmov %v18509_v10  ;;  %v18516_v55 = vmov %v18504_v62  ;;  %v18518_v38 = vrot.slane %v18517_v28, 2 }
 0x1b9   : > { %v1995_v47 = vadd.f32 %v15034_v59, %v1956_v31  ;;  %v1688_v8 = vsel %vm676_vm1, %v18513_v4, %v18512_v53  ;;  %v1757_v9 = vadd.f32 %v1686_v50, %v1552_v29  ;;  %v1886_v0 = vsel %vm877_vm0, %v18516_v55, %v18515_v35  ;;  %v18529_v29 = vld [vmem:[#allocation11_spill] sm:$0xff] }
 0x1ba   : > { %v1758_v48 = vadd.f32 %v1688_v8, %v1553_v41  ;;  %v18519_v16 = vmov %v18515_v35  ;;  %v1076_v52 = vadd.f32 %v18521_v2, %v18520_v23  ;;  %v2026_v18 = vmax.f32 %v1994_v21, 0.0  ;;  %v18535_v8 = vld [vmem:[#allocation50_spill] sm:$0xff] }
 0x1bb   : > { %v1888_v57 = vsel %vm877_vm0, %v18519_v16, %v18518_v38  ;;  %v2027_v26 = vmax.f32 %v1995_v47, 0.0  ;;  %v1957_v20 = vadd.f32 %v1886_v0, %v1757_v9  ;;  %v18523_v32 = vrot.slane %v18522_v3, 2  ;;  %v18536_v38 = vld [vmem:[#allocation73_spill] sm:$0xff] }
 0x1bc   : > { %v2033_v54 = vmax.f32 %v15433_v45, 0.0  ;;  %v1958_v56 = vadd.f32 %v1888_v57, %v1758_v48  ;;  %v1281_v11 = vadd.f32 %v18524_v61, %v1076_v52  ;;  %v2003_v14 = vadd.f32 %v15034_v59, %v1964_v49  ;;  %v18533_v49 = vld [vmem:[#allocation57_spill] sm:$0xff] }
 0x1bd   : > { %v1411_v17 = vsel %vm877_vm0, %v18499_v5, %v18523_v32  ;;  %v15484_v62 = vpack.c.bf16 %v2027_v26, %v2026_v18  ;;  %v1996_v27 = vadd.f32 %v15034_v59, %v1957_v20  ;;  %v18527_v30 = vrot.slane %v18526_v51, 2 }
 0x1be   : > { %v1480_v13 = vadd.f32 %v1411_v17, %v18525_v36  ;;  %v18528_v31 = vmov %v18523_v32  ;;  %v1997_v21 = vadd.f32 %v15034_v59, %v1958_v56  ;;  %v2147_v45 = vshrl.u32 %v15395_v44, 16 }
 0x1bf   : > { %v1413_v39 = vsel %vm877_vm0, %v18528_v31, %v18527_v30  ;;  %11314 = vmatmul.mubr.msk.bf16.gmra.mrb[20].mxu0 %vm2207_vm2, %v15484_v62  ;;  %v2028_v19 = vmax.f32 %v1996_v27, 0.0  ;;  %v2151_v41 = vshll.u32 %v15484_v62, 16  ;;  %v18530_v37 = vrot.slane %v14939_v60, 1 }
 0x1c0   : > { %v1481_v33 = vadd.f32 %v1413_v39, %v1281_v11  ;;  %v1554_v22 = vadd.f32 %v18529_v29, %v1480_v13  ;;  %v18531_v10 = vmov %v18512_v53  ;;  %v18532_v50 = vrot.slane %v15064_v63, 2 }
 0x1c1   : > { %v1690_v6 = vsel %vm676_vm1, %v18531_v10, %v18530_v37  ;;  %v18534_v47 = vrot.slane %v18533_v49, 2  ;;  %v2029_v4 = vmax.f32 %v1997_v21, 0.0  ;;  %v2035_v35 = vmax.f32 %v2003_v14, 0.0 }
 0x1c2   : > { %v1555_v9 = vadd.f32 %v18535_v8, %v1481_v33  ;;  %v1759_v48 = vadd.f32 %v1690_v6, %v1554_v22  ;;  %v2149_v55 = vor.u32 %v2147_v45, %v2145_v46  ;;  %v2153_v0 = vrot.slane %v2151_v41, 1  ;;  %v18541_v41 = vld [vmem:[#allocation61_spill] sm:$0xff] }
 0x1c3   : > { %v1894_v53 = vsel %vm877_vm0, %v18534_v47, %v18532_v50  ;;  %v18537_v60 = vrot.slane %v18536_v38, 2  ;;  %v18538_v34 = vrot.slane %v18517_v28, 2  ;;  %v15514_v57 = vpack.c.bf16 %v2029_v4, %v2028_v19  ;;  %v18542_v50 = vld [vmem:[#allocation52_spill] sm:$0xff]  ;;  %v12981_v38 = vld [vmem:[%s17877_s2 + $0x38] sm:$0xff]  }
 0x1c4   : > { %v1961_v43 = vadd.f32 %v1894_v53, %v1761_v58  ;;  %v1760_v63 = vadd.f32 %v15280_v42, %v1555_v9  ;;  %v2034_v52 = vmax.f32 %v2002_v1, 0.0  ;;  %v15519_v18 = vsel %vm2062_vm3, %v2149_v55, %v2153_v0 }
 0x1c5   : > { %v1890_v16 = vsel %vm877_vm0, %v18538_v34, %v18537_v60  ;;  %v18539_v46 = vmov %v18534_v47  ;;  %v18540_v58 = vmov %v18537_v60  ;;  %v2155_v28 = vshrl.u32 %v15484_v62, 16  ;;  %11317 = vmatprep.mubr.msk.bf16.mxu0 %vm2207_vm2, %v15514_v57  ;;  %11277 = vmatprep.mubr.msk.bf16.mxu1 %vm2207_vm2, %v15519_v18 }
 0x1c6   : > { %v1959_v23 = vadd.f32 %v1890_v16, %v1759_v48  ;;  %v2000_v2 = vadd.f32 %v15034_v59, %v1961_v43  ;;  %v1892_v26 = vsel %vm877_vm0, %v18540_v58, %v18539_v46  ;;  %v2159_v20 = vshll.u32 %v15514_v57, 16  ;;  %v18544_v48 = vld [vmem:[#allocation7_spill] sm:$0xff]  ;;  %v13254_v16 = vld [vmem:[%s17877_s2 + $0x30] sm:$0xff]  }
 0x1c7   : > { %v1960_v42 = vadd.f32 %v1892_v26, %v1760_v63  ;;  %v15533_v32 = vpack.c.bf16 %v2035_v35, %v2034_v52  ;;  %v2157_v17 = vor.u32 %v2155_v28, %v2153_v0  ;;  %v2646_v37 = vrot.slane %v18541_v41, 1  ;;  %v18545_v35 = vld [vmem:[#allocation66_spill] sm:$0xff]  ;;  %v18547_v52 = vld [vmem:[#allocation41_spill] sm:$0xff] }
 0x1c8   : > { %v1998_v1 = vadd.f32 %v15034_v59, %v1959_v23  ;;  %v2032_v3 = vmax.f32 %v2000_v2, 0.0  ;;  %v2161_v56 = vrot.slane %v2159_v20, 1  ;;  %v2645_v49 = vrot.slane %v18542_v50, 1  ;;  %v12982_v63 = vld [vmem:[%s17877_s2 + $0x40] sm:$0xff]   ;;  %v18546_v23 = vld [vmem:[#allocation44_spill] sm:$0xff]  ;;  %v18548_v28 = vld [vmem:[#allocation49_spill] sm:$0xff] }
 0x1c9   : > { %v1999_v5 = vadd.f32 %v15034_v59, %v1960_v42  ;;  %v2183_v27 = vshll.u32 %v15533_v32, 16  ;;  %v2163_v59 = vshrl.u32 %v15514_v57, 16  ;;  %v2187_v53 = vshrl.u32 %v15533_v32, 16 }
 0x1ca   : > { %v15536_v61 = vpack.c.bf16 %v2033_v54, %v2032_v3  ;;  %v2030_v11 = vmax.f32 %v1998_v1, 0.0  ;;  %v15539_v13 = vsel %vm2062_vm3, %v2157_v17, %v2161_v56  ;;  %v2647_v47 = vsel %vm676_vm1, %v2645_v49, %v2646_v37 }
 0x1cb   : > { %v2031_v36 = vmax.f32 %v1999_v5, 0.0  ;;  %11278 = vmatmul.mubr.msk.bf16.gmra.mrb[20].mxu1 %vm2207_vm2, %v15539_v13  ;;  %v2185_v39 = vrot.slane %v2183_v27, 1  ;;  %v2165_v21 = vor.u32 %v2163_v59, %v2161_v56  ;;  %v18543_v8 = vmov 0  }
 0x1cc   : > { %v2175_v14 = vshll.u32 %v15536_v61, 16  ;;  %v2179_v31 = vshrl.u32 %v15536_v61, 16  ;;  %v15578_v9 = vrot.slane %v18543_v8, 1  ;;  %v2648_v43 = vrot.slane %v18544_v48, 1 }
 0x1cd   : > { %v15545_v51 = vpack.c.bf16 %v2031_v36, %v2030_v11  ;;  %v2189_v4 = vor.u32 %v2187_v53, %v2185_v39  ;;  %v2650_v55 = vrot.slane %v18545_v35, 1  ;;  %v2652_v2 = vrot.slane %v18546_v23, 1 }
 0x1ce   : > { %v2177_v30 = vrot.slane %v2175_v14, 1  ;;  %v15590_v60 = vsel %vm676_vm1, %v2646_v37, %v2648_v43  ;;  %v2654_v46 = vrot.slane %v18547_v52, 1  ;;  %v2656_v42 = vrot.slane %v18548_v28, 1 }
 0x1cf   : > { %11318 = vmatmul.mubr.msk.bf16.gmra.mrb[24].mxu0 %vm2207_vm2, %v15545_v51  ;;  %v2167_v54 = vshll.u32 %v15545_v51, 16  ;;  %v2171_v33 = vshrl.u32 %v15545_v51, 16  ;;  %v15584_v0 = vsel %vm2062_vm3, %v2189_v4, %v15578_v9  ;;  %v15597_v34 = vsel %vm676_vm1, %v2648_v43, %v2650_v55  ;;  %v12983_v43 = vld [vmem:[%s17877_s2 + $0x48] sm:$0xff]  }
 0x1d0   : > { %11321 = vmatprep.mubr.msk.bf16.mxu0 %vm2207_vm2, %v15536_v61  ;;  %v2181_v29 = vor.u32 %v2179_v31, %v2177_v30  ;;  %v15610_v58 = vsel %vm676_vm1, %v2650_v55, %v2652_v2  ;;  %v15615_v26 = vsel %vm676_vm1, %v2652_v2, %v2654_v46  ;;  %v2658_v1 = vrot.slane %v15079_v25, 1  ;;  %v18549_v2 = vld [vmem:[#allocation21_spill] sm:$0xff] }
 0x1d1   : > { %v2169_v45 = vrot.slane %v2167_v54, 1  ;;  %v15622_v20 = vsel %vm676_vm1, %v2654_v46, %v2656_v42  ;;  %v2660_v5 = vrot.slane %v15193_v24, 1  ;;  %v2662_v17 = vrot.slane %v15271_v7, 1 }
 0x1d2   : > { %v15562_v10 = vsel %vm2062_vm3, %v2181_v29, %v2185_v39  ;;  %v15627_v3 = vsel %vm676_vm1, %v2656_v42, %v2658_v1  ;;  %v2664_v36 = vrot.slane %v15395_v44, 1  ;;  %v2666_v14 = vrot.slane %v15484_v62, 1 }
 0x1d3   : > { %v15556_v22 = vsel %vm2062_vm3, %v2165_v21, %v2169_v45  ;;  %v2173_v19 = vor.u32 %v2171_v33, %v2169_v45  ;;  %v15634_v56 = vsel %vm676_vm1, %v2658_v1, %v2660_v5  ;;  %v15639_v11 = vsel %vm676_vm1, %v2660_v5, %v2662_v17  ;;  %v12985_v1 = vld [vmem:[%s17877_s2 + $0x58] sm:$0xff]  }
 0x1d4   : > { %11281 = vmatprep.mubr.msk.bf16.mxu1 %vm2207_vm2, %v15556_v22  ;;  %v15646_v27 = vsel %vm676_vm1, %v2662_v17, %v2664_v36  ;;  %v2668_v59 = vrot.slane %v15514_v57, 1  ;;  %v2670_v54 = vrot.slane %v15545_v51, 1  ;;  %v2672_v21 = vrot.slane %v15536_v61, 1 }
 0x1d5   : > { %v15565_v6 = vsel %vm2062_vm3, %v2173_v19, %v2177_v30  ;;  %v15651_v30 = vsel %vm676_vm1, %v2664_v36, %v2666_v14  ;;  %v2674_v45 = vrot.slane %v15533_v32, 1  ;;  %v18033_v19 = vmov 0.0|0.0   ;;  %v18552_v36 = vld [vmem:[#allocation43_spill] sm:$0xff] }
 0x1d6   : > { %11282 = vmatmul.mubr.msk.bf16.gmra.mrb[24].mxu1 %vm2207_vm2, %v15565_v6  ;;  %v15658_v31 = vsel %vm676_vm1, %v2666_v14, %v2668_v59  ;;  %v15663_v39 = vsel %vm676_vm1, %v2668_v59, %v2670_v54  ;;  %v15670_v33 = vsel %vm676_vm1, %v2670_v54, %v2672_v21  ;;  %v15680_v37 = vrot.slane %v18033_v19, 1  ;;  %v18553_v14 = vld [vmem:[#allocation42_spill] sm:$0xff]  ;;  %v18554_v54 = vld [vmem:[#allocation72_spill] sm:$0xff] }
 0x1d7   : > { %11322 = vmatmul.mubr.msk.bf16.gmra.mrb[28].mxu0 %vm2207_vm2, %v15533_v32  ;;  %11285 = vmatprep.mubr.msk.bf16.mxu1 %vm2207_vm2, %v15562_v10  ;;  %v15675_v29 = vsel %vm676_vm1, %v2672_v21, %v2674_v45  ;;  %v12986_v59 = vld [vmem:[%s17877_s2 + $0x60] sm:$0xff]   ;;  %v18555_v21 = vld [vmem:[#allocation76_spill] sm:$0xff] }
 0x1d8   : > { %11329 = vmatprep.mubr.msk.bf16.mxu0 %vm2207_vm2, %v2647_v47  ;;  %v15684_v50 = vsel %vm676_vm1, %v2674_v45, %v15680_v37  ;;  %v18556_v45 = vld [vmem:[#allocation54_spill] sm:$0xff] }
 0x1de   : > { %11286 = vmatmul.mubr.msk.bf16.gmra.mrb[28].mxu1 %vm2207_vm2, %v15584_v0 }
 0x1df   : > { %11330 = vmatmul.mubr.msk.bf16.vlgmr.msra.gmra.mrb[0].mxu0 %vm2207_vm2, %v15590_v60 }
 0x1e0   : > { %11362 = vmatpush3.bf16.msra.mxu0 %v13254_v16  ;;  %11333 = vmatprep.mubr.msk.bf16.mxu0 %vm2207_vm2, %v15597_v34 }
 0x1e1   : > { %11363 = vmatprep.subr.bf16.mxu0 %v12981_v38 }
 0x1e4   : > { %11364 = vmatpush3.bf16.msra.mxu0 %v12981_v38 }
 0x1e5   : > { %11397 = vmatprep.subr.bf16.mxu0 %v12982_v63 }
 0x1e7   : > { %11334 = vmatmul.mubr.msk.bf16.gmra.mrb[4].mxu0 %vm2207_vm2, %v15610_v58 }
 0x1e8   : > { %11337 = vmatprep.mubr.msk.bf16.mxu0 %vm2207_vm2, %v15615_v26 }
 0x1ef   : > { %11338 = vmatmul.mubr.msk.bf16.gmra.mrb[8].mxu0 %vm2207_vm2, %v15622_v20 }
 0x1f0   : > { %11341 = vmatprep.mubr.msk.bf16.mxu0 %vm2207_vm2, %v15627_v3 }
 0x1f7   : > { %11342 = vmatmul.mubr.msk.bf16.gmra.mrb[12].mxu0 %vm2207_vm2, %v15634_v56  ;;  %v15690_v49 = vpop.f32.mrb[0].mxu1 }
 0x1f8   : > { %11345 = vmatprep.mubr.msk.bf16.mxu0 %vm2207_vm2, %v15639_v11  ;;  %v15692_v47 = vpop.f32.mrb[1].mxu1 }
 0x1f9   : > { %v15694_v53 = vpop.f32.mrb[2].mxu1 }
 0x1fa   : > { %v15696_v4 = vpop.f32.mrb[3].mxu1 }
 0x1ff   : > { %11346 = vmatmul.mubr.msk.bf16.gmra.mrb[16].mxu0 %vm2207_vm2, %v15646_v27 }
 0x200   : > { %11349 = vmatprep.mubr.msk.bf16.mxu0 %vm2207_vm2, %v15651_v30 }
 0x207   : > { %11350 = vmatmul.mubr.msk.bf16.gmra.mrb[20].mxu0 %vm2207_vm2, %v15658_v31 }
 0x208   : > { %11353 = vmatprep.mubr.msk.bf16.mxu0 %vm2207_vm2, %v15663_v39 }
 0x20f   : > { %11354 = vmatmul.mubr.msk.bf16.gmra.mrb[24].mxu0 %vm2207_vm2, %v15670_v33 }
 0x210   : > { %11357 = vmatprep.mubr.msk.bf16.mxu0 %vm2207_vm2, %v15675_v29 }
 0x217   : > { %11358 = vmatmul.mubr.msk.bf16.gmra.mrb[28].mxu0 %vm2207_vm2, %v15684_v50 }
 0x218   : > { %11365 = vmatprep.mubr.msk.bf16.mxu0 %vm2207_vm2, %v18541_v41  ;;  %v12984_v41 = vld [vmem:[%s17877_s2 + $0x50] sm:$0xff]  }
 0x21f   : > { %11366 = vmatmul.mubr.msk.bf16.vlgmr.msra.gmra.mrb[0].mxu0 %vm2207_vm2, %v18544_v48 }
 0x220   : > { %11398 = vmatpush3.bf16.msra.mxu0 %v12982_v63  ;;  %11369 = vmatprep.mubr.msk.bf16.mxu0 %vm2207_vm2, %v18545_v35 }
 0x221   : > { %11399 = vmatprep.subr.bf16.mxu0 %v12983_v43 }
 0x222   : > { %v15720_v55 = vpop.f32.mrb[4].mxu1 }
 0x223   : > { %v15722_v38 = vpop.f32.mrb[5].mxu1 }
 0x224   : > { %11400 = vmatpush3.bf16.msra.mxu0 %v12983_v43  ;;  %v15726_v16 = vpop.f32.mrb[6].mxu1 }
 0x225   : > { %11433 = vmatprep.subr.bf16.mxu0 %v12984_v41  ;;  %v15730_v63 = vpop.f32.mrb[7].mxu1 }
 0x227   : > { %11370 = vmatmul.mubr.msk.bf16.gmra.mrb[4].mxu0 %vm2207_vm2, %v18546_v23 }
 0x228   : > { %11373 = vmatprep.mubr.msk.bf16.mxu0 %vm2207_vm2, %v18547_v52 }
 0x22f   : > { %11374 = vmatmul.mubr.msk.bf16.gmra.mrb[8].mxu0 %vm2207_vm2, %v18548_v28 }
 0x230   : > { %11377 = vmatprep.mubr.msk.bf16.mxu0 %vm2207_vm2, %v15079_v25 }
 0x237   : > { %11378 = vmatmul.mubr.msk.bf16.gmra.mrb[12].mxu0 %vm2207_vm2, %v15193_v24 }
 0x238   : > { %11381 = vmatprep.mubr.msk.bf16.mxu0 %vm2207_vm2, %v15271_v7 }
 0x23f   : > { %11382 = vmatmul.mubr.msk.bf16.gmra.mrb[16].mxu0 %vm2207_vm2, %v15395_v44 }
 0x240   : > { %11385 = vmatprep.mubr.msk.bf16.mxu0 %vm2207_vm2, %v15484_v62 }
 0x245   : > { %v15743_v46 = vpop.f32.mrb[8].mxu1 }
 0x246   : > { %v15745_v42 = vpop.f32.mrb[9].mxu1 }
 0x247   : > { %11386 = vmatmul.mubr.msk.bf16.gmra.mrb[20].mxu0 %vm2207_vm2, %v15514_v57  ;;  %v15750_v5 = vpop.f32.mrb[10].mxu1 }
 0x248   : > { %11389 = vmatprep.mubr.msk.bf16.mxu0 %vm2207_vm2, %v15545_v51  ;;  %18550 = vst [vmem:[#allocation58_spill] sm:$0xff] %v15750_v5  ;;  %v15752_v17 = vpop.f32.mrb[11].mxu1 }
 0x249   : > { %18551 = vst [vmem:[#allocation12_spill] sm:$0xff] %v15752_v17 }
 0x24f   : > { %11390 = vmatmul.mubr.msk.bf16.gmra.mrb[24].mxu0 %vm2207_vm2, %v15536_v61 }
 0x250   : > { %11393 = vmatprep.mubr.msk.bf16.mxu0 %vm2207_vm2, %v15533_v32 }
 0x257   : > { %11394 = vmatmul.mubr.bf16.gmra.mrb[28].mxu0 %v18033_v19 }
 0x258   : > { %11401 = vmatprep.mubr.msk.bf16.mxu0 %vm2207_vm2, %v18549_v2 }
 0x25f   : > { %11402 = vmatmul.mubr.msk.bf16.vlgmr.msra.gmra.mrb[0].mxu0 %vm2207_vm2, %v18552_v36 }
 0x260   : > { %11434 = vmatpush3.bf16.msra.mxu0 %v12984_v41  ;;  %11405 = vmatprep.mubr.msk.bf16.mxu0 %vm2207_vm2, %v18553_v14 }
 0x261   : > { %11435 = vmatprep.subr.bf16.mxu0 %v12985_v1 }
 0x264   : > { %11436 = vmatpush3.bf16.msra.mxu0 %v12985_v1 }
 0x265   : > { %11469 = vmatprep.subr.bf16.mxu0 %v12986_v59 }
 0x267   : > { %11406 = vmatmul.mubr.msk.bf16.gmra.mrb[4].mxu0 %vm2207_vm2, %v18554_v54 }
 0x268   : > { %11409 = vmatprep.mubr.msk.bf16.mxu0 %vm2207_vm2, %v18555_v21 }
 0x26b   : > { %v15773_v43 = vpop.f32.mrb[12].mxu1 }
 0x26c   : > { %18557 = vst [vmem:[#allocation5_spill] sm:$0xff] %v15773_v43  ;;  %v15775_v41 = vpop.f32.mrb[13].mxu1 }
 0x26d   : > { %18558 = vst [vmem:[#allocation60_spill] sm:$0xff] %v15775_v41  ;;  %v15777_v2 = vpop.f32.mrb[14].mxu1 }
 0x26e   : > { %18559 = vst [vmem:[#allocation63_spill] sm:$0xff] %v15777_v2  ;;  %v15779_v1 = vpop.f32.mrb[15].mxu1 }
 0x26f   : > { %11410 = vmatmul.mubr.msk.bf16.gmra.mrb[8].mxu0 %vm2207_vm2, %v18556_v45  ;;  %18560 = vst [vmem:[#allocation3_spill] sm:$0xff] %v15779_v1 }
 0x270   : > { %11413 = vmatprep.mubr.msk.bf16.mxu0 %vm2207_vm2, %v15294_v15 }
 0x277   : > { %11414 = vmatmul.mubr.msk.bf16.gmra.mrb[12].mxu0 %vm2207_vm2, %v15383_v12 }
 0x278   : > { %11417 = vmatprep.mubr.msk.bf16.mxu0 %vm2207_vm2, %v15442_v40 }
 0x27f   : > { %11418 = vmatmul.mubr.msk.bf16.gmra.mrb[16].mxu0 %vm2207_vm2, %v15519_v18 }
 0x280   : > { %11421 = vmatprep.mubr.msk.bf16.mxu0 %vm2207_vm2, %v15539_v13 }
 0x287   : > { %11422 = vmatmul.mubr.msk.bf16.gmra.mrb[20].mxu0 %vm2207_vm2, %v15556_v22 }
 0x288   : > { %11425 = vmatprep.mubr.msk.bf16.mxu0 %vm2207_vm2, %v15565_v6 }
 0x289   : > { %v15789_v19 = vpop.f32.mrb[16].mxu1 }
 0x28a   : > { %18561 = vst [vmem:[#allocation20_spill] sm:$0xff] %v15789_v19  ;;  %v15793_v2 = vpop.f32.mrb[17].mxu1  ;;  %v12987_v19 = vld [vmem:[%s17877_s2 + $0x68] sm:$0xff]  }
 0x28b   : > { %18562 = vst [vmem:[#allocation8_spill] sm:$0xff] %v15793_v2  ;;  %v15797_v1 = vpop.f32.mrb[18].mxu1 }
 0x28c   : > { %18563 = vst [vmem:[#allocation62_spill] sm:$0xff] %v15797_v1  ;;  %v15799_v41 = vpop.f32.mrb[19].mxu1 }
 0x28d   : > { %18564 = vst [vmem:[#allocation59_spill] sm:$0xff] %v15799_v41 }
 0x28f   : > { %11426 = vmatmul.mubr.msk.bf16.gmra.mrb[24].mxu0 %vm2207_vm2, %v15562_v10 }
 0x290   : > { %11429 = vmatprep.mubr.msk.bf16.mxu0 %vm2207_vm2, %v15584_v0 }
 0x297   : > { %11430 = vmatmul.mubr.msk.bf16.gmra.mrb[28].mxu0 %vm2207_vm2, %v15578_v9 }
 0x298   : > { %11437 = vmatprep.mubr.msk.bf16.mxu0 %vm2207_vm2, %v15590_v60  ;;  %v12988_v60 = vld [vmem:[%s17877_s2 + $0x70] sm:$0xff]  }
 0x29e   : > { %v15810_v2 = vpop.f32.mrb[20].mxu1 }
 0x29f   : > { %11438 = vmatmul.mubr.msk.bf16.vlgmr.msra.gmra.mrb[0].mxu0 %vm2207_vm2, %v15597_v34  ;;  %18565 = vst [vmem:[#allocation18_spill] sm:$0xff] %v15810_v2  ;;  %v15814_v41 = vpop.f32.mrb[21].mxu1 }
 0x2a0   : > { %11470 = vmatpush3.bf16.msra.mxu0 %v12986_v59  ;;  %11441 = vmatprep.mubr.msk.bf16.mxu0 %vm2207_vm2, %v15610_v58  ;;  %18566 = vst [vmem:[#allocation9_spill] sm:$0xff] %v15814_v41  ;;  %v15816_v1 = vpop.f32.mrb[22].mxu1 }
 0x2a1   : > { %18567 = vst [vmem:[#allocation22_spill] sm:$0xff] %v15816_v1  ;;  %11471 = vmatprep.subr.bf16.mxu0 %v12987_v19  ;;  %v15821_v43 = vpop.f32.mrb[23].mxu1 }
 0x2a2   : > { %18568 = vst [vmem:[#allocation13_spill] sm:$0xff] %v15821_v43 }
 0x2a4   : > { %11472 = vmatpush3.bf16.msra.mxu0 %v12987_v19 }
 0x2a5   : > { %11505 = vmatprep.subr.bf16.mxu0 %v12988_v60 }
 0x2a7   : > { %11442 = vmatmul.mubr.msk.bf16.gmra.mrb[4].mxu0 %vm2207_vm2, %v15615_v26 }
 0x2a8   : > { %11445 = vmatprep.mubr.msk.bf16.mxu0 %vm2207_vm2, %v15622_v20 }
 0x2a9   : > { %v15827_v59 = vpop.f32.mrb[24].mxu1 }
 0x2aa   : > { %v15829_v41 = vpop.f32.mrb[25].mxu1 }
 0x2ab   : > { %v15831_v1 = vpop.f32.mrb[26].mxu1 }
 0x2ac   : > { %v15833_v2 = vpop.f32.mrb[27].mxu1 }
 0x2af   : > { %11446 = vmatmul.mubr.msk.bf16.gmra.mrb[8].mxu0 %vm2207_vm2, %v15627_v3 }
 0x2b0   : > { %11449 = vmatprep.mubr.msk.bf16.mxu0 %vm2207_vm2, %v15634_v56 }
 0x2b1   : > { %v15839_v19 = vpop.f32.mrb[28].mxu1 }
 0x2b2   : > { %v15841_v43 = vpop.f32.mrb[29].mxu1 }
 0x2b3   : > { %v15843_v17 = vpop.f32.mrb[30].mxu1 }
 0x2b4   : > { %18569 = vst [vmem:[#allocation14_spill] sm:$0xff] %v15843_v17  ;;  %v15845_v5 = vpop.f32.mrb[31].mxu1  ;;  %v12990_v17 = vld [vmem:[%s17877_s2 + $0x80] sm:$0xff]  }
 0x2b5   : > { %18570 = vst [vmem:[#allocation34_spill] sm:$0xff] %v15845_v5  ;;  %v12989_v5 = vld [vmem:[%s17877_s2 + $0x78] sm:$0xff]  }
 0x2b7   : > { %11450 = vmatmul.mubr.msk.bf16.gmra.mrb[12].mxu0 %vm2207_vm2, %v15639_v11 }
 0x2b8   : > { %11453 = vmatprep.mubr.msk.bf16.mxu0 %vm2207_vm2, %v15646_v27 }
 0x2bf   : > { %11454 = vmatmul.mubr.msk.bf16.gmra.mrb[16].mxu0 %vm2207_vm2, %v15651_v30 }
 0x2c0   : > { %11457 = vmatprep.mubr.msk.bf16.mxu0 %vm2207_vm2, %v15658_v31 }
 0x2c7   : > { %11458 = vmatmul.mubr.msk.bf16.gmra.mrb[20].mxu0 %vm2207_vm2, %v15663_v39 }
 0x2c8   : > { %11461 = vmatprep.mubr.msk.bf16.mxu0 %vm2207_vm2, %v15670_v33 }
 0x2cf   : > { %11462 = vmatmul.mubr.msk.bf16.gmra.mrb[24].mxu0 %vm2207_vm2, %v15675_v29 }
 0x2d0   : > { %11465 = vmatprep.mubr.msk.bf16.mxu0 %vm2207_vm2, %v15684_v50 }
 0x2d7   : > { %11466 = vmatmul.mubr.msk.bf16.gmra.mrb[28].mxu0 %vm2207_vm2, %v15680_v37 }
 0x2d8   : > { %11473 = vmatprep.mubr.msk.bf16.mxu0 %vm2207_vm2, %v18544_v48 }
 0x2df   : > { %11474 = vmatmul.mubr.msk.bf16.vlgmr.msra.gmra.mrb[0].mxu0 %vm2207_vm2, %v18545_v35 }
 0x2e0   : > { %11506 = vmatpush3.bf16.msra.mxu0 %v12988_v60  ;;  %11477 = vmatprep.mubr.msk.bf16.mxu0 %vm2207_vm2, %v18546_v23 }
 0x2e1   : > { %11507 = vmatprep.subr.bf16.mxu0 %v12989_v5 }
 0x2e4   : > { %11508 = vmatpush3.bf16.msra.mxu0 %v12989_v5 }
 0x2e5   : > { %11541 = vmatprep.subr.bf16.mxu0 %v12990_v17 }
 0x2e7   : > { %11478 = vmatmul.mubr.msk.bf16.gmra.mrb[4].mxu0 %vm2207_vm2, %v18547_v52 }
 0x2e8   : > { %11481 = vmatprep.mubr.msk.bf16.mxu0 %vm2207_vm2, %v18548_v28 }
 0x2ef   : > { %11482 = vmatmul.mubr.msk.bf16.gmra.mrb[8].mxu0 %vm2207_vm2, %v15079_v25  ;;  %v18571_v25 = vmov 0.0|0.0  }
 0x2f0   : > { %11485 = vmatprep.mubr.msk.bf16.mxu0 %vm2207_vm2, %v15193_v24  ;;  %v12992_v24 = vld [vmem:[%s17878_s3 + $0x20] sm:$0xff]  }
 0x2f1   : > { %11577 = vmatprep.subr.bf16.mxu1 %v12992_v24 }
 0x2f2   : > { %11578 = vmatpush3.bf16.msra.mxu1 %v12992_v24 }
 0x2f7   : > { %11486 = vmatmul.mubr.msk.bf16.gmra.mrb[12].mxu0 %vm2207_vm2, %v15271_v7  ;;  %v12993_v7 = vld [vmem:[%s17878_s3 + $0x28] sm:$0xff]  }
 0x2f8   : > { %11489 = vmatprep.mubr.msk.bf16.mxu0 %vm2207_vm2, %v15395_v44  ;;  %11579 = vmatprep.subr.bf16.mxu1 %v12993_v7  ;;  %v12994_v44 = vld [vmem:[%s17878_s3 + $0x30] sm:$0xff]  }
 0x2f9   : > { %11580 = vmatpush3.bf16.msra.mxu1 %v12993_v7 }
 0x2fa   : > { %11581 = vmatprep.subr.bf16.mxu1 %v12994_v44 }
 0x2fd   : > { %11582 = vmatpush3.bf16.msra.mxu1 %v12994_v44 }
 0x2ff   : > { %11490 = vmatmul.mubr.msk.bf16.gmra.mrb[16].mxu0 %vm2207_vm2, %v15484_v62  ;;  %v12991_v62 = vld [vmem:[%s17877_s2 + $0x88] sm:$0xff]  }
 0x300   : > { %11493 = vmatprep.mubr.msk.bf16.mxu0 %vm2207_vm2, %v15514_v57  ;;  %v15990_v57 = vld [vmem:[%s17881_s6] ss:$0 sm:$0xff] }
 0x307   : > { %11494 = vmatmul.mubr.msk.bf16.gmra.mrb[20].mxu0 %vm2207_vm2, %v15545_v51 }
 0x308   : > { %11497 = vmatprep.mubr.msk.bf16.mxu0 %vm2207_vm2, %v15536_v61 }
 0x30f   : > { %11498 = vmatmul.mubr.msk.bf16.gmra.mrb[24].mxu0 %vm2207_vm2, %v15533_v32 }
 0x310   : > { %11501 = vmatprep.mubr.bf16.mxu0 %v18571_v25 }
 0x317   : > { %11502 = vmatmul.mubr.bf16.gmra.mrb[28].mxu0 %v18571_v25 }
 0x318   : > { %11509 = vmatprep.mubr.msk.bf16.mxu0 %vm2207_vm2, %v18552_v36 }
 0x31f   : > { %11510 = vmatmul.mubr.msk.bf16.vlgmr.msra.gmra.mrb[0].mxu0 %vm2207_vm2, %v18553_v14 }
 0x320   : > { %11542 = vmatpush3.bf16.msra.mxu0 %v12990_v17  ;;  %11513 = vmatprep.mubr.msk.bf16.mxu0 %vm2207_vm2, %v18554_v54 }
 0x321   : > { %11543 = vmatprep.subr.bf16.mxu0 %v12991_v62 }
 0x324   : > { %11544 = vmatpush3.bf16.msra.mxu0 %v12991_v62 }
 0x327   : > { %11514 = vmatmul.mubr.msk.bf16.gmra.mrb[4].mxu0 %vm2207_vm2, %v18555_v21 }
 0x328   : > { %11517 = vmatprep.mubr.msk.bf16.mxu0 %vm2207_vm2, %v18556_v45 }
 0x32f   : > { %11518 = vmatmul.mubr.msk.bf16.gmra.mrb[8].mxu0 %vm2207_vm2, %v15294_v15  ;;  %v12995_v15 = vld [vmem:[%s17878_s3 + $0x38] sm:$0xff]  }
 0x330   : > { %11521 = vmatprep.mubr.msk.bf16.mxu0 %vm2207_vm2, %v15383_v12  ;;  %11583 = vmatprep.subr.bf16.mxu1 %v12995_v15  ;;  %v15984_v12 = vld [vmem:[%s17878_s3] sm:$0xff]  }
 0x331   : > { %11584 = vmatpush3.bf16.msra.mxu1 %v12995_v15  ;;  %v18572_v15 = vld [vmem:[#allocation58_spill] sm:$0xff] }
 0x332   : > { %11617 = vmatprep.subr.bf16.mxu1 %v15984_v12 }
 0x337   : > { %11522 = vmatmul.mubr.msk.bf16.gmra.mrb[12].mxu0 %vm2207_vm2, %v15442_v40 }
 0x338   : > { %11525 = vmatprep.mubr.msk.bf16.mxu0 %vm2207_vm2, %v15519_v18 }
 0x33f   : > { %11526 = vmatmul.mubr.msk.bf16.gmra.mrb[16].mxu0 %vm2207_vm2, %v15539_v13 }
 0x340   : > { %11529 = vmatprep.mubr.msk.bf16.mxu0 %vm2207_vm2, %v15556_v22 }
 0x347   : > { %11530 = vmatmul.mubr.msk.bf16.gmra.mrb[20].mxu0 %vm2207_vm2, %v15565_v6 }
 0x348   : > { %11533 = vmatprep.mubr.msk.bf16.mxu0 %vm2207_vm2, %v15562_v10 }
 0x34f   : > { %11534 = vmatmul.mubr.msk.bf16.gmra.mrb[24].mxu0 %vm2207_vm2, %v15584_v0 }
 0x350   : > { %11537 = vmatprep.mubr.msk.bf16.mxu0 %vm2207_vm2, %v15578_v9 }
 0x357   : > { %11538 = vmatmul.mubr.msk.bf16.gmra.mrb[28].mxu0 %vm2207_vm2, %v15578_v9 }
 0x358   : > { %11545 = vmatprep.mubr.msk.bf16.mxu0 %vm2207_vm2, %v15597_v34 }
 0x35f   : > { %11546 = vmatmul.mubr.msk.bf16.vlgmr.msra.gmra.mrb[0].mxu0 %vm2207_vm2, %v15610_v58 }
 0x360   : > { %11549 = vmatprep.mubr.msk.bf16.mxu0 %vm2207_vm2, %v15615_v26 }
 0x367   : > { %11550 = vmatmul.mubr.msk.bf16.gmra.mrb[4].mxu0 %vm2207_vm2, %v15622_v20 }
 0x368   : > { %11553 = vmatprep.mubr.msk.bf16.mxu0 %vm2207_vm2, %v15627_v3 }
 0x36f   : > { %11554 = vmatmul.mubr.msk.bf16.gmra.mrb[8].mxu0 %vm2207_vm2, %v15634_v56 }
 0x370   : > { %11557 = vmatprep.mubr.msk.bf16.mxu0 %vm2207_vm2, %v15639_v11 }
 0x377   : > { %11558 = vmatmul.mubr.msk.bf16.gmra.mrb[12].mxu0 %vm2207_vm2, %v15646_v27 }
 0x378   : > { %11561 = vmatprep.mubr.msk.bf16.mxu0 %vm2207_vm2, %v15651_v30 }
 0x37f   : > { %11562 = vmatmul.mubr.msk.bf16.gmra.mrb[16].mxu0 %vm2207_vm2, %v15658_v31 }
 0x380   : > { %11565 = vmatprep.mubr.msk.bf16.mxu0 %vm2207_vm2, %v15663_v39 }
 0x387   : > { %11566 = vmatmul.mubr.msk.bf16.gmra.mrb[20].mxu0 %vm2207_vm2, %v15670_v33 }
 0x388   : > { %11569 = vmatprep.mubr.msk.bf16.mxu0 %vm2207_vm2, %v15675_v29 }
 0x38f   : > { %11570 = vmatmul.mubr.msk.bf16.gmra.mrb[24].mxu0 %vm2207_vm2, %v15684_v50 }
 0x390   : > { %11573 = vmatprep.mubr.msk.bf16.mxu0 %vm2207_vm2, %v15680_v37 }
 0x397   : > { %11574 = vmatmul.mubr.msk.bf16.gmra.mrb[28].mxu0 %vm2207_vm2, %v15680_v37 }
 0x398   : > { %8283 = vmatprep.mubr.bf16.mxu0 %v18543_v8 }
 0x432   : > { %v11547_v40 = vpop.f32.mrb[0].mxu0 }
 0x433   : > { %v11937_v18 = vadd.f32 %v11547_v40, %v15690_v49  ;;  %v4045_v32 = vpop.f32.mrb[1].mxu0 }
 0x434   : > { %v11938_v61 = vadd.f32 %v4045_v32, %v15692_v47  ;;  %v11548_v13 = vpop.f32.mrb[2].mxu0 }
 0x435   : > { %v4213_v51 = vadd.f32 %v11937_v18, %v15990_v57  ;;  %v11939_v22 = vadd.f32 %v11548_v13, %v15694_v53  ;;  %v4048_v10 = vpop.f32.mrb[3].mxu0 }
 0x436   : > { %v4211_v6 = vadd.f32 %v11938_v61, %v15990_v57  ;;  %v11940_v48 = vadd.f32 %v4048_v10, %v15696_v4 }
 0x437   : > { %v4214_v35 = vadd.f32 %v11939_v22, %v15990_v57  ;;  %v4245_v34 = vmax.f32 %v4213_v51, 0.0 }
 0x438   : > { %v4212_v0 = vadd.f32 %v11940_v48, %v15990_v57  ;;  %v4243_v52 = vmax.f32 %v4211_v6, 0.0 }
 0x439   : > { %v4246_v23 = vmax.f32 %v4214_v35, 0.0 }
 0x43a   : > { %v4244_v58 = vmax.f32 %v4212_v0, 0.0  ;;  %v11551_v26 = vpop.f32.mrb[4].mxu0 }
 0x43b   : > { %v16000_v28 = vpack.c.bf16 %v4246_v23, %v4245_v34  ;;  %v11941_v20 = vadd.f32 %v11551_v26, %v15720_v55  ;;  %v4061_v3 = vpop.f32.mrb[5].mxu0 }
 0x43c   : > { %v16003_v56 = vpack.c.bf16 %v4244_v58, %v4243_v52  ;;  %v11942_v11 = vadd.f32 %v4061_v3, %v15722_v38  ;;  %v11552_v27 = vpop.f32.mrb[6].mxu0  ;;  %v12997_v52 = vld [vmem:[%s17878_s3 + $0x8] sm:$0xff]  }
 0x43d   : > { %v4217_v30 = vadd.f32 %v11941_v20, %v15990_v57  ;;  %v11943_v31 = vadd.f32 %v11552_v27, %v15726_v16  ;;  %v4064_v39 = vpop.f32.mrb[7].mxu0  ;;  %v4316_v49 = vshll.u32 %v16000_v28, 16  ;;  %v4320_v51 = vshrl.u32 %v16000_v28, 16 }
 0x43e   : > { %v4215_v33 = vadd.f32 %v11942_v11, %v15990_v57  ;;  %v11944_v29 = vadd.f32 %v4064_v39, %v15730_v63  ;;  %v4311_v50 = vshll.u32 %v16003_v56, 16  ;;  %v4309_v4 = vshrl.u32 %v16003_v56, 16 }
 0x43f   : > { %v4218_v47 = vadd.f32 %v11943_v31, %v15990_v57  ;;  %v4249_v38 = vmax.f32 %v4217_v30, 0.0  ;;  %v4318_v54 = vrot.slane %v4316_v49, 1  ;;  %v18574_v30 = vld [vmem:[#allocation5_spill] sm:$0xff] }
 0x440   : > { %v4216_v53 = vadd.f32 %v11944_v29, %v15990_v57  ;;  %v4313_v55 = vrot.slane %v4311_v50, 1  ;;  %v4247_v16 = vmax.f32 %v4215_v33, 0.0  ;;  %v18575_v29 = vld [vmem:[#allocation60_spill] sm:$0xff] }
 0x441   : > { %v4250_v5 = vmax.f32 %v4218_v47, 0.0  ;;  %v4322_v6 = vor.u32 %v4320_v51, %v4318_v54 }
 0x442   : > { %v4248_v17 = vmax.f32 %v4216_v53, 0.0  ;;  %v11555_v36 = vpop.f32.mrb[8].mxu0  ;;  %v4314_v14 = vor.u32 %v4313_v55, %v4309_v4  ;;  %v18576_v4 = vld [vmem:[#allocation63_spill] sm:$0xff] }
 0x443   : > { %v16015_v63 = vpack.c.bf16 %v4250_v5, %v4249_v38  ;;  %v11945_v21 = vadd.f32 %v11555_v36, %v15743_v46  ;;  %v4077_v45 = vpop.f32.mrb[9].mxu0  ;;  %v18573_v46 = vld [vmem:[#allocation12_spill] sm:$0xff] }
 0x444   : > { %v16018_v60 = vpack.c.bf16 %v4248_v17, %v4247_v16  ;;  %v11946_v24 = vadd.f32 %v4077_v45, %v15745_v42  ;;  %v11556_v7 = vpop.f32.mrb[10].mxu0  ;;  %v4319_v44 = vsel %vm2062_vm3, %v4314_v14, %v4318_v54  ;;  %v12998_v16 = vld [vmem:[%s17878_s3 + $0x10] sm:$0xff]   ;;  %v18577_v17 = vld [vmem:[#allocation3_spill] sm:$0xff] }
 0x445   : > { %v4221_v62 = vadd.f32 %v11945_v21, %v15990_v57  ;;  %v11947_v40 = vadd.f32 %v11556_v7, %v18572_v15  ;;  %v4080_v18 = vpop.f32.mrb[11].mxu0  ;;  %11585 = vmatprep.mubr.msk.bf16.mxu1 %vm4460_vm4, %v4319_v44  ;;  %v4332_v32 = vshll.u32 %v16015_v63, 16  ;;  %v4336_v14 = vshrl.u32 %v16015_v63, 16 }
 0x446   : > { %v4219_v61 = vadd.f32 %v11946_v24, %v15990_v57  ;;  %v11948_v13 = vadd.f32 %v4080_v18, %v18573_v46  ;;  %v4324_v42 = vshll.u32 %v16018_v60, 16  ;;  %v4328_v35 = vshrl.u32 %v16018_v60, 16  ;;  %v12999_v18 = vld [vmem:[%s17878_s3 + $0x18] sm:$0xff]  }
 0x447   : > { %v4222_v22 = vadd.f32 %v11947_v40, %v15990_v57  ;;  %v4253_v0 = vmax.f32 %v4221_v62, 0.0  ;;  %v4334_v23 = vrot.slane %v4332_v32, 1 }
 0x448   : > { %v4220_v10 = vadd.f32 %v11948_v13, %v15990_v57  ;;  %v4326_v48 = vrot.slane %v4324_v42, 1  ;;  %v4251_v58 = vmax.f32 %v4219_v61, 0.0 }
 0x449   : > { %v4254_v34 = vmax.f32 %v4222_v22, 0.0  ;;  %v4338_v24 = vor.u32 %v4336_v14, %v4334_v23  ;;  %v18578_v22 = vld [vmem:[#allocation20_spill] sm:$0xff] }
 0x44a   : > { %v4252_v26 = vmax.f32 %v4220_v10, 0.0  ;;  %v11559_v20 = vpop.f32.mrb[12].mxu0  ;;  %v16037_v3 = vsel %vm2062_vm3, %v4322_v6, %v4326_v48  ;;  %v4330_v11 = vor.u32 %v4328_v35, %v4326_v48  ;;  %v18579_v35 = vld [vmem:[#allocation8_spill] sm:$0xff] }
 0x44b   : > { %v16039_v27 = vpack.c.bf16 %v4254_v34, %v4253_v0  ;;  %v11949_v31 = vadd.f32 %v11559_v20, %v18574_v30  ;;  %v4093_v39 = vpop.f32.mrb[13].mxu0  ;;  %11586 = vmatmul.mubr.msk.bf16.vlgmr.msra.gmra.mrb[32].mxu1 %vm4460_vm4, %v16037_v3  ;;  %v16091_v30 = vld [vmem:[%s17878_s3 + $0x40] sm:$0xff]  }
 0x44c   : > { %v16044_v33 = vpack.c.bf16 %v4252_v26, %v4251_v58  ;;  %v11950_v50 = vadd.f32 %v4093_v39, %v18575_v29  ;;  %11618 = vmatpush3.bf16.msra.mxu1 %v15984_v12  ;;  %v11560_v49 = vpop.f32.mrb[14].mxu0  ;;  %v16049_v47 = vsel %vm2062_vm3, %v4330_v11, %v4334_v23  ;;  %v18580_v58 = vld [vmem:[#allocation62_spill] sm:$0xff]  ;;  %v18581_v39 = vld [vmem:[#allocation59_spill] sm:$0xff] }
 0x44d   : > { %v4225_v53 = vadd.f32 %v11949_v31, %v15990_v57  ;;  %v11951_v55 = vadd.f32 %v11560_v49, %v18576_v4  ;;  %v4096_v38 = vpop.f32.mrb[15].mxu0  ;;  %11589 = vmatprep.mubr.msk.bf16.mxu1 %vm4460_vm4, %v16049_v47  ;;  %v4348_v5 = vshll.u32 %v16039_v27, 16  ;;  %11619 = vmatprep.subr.bf16.mxu1 %v12997_v52 }
 0x44e   : > { %v4223_v12 = vadd.f32 %v11950_v50, %v15990_v57  ;;  %v11952_v36 = vadd.f32 %v4096_v38, %v18577_v17  ;;  %v4340_v54 = vshll.u32 %v16044_v33, 16  ;;  %v4344_v44 = vshrl.u32 %v16044_v33, 16 }
 0x44f   : > { %v4226_v21 = vadd.f32 %v11951_v55, %v15990_v57  ;;  %v4257_v62 = vmax.f32 %v4225_v53, 0.0  ;;  %v4350_v40 = vrot.slane %v4348_v5, 1  ;;  %v4352_v50 = vshrl.u32 %v16039_v27, 16 }
 0x450   : > { %v4224_v45 = vadd.f32 %v11952_v36, %v15990_v57  ;;  %v4342_v7 = vrot.slane %v4340_v54, 1  ;;  %11620 = vmatpush3.bf16.msra.mxu1 %v12997_v52  ;;  %v4255_v32 = vmax.f32 %v4223_v12, 0.0 }
 0x451   : > { %v4258_v15 = vmax.f32 %v4226_v21, 0.0  ;;  %11621 = vmatprep.subr.bf16.mxu1 %v12998_v16  ;;  %v4354_v55 = vor.u32 %v4352_v50, %v4350_v40 }
 0x452   : > { %v4256_v61 = vmax.f32 %v4224_v45, 0.0  ;;  %v11563_v46 = vpop.f32.mrb[16].mxu0  ;;  %v16070_v13 = vsel %vm2062_vm3, %v4338_v24, %v4342_v7  ;;  %v4346_v51 = vor.u32 %v4344_v44, %v4342_v7  ;;  %v18582_v7 = vld [vmem:[#allocation18_spill] sm:$0xff] }
 0x453   : > { %v16072_v42 = vpack.c.bf16 %v4258_v15, %v4257_v62  ;;  %v11953_v10 = vadd.f32 %v11563_v46, %v18578_v22  ;;  %v4109_v6 = vpop.f32.mrb[17].mxu0  ;;  %11590 = vmatmul.mubr.msk.bf16.gmra.mrb[36].mxu1 %vm4460_vm4, %v16070_v13 }
 0x454   : > { %v16077_v48 = vpack.c.bf16 %v4256_v61, %v4255_v32  ;;  %v11954_v0 = vadd.f32 %v4109_v6, %v18579_v35  ;;  %v11564_v34 = vpop.f32.mrb[18].mxu0  ;;  %v16081_v23 = vsel %vm2062_vm3, %v4346_v51, %v4350_v40  ;;  %11622 = vmatpush3.bf16.msra.mxu1 %v12998_v16  ;;  %v18583_v40 = vld [vmem:[#allocation9_spill] sm:$0xff]  ;;  %v18584_v51 = vld [vmem:[#allocation22_spill] sm:$0xff] }
 0x455   : > { %v4229_v52 = vadd.f32 %v11953_v10, %v15990_v57  ;;  %v11955_v26 = vadd.f32 %v11564_v34, %v18580_v58  ;;  %v4112_v20 = vpop.f32.mrb[19].mxu0  ;;  %11593 = vmatprep.mubr.msk.bf16.mxu1 %vm4460_vm4, %v16081_v23  ;;  %v4364_v11 = vshll.u32 %v16072_v42, 16  ;;  %11623 = vmatprep.subr.bf16.mxu1 %v12999_v18 }
 0x456   : > { %v4227_v31 = vadd.f32 %v11954_v0, %v15990_v57  ;;  %v11956_v29 = vadd.f32 %v4112_v20, %v18581_v39  ;;  %v4356_v49 = vshll.u32 %v16077_v48, 16  ;;  %v4360_v5 = vshrl.u32 %v16077_v48, 16  ;;  %v18585_v0 = vld [vmem:[#allocation13_spill] sm:$0xff] }
 0x457   : > { %v4230_v53 = vadd.f32 %v11955_v26, %v15990_v57  ;;  %v4261_v16 = vmax.f32 %v4229_v52, 0.0  ;;  %v4366_v17 = vrot.slane %v4364_v11, 1  ;;  %v4368_v52 = vshrl.u32 %v16072_v42, 16 }
 0x458   : > { %v4228_v4 = vadd.f32 %v11956_v29, %v15990_v57  ;;  %v4358_v38 = vrot.slane %v4356_v49, 1  ;;  %11624 = vmatpush3.bf16.msra.mxu1 %v12999_v18  ;;  %v4259_v36 = vmax.f32 %v4227_v31, 0.0 }
 0x459   : > { %v4262_v12 = vmax.f32 %v4230_v53, 0.0  ;;  %11657 = vmatprep.subr.bf16.mxu1 %v16091_v30  ;;  %v4370_v11 = vor.u32 %v4368_v52, %v4366_v17 }
 0x45a   : > { %v4260_v14 = vmax.f32 %v4228_v4, 0.0  ;;  %v11567_v54 = vpop.f32.mrb[20].mxu0  ;;  %v16102_v21 = vsel %vm2062_vm3, %v4354_v55, %v4358_v38  ;;  %v4362_v45 = vor.u32 %v4360_v5, %v4358_v38 }
 0x45b   : > { %v16104_v24 = vpack.c.bf16 %v4262_v12, %v4261_v16  ;;  %v11957_v44 = vadd.f32 %v11567_v54, %v18582_v7  ;;  %v4125_v62 = vpop.f32.mrb[21].mxu0  ;;  %11594 = vmatmul.mubr.msk.bf16.gmra.mrb[40].mxu1 %vm4460_vm4, %v16102_v21 }
 0x45c   : > { %v16109_v15 = vpack.c.bf16 %v4260_v14, %v4259_v36  ;;  %v11958_v18 = vadd.f32 %v4125_v62, %v18583_v40  ;;  %v11568_v32 = vpop.f32.mrb[22].mxu0  ;;  %v16113_v61 = vsel %vm2062_vm3, %v4362_v45, %v4366_v17 }
 0x45d   : > { %v4233_v46 = vadd.f32 %v11957_v44, %v15990_v57  ;;  %v11959_v22 = vadd.f32 %v11568_v32, %v18584_v51  ;;  %v4128_v10 = vpop.f32.mrb[23].mxu0  ;;  %11597 = vmatprep.mubr.msk.bf16.mxu1 %vm4460_vm4, %v16113_v61  ;;  %v4380_v6 = vshll.u32 %v16104_v24, 16 }
 0x45e   : > { %v4231_v35 = vadd.f32 %v11958_v18, %v15990_v57  ;;  %v11960_v34 = vadd.f32 %v4128_v10, %v18585_v0  ;;  %v4372_v58 = vshll.u32 %v16109_v15, 16  ;;  %v4376_v39 = vshrl.u32 %v16109_v15, 16 }
 0x45f   : > { %v4234_v26 = vadd.f32 %v11959_v22, %v15990_v57  ;;  %v4265_v29 = vmax.f32 %v4233_v46, 0.0  ;;  %v4382_v49 = vrot.slane %v4380_v6, 1 }
 0x460   : > { %v4232_v20 = vadd.f32 %v11960_v34, %v15990_v57  ;;  %v4374_v31 = vrot.slane %v4372_v58, 1  ;;  %v4263_v53 = vmax.f32 %v4231_v35, 0.0 }
 0x461   : > { %v4266_v50 = vmax.f32 %v4234_v26, 0.0 }
 0x462   : > { %v4264_v4 = vmax.f32 %v4232_v20, 0.0  ;;  %v11571_v55 = vpop.f32.mrb[24].mxu0  ;;  %v16128_v38 = vsel %vm2062_vm3, %v4370_v11, %v4374_v31  ;;  %v4378_v5 = vor.u32 %v4376_v39, %v4374_v31 }
 0x463   : > { %v16130_v16 = vpack.c.bf16 %v4266_v50, %v4265_v29  ;;  %v11961_v12 = vadd.f32 %v11571_v55, %v15827_v59  ;;  %v4141_v36 = vpop.f32.mrb[25].mxu0  ;;  %11598 = vmatmul.mubr.msk.bf16.gmra.mrb[44].mxu1 %vm4460_vm4, %v16128_v38 }
 0x464   : > { %v16135_v17 = vpack.c.bf16 %v4264_v4, %v4263_v53  ;;  %v11962_v14 = vadd.f32 %v4141_v36, %v15829_v41  ;;  %v11572_v54 = vpop.f32.mrb[26].mxu0  ;;  %v16139_v45 = vsel %vm2062_vm3, %v4378_v5, %v4382_v49  ;;  %v4384_v41 = vshrl.u32 %v16104_v24, 16  ;;  %v18586_v4 = vld [vmem:[#allocation14_spill] sm:$0xff] }
 0x465   : > { %v4237_v7 = vadd.f32 %v11961_v12, %v15990_v57  ;;  %v11963_v44 = vadd.f32 %v11572_v54, %v15831_v1  ;;  %v4144_v62 = vpop.f32.mrb[27].mxu0  ;;  %11601 = vmatprep.mubr.msk.bf16.mxu1 %vm4460_vm4, %v16139_v45  ;;  %v4396_v59 = vshll.u32 %v16130_v16, 16  ;;  %v18587_v36 = vld [vmem:[#allocation34_spill] sm:$0xff] }
 0x466   : > { %v4235_v40 = vadd.f32 %v11962_v14, %v15990_v57  ;;  %v11964_v18 = vadd.f32 %v4144_v62, %v15833_v2  ;;  %v4388_v32 = vshll.u32 %v16135_v17, 16  ;;  %v4386_v22 = vor.u32 %v4384_v41, %v4382_v49 }
 0x467   : > { %v4238_v46 = vadd.f32 %v11963_v44, %v15990_v57  ;;  %v4392_v10 = vshrl.u32 %v16135_v17, 16  ;;  %v4269_v6 = vmax.f32 %v4237_v7, 0.0  ;;  %v4398_v0 = vrot.slane %v4396_v59, 1 }
 0x468   : > { %v4236_v51 = vadd.f32 %v11964_v18, %v15990_v57  ;;  %v4390_v1 = vrot.slane %v4388_v32, 1  ;;  %v4267_v34 = vmax.f32 %v4235_v40, 0.0 }
 0x469   : > { %v4270_v35 = vmax.f32 %v4238_v46, 0.0 }
 0x46a   : > { %v4268_v52 = vmax.f32 %v4236_v51, 0.0  ;;  %v11575_v58 = vpop.f32.mrb[28].mxu0  ;;  %v16154_v2 = vsel %vm2062_vm3, %v4386_v22, %v4390_v1  ;;  %v4394_v26 = vor.u32 %v4392_v10, %v4390_v1 }
 0x46b   : > { %v16156_v20 = vpack.c.bf16 %v4270_v35, %v4269_v6  ;;  %v11965_v11 = vadd.f32 %v11575_v58, %v15839_v19  ;;  %v4157_v31 = vpop.f32.mrb[29].mxu0  ;;  %11602 = vmatmul.mubr.msk.bf16.gmra.mrb[48].mxu1 %vm4460_vm4, %v16154_v2 }
 0x46c   : > { %v16161_v39 = vpack.c.bf16 %v4268_v52, %v4267_v34  ;;  %v11966_v29 = vadd.f32 %v4157_v31, %v15841_v43  ;;  %v11576_v50 = vpop.f32.mrb[30].mxu0  ;;  %v16165_v49 = vsel %vm2062_vm3, %v4394_v26, %v4398_v0  ;;  %v4400_v43 = vshrl.u32 %v16130_v16, 16 }
 0x46d   : > { %v4241_v53 = vadd.f32 %v11965_v11, %v15990_v57  ;;  %v11967_v55 = vadd.f32 %v11576_v50, %v18586_v4  ;;  %v4160_v5 = vpop.f32.mrb[31].mxu0  ;;  %11605 = vmatprep.mubr.msk.bf16.mxu1 %vm4460_vm4, %v16165_v49  ;;  %v4412_v19 = vshll.u32 %v16156_v20, 16  ;;  %v4416_v35 = vshrl.u32 %v16156_v20, 16 }
 0x46e   : > { %v4239_v12 = vadd.f32 %v11966_v29, %v15990_v57  ;;  %v11968_v14 = vadd.f32 %v4160_v5, %v18587_v36  ;;  %v4404_v54 = vshll.u32 %v16161_v39, 16  ;;  %v4402_v62 = vor.u32 %v4400_v43, %v4398_v0  ;;  %v13001_v5 = vld [vmem:[%s17878_s3 + $0x48] sm:$0xff]  }
 0x46f   : > { %v4242_v7 = vadd.f32 %v11967_v55, %v15990_v57  ;;  %v4408_v40 = vshrl.u32 %v16161_v39, 16  ;;  %v4273_v18 = vmax.f32 %v4241_v53, 0.0  ;;  %v4414_v32 = vrot.slane %v4412_v19, 1  ;;  %v13002_v19 = vld [vmem:[%s17878_s3 + $0x50] sm:$0xff]  }
 0x470   : > { %v4240_v44 = vadd.f32 %v11968_v14, %v15990_v57  ;;  %v4406_v59 = vrot.slane %v4404_v54, 1  ;;  %v4271_v46 = vmax.f32 %v4239_v12, 0.0  ;;  %v13003_v12 = vld [vmem:[%s17878_s3 + $0x58] sm:$0xff]   ;;  %v4912_v36 = vrot.slane %v16003_v56, 1 }
 0x471   : > { %v4274_v41 = vmax.f32 %v4242_v7, 0.0  ;;  %v4418_v52 = vor.u32 %v4416_v35, %v4414_v32  ;;  %v4913_v14 = vrot.slane %v16000_v28, 1  ;;  %v4915_v54 = vrot.slane %v16018_v60, 1 }
 0x472   : > { %v4272_v51 = vmax.f32 %v4240_v44, 0.0  ;;  %v16180_v22 = vsel %vm2062_vm3, %v4402_v62, %v4406_v59  ;;  %v4410_v1 = vor.u32 %v4408_v40, %v4406_v59  ;;  %v4917_v7 = vrot.slane %v16015_v63, 1  ;;  %v13005_v44 = vld [vmem:[%s17878_s3 + $0x68] sm:$0xff]   ;;  %v13006_v59 = vld [vmem:[%s17878_s3 + $0x70] sm:$0xff]  }
 0x473   : > { %v16182_v10 = vpack.c.bf16 %v4274_v41, %v4273_v18  ;;  %11606 = vmatmul.mubr.msk.bf16.gmra.mrb[52].mxu1 %vm4460_vm4, %v16180_v22  ;;  %v4914_v43 = vsel %vm676_vm1, %v4912_v36, %v4913_v14  ;;  %v16269_v62 = vsel %vm676_vm1, %v4913_v14, %v4915_v54  ;;  %v4919_v40 = vrot.slane %v16044_v33, 1  ;;  %v13007_v41 = vld [vmem:[%s17878_s3 + $0x78] sm:$0xff]  }
 0x474   : > { %v16186_v6 = vpack.c.bf16 %v4272_v51, %v4271_v46  ;;  %v16189_v57 = vsel %vm2062_vm3, %v4410_v1, %v4414_v32  ;;  %v4921_v18 = vrot.slane %v16039_v27, 1  ;;  %v13008_v51 = vld [vmem:[%s17878_s3 + $0x80] sm:$0xff]   ;;  %v4923_v1 = vrot.slane %v16077_v48, 1 }
 0x475   : > { %11609 = vmatprep.mubr.msk.bf16.mxu1 %vm4460_vm4, %v16189_v57  ;;  %v4428_v34 = vshll.u32 %v16182_v10, 16  ;;  %v4432_v53 = vshrl.u32 %v16182_v10, 16  ;;  %v16287_v32 = vsel %vm676_vm1, %v4917_v7, %v4919_v40  ;;  %v4925_v35 = vrot.slane %v16072_v42, 1 }
 0x476   : > { %v4420_v0 = vshll.u32 %v16186_v6, 16  ;;  %v4424_v26 = vshrl.u32 %v16186_v6, 16  ;;  %v16292_v46 = vsel %vm676_vm1, %v4919_v40, %v4921_v18  ;;  %v4939_v14 = vrot.slane %v16186_v6, 1  ;;  %v13010_v40 = vld [vmem:[%s17878_s3 + $0x90] sm:$0xff]  }
 0x477   : > { %v4430_v29 = vrot.slane %v4428_v34, 1  ;;  %v16307_v34 = vsel %vm676_vm1, %v4923_v1, %v4925_v35 }
 0x478   : > { %v4422_v58 = vrot.slane %v4420_v0, 1  ;;  %v16302_v0 = vsel %vm676_vm1, %v4921_v18, %v4923_v1  ;;  %v13012_v18 = vld [vmem:[%s17878_s3 + $0xa0] sm:$0xff]  }
 0x479   : > { %v4434_v4 = vor.u32 %v4432_v53, %v4430_v29  ;;  %v4933_v53 = vrot.slane %v16130_v16, 1  ;;  %v13016_v1 = vld [vmem:[%s17878_s3 + $0xc0] sm:$0xff]  }
 0x47a   : > { %v16198_v11 = vsel %vm2062_vm3, %v4418_v52, %v4422_v58  ;;  %v4426_v31 = vor.u32 %v4424_v26, %v4422_v58  ;;  %v4927_v52 = vrot.slane %v16109_v15, 1  ;;  %v4929_v58 = vrot.slane %v16104_v24, 1 }
 0x47b   : > { %11610 = vmatmul.mubr.msk.bf16.gmra.mrb[56].mxu1 %vm4460_vm4, %v16198_v11  ;;  %v16210_v55 = vsel %vm2062_vm3, %v4434_v4, %v15578_v9 }
 0x47c   : > { %v16203_v50 = vsel %vm2062_vm3, %v4426_v31, %v4430_v29  ;;  %v16314_v26 = vsel %vm676_vm1, %v4925_v35, %v4927_v52  ;;  %v16319_v31 = vsel %vm676_vm1, %v4927_v52, %v4929_v58  ;;  %v4931_v29 = vrot.slane %v16135_v17, 1  ;;  %v13017_v35 = vld [vmem:[%s17878_s3 + $0xc8] sm:$0xff]   ;;  %v13018_v52 = vld [vmem:[%s17878_s3 + $0xd0] sm:$0xff]  }
 0x47d   : > { %11613 = vmatprep.mubr.msk.bf16.mxu1 %vm4460_vm4, %v16203_v50 }
 0x47e   : > { %v16326_v4 = vsel %vm676_vm1, %v4929_v58, %v4931_v29  ;;  %v13020_v58 = vld [vmem:[%s17878_s3 + $0xe0] sm:$0xff]  }
 0x483   : > { %11614 = vmatmul.mubr.msk.bf16.gmra.mrb[60].mxu1 %vm4460_vm4, %v16210_v55 }
 0x484   : > { %11625 = vmatprep.mubr.msk.bf16.mxu1 %vm4460_vm4, %v16003_v56  ;;  %v16274_v56 = vsel %vm676_vm1, %v4915_v54, %v4917_v7 }
 0x48b   : > { %11626 = vmatmul.mubr.msk.bf16.vlgmr.msra.gmra.mrb[32].mxu1 %vm4460_vm4, %v16000_v28 }
 0x48c   : > { %11658 = vmatpush3.bf16.msra.mxu1 %v16091_v30  ;;  %11629 = vmatprep.mubr.msk.bf16.mxu1 %vm4460_vm4, %v16018_v60  ;;  %v13004_v30 = vld [vmem:[%s17878_s3 + $0x60] sm:$0xff]  }
 0x48d   : > { %11659 = vmatprep.subr.bf16.mxu1 %v13001_v5 }
 0x490   : > { %11660 = vmatpush3.bf16.msra.mxu1 %v13001_v5  ;;  %v16331_v5 = vsel %vm676_vm1, %v4931_v29, %v4933_v53  ;;  %v13021_v29 = vld [vmem:[%s17878_s3 + $0xe8] sm:$0xff]  }
 0x491   : > { %11661 = vmatprep.subr.bf16.mxu1 %v13002_v19 }
 0x493   : > { %11630 = vmatmul.mubr.msk.bf16.gmra.mrb[36].mxu1 %vm4460_vm4, %v16015_v63 }
 0x494   : > { %11633 = vmatprep.mubr.msk.bf16.mxu1 %vm4460_vm4, %v16044_v33  ;;  %11662 = vmatpush3.bf16.msra.mxu1 %v13002_v19  ;;  %v4935_v19 = vrot.slane %v16161_v39, 1 }
 0x495   : > { %11663 = vmatprep.subr.bf16.mxu1 %v13003_v12 }
 0x498   : > { %11664 = vmatpush3.bf16.msra.mxu1 %v13003_v12  ;;  %v4937_v12 = vrot.slane %v16156_v20, 1 }
 0x499   : > { %11697 = vmatprep.subr.bf16.mxu1 %v13004_v30 }
 0x49a   : > { %v16343_v36 = vsel %vm676_vm1, %v4935_v19, %v4937_v12  ;;  %v16350_v54 = vsel %vm676_vm1, %v4937_v12, %v4939_v14  ;;  %v13096_v12 = vld [vmem:[%s17879_s4 + $0x4] ss:$8 sps:$4 sm:$0xff]  }
 0x49b   : > { %11634 = vmatmul.mubr.msk.bf16.gmra.mrb[40].mxu1 %vm4460_vm4, %v16039_v27 }
 0x49c   : > { %11637 = vmatprep.mubr.msk.bf16.mxu1 %vm4460_vm4, %v16077_v48 }
 0x4a3   : > { %11638 = vmatmul.mubr.msk.bf16.gmra.mrb[44].mxu1 %vm4460_vm4, %v16072_v42 }
 0x4a4   : > { %11641 = vmatprep.mubr.msk.bf16.mxu1 %vm4460_vm4, %v16109_v15 }
 0x4ab   : > { %11642 = vmatmul.mubr.msk.bf16.gmra.mrb[48].mxu1 %vm4460_vm4, %v16104_v24 }
 0x4ac   : > { %11645 = vmatprep.mubr.msk.bf16.mxu1 %vm4460_vm4, %v16135_v17 }
 0x4b3   : > { %11646 = vmatmul.mubr.msk.bf16.gmra.mrb[52].mxu1 %vm4460_vm4, %v16130_v16 }
 0x4b4   : > { %11649 = vmatprep.mubr.msk.bf16.mxu1 %vm4460_vm4, %v16161_v39 }
 0x4bb   : > { %11650 = vmatmul.mubr.msk.bf16.gmra.mrb[56].mxu1 %vm4460_vm4, %v16156_v20 }
 0x4bc   : > { %11653 = vmatprep.mubr.msk.bf16.mxu1 %vm4460_vm4, %v16186_v6 }
 0x4c3   : > { %11654 = vmatmul.mubr.msk.bf16.gmra.mrb[60].mxu1 %vm4460_vm4, %v16182_v10 }
 0x4c4   : > { %11665 = vmatprep.mubr.msk.bf16.mxu1 %vm4460_vm4, %v4914_v43  ;;  %v4941_v43 = vrot.slane %v16182_v10, 1 }
 0x4c6   : > { %v16355_v7 = vsel %vm676_vm1, %v4939_v14, %v4941_v43 }
 0x4cb   : > { %11666 = vmatmul.mubr.msk.bf16.vlgmr.msra.gmra.mrb[32].mxu1 %vm4460_vm4, %v16269_v62 }
 0x4cc   : > { %11698 = vmatpush3.bf16.msra.mxu1 %v13004_v30  ;;  %11669 = vmatprep.mubr.msk.bf16.mxu1 %vm4460_vm4, %v16274_v56  ;;  %v16338_v30 = vsel %vm676_vm1, %v4933_v53, %v4935_v19  ;;  %v13022_v53 = vld [vmem:[%s17878_s3 + $0xf0] sm:$0xff]  }
 0x4cd   : > { %11699 = vmatprep.subr.bf16.mxu1 %v13005_v44  ;;  %v13055_v19 = vld [vmem:[%s17879_s4 + $0x250] ss:$8 sps:$4 sm:$0xff]  }
 0x4d0   : > { %11700 = vmatpush3.bf16.msra.mxu1 %v13005_v44  ;;  %v16361_v44 = vsel %vm676_vm1, %v4941_v43, %v15680_v37 }
 0x4d1   : > { %11701 = vmatprep.subr.bf16.mxu1 %v13006_v59 }
 0x4d3   : > { %11670 = vmatmul.mubr.msk.bf16.gmra.mrb[36].mxu1 %vm4460_vm4, %v16287_v32 }
 0x4d4   : > { %11673 = vmatprep.mubr.msk.bf16.mxu1 %vm4460_vm4, %v16292_v46  ;;  %11702 = vmatpush3.bf16.msra.mxu1 %v13006_v59  ;;  %v13009_v59 = vld [vmem:[%s17878_s3 + $0x88] sm:$0xff]  }
 0x4d5   : > { %11703 = vmatprep.subr.bf16.mxu1 %v13007_v41 }
 0x4d8   : > { %11704 = vmatpush3.bf16.msra.mxu1 %v13007_v41  ;;  %v13013_v41 = vld [vmem:[%s17878_s3 + $0xa8] sm:$0xff]  }
 0x4d9   : > { %11737 = vmatprep.subr.bf16.mxu1 %v13008_v51 }
 0x4db   : > { %11674 = vmatmul.mubr.msk.bf16.gmra.mrb[40].mxu1 %vm4460_vm4, %v16302_v0 }
 0x4dc   : > { %11677 = vmatprep.mubr.msk.bf16.mxu1 %vm4460_vm4, %v16307_v34 }
 0x4e3   : > { %11678 = vmatmul.mubr.msk.bf16.gmra.mrb[44].mxu1 %vm4460_vm4, %v16314_v26 }
 0x4e4   : > { %11681 = vmatprep.mubr.msk.bf16.mxu1 %vm4460_vm4, %v16319_v31 }
 0x4eb   : > { %11682 = vmatmul.mubr.msk.bf16.gmra.mrb[48].mxu1 %vm4460_vm4, %v16326_v4 }
 0x4ec   : > { %11685 = vmatprep.mubr.msk.bf16.mxu1 %vm4460_vm4, %v16331_v5 }
 0x4f3   : > { %11686 = vmatmul.mubr.msk.bf16.gmra.mrb[52].mxu1 %vm4460_vm4, %v16338_v30 }
 0x4f4   : > { %11689 = vmatprep.mubr.msk.bf16.mxu1 %vm4460_vm4, %v16343_v36 }
 0x4fb   : > { %11690 = vmatmul.mubr.msk.bf16.gmra.mrb[56].mxu1 %vm4460_vm4, %v16350_v54 }
 0x4fc   : > { %11693 = vmatprep.mubr.msk.bf16.mxu1 %vm4460_vm4, %v16355_v7 }
 0x503   : > { %11694 = vmatmul.mubr.msk.bf16.gmra.mrb[60].mxu1 %vm4460_vm4, %v16361_v44 }
 0x504   : > { %11705 = vmatprep.mubr.msk.bf16.mxu1 %vm4460_vm4, %v16000_v28  ;;  %v13011_v28 = vld [vmem:[%s17878_s3 + $0x98] sm:$0xff]  }
 0x50b   : > { %11706 = vmatmul.mubr.msk.bf16.vlgmr.msra.gmra.mrb[32].mxu1 %vm4460_vm4, %v16018_v60 }
 0x50c   : > { %11738 = vmatpush3.bf16.msra.mxu1 %v13008_v51  ;;  %11709 = vmatprep.mubr.msk.bf16.mxu1 %vm4460_vm4, %v16015_v63  ;;  %v13014_v51 = vld [vmem:[%s17878_s3 + $0xb0] sm:$0xff]  }
 0x50d   : > { %11739 = vmatprep.subr.bf16.mxu1 %v13009_v59 }
 0x510   : > { %11740 = vmatpush3.bf16.msra.mxu1 %v13009_v59 }
 0x511   : > { %11741 = vmatprep.subr.bf16.mxu1 %v13010_v40 }
 0x513   : > { %11710 = vmatmul.mubr.msk.bf16.gmra.mrb[36].mxu1 %vm4460_vm4, %v16044_v33 }
 0x514   : > { %11713 = vmatprep.mubr.msk.bf16.mxu1 %vm4460_vm4, %v16039_v27  ;;  %11742 = vmatpush3.bf16.msra.mxu1 %v13010_v40 }
 0x515   : > { %11743 = vmatprep.subr.bf16.mxu1 %v13011_v28 }
 0x518   : > { %11744 = vmatpush3.bf16.msra.mxu1 %v13011_v28 }
 0x519   : > { %11777 = vmatprep.subr.bf16.mxu1 %v13012_v18 }
 0x51b   : > { %11714 = vmatmul.mubr.msk.bf16.gmra.mrb[40].mxu1 %vm4460_vm4, %v16077_v48 }
 0x51c   : > { %11717 = vmatprep.mubr.msk.bf16.mxu1 %vm4460_vm4, %v16072_v42 }
 0x523   : > { %11718 = vmatmul.mubr.msk.bf16.gmra.mrb[44].mxu1 %vm4460_vm4, %v16109_v15 }
 0x524   : > { %11721 = vmatprep.mubr.msk.bf16.mxu1 %vm4460_vm4, %v16104_v24 }
 0x52b   : > { %11722 = vmatmul.mubr.msk.bf16.gmra.mrb[48].mxu1 %vm4460_vm4, %v16135_v17 }
 0x52c   : > { %11725 = vmatprep.mubr.msk.bf16.mxu1 %vm4460_vm4, %v16130_v16 }
 0x533   : > { %11726 = vmatmul.mubr.msk.bf16.gmra.mrb[52].mxu1 %vm4460_vm4, %v16161_v39 }
 0x534   : > { %11729 = vmatprep.mubr.msk.bf16.mxu1 %vm4460_vm4, %v16156_v20 }
 0x53b   : > { %11730 = vmatmul.mubr.msk.bf16.gmra.mrb[56].mxu1 %vm4460_vm4, %v16186_v6 }
 0x53c   : > { %11733 = vmatprep.mubr.msk.bf16.mxu1 %vm4460_vm4, %v16182_v10 }
 0x543   : > { %11734 = vmatmul.mubr.bf16.gmra.mrb[60].mxu1 %v18571_v25 }
 0x544   : > { %11745 = vmatprep.mubr.msk.bf16.mxu1 %vm4460_vm4, %v16037_v3  ;;  %v13015_v3 = vld [vmem:[%s17878_s3 + $0xb8] sm:$0xff]  }
 0x54b   : > { %11746 = vmatmul.mubr.msk.bf16.vlgmr.msra.gmra.mrb[32].mxu1 %vm4460_vm4, %v16049_v47 }
 0x54c   : > { %11778 = vmatpush3.bf16.msra.mxu1 %v13012_v18  ;;  %11749 = vmatprep.mubr.msk.bf16.mxu1 %vm4460_vm4, %v16070_v13 }
 0x54d   : > { %11779 = vmatprep.subr.bf16.mxu1 %v13013_v41 }
 0x550   : > { %11780 = vmatpush3.bf16.msra.mxu1 %v13013_v41 }
 0x551   : > { %11781 = vmatprep.subr.bf16.mxu1 %v13014_v51 }
 0x553   : > { %11750 = vmatmul.mubr.msk.bf16.gmra.mrb[36].mxu1 %vm4460_vm4, %v16081_v23 }
 0x554   : > { %11753 = vmatprep.mubr.msk.bf16.mxu1 %vm4460_vm4, %v16102_v21  ;;  %11782 = vmatpush3.bf16.msra.mxu1 %v13014_v51 }
 0x555   : > { %11783 = vmatprep.subr.bf16.mxu1 %v13015_v3 }
 0x558   : > { %11784 = vmatpush3.bf16.msra.mxu1 %v13015_v3 }
 0x559   : > { %11817 = vmatprep.subr.bf16.mxu1 %v13016_v1 }
 0x55b   : > { %11754 = vmatmul.mubr.msk.bf16.gmra.mrb[40].mxu1 %vm4460_vm4, %v16113_v61 }
 0x55c   : > { %11757 = vmatprep.mubr.msk.bf16.mxu1 %vm4460_vm4, %v16128_v38 }
 0x563   : > { %11758 = vmatmul.mubr.msk.bf16.gmra.mrb[44].mxu1 %vm4460_vm4, %v16139_v45 }
 0x564   : > { %11761 = vmatprep.mubr.msk.bf16.mxu1 %vm4460_vm4, %v16154_v2 }
 0x56b   : > { %11762 = vmatmul.mubr.msk.bf16.gmra.mrb[48].mxu1 %vm4460_vm4, %v16165_v49 }
 0x56c   : > { %11765 = vmatprep.mubr.msk.bf16.mxu1 %vm4460_vm4, %v16180_v22 }
 0x573   : > { %11766 = vmatmul.mubr.msk.bf16.gmra.mrb[52].mxu1 %vm4460_vm4, %v16189_v57 }
 0x574   : > { %11769 = vmatprep.mubr.msk.bf16.mxu1 %vm4460_vm4, %v16198_v11 }
 0x57b   : > { %11770 = vmatmul.mubr.msk.bf16.gmra.mrb[56].mxu1 %vm4460_vm4, %v16203_v50 }
 0x57c   : > { %11773 = vmatprep.mubr.msk.bf16.mxu1 %vm4460_vm4, %v16210_v55 }
 0x583   : > { %11774 = vmatmul.mubr.msk.bf16.gmra.mrb[60].mxu1 %vm4460_vm4, %v15578_v9 }
 0x584   : > { %11785 = vmatprep.mubr.msk.bf16.mxu1 %vm4460_vm4, %v16269_v62  ;;  %v13019_v62 = vld [vmem:[%s17878_s3 + $0xd8] sm:$0xff]  }
 0x58b   : > { %11786 = vmatmul.mubr.msk.bf16.vlgmr.msra.gmra.mrb[32].mxu1 %vm4460_vm4, %v16274_v56 }
 0x58c   : > { %11818 = vmatpush3.bf16.msra.mxu1 %v13016_v1  ;;  %11789 = vmatprep.mubr.msk.bf16.mxu1 %vm4460_vm4, %v16287_v32 }
 0x58d   : > { %11819 = vmatprep.subr.bf16.mxu1 %v13017_v35 }
 0x590   : > { %11820 = vmatpush3.bf16.msra.mxu1 %v13017_v35 }
 0x591   : > { %11821 = vmatprep.subr.bf16.mxu1 %v13018_v52 }
 0x593   : > { %11790 = vmatmul.mubr.msk.bf16.gmra.mrb[36].mxu1 %vm4460_vm4, %v16292_v46 }
 0x594   : > { %11793 = vmatprep.mubr.msk.bf16.mxu1 %vm4460_vm4, %v16302_v0  ;;  %11822 = vmatpush3.bf16.msra.mxu1 %v13018_v52 }
 0x595   : > { %11823 = vmatprep.subr.bf16.mxu1 %v13019_v62 }
 0x598   : > { %11824 = vmatpush3.bf16.msra.mxu1 %v13019_v62 }
 0x599   : > { %11857 = vmatprep.subr.bf16.mxu1 %v13020_v58 }
 0x59b   : > { %11794 = vmatmul.mubr.msk.bf16.gmra.mrb[40].mxu1 %vm4460_vm4, %v16307_v34 }
 0x59c   : > { %11797 = vmatprep.mubr.msk.bf16.mxu1 %vm4460_vm4, %v16314_v26 }
 0x5a3   : > { %11798 = vmatmul.mubr.msk.bf16.gmra.mrb[44].mxu1 %vm4460_vm4, %v16319_v31 }
 0x5a4   : > { %11801 = vmatprep.mubr.msk.bf16.mxu1 %vm4460_vm4, %v16326_v4 }
 0x5ab   : > { %11802 = vmatmul.mubr.msk.bf16.gmra.mrb[48].mxu1 %vm4460_vm4, %v16331_v5 }
 0x5ac   : > { %11805 = vmatprep.mubr.msk.bf16.mxu1 %vm4460_vm4, %v16338_v30 }
 0x5b3   : > { %11806 = vmatmul.mubr.msk.bf16.gmra.mrb[52].mxu1 %vm4460_vm4, %v16343_v36 }
 0x5b4   : > { %11809 = vmatprep.mubr.msk.bf16.mxu1 %vm4460_vm4, %v16350_v54 }
 0x5bb   : > { %11810 = vmatmul.mubr.msk.bf16.gmra.mrb[56].mxu1 %vm4460_vm4, %v16355_v7 }
 0x5bc   : > { %11813 = vmatprep.mubr.msk.bf16.mxu1 %vm4460_vm4, %v16361_v44 }
 0x5c3   : > { %11814 = vmatmul.mubr.msk.bf16.gmra.mrb[60].mxu1 %vm4460_vm4, %v15680_v37 }
 0x5c4   : > { %11825 = vmatprep.mubr.msk.bf16.mxu1 %vm4460_vm4, %v16018_v60  ;;  %v13023_v60 = vld [vmem:[%s17878_s3 + $0xf8] sm:$0xff]  }
 0x5cb   : > { %11826 = vmatmul.mubr.msk.bf16.vlgmr.msra.gmra.mrb[32].mxu1 %vm4460_vm4, %v16015_v63  ;;  %v13024_v63 = vld [vmem:[%s17878_s3 + $0x100] sm:$0xff]  }
 0x5cc   : > { %11858 = vmatpush3.bf16.msra.mxu1 %v13020_v58  ;;  %11829 = vmatprep.mubr.msk.bf16.mxu1 %vm4460_vm4, %v16044_v33  ;;  %v13030_v33 = vld [vmem:[%s17879_s4 + $0x204] ss:$8 sps:$4 sm:$0xff]  }
 0x5cd   : > { %11859 = vmatprep.subr.bf16.mxu1 %v13021_v29  ;;  %8251 = vmatprep.subr.bf16.mxu0 %v13030_v33 }
 0x5d0   : > { %11860 = vmatpush3.bf16.msra.mxu1 %v13021_v29 }
 0x5d1   : > { %11861 = vmatprep.subr.bf16.mxu1 %v13022_v53 }
 0x5d3   : > { %11830 = vmatmul.mubr.msk.bf16.gmra.mrb[36].mxu1 %vm4460_vm4, %v16039_v27  ;;  %v13028_v27 = vld [vmem:[%s17879_s4 + $0x200] ss:$8 sps:$4 sm:$0xff]  }
 0x5d4   : > { %11833 = vmatprep.mubr.msk.bf16.mxu1 %vm4460_vm4, %v16077_v48  ;;  %11862 = vmatpush3.bf16.msra.mxu1 %v13022_v53  ;;  %v13031_v48 = vld [vmem:[%s17879_s4 + $0x210] ss:$8 sps:$4 sm:$0xff]  }
 0x5d5   : > { %11863 = vmatprep.subr.bf16.mxu1 %v13023_v60  ;;  %8252 = vmatpush1.bf16.msra.mxu0 %v13028_v27 }
 0x5d8   : > { %11864 = vmatpush3.bf16.msra.mxu1 %v13023_v60 }
 0x5d9   : > { %11897 = vmatprep.subr.bf16.mxu1 %v13024_v63 }
 0x5db   : > { %11834 = vmatmul.mubr.msk.bf16.gmra.mrb[40].mxu1 %vm4460_vm4, %v16072_v42  ;;  %v13033_v42 = vld [vmem:[%s17879_s4 + $0x214] ss:$8 sps:$4 sm:$0xff]  }
 0x5dc   : > { %11837 = vmatprep.mubr.msk.bf16.mxu1 %vm4460_vm4, %v16109_v15  ;;  %8253 = vmatprep.subr.bf16.mxu0 %v13033_v42  ;;  %v13025_v15 = vld [vmem:[%s17878_s3 + $0x108] sm:$0xff]  }
 0x5dd   : > { %8254 = vmatpush1.bf16.msra.mxu0 %v13031_v48 }
 0x5e3   : > { %11838 = vmatmul.mubr.msk.bf16.gmra.mrb[44].mxu1 %vm4460_vm4, %v16104_v24  ;;  %v13036_v24 = vld [vmem:[%s17879_s4 + $0x224] ss:$8 sps:$4 sm:$0xff]  }
 0x5e4   : > { %11841 = vmatprep.mubr.msk.bf16.mxu1 %vm4460_vm4, %v16135_v17  ;;  %8255 = vmatprep.subr.bf16.mxu0 %v13036_v24  ;;  %v13026_v17 = vld [vmem:[%s17878_s3 + $0x110] sm:$0xff]  }
 0x5eb   : > { %11842 = vmatmul.mubr.msk.bf16.gmra.mrb[48].mxu1 %vm4460_vm4, %v16130_v16  ;;  %v13039_v16 = vld [vmem:[%s17879_s4 + $0x234] ss:$8 sps:$4 sm:$0xff]  }
 0x5ec   : > { %11845 = vmatprep.mubr.msk.bf16.mxu1 %vm4460_vm4, %v16161_v39  ;;  %v13046_v39 = vld [vmem:[%s17879_s4 + $0x240] ss:$8 sps:$4 sm:$0xff]  }
 0x5f3   : > { %11846 = vmatmul.mubr.msk.bf16.gmra.mrb[52].mxu1 %vm4460_vm4, %v16156_v20  ;;  %v13037_v20 = vld [vmem:[%s17879_s4 + $0x230] ss:$8 sps:$4 sm:$0xff]  }
 0x5f4   : > { %11849 = vmatprep.mubr.msk.bf16.mxu1 %vm4460_vm4, %v16186_v6  ;;  %v13042_v6 = vld [vmem:[%s17879_s4 + $0x84] ss:$8 sps:$4 sm:$0xff]  }
 0x5fb   : > { %11850 = vmatmul.mubr.msk.bf16.gmra.mrb[56].mxu1 %vm4460_vm4, %v16182_v10  ;;  %v13057_v10 = vld [vmem:[%s17879_s4 + $0x254] ss:$8 sps:$4 sm:$0xff]  }
 0x5fc   : > { %11853 = vmatprep.mubr.bf16.mxu1 %v18571_v25 }
 0x603   : > { %11854 = vmatmul.mubr.bf16.gmra.mrb[60].mxu1 %v18571_v25 }
 0x604   : > { %11865 = vmatprep.mubr.msk.bf16.mxu1 %vm4460_vm4, %v16049_v47  ;;  %v13034_v47 = vld [vmem:[%s17879_s4 + $0x220] ss:$8 sps:$4 sm:$0xff]  }
 0x605   : > { %8256 = vmatpush1.bf16.msra.mxu0 %v13034_v47 }
 0x606   : > { %8257 = vmatprep.subr.bf16.mxu0 %v13039_v16 }
 0x609   : > { %8258 = vmatpush1.bf16.msra.mxu0 %v13037_v20 }
 0x60b   : > { %11866 = vmatmul.mubr.msk.bf16.vlgmr.msra.gmra.mrb[32].mxu1 %vm4460_vm4, %v16070_v13  ;;  %v13048_v13 = vld [vmem:[%s17879_s4 + $0x244] ss:$8 sps:$4 sm:$0xff]  }
 0x60c   : > { %11898 = vmatpush3.bf16.msra.mxu1 %v13024_v63  ;;  %11869 = vmatprep.mubr.msk.bf16.mxu1 %vm4460_vm4, %v16081_v23  ;;  %v13027_v23 = vld [vmem:[%s17878_s3 + $0x118] sm:$0xff]  }
 0x60d   : > { %11899 = vmatprep.subr.bf16.mxu1 %v13025_v15  ;;  %8259 = vmatprep.subr.bf16.mxu0 %v13048_v13  ;;  %v13094_v13 = vld [vmem:[%s17879_s4] ss:$8 sps:$4 sm:$0xff]  }
 0x60e   : > { %8260 = vmatpush1.bf16.msra.mxu0 %v13046_v39  ;;  %v13099_v39 = vld [vmem:[%s17879_s4 + $0x14] ss:$8 sps:$4 sm:$0xff]  }
 0x60f   : > { %8261 = vmatprep.subr.bf16.mxu0 %v13057_v10 }
 0x610   : > { %11900 = vmatpush3.bf16.msra.mxu1 %v13025_v15 }
 0x611   : > { %11901 = vmatprep.subr.bf16.mxu1 %v13026_v17 }
 0x612   : > { %8262 = vmatpush1.bf16.msra.mxu0 %v13055_v19 }
 0x613   : > { %11870 = vmatmul.mubr.msk.bf16.gmra.mrb[36].mxu1 %vm4460_vm4, %v16102_v21  ;;  %v13040_v21 = vld [vmem:[%s17879_s4 + $0x80] ss:$8 sps:$4 sm:$0xff]  }
 0x614   : > { %11873 = vmatprep.mubr.msk.bf16.mxu1 %vm4460_vm4, %v16113_v61  ;;  %11902 = vmatpush3.bf16.msra.mxu1 %v13026_v17  ;;  %v13045_v61 = vld [vmem:[%s17879_s4 + $0x94] ss:$8 sps:$4 sm:$0xff]  }
 0x615   : > { %11903 = vmatprep.subr.bf16.mxu1 %v13027_v23 }
 0x618   : > { %11904 = vmatpush3.bf16.msra.mxu1 %v13027_v23 }
 0x619   : > { %6915 = vmatprep.subr.bf16.mxu1 %v13042_v6 }
 0x61b   : > { %11874 = vmatmul.mubr.msk.bf16.gmra.mrb[40].mxu1 %vm4460_vm4, %v16128_v38  ;;  %v13043_v38 = vld [vmem:[%s17879_s4 + $0x90] ss:$8 sps:$4 sm:$0xff]  }
 0x61c   : > { %11877 = vmatprep.mubr.msk.bf16.mxu1 %vm4460_vm4, %v16139_v45  ;;  %v13051_v45 = vld [vmem:[%s17879_s4 + $0xa4] ss:$8 sps:$4 sm:$0xff]  }
 0x623   : > { %11878 = vmatmul.mubr.msk.bf16.gmra.mrb[44].mxu1 %vm4460_vm4, %v16154_v2  ;;  %v13049_v2 = vld [vmem:[%s17879_s4 + $0xa0] ss:$8 sps:$4 sm:$0xff]  }
 0x624   : > { %11881 = vmatprep.mubr.msk.bf16.mxu1 %vm4460_vm4, %v16165_v49  ;;  %v13054_v49 = vld [vmem:[%s17879_s4 + $0xb4] ss:$8 sps:$4 sm:$0xff]  }
 0x62b   : > { %11882 = vmatmul.mubr.msk.bf16.gmra.mrb[48].mxu1 %vm4460_vm4, %v16180_v22  ;;  %v13052_v22 = vld [vmem:[%s17879_s4 + $0xb0] ss:$8 sps:$4 sm:$0xff]  }
 0x62c   : > { %11885 = vmatprep.mubr.msk.bf16.mxu1 %vm4460_vm4, %v16189_v57  ;;  %v13058_v57 = vld [vmem:[%s17879_s4 + $0xc0] ss:$8 sps:$4 sm:$0xff]  }
 0x633   : > { %11886 = vmatmul.mubr.msk.bf16.gmra.mrb[52].mxu1 %vm4460_vm4, %v16198_v11  ;;  %v13060_v11 = vld [vmem:[%s17879_s4 + $0xc4] ss:$8 sps:$4 sm:$0xff]  }
 0x634   : > { %11889 = vmatprep.mubr.msk.bf16.mxu1 %vm4460_vm4, %v16203_v50  ;;  %v13061_v50 = vld [vmem:[%s17879_s4 + $0xd0] ss:$8 sps:$4 sm:$0xff]  }
 0x63b   : > { %11890 = vmatmul.mubr.msk.bf16.gmra.mrb[56].mxu1 %vm4460_vm4, %v16210_v55  ;;  %v13063_v55 = vld [vmem:[%s17879_s4 + $0xd4] ss:$8 sps:$4 sm:$0xff]  }
 0x63c   : > { %11893 = vmatprep.mubr.msk.bf16.mxu1 %vm4460_vm4, %v15578_v9 }
 0x643   : > { %11894 = vmatmul.mubr.msk.bf16.gmra.mrb[60].mxu1 %vm4460_vm4, %v15578_v9 }
 0x644   : > { %11905 = vmatprep.mubr.msk.bf16.mxu1 %vm4460_vm4, %v16274_v56  ;;  %v13064_v56 = vld [vmem:[%s17879_s4 + $0x260] ss:$8 sps:$4 sm:$0xff]  }
 0x64b   : > { %11906 = vmatmul.mubr.msk.bf16.vlgmr.msra.gmra.mrb[32].mxu1 %vm4460_vm4, %v16287_v32  ;;  %v13066_v32 = vld [vmem:[%s17879_s4 + $0x264] ss:$8 sps:$4 sm:$0xff]  }
 0x64c   : > { %11909 = vmatprep.mubr.msk.bf16.mxu1 %vm4460_vm4, %v16292_v46  ;;  %6916 = vmatpush1.bf16.msra.mxu1 %v13040_v21  ;;  %v13069_v46 = vld [vmem:[%s17879_s4 + $0xe4] ss:$8 sps:$4 sm:$0xff]  }
 0x64d   : > { %6917 = vmatprep.subr.bf16.mxu1 %v13045_v61  ;;  %8263 = vmatprep.subr.bf16.mxu0 %v13066_v32 }
 0x64e   : > { %8264 = vmatpush1.bf16.msra.mxu0 %v13064_v56  ;;  %v13076_v56 = vld [vmem:[%s17879_s4 + $0x280] ss:$8 sps:$4 sm:$0xff]  }
 0x650   : > { %6918 = vmatpush1.bf16.msra.mxu1 %v13043_v38 }
 0x651   : > { %6919 = vmatprep.subr.bf16.mxu1 %v13051_v45 }
 0x653   : > { %11910 = vmatmul.mubr.msk.bf16.gmra.mrb[36].mxu1 %vm4460_vm4, %v16302_v0  ;;  %v13067_v0 = vld [vmem:[%s17879_s4 + $0xe0] ss:$8 sps:$4 sm:$0xff]  }
 0x654   : > { %11913 = vmatprep.mubr.msk.bf16.mxu1 %vm4460_vm4, %v16307_v34  ;;  %6920 = vmatpush1.bf16.msra.mxu1 %v13049_v2  ;;  %v13072_v34 = vld [vmem:[%s17879_s4 + $0xf4] ss:$8 sps:$4 sm:$0xff]  }
 0x655   : > { %6921 = vmatprep.subr.bf16.mxu1 %v13054_v49 }
 0x658   : > { %6922 = vmatpush1.bf16.msra.mxu1 %v13052_v22  ;;  %v13097_v22 = vld [vmem:[%s17879_s4 + $0x10] ss:$8 sps:$4 sm:$0xff]  }
 0x659   : > { %6923 = vmatprep.subr.bf16.mxu1 %v13060_v11 }
 0x65b   : > { %11914 = vmatmul.mubr.msk.bf16.gmra.mrb[40].mxu1 %vm4460_vm4, %v16314_v26  ;;  %v13073_v26 = vld [vmem:[%s17879_s4 + $0x270] ss:$8 sps:$4 sm:$0xff]  }
 0x65c   : > { %11917 = vmatprep.mubr.msk.bf16.mxu1 %vm4460_vm4, %v16319_v31  ;;  %6924 = vmatpush1.bf16.msra.mxu1 %v13058_v57  ;;  %v13075_v31 = vld [vmem:[%s17879_s4 + $0x274] ss:$8 sps:$4 sm:$0xff]  }
 0x65d   : > { %6925 = vmatprep.subr.bf16.mxu1 %v13063_v55  ;;  %8265 = vmatprep.subr.bf16.mxu0 %v13075_v31 }
 0x65e   : > { %8266 = vmatpush1.bf16.msra.mxu0 %v13073_v26  ;;  %v13081_v26 = vld [vmem:[%s17879_s4 + $0x294] ss:$8 sps:$4 sm:$0xff]  }
 0x660   : > { %6926 = vmatpush1.bf16.msra.mxu1 %v13061_v50  ;;  %v13105_v50 = vld [vmem:[%s17879_s4 + $0x24] ss:$8 sps:$4 sm:$0xff]  }
 0x661   : > { %6927 = vmatprep.subr.bf16.mxu1 %v13069_v46 }
 0x663   : > { %11918 = vmatmul.mubr.msk.bf16.gmra.mrb[44].mxu1 %vm4460_vm4, %v16326_v4  ;;  %v13070_v4 = vld [vmem:[%s17879_s4 + $0xf0] ss:$8 sps:$4 sm:$0xff]  }
 0x664   : > { %11921 = vmatprep.mubr.msk.bf16.mxu1 %vm4460_vm4, %v16331_v5  ;;  %6928 = vmatpush1.bf16.msra.mxu1 %v13067_v0  ;;  %v13078_v5 = vld [vmem:[%s17879_s4 + $0x284] ss:$8 sps:$4 sm:$0xff]  }
 0x665   : > { %6929 = vmatprep.subr.bf16.mxu1 %v13072_v34  ;;  %8606 = vmatprep.subr.bf16.mxu0 %v13078_v5 }
 0x668   : > { %6930 = vmatpush1.bf16.msra.mxu1 %v13070_v4 }
 0x669   : > { %7188 = vmatprep.subr.bf16.mxu1 %v13096_v12  ;;  %v13103_v12 = vld [vmem:[%s17879_s4 + $0x20] ss:$8 sps:$4 sm:$0xff]  }
 0x66b   : > { %11922 = vmatmul.mubr.msk.bf16.gmra.mrb[48].mxu1 %vm4460_vm4, %v16338_v30  ;;  %v16717_v30 = vld [vmem:[%s17882_s7] ss:$0 sm:$0xff] }
 0x66c   : > { %11925 = vmatprep.mubr.msk.bf16.mxu1 %vm4460_vm4, %v16343_v36 }
 0x673   : > { %11926 = vmatmul.mubr.msk.bf16.gmra.mrb[52].mxu1 %vm4460_vm4, %v16350_v54 }
 0x674   : > { %11929 = vmatprep.mubr.msk.bf16.mxu1 %vm4460_vm4, %v16355_v7 }
 0x67b   : > { %11930 = vmatmul.mubr.msk.bf16.gmra.mrb[56].mxu1 %vm4460_vm4, %v16361_v44 }
 0x67c   : > { %11933 = vmatprep.mubr.msk.bf16.mxu1 %vm4460_vm4, %v15680_v37 }
 0x683   : > { %11934 = vmatmul.mubr.msk.bf16.gmra.mrb[60].mxu1 %vm4460_vm4, %v15680_v37 }
 0x684   : > { %6947 = vmatprep.mubr.bf16.mxu1 %v18543_v8 }
 0x71e   : > { %v11907_v36 = vpop.f32.mrb[32].mxu1 }
 0x71f   : > { %v6580_v14 = vadd.f32 %v11907_v36, %v16717_v30  ;;  %v6412_v43 = vpop.f32.mrb[33].mxu1 }
 0x720   : > { %v6578_v54 = vadd.f32 %v16717_v30, %v6412_v43  ;;  %v11908_v7 = vpop.f32.mrb[34].mxu1 }
 0x721   : > { %v6581_v44 = vadd.f32 %v11908_v7, %v16717_v30  ;;  %v6415_v59 = vpop.f32.mrb[35].mxu1  ;;  %v6612_v28 = vmax.f32 %v6580_v14, 0.0  ;;  %v13108_v14 = vld [vmem:[%s17879_s4 + $0x34] ss:$8 sps:$4 sm:$0xff]  }
 0x722   : > { %v6579_v40 = vadd.f32 %v16717_v30, %v6415_v59  ;;  %v6610_v41 = vmax.f32 %v6578_v54, 0.0  ;;  %v13079_v59 = vld [vmem:[%s17879_s4 + $0x290] ss:$8 sps:$4 sm:$0xff]  }
 0x723   : > { %v6613_v18 = vmax.f32 %v6581_v44, 0.0 }
 0x724   : > { %v6611_v51 = vmax.f32 %v6579_v40, 0.0 }
 0x725   : > { %v16723_v3 = vpack.c.bf16 %v6613_v18, %v6612_v28  ;;  %v13084_v18 = vld [vmem:[%s17879_s4 + $0x2a4] ss:$8 sps:$4 sm:$0xff]  }
 0x726   : > { %v16725_v1 = vpack.c.bf16 %v6611_v51, %v6610_v41  ;;  %v11911_v35 = vpop.f32.mrb[36].mxu1 }
 0x727   : > { %v6584_v52 = vadd.f32 %v11911_v35, %v16717_v30  ;;  %v6428_v62 = vpop.f32.mrb[37].mxu1  ;;  %v6699_v60 = vshll.u32 %v16723_v3, 16  ;;  %v6703_v2 = vshrl.u32 %v16723_v3, 16 }
 0x728   : > { %v6694_v58 = vshll.u32 %v16725_v1, 16  ;;  %v6582_v29 = vadd.f32 %v16717_v30, %v6428_v62  ;;  %v11912_v53 = vpop.f32.mrb[38].mxu1  ;;  %v6692_v33 = vshrl.u32 %v16725_v1, 16 }
 0x729   : > { %v6585_v63 = vadd.f32 %v11912_v53, %v16717_v30  ;;  %v6431_v27 = vpop.f32.mrb[39].mxu1  ;;  %v6616_v24 = vmax.f32 %v6584_v52, 0.0  ;;  %v6701_v20 = vrot.slane %v6699_v60, 1  ;;  %v13106_v52 = vld [vmem:[%s17879_s4 + $0x30] ss:$8 sps:$4 sm:$0xff]  }
 0x72a   : > { %v6696_v42 = vrot.slane %v6694_v58, 1  ;;  %v6583_v48 = vadd.f32 %v16717_v30, %v6431_v27  ;;  %v6614_v47 = vmax.f32 %v6582_v29, 0.0  ;;  %v13111_v29 = vld [vmem:[%s17879_s4 + $0x44] ss:$8 sps:$4 sm:$0xff]  }
 0x72b   : > { %v6617_v15 = vmax.f32 %v6585_v63, 0.0  ;;  %v6705_v32 = vor.u32 %v6703_v2, %v6701_v20  ;;  %v13082_v63 = vld [vmem:[%s17879_s4 + $0x2a0] ss:$8 sps:$4 sm:$0xff]  }
 0x72c   : > { %v6615_v16 = vmax.f32 %v6583_v48, 0.0  ;;  %v6697_v17 = vor.u32 %v6696_v42, %v6692_v33  ;;  %v13087_v42 = vld [vmem:[%s17879_s4 + $0x2b4] ss:$8 sps:$4 sm:$0xff]  }
 0x72d   : > { %v16737_v23 = vpack.c.bf16 %v6617_v15, %v6616_v24 }
 0x72e   : > { %v16742_v10 = vpack.c.bf16 %v6615_v16, %v6614_v47  ;;  %v11915_v6 = vpop.f32.mrb[40].mxu1  ;;  %v6702_v19 = vsel %vm2062_vm3, %v6697_v17, %v6701_v20  ;;  %v13109_v16 = vld [vmem:[%s17879_s4 + $0x40] ss:$8 sps:$4 sm:$0xff]   ;;  %v13114_v20 = vld [vmem:[%s17879_s4 + $0x54] ss:$8 sps:$4 sm:$0xff]  }
 0x72f   : > { %v6588_v21 = vadd.f32 %v11915_v6, %v16717_v30  ;;  %v6444_v61 = vpop.f32.mrb[41].mxu1  ;;  %6948 = vmatmul.mubr.bf16.vlgmr.msra.gmra.mrb[64].mxu1 %v6702_v19  ;;  %v6715_v44 = vshll.u32 %v16737_v23, 16  ;;  %v13085_v6 = vld [vmem:[%s17879_s4 + $0x2b0] ss:$8 sps:$4 sm:$0xff]   ;;  %v6719_v2 = vshrl.u32 %v16737_v23, 16 }
 0x730   : > { %v6586_v38 = vadd.f32 %v16717_v30, %v6444_v61  ;;  %v11916_v45 = vpop.f32.mrb[42].mxu1  ;;  %v6707_v49 = vshll.u32 %v16742_v10, 16  ;;  %6957 = vmatprep.mubr.bf16.mxu1 %v18543_v8  ;;  %7189 = vmatpush1.bf16.msra.mxu1 %v13094_v13  ;;  %v6711_v7 = vshrl.u32 %v16742_v10, 16  ;;  %v13090_v61 = vld [vmem:[%s17879_s4 + $0x2c4] ss:$8 sps:$4 sm:$0xff]  }
 0x731   : > { %v6589_v57 = vadd.f32 %v11916_v45, %v16717_v30  ;;  %v6447_v11 = vpop.f32.mrb[43].mxu1  ;;  %7190 = vmatprep.subr.bf16.mxu1 %v13099_v39  ;;  %v6620_v0 = vmax.f32 %v6588_v21, 0.0  ;;  %v6717_v60 = vrot.slane %v6715_v44, 1 }
 0x732   : > { %v6587_v55 = vadd.f32 %v16717_v30, %v6447_v11  ;;  %v6709_v46 = vrot.slane %v6707_v49, 1  ;;  %v6618_v31 = vmax.f32 %v6586_v38, 0.0 }
 0x733   : > { %v6621_v34 = vmax.f32 %v6589_v57, 0.0 }
 0x734   : > { %v6619_v4 = vmax.f32 %v6587_v55, 0.0  ;;  %v6710_v5 = vsel %vm2062_vm3, %v6705_v32, %v6709_v46  ;;  %7191 = vmatpush1.bf16.msra.mxu1 %v13097_v22  ;;  %v6713_v35 = vor.u32 %v6711_v7, %v6709_v46  ;;  %v13112_v22 = vld [vmem:[%s17879_s4 + $0x50] ss:$8 sps:$4 sm:$0xff]   ;;  %v13088_v32 = vld [vmem:[%s17879_s4 + $0x2c0] ss:$8 sps:$4 sm:$0xff]  }
 0x735   : > { %v16768_v36 = vpack.c.bf16 %v6621_v34, %v6620_v0  ;;  %8284 = vmatmul.mubr.bf16.vlgmr.msra.gmra.mrb[32].mxu0 %v6710_v5  ;;  %7192 = vmatprep.subr.bf16.mxu1 %v13105_v50  ;;  %v13120_v50 = vld [vmem:[%s17879_s4 + $0x64] ss:$8 sps:$4 sm:$0xff]   ;;  %v13093_v34 = vld [vmem:[%s17879_s4 + $0x2d4] ss:$8 sps:$4 sm:$0xff]  }
 0x736   : > { %v16773_v43 = vpack.c.bf16 %v6619_v4, %v6618_v31  ;;  %8607 = vmatpush1.bf16.msra.mxu0 %v13076_v56  ;;  %v11919_v54 = vpop.f32.mrb[44].mxu1  ;;  %8293 = vmatprep.mubr.bf16.mxu0 %v18543_v8  ;;  %v16802_v15 = vsel %vm2062_vm3, %v6713_v35, %v6717_v60  ;;  %v6721_v56 = vor.u32 %v6719_v2, %v6717_v60 }
 0x737   : > { %v6592_v40 = vadd.f32 %v11919_v54, %v16717_v30  ;;  %v6460_v28 = vpop.f32.mrb[45].mxu1  ;;  %6958 = vmatmul.mubr.bf16.gmra.mrb[68].mxu1 %v6710_v5  ;;  %8608 = vmatprep.subr.bf16.mxu0 %v13081_v26  ;;  %v13118_v5 = vld [vmem:[%s17879_s4 + $0x60] ss:$8 sps:$4 sm:$0xff]  }
 0x738   : > { %v6590_v41 = vadd.f32 %v16717_v30, %v6460_v28  ;;  %v11920_v51 = vpop.f32.mrb[46].mxu1  ;;  %6967 = vmatprep.mubr.bf16.mxu1 %v18543_v8  ;;  %7193 = vmatpush1.bf16.msra.mxu1 %v13103_v12  ;;  %v6723_v47 = vshll.u32 %v16773_v43, 16  ;;  %v6727_v44 = vshrl.u32 %v16773_v43, 16 }
 0x739   : > { %v6593_v62 = vadd.f32 %v11920_v51, %v16717_v30  ;;  %v6463_v58 = vpop.f32.mrb[47].mxu1  ;;  %7194 = vmatprep.subr.bf16.mxu1 %v13108_v14  ;;  %v6624_v27 = vmax.f32 %v6592_v40, 0.0  ;;  %v13123_v14 = vld [vmem:[%s17879_s4 + $0x74] ss:$8 sps:$4 sm:$0xff]   ;;  %v13091_v40 = vld [vmem:[%s17879_s4 + $0x2d0] ss:$8 sps:$4 sm:$0xff]  }
 0x73a   : > { %v6591_v53 = vadd.f32 %v16717_v30, %v6463_v58  ;;  %8609 = vmatpush1.bf16.msra.mxu0 %v13079_v59  ;;  %v6622_v48 = vmax.f32 %v6590_v41, 0.0  ;;  %v6725_v49 = vrot.slane %v6723_v47, 1  ;;  %v6731_v59 = vshll.u32 %v16768_v36, 16  ;;  %v13102_v41 = vld [vmem:[%s17879_s4 + $0x2e4] ss:$8 sps:$4 sm:$0xff]  }
 0x73b   : > { %v6625_v33 = vmax.f32 %v6593_v62, 0.0  ;;  %8610 = vmatprep.subr.bf16.mxu0 %v13084_v18  ;;  %v13121_v62 = vld [vmem:[%s17879_s4 + $0x70] ss:$8 sps:$4 sm:$0xff]  }
 0x73c   : > { %v6623_v24 = vmax.f32 %v6591_v53, 0.0  ;;  %7195 = vmatpush1.bf16.msra.mxu1 %v13106_v52  ;;  %v16843_v4 = vsel %vm2062_vm3, %v6721_v56, %v6725_v49  ;;  %v6729_v52 = vor.u32 %v6727_v44, %v6725_v49  ;;  %v6733_v60 = vrot.slane %v6731_v59, 1 }
 0x73d   : > { %v16808_v17 = vpack.c.bf16 %v6625_v33, %v6624_v27  ;;  %8294 = vmatmul.mubr.bf16.gmra.mrb[36].mxu0 %v16802_v15  ;;  %7196 = vmatprep.subr.bf16.mxu1 %v13111_v29  ;;  %v6735_v49 = vshrl.u32 %v16768_v36, 16 }
 0x73e   : > { %v16814_v13 = vpack.c.bf16 %v6623_v24, %v6622_v48  ;;  %v11923_v39 = vpop.f32.mrb[48].mxu1  ;;  %8303 = vmatprep.mubr.bf16.mxu0 %v18543_v8  ;;  %8611 = vmatpush1.bf16.msra.mxu0 %v13082_v63  ;;  %v13100_v63 = vld [vmem:[%s17879_s4 + $0x2e0] ss:$8 sps:$4 sm:$0xff]   ;;  %v16881_v47 = vsel %vm2062_vm3, %v6729_v52, %v6733_v60 }
 0x73f   : > { %v6596_v19 = vadd.f32 %v11923_v39, %v16717_v30  ;;  %v6476_v21 = vpop.f32.mrb[49].mxu1  ;;  %6968 = vmatmul.mubr.bf16.gmra.mrb[72].mxu1 %v16802_v15  ;;  %8612 = vmatprep.subr.bf16.mxu0 %v13087_v42  ;;  %v13117_v42 = vld [vmem:[%s17879_s4 + $0x2f4] ss:$8 sps:$4 sm:$0xff]  }
 0x740   : > { %v6594_v38 = vadd.f32 %v16717_v30, %v6476_v21  ;;  %v11924_v45 = vpop.f32.mrb[50].mxu1  ;;  %6977 = vmatprep.mubr.bf16.mxu1 %v18543_v8  ;;  %7197 = vmatpush1.bf16.msra.mxu1 %v13109_v16  ;;  %v6739_v16 = vshll.u32 %v16814_v13, 16 }
 0x741   : > { %v6597_v57 = vadd.f32 %v11924_v45, %v16717_v30  ;;  %v6479_v11 = vpop.f32.mrb[51].mxu1  ;;  %7198 = vmatprep.subr.bf16.mxu1 %v13114_v20  ;;  %v6628_v46 = vmax.f32 %v6596_v19, 0.0  ;;  %v13115_v19 = vld [vmem:[%s17879_s4 + $0x2f0] ss:$8 sps:$4 sm:$0xff]  }
 0x742   : > { %v6595_v55 = vadd.f32 %v16717_v30, %v6479_v11  ;;  %8613 = vmatpush1.bf16.msra.mxu0 %v13085_v6  ;;  %v6626_v26 = vmax.f32 %v6594_v38, 0.0  ;;  %v13126_v38 = vld [vmem:[%s17879_s4 + $0x304] ss:$8 sps:$4 sm:$0xff]  }
 0x743   : > { %v6629_v0 = vmax.f32 %v6597_v57, 0.0  ;;  %8614 = vmatprep.subr.bf16.mxu0 %v13090_v61 }
 0x744   : > { %v6627_v31 = vmax.f32 %v6595_v55, 0.0  ;;  %7199 = vmatpush1.bf16.msra.mxu1 %v13112_v22  ;;  %v6741_v22 = vrot.slane %v6739_v16, 1  ;;  %v6737_v55 = vor.u32 %v6735_v49, %v6733_v60 }
 0x745   : > { %v16848_v12 = vpack.c.bf16 %v6629_v0, %v6628_v46  ;;  %8304 = vmatmul.mubr.bf16.gmra.mrb[40].mxu0 %v16843_v4  ;;  %7200 = vmatprep.subr.bf16.mxu1 %v13120_v50 }
 0x746   : > { %v16854_v54 = vpack.c.bf16 %v6627_v31, %v6626_v26  ;;  %v11927_v7 = vpop.f32.mrb[52].mxu1  ;;  %8313 = vmatprep.mubr.bf16.mxu0 %v18543_v8  ;;  %8615 = vmatpush1.bf16.msra.mxu0 %v13088_v32 }
 0x747   : > { %v6600_v28 = vadd.f32 %v11927_v7, %v16717_v30  ;;  %v6492_v18 = vpop.f32.mrb[53].mxu1  ;;  %6978 = vmatmul.mubr.bf16.gmra.mrb[76].mxu1 %v16843_v4  ;;  %8616 = vmatprep.subr.bf16.mxu0 %v13093_v34  ;;  %v16904_v34 = vsel %vm2062_vm3, %v6737_v55, %v6741_v22  ;;  %v6747_v7 = vshll.u32 %v16808_v17, 16 }
 0x748   : > { %v6598_v51 = vadd.f32 %v16717_v30, %v6492_v18  ;;  %v11928_v35 = vpop.f32.mrb[54].mxu1  ;;  %6987 = vmatprep.mubr.bf16.mxu1 %v18543_v8  ;;  %7201 = vmatpush1.bf16.msra.mxu1 %v13118_v5  ;;  %v6759_v16 = vshrl.u32 %v16854_v54, 16 }
 0x749   : > { %v6601_v58 = vadd.f32 %v11928_v35, %v16717_v30  ;;  %v6495_v29 = vpop.f32.mrb[55].mxu1  ;;  %7202 = vmatprep.subr.bf16.mxu1 %v13123_v14  ;;  %v6632_v27 = vmax.f32 %v6600_v28, 0.0  ;;  %v6743_v14 = vshrl.u32 %v16814_v13, 16  ;;  %v6749_v52 = vrot.slane %v6747_v7, 1 }
 0x74a   : > { %v6599_v53 = vadd.f32 %v16717_v30, %v6495_v29  ;;  %8617 = vmatpush1.bf16.msra.mxu0 %v13091_v40  ;;  %v6630_v48 = vmax.f32 %v6598_v51, 0.0 }
 0x74b   : > { %v6633_v33 = vmax.f32 %v6601_v58, 0.0  ;;  %8618 = vmatprep.subr.bf16.mxu0 %v13102_v41  ;;  %v6745_v18 = vor.u32 %v6743_v14, %v6741_v22 }
 0x74c   : > { %v6631_v24 = vmax.f32 %v6599_v53, 0.0  ;;  %7203 = vmatpush1.bf16.msra.mxu1 %v13121_v62 }
 0x74d   : > { %v16884_v20 = vpack.c.bf16 %v6633_v33, %v6632_v27  ;;  %8314 = vmatmul.mubr.bf16.gmra.mrb[44].mxu0 %v16881_v47  ;;  %v16921_v60 = vsel %vm2062_vm3, %v6745_v18, %v6749_v52 }
 0x74e   : > { %v16887_v39 = vpack.c.bf16 %v6631_v24, %v6630_v48  ;;  %v11931_v6 = vpop.f32.mrb[56].mxu1  ;;  %8323 = vmatprep.mubr.bf16.mxu0 %v18543_v8  ;;  %8619 = vmatpush1.bf16.msra.mxu0 %v13100_v63  ;;  %v6755_v63 = vshll.u32 %v16854_v54, 16 }
 0x74f   : > { %v6604_v21 = vadd.f32 %v11931_v6, %v16717_v30  ;;  %v6508_v61 = vpop.f32.mrb[57].mxu1  ;;  %6988 = vmatmul.mubr.bf16.gmra.mrb[80].mxu1 %v16881_v47  ;;  %8620 = vmatprep.subr.bf16.mxu0 %v13117_v42  ;;  %v6763_v6 = vshll.u32 %v16848_v12, 16 }
 0x750   : > { %v6602_v45 = vadd.f32 %v16717_v30, %v6508_v61  ;;  %v11932_v2 = vpop.f32.mrb[58].mxu1  ;;  %6997 = vmatprep.mubr.bf16.mxu1 %v18543_v8  ;;  %v6757_v42 = vrot.slane %v6755_v63, 1 }
 0x751   : > { %v6605_v57 = vadd.f32 %v11932_v2, %v16717_v30  ;;  %v6511_v11 = vpop.f32.mrb[59].mxu1  ;;  %v6636_v56 = vmax.f32 %v6604_v21, 0.0  ;;  %v6765_v21 = vrot.slane %v6763_v6, 1  ;;  %v13142_v6 = vld [vmem:[%s17879_s4 + $0x100] ss:$8 sps:$4 sm:$0xff]  }
 0x752   : > { %v6603_v50 = vadd.f32 %v16717_v30, %v6511_v11  ;;  %8621 = vmatpush1.bf16.msra.mxu0 %v13115_v19  ;;  %v6634_v46 = vmax.f32 %v6602_v45, 0.0  ;;  %v6761_v19 = vor.u32 %v6759_v16, %v6757_v42  ;;  %v6767_v45 = vshrl.u32 %v16848_v12, 16 }
 0x753   : > { %v6637_v32 = vmax.f32 %v6605_v57, 0.0  ;;  %8960 = vmatprep.subr.bf16.mxu0 %v13126_v38  ;;  %v6771_v38 = vshll.u32 %v16887_v39, 16  ;;  %v6775_v57 = vshrl.u32 %v16887_v39, 16  ;;  %v6779_v11 = vshll.u32 %v16884_v20, 16 }
 0x754   : > { %v6635_v0 = vmax.f32 %v6603_v50, 0.0  ;;  %v16943_v61 = vsel %vm2062_vm3, %v6761_v19, %v6765_v21  ;;  %v6769_v49 = vor.u32 %v6767_v45, %v6765_v21  ;;  %v13147_v19 = vld [vmem:[%s17879_s4 + $0x114] ss:$8 sps:$4 sm:$0xff]   ;;  %v7417_v21 = vrot.slane %v16742_v10, 1  ;;  %v13153_v45 = vld [vmem:[%s17879_s4 + $0x124] ss:$8 sps:$4 sm:$0xff]  }
 0x755   : > { %v16906_v26 = vpack.c.bf16 %v6637_v32, %v6636_v56  ;;  %8324 = vmatmul.mubr.bf16.gmra.mrb[48].mxu0 %v16904_v34  ;;  %v6773_v2 = vrot.slane %v6771_v38, 1  ;;  %v6781_v55 = vrot.slane %v6779_v11, 1  ;;  %v13145_v38 = vld [vmem:[%s17879_s4 + $0x110] ss:$8 sps:$4 sm:$0xff]  }
 0x756   : > { %v16909_v31 = vpack.c.bf16 %v6635_v0, %v6634_v46  ;;  %v11935_v5 = vpop.f32.mrb[60].mxu1  ;;  %8333 = vmatprep.mubr.bf16.mxu0 %v18543_v8  ;;  %v6783_v46 = vshrl.u32 %v16884_v20, 16 }
 0x757   : > { %v6608_v44 = vadd.f32 %v11935_v5, %v16717_v30  ;;  %v6524_v59 = vpop.f32.mrb[61].mxu1  ;;  %6998 = vmatmul.mubr.bf16.gmra.mrb[84].mxu1 %v16904_v34  ;;  %v16952_v22 = vsel %vm2062_vm3, %v6769_v49, %v6773_v2  ;;  %v6777_v50 = vor.u32 %v6775_v57, %v6773_v2  ;;  %v13124_v2 = vld [vmem:[%s17879_s4 + $0x300] ss:$8 sps:$4 sm:$0xff]   ;;  %v7415_v49 = vrot.slane %v16723_v3, 1  ;;  %v13129_v57 = vld [vmem:[%s17879_s4 + $0x314] ss:$8 sps:$4 sm:$0xff]  }
 0x758   : > { %v6606_v40 = vadd.f32 %v16717_v30, %v6524_v59  ;;  %v11936_v28 = vpop.f32.mrb[62].mxu1  ;;  %7007 = vmatprep.mubr.bf16.mxu1 %v18543_v8  ;;  %v6787_v32 = vshll.u32 %v16909_v31, 16  ;;  %v6785_v5 = vor.u32 %v6783_v46, %v6781_v55  ;;  %v6791_v7 = vshrl.u32 %v16909_v31, 16  ;;  %v13132_v46 = vld [vmem:[%s17879_s4 + $0x324] ss:$8 sps:$4 sm:$0xff]  }
 0x759   : > { %v6609_v41 = vadd.f32 %v11936_v28, %v16717_v30  ;;  %v6527_v51 = vpop.f32.mrb[63].mxu1  ;;  %v6640_v62 = vmax.f32 %v6608_v44, 0.0  ;;  %v16961_v56 = vsel %vm2062_vm3, %v6777_v50, %v6781_v55  ;;  %v6795_v44 = vshll.u32 %v16906_v26, 16  ;;  %v13151_v50 = vld [vmem:[%s17879_s4 + $0x120] ss:$8 sps:$4 sm:$0xff]  }
 0x75a   : > { %v6607_v35 = vadd.f32 %v16717_v30, %v6527_v51  ;;  %v6638_v29 = vmax.f32 %v6606_v40, 0.0  ;;  %v6751_v30 = vshrl.u32 %v16808_v17, 16  ;;  %v6789_v0 = vrot.slane %v6787_v32, 1  ;;  %v13156_v55 = vld [vmem:[%s17879_s4 + $0x134] ss:$8 sps:$4 sm:$0xff]  }
 0x75b   : > { %v6641_v58 = vmax.f32 %v6609_v41, 0.0  ;;  %v6797_v40 = vrot.slane %v6795_v44, 1  ;;  %v13144_v41 = vld [vmem:[%s17879_s4 + $0x104] ss:$8 sps:$4 sm:$0xff]   ;;  %v6799_v51 = vshrl.u32 %v16906_v26, 16  ;;  %v17042_v11 = vsel %vm676_vm1, %v7415_v49, %v7417_v21 }
 0x75c   : > { %v6639_v53 = vmax.f32 %v6607_v35, 0.0  ;;  %v6753_v48 = vor.u32 %v6751_v30, %v6749_v52  ;;  %v16970_v14 = vsel %vm2062_vm3, %v6785_v5, %v6789_v0  ;;  %v6793_v59 = vor.u32 %v6791_v7, %v6789_v0  ;;  %7542 = vmatprep.subr.bf16.mxu1 %v13144_v41  ;;  %v13127_v32 = vld [vmem:[%s17879_s4 + $0x310] ss:$8 sps:$4 sm:$0xff]   ;;  %v13159_v7 = vld [vmem:[%s17879_s4 + $0x144] ss:$8 sps:$4 sm:$0xff]  }
 0x75d   : > { %v16924_v27 = vpack.c.bf16 %v6641_v58, %v6640_v62  ;;  %8334 = vmatmul.mubr.bf16.gmra.mrb[52].mxu0 %v16921_v60  ;;  %v6801_v52 = vor.u32 %v6799_v51, %v6797_v40  ;;  %v7419_v0 = vrot.slane %v16737_v23, 1  ;;  %v13154_v5 = vld [vmem:[%s17879_s4 + $0x130] ss:$8 sps:$4 sm:$0xff]   ;;  %v13130_v44 = vld [vmem:[%s17879_s4 + $0x320] ss:$8 sps:$4 sm:$0xff]  }
 0x75e   : > { %v16927_v33 = vpack.c.bf16 %v6639_v53, %v6638_v29  ;;  %8343 = vmatprep.mubr.bf16.mxu0 %v18543_v8  ;;  %v16934_v24 = vsel %vm2062_vm3, %v6753_v48, %v6757_v42  ;;  %v16979_v28 = vsel %vm2062_vm3, %v6793_v59, %v6797_v40  ;;  %v13135_v59 = vld [vmem:[%s17879_s4 + $0x334] ss:$8 sps:$4 sm:$0xff]   ;;  %v13133_v51 = vld [vmem:[%s17879_s4 + $0x330] ss:$8 sps:$4 sm:$0xff]  }
 0x75f   : > { %7008 = vmatmul.mubr.bf16.gmra.mrb[88].mxu1 %v16921_v60  ;;  %v6811_v29 = vshll.u32 %v16924_v27, 16  ;;  %v6815_v42 = vshrl.u32 %v16924_v27, 16  ;;  %v17074_v40 = vsel %vm676_vm1, %v7417_v21, %v7419_v0  ;;  %v13162_v41 = vld [vmem:[%s17879_s4 + $0x154] ss:$8 sps:$4 sm:$0xff]   ;;  %v13150_v21 = vld [vmem:[%s17879_s4 + $0x364] ss:$8 sps:$4 sm:$0xff]  }
 0x760   : > { %7017 = vmatprep.mubr.bf16.mxu1 %v18543_v8  ;;  %v6803_v18 = vshll.u32 %v16927_v33, 16  ;;  %v6807_v58 = vshrl.u32 %v16927_v33, 16 }
 0x761   : > { %v6813_v63 = vrot.slane %v6811_v29, 1  ;;  %v13168_v29 = vld [vmem:[%s17879_s4 + $0x164] ss:$8 sps:$4 sm:$0xff]  }
 0x762   : > { %v6805_v35 = vrot.slane %v6803_v18, 1  ;;  %v13157_v18 = vld [vmem:[%s17879_s4 + $0x140] ss:$8 sps:$4 sm:$0xff]  }
 0x763   : > { %v6817_v48 = vor.u32 %v6815_v42, %v6813_v63 }
 0x764   : > { %v16991_v62 = vsel %vm2062_vm3, %v6801_v52, %v6805_v35  ;;  %v6809_v53 = vor.u32 %v6807_v58, %v6805_v35  ;;  %v13138_v35 = vld [vmem:[%s17879_s4 + $0x344] ss:$8 sps:$4 sm:$0xff]   ;;  %v7421_v52 = vrot.slane %v16773_v43, 1  ;;  %v13160_v58 = vld [vmem:[%s17879_s4 + $0x150] ss:$8 sps:$4 sm:$0xff]  }
 0x765   : > { %8344 = vmatmul.mubr.bf16.gmra.mrb[56].mxu0 %v16934_v24  ;;  %v17009_v16 = vsel %vm2062_vm3, %v6817_v48, %v15578_v9  ;;  %v13166_v48 = vld [vmem:[%s17879_s4 + $0x160] ss:$8 sps:$4 sm:$0xff]  }
 0x766   : > { %8353 = vmatprep.mubr.bf16.mxu0 %v18543_v8  ;;  %v17000_v30 = vsel %vm2062_vm3, %v6809_v53, %v6813_v63  ;;  %v13136_v53 = vld [vmem:[%s17879_s4 + $0x340] ss:$8 sps:$4 sm:$0xff]   ;;  %v13141_v63 = vld [vmem:[%s17879_s4 + $0x354] ss:$8 sps:$4 sm:$0xff]   ;;  %v17106_v42 = vsel %vm676_vm1, %v7419_v0, %v7421_v52 }
 0x767   : > { %7018 = vmatmul.mubr.bf16.gmra.mrb[92].mxu1 %v16934_v24 }
 0x768   : > { %7027 = vmatprep.mubr.bf16.mxu1 %v18543_v8 }
 0x76d   : > { %8354 = vmatmul.mubr.bf16.gmra.mrb[60].mxu0 %v16943_v61 }
 0x76e   : > { %8363 = vmatprep.mubr.bf16.mxu0 %v18543_v8 }
 0x76f   : > { %7028 = vmatmul.mubr.bf16.gmra.mrb[96].mxu1 %v16943_v61 }
 0x770   : > { %7037 = vmatprep.mubr.bf16.mxu1 %v18543_v8 }
 0x775   : > { %8364 = vmatmul.mubr.bf16.gmra.mrb[64].mxu0 %v16952_v22 }
 0x776   : > { %8373 = vmatprep.mubr.bf16.mxu0 %v18543_v8 }
 0x777   : > { %7038 = vmatmul.mubr.bf16.gmra.mrb[100].mxu1 %v16952_v22 }
 0x778   : > { %7047 = vmatprep.mubr.bf16.mxu1 %v18543_v8 }
 0x77d   : > { %8374 = vmatmul.mubr.bf16.gmra.mrb[68].mxu0 %v16961_v56 }
 0x77e   : > { %8383 = vmatprep.mubr.bf16.mxu0 %v18543_v8 }
 0x77f   : > { %7048 = vmatmul.mubr.bf16.gmra.mrb[104].mxu1 %v16961_v56 }
 0x780   : > { %7057 = vmatprep.mubr.bf16.mxu1 %v18543_v8 }
 0x785   : > { %8384 = vmatmul.mubr.bf16.gmra.mrb[72].mxu0 %v16970_v14 }
 0x786   : > { %8393 = vmatprep.mubr.bf16.mxu0 %v18543_v8 }
 0x787   : > { %7058 = vmatmul.mubr.bf16.gmra.mrb[108].mxu1 %v16970_v14 }
 0x788   : > { %7067 = vmatprep.mubr.bf16.mxu1 %v18543_v8 }
 0x78d   : > { %8394 = vmatmul.mubr.bf16.gmra.mrb[76].mxu0 %v16979_v28 }
 0x78e   : > { %8403 = vmatprep.mubr.bf16.mxu0 %v18543_v8 }
 0x78f   : > { %7068 = vmatmul.mubr.bf16.gmra.mrb[112].mxu1 %v16979_v28 }
 0x790   : > { %7077 = vmatprep.mubr.bf16.mxu1 %v18543_v8 }
 0x795   : > { %8404 = vmatmul.mubr.bf16.gmra.mrb[80].mxu0 %v16991_v62 }
 0x796   : > { %8413 = vmatprep.mubr.bf16.mxu0 %v18543_v8 }
 0x797   : > { %7078 = vmatmul.mubr.bf16.gmra.mrb[116].mxu1 %v16991_v62 }
 0x798   : > { %7087 = vmatprep.mubr.bf16.mxu1 %v18543_v8 }
 0x79d   : > { %8414 = vmatmul.mubr.bf16.gmra.mrb[84].mxu0 %v17000_v30 }
 0x79e   : > { %8423 = vmatprep.mubr.bf16.mxu0 %v18543_v8 }
 0x79f   : > { %7088 = vmatmul.mubr.bf16.gmra.mrb[120].mxu1 %v17000_v30 }
 0x7a0   : > { %7097 = vmatprep.mubr.bf16.mxu1 %v18543_v8 }
 0x7a5   : > { %8424 = vmatmul.mubr.bf16.gmra.mrb[88].mxu0 %v17009_v16 }
 0x7a6   : > { %8433 = vmatprep.mubr.bf16.mxu0 %v18543_v8 }
 0x7a7   : > { %7098 = vmatmul.mubr.bf16.gmra.mrb[124].mxu1 %v17009_v16 }
 0x7a8   : > { %7220 = vmatprep.mubr.bf16.mxu1 %v18543_v8 }
 0x7ad   : > { %8434 = vmatmul.mubr.bf16.gmra.mrb[92].mxu0 %v15578_v9 }
 0x7ae   : > { %8638 = vmatprep.mubr.bf16.mxu0 %v18543_v8 }
 0x7af   : > { %7221 = vmatmul.mubr.bf16.vlgmr.msra.gmra.mrb[64].mxu1 %v16725_v1 }
 0x7b0   : > { %7230 = vmatprep.mubr.bf16.mxu1 %v18543_v8  ;;  %7543 = vmatpush1.bf16.msra.mxu1 %v13142_v6  ;;  %v13171_v6 = vld [vmem:[%s17879_s4 + $0x174] ss:$8 sps:$4 sm:$0xff]  }
 0x7b1   : > { %7544 = vmatprep.subr.bf16.mxu1 %v13147_v19  ;;  %v13139_v19 = vld [vmem:[%s17879_s4 + $0x350] ss:$8 sps:$4 sm:$0xff]  }
 0x7b4   : > { %7545 = vmatpush1.bf16.msra.mxu1 %v13145_v38  ;;  %v7423_v38 = vrot.slane %v16768_v36, 1 }
 0x7b5   : > { %8639 = vmatmul.mubr.bf16.vlgmr.msra.gmra.mrb[32].mxu0 %v17042_v11  ;;  %7546 = vmatprep.subr.bf16.mxu1 %v13153_v45  ;;  %v13169_v45 = vld [vmem:[%s17879_s4 + $0x170] ss:$8 sps:$4 sm:$0xff]  }
 0x7b6   : > { %8961 = vmatpush1.bf16.msra.mxu0 %v13124_v2  ;;  %8648 = vmatprep.mubr.bf16.mxu0 %v18543_v8  ;;  %v13148_v2 = vld [vmem:[%s17879_s4 + $0x360] ss:$8 sps:$4 sm:$0xff]  }
 0x7b7   : > { %7231 = vmatmul.mubr.bf16.gmra.mrb[68].mxu1 %v16723_v3  ;;  %8962 = vmatprep.subr.bf16.mxu0 %v13129_v57  ;;  %v13165_v57 = vld [vmem:[%s17879_s4 + $0x374] ss:$8 sps:$4 sm:$0xff]  }
 0x7b8   : > { %7240 = vmatprep.mubr.bf16.mxu1 %v18543_v8  ;;  %7547 = vmatpush1.bf16.msra.mxu1 %v13151_v50  ;;  %v17135_v50 = vsel %vm676_vm1, %v7421_v52, %v7423_v38  ;;  %v7435_v52 = vrot.slane %v16884_v20, 1 }
 0x7b9   : > { %7548 = vmatprep.subr.bf16.mxu1 %v13156_v55  ;;  %v13163_v55 = vld [vmem:[%s17879_s4 + $0x370] ss:$8 sps:$4 sm:$0xff]  }
 0x7ba   : > { %8963 = vmatpush1.bf16.msra.mxu0 %v13127_v32  ;;  %v13174_v32 = vld [vmem:[%s17879_s4 + $0x384] ss:$8 sps:$4 sm:$0xff]  }
 0x7bb   : > { %8964 = vmatprep.subr.bf16.mxu0 %v13132_v46  ;;  %v7425_v46 = vrot.slane %v16814_v13, 1 }
 0x7bc   : > { %7549 = vmatpush1.bf16.msra.mxu1 %v13154_v5  ;;  %v7427_v5 = vrot.slane %v16808_v17, 1 }
 0x7bd   : > { %8649 = vmatmul.mubr.bf16.gmra.mrb[36].mxu0 %v17074_v40  ;;  %7550 = vmatprep.subr.bf16.mxu1 %v13159_v7  ;;  %v17149_v0 = vsel %vm676_vm1, %v7423_v38, %v7425_v46  ;;  %v7443_v38 = vrot.slane %v16924_v27, 1 }
 0x7be   : > { %8658 = vmatprep.mubr.bf16.mxu0 %v18543_v8  ;;  %8965 = vmatpush1.bf16.msra.mxu0 %v13130_v44  ;;  %v17157_v7 = vsel %vm676_vm1, %v7425_v46, %v7427_v5  ;;  %v7429_v44 = vrot.slane %v16854_v54, 1 }
 0x7bf   : > { %7241 = vmatmul.mubr.bf16.gmra.mrb[72].mxu1 %v16742_v10  ;;  %8966 = vmatprep.subr.bf16.mxu0 %v13135_v59 }
 0x7c0   : > { %7250 = vmatprep.mubr.bf16.mxu1 %v18543_v8  ;;  %7551 = vmatpush1.bf16.msra.mxu1 %v13157_v18  ;;  %v17165_v59 = vsel %vm676_vm1, %v7427_v5, %v7429_v44  ;;  %v7431_v18 = vrot.slane %v16848_v12, 1  ;;  %v13201_v5 = vld [vmem:[%s17879_s4 + $0x1a4] ss:$8 sps:$4 sm:$0xff]  }
 0x7c1   : > { %7552 = vmatprep.subr.bf16.mxu1 %v13162_v41 }
 0x7c2   : > { %8967 = vmatpush1.bf16.msra.mxu0 %v13133_v51  ;;  %v17173_v41 = vsel %vm676_vm1, %v7429_v44, %v7431_v18  ;;  %v7433_v51 = vrot.slane %v16887_v39, 1  ;;  %v13172_v44 = vld [vmem:[%s17879_s4 + $0x380] ss:$8 sps:$4 sm:$0xff]  }
 0x7c3   : > { %8968 = vmatprep.subr.bf16.mxu0 %v13138_v35 }
 0x7c4   : > { %7553 = vmatpush1.bf16.msra.mxu1 %v13160_v58  ;;  %v17181_v35 = vsel %vm676_vm1, %v7431_v18, %v7433_v51  ;;  %v17189_v58 = vsel %vm676_vm1, %v7433_v51, %v7435_v52  ;;  %v13199_v18 = vld [vmem:[%s17879_s4 + $0x1a0] ss:$8 sps:$4 sm:$0xff]   ;;  %v13204_v51 = vld [vmem:[%s17879_s4 + $0x1b4] ss:$8 sps:$4 sm:$0xff]  }
 0x7c5   : > { %8659 = vmatmul.mubr.bf16.gmra.mrb[40].mxu0 %v17106_v42  ;;  %7554 = vmatprep.subr.bf16.mxu1 %v13168_v29  ;;  %v7437_v29 = vrot.slane %v16909_v31, 1 }
 0x7c6   : > { %8668 = vmatprep.mubr.bf16.mxu0 %v18543_v8  ;;  %8969 = vmatpush1.bf16.msra.mxu0 %v13136_v53 }
 0x7c7   : > { %7251 = vmatmul.mubr.bf16.gmra.mrb[76].mxu1 %v16737_v23  ;;  %8970 = vmatprep.subr.bf16.mxu0 %v13141_v63  ;;  %v17197_v53 = vsel %vm676_vm1, %v7435_v52, %v7437_v29  ;;  %v7439_v63 = vrot.slane %v16906_v26, 1  ;;  %v13175_v52 = vld [vmem:[%s17879_s4 + $0x390] ss:$8 sps:$4 sm:$0xff]  }
 0x7c8   : > { %7260 = vmatprep.mubr.bf16.mxu1 %v18543_v8  ;;  %7555 = vmatpush1.bf16.msra.mxu1 %v13166_v48 }
 0x7c9   : > { %7556 = vmatprep.subr.bf16.mxu1 %v13171_v6  ;;  %v17205_v48 = vsel %vm676_vm1, %v7437_v29, %v7439_v63  ;;  %v13192_v6 = vld [vmem:[%s17879_s4 + $0x184] ss:$8 sps:$4 sm:$0xff]  }
 0x7ca   : > { %8971 = vmatpush1.bf16.msra.mxu0 %v13139_v19  ;;  %v7441_v19 = vrot.slane %v16927_v33, 1  ;;  %v13180_v29 = vld [vmem:[%s17879_s4 + $0x3a4] ss:$8 sps:$4 sm:$0xff]  }
 0x7cb   : > { %8972 = vmatprep.subr.bf16.mxu0 %v13150_v21 }
 0x7cc   : > { %7557 = vmatpush1.bf16.msra.mxu1 %v13169_v45  ;;  %v17216_v21 = vsel %vm676_vm1, %v7439_v63, %v7441_v19  ;;  %v17224_v45 = vsel %vm676_vm1, %v7441_v19, %v7443_v38  ;;  %v13202_v63 = vld [vmem:[%s17879_s4 + $0x1b0] ss:$8 sps:$4 sm:$0xff]   ;;  %v13183_v19 = vld [vmem:[%s17879_s4 + $0x3b4] ss:$8 sps:$4 sm:$0xff]  }
 0x7cd   : > { %8669 = vmatmul.mubr.bf16.gmra.mrb[44].mxu0 %v17135_v50  ;;  %7896 = vmatprep.subr.bf16.mxu1 %v13192_v6  ;;  %v13207_v6 = vld [vmem:[%s17879_s4 + $0x1c4] ss:$8 sps:$4 sm:$0xff]  }
 0x7ce   : > { %8678 = vmatprep.mubr.bf16.mxu0 %v18543_v8  ;;  %8973 = vmatpush1.bf16.msra.mxu0 %v13148_v2  ;;  %v17232_v2 = vsel %vm676_vm1, %v7443_v38, %v15680_v37  ;;  %v13205_v38 = vld [vmem:[%s17879_s4 + $0x1c0] ss:$8 sps:$4 sm:$0xff]  }
 0x7cf   : > { %7261 = vmatmul.mubr.bf16.gmra.mrb[80].mxu1 %v16773_v43  ;;  %8974 = vmatprep.subr.bf16.mxu0 %v13165_v57  ;;  %v7414_v57 = vrot.slane %v16725_v1, 1  ;;  %v13193_v1 = vld [vmem:[%s17879_s4 + $0x190] ss:$8 sps:$4 sm:$0xff]  }
 0x7d0   : > { %7270 = vmatprep.mubr.bf16.mxu1 %v18543_v8 }
 0x7d1   : > { %v7416_v46 = vsel %vm676_vm1, %v7414_v57, %v7415_v49  ;;  %v13177_v49 = vld [vmem:[%s17879_s4 + $0x394] ss:$8 sps:$4 sm:$0xff]  }
 0x7d2   : > { %8975 = vmatpush1.bf16.msra.mxu0 %v13163_v55  ;;  %v13190_v55 = vld [vmem:[%s17879_s4 + $0x180] ss:$8 sps:$4 sm:$0xff]   ;;  %v13210_v57 = vld [vmem:[%s17879_s4 + $0x1d4] ss:$8 sps:$4 sm:$0xff]  }
 0x7d3   : > { %9314 = vmatprep.subr.bf16.mxu0 %v13174_v32  ;;  %v13195_v32 = vld [vmem:[%s17879_s4 + $0x194] ss:$8 sps:$4 sm:$0xff]  }
 0x7d5   : > { %8679 = vmatmul.mubr.bf16.gmra.mrb[48].mxu0 %v17149_v0 }
 0x7d6   : > { %8688 = vmatprep.mubr.bf16.mxu0 %v18543_v8 }
 0x7d7   : > { %7271 = vmatmul.mubr.bf16.gmra.mrb[84].mxu1 %v16768_v36 }
 0x7d8   : > { %7280 = vmatprep.mubr.bf16.mxu1 %v18543_v8 }
 0x7dd   : > { %8689 = vmatmul.mubr.bf16.gmra.mrb[52].mxu0 %v17157_v7 }
 0x7de   : > { %8698 = vmatprep.mubr.bf16.mxu0 %v18543_v8 }
 0x7df   : > { %7281 = vmatmul.mubr.bf16.gmra.mrb[88].mxu1 %v16814_v13 }
 0x7e0   : > { %7290 = vmatprep.mubr.bf16.mxu1 %v18543_v8 }
 0x7e5   : > { %8699 = vmatmul.mubr.bf16.gmra.mrb[56].mxu0 %v17165_v59 }
 0x7e6   : > { %8708 = vmatprep.mubr.bf16.mxu0 %v18543_v8 }
 0x7e7   : > { %7291 = vmatmul.mubr.bf16.gmra.mrb[92].mxu1 %v16808_v17 }
 0x7e8   : > { %7300 = vmatprep.mubr.bf16.mxu1 %v18543_v8 }
 0x7ed   : > { %8709 = vmatmul.mubr.bf16.gmra.mrb[60].mxu0 %v17173_v41 }
 0x7ee   : > { %8718 = vmatprep.mubr.bf16.mxu0 %v18543_v8 }
 0x7ef   : > { %7301 = vmatmul.mubr.bf16.gmra.mrb[96].mxu1 %v16854_v54 }
 0x7f0   : > { %7310 = vmatprep.mubr.bf16.mxu1 %v18543_v8 }
 0x7f5   : > { %8719 = vmatmul.mubr.bf16.gmra.mrb[64].mxu0 %v17181_v35 }
 0x7f6   : > { %8728 = vmatprep.mubr.bf16.mxu0 %v18543_v8 }
 0x7f7   : > { %7311 = vmatmul.mubr.bf16.gmra.mrb[100].mxu1 %v16848_v12 }
 0x7f8   : > { %7320 = vmatprep.mubr.bf16.mxu1 %v18543_v8 }
 0x7fd   : > { %8729 = vmatmul.mubr.bf16.gmra.mrb[68].mxu0 %v17189_v58 }
 0x7fe   : > { %8738 = vmatprep.mubr.bf16.mxu0 %v18543_v8 }
 0x7ff   : > { %7321 = vmatmul.mubr.bf16.gmra.mrb[104].mxu1 %v16887_v39 }
 0x800   : > { %7330 = vmatprep.mubr.bf16.mxu1 %v18543_v8 }
 0x805   : > { %8739 = vmatmul.mubr.bf16.gmra.mrb[72].mxu0 %v17197_v53 }
 0x806   : > { %8748 = vmatprep.mubr.bf16.mxu0 %v18543_v8 }
 0x807   : > { %7331 = vmatmul.mubr.bf16.gmra.mrb[108].mxu1 %v16884_v20 }
 0x808   : > { %7340 = vmatprep.mubr.bf16.mxu1 %v18543_v8 }
 0x80d   : > { %8749 = vmatmul.mubr.bf16.gmra.mrb[76].mxu0 %v17205_v48 }
 0x80e   : > { %8758 = vmatprep.mubr.bf16.mxu0 %v18543_v8 }
 0x80f   : > { %7341 = vmatmul.mubr.bf16.gmra.mrb[112].mxu1 %v16909_v31 }
 0x810   : > { %7350 = vmatprep.mubr.bf16.mxu1 %v18543_v8 }
 0x815   : > { %8759 = vmatmul.mubr.bf16.gmra.mrb[80].mxu0 %v17216_v21 }
 0x816   : > { %8768 = vmatprep.mubr.bf16.mxu0 %v18543_v8 }
 0x817   : > { %7351 = vmatmul.mubr.bf16.gmra.mrb[116].mxu1 %v16906_v26 }
 0x818   : > { %7360 = vmatprep.mubr.bf16.mxu1 %v18543_v8 }
 0x81d   : > { %8769 = vmatmul.mubr.bf16.gmra.mrb[84].mxu0 %v17224_v45 }
 0x81e   : > { %8778 = vmatprep.mubr.bf16.mxu0 %v18543_v8 }
 0x81f   : > { %7361 = vmatmul.mubr.bf16.gmra.mrb[120].mxu1 %v16927_v33 }
 0x820   : > { %7370 = vmatprep.mubr.bf16.mxu1 %v18543_v8 }
 0x825   : > { %8779 = vmatmul.mubr.bf16.gmra.mrb[88].mxu0 %v17232_v2 }
 0x826   : > { %8788 = vmatprep.mubr.bf16.mxu0 %v18543_v8 }
 0x827   : > { %7371 = vmatmul.mubr.bf16.gmra.mrb[124].mxu1 %v16924_v27 }
 0x828   : > { %7574 = vmatprep.mubr.bf16.mxu1 %v18543_v8 }
 0x82d   : > { %8789 = vmatmul.mubr.bf16.gmra.mrb[92].mxu0 %v15680_v37 }
 0x82e   : > { %8992 = vmatprep.mubr.bf16.mxu0 %v18543_v8 }
 0x82f   : > { %7575 = vmatmul.mubr.bf16.vlgmr.msra.gmra.mrb[64].mxu1 %v7416_v46  ;;  %v13208_v46 = vld [vmem:[%s17879_s4 + $0x1d0] ss:$8 sps:$4 sm:$0xff]  }
 0x830   : > { %7584 = vmatprep.mubr.bf16.mxu1 %v18543_v8  ;;  %7897 = vmatpush1.bf16.msra.mxu1 %v13190_v55  ;;  %v13181_v55 = vld [vmem:[%s17879_s4 + $0x3b0] ss:$8 sps:$4 sm:$0xff]  }
 0x831   : > { %7898 = vmatprep.subr.bf16.mxu1 %v13195_v32  ;;  %v13186_v32 = vld [vmem:[%s17879_s4 + $0x3c4] ss:$8 sps:$4 sm:$0xff]  }
 0x834   : > { %7899 = vmatpush1.bf16.msra.mxu1 %v13193_v1  ;;  %v13216_v1 = vld [vmem:[%s17879_s4 + $0x1e4] ss:$8 sps:$4 sm:$0xff]  }
 0x835   : > { %8993 = vmatmul.mubr.bf16.vlgmr.msra.gmra.mrb[32].mxu0 %v16742_v10  ;;  %7900 = vmatprep.subr.bf16.mxu1 %v13201_v5  ;;  %v13184_v5 = vld [vmem:[%s17879_s4 + $0x3c0] ss:$8 sps:$4 sm:$0xff]  }
 0x836   : > { %9315 = vmatpush1.bf16.msra.mxu0 %v13172_v44  ;;  %9002 = vmatprep.mubr.bf16.mxu0 %v18543_v8  ;;  %v13189_v44 = vld [vmem:[%s17879_s4 + $0x3d4] ss:$8 sps:$4 sm:$0xff]  }
 0x837   : > { %7585 = vmatmul.mubr.bf16.gmra.mrb[68].mxu1 %v17042_v11  ;;  %9316 = vmatprep.subr.bf16.mxu0 %v13177_v49  ;;  %v13178_v11 = vld [vmem:[%s17879_s4 + $0x3a0] ss:$8 sps:$4 sm:$0xff]  }
 0x838   : > { %7594 = vmatprep.mubr.bf16.mxu1 %v18543_v8  ;;  %7901 = vmatpush1.bf16.msra.mxu1 %v13199_v18  ;;  %v13214_v49 = vld [vmem:[%s17879_s4 + $0x1e0] ss:$8 sps:$4 sm:$0xff]   ;;  %v13219_v18 = vld [vmem:[%s17879_s4 + $0x1f4] ss:$8 sps:$4 sm:$0xff]  }
 0x839   : > { %7902 = vmatprep.subr.bf16.mxu1 %v13204_v51  ;;  %v13187_v51 = vld [vmem:[%s17879_s4 + $0x3d0] ss:$8 sps:$4 sm:$0xff]  }
 0x83a   : > { %9317 = vmatpush1.bf16.msra.mxu0 %v13175_v52  ;;  %v13198_v52 = vld [vmem:[%s17879_s4 + $0x3e4] ss:$8 sps:$4 sm:$0xff]  }
 0x83b   : > { %9318 = vmatprep.subr.bf16.mxu0 %v13180_v29  ;;  %v13217_v29 = vld [vmem:[%s17879_s4 + $0x1f0] ss:$8 sps:$4 sm:$0xff]  }
 0x83c   : > { %7903 = vmatpush1.bf16.msra.mxu1 %v13202_v63  ;;  %v13196_v63 = vld [vmem:[%s17879_s4 + $0x3e0] ss:$8 sps:$4 sm:$0xff]  }
 0x83d   : > { %9003 = vmatmul.mubr.bf16.gmra.mrb[36].mxu0 %v16737_v23  ;;  %7904 = vmatprep.subr.bf16.mxu1 %v13207_v6  ;;  %v13213_v6 = vld [vmem:[%s17879_s4 + $0x3f4] ss:$8 sps:$4 sm:$0xff]  }
 0x83e   : > { %9012 = vmatprep.mubr.bf16.mxu0 %v18543_v8  ;;  %9319 = vmatpush1.bf16.msra.mxu0 %v13178_v11  ;;  %v13211_v11 = vld [vmem:[%s17879_s4 + $0x3f0] ss:$8 sps:$4 sm:$0xff]  }
 0x83f   : > { %7595 = vmatmul.mubr.bf16.gmra.mrb[72].mxu1 %v17074_v40  ;;  %9320 = vmatprep.subr.bf16.mxu0 %v13183_v19  ;;  %v13222_v19 = vld [vmem:[%s17879_s4 + $0x404] ss:$8 sps:$4 sm:$0xff]  }
 0x840   : > { %7604 = vmatprep.mubr.bf16.mxu1 %v18543_v8  ;;  %7905 = vmatpush1.bf16.msra.mxu1 %v13205_v38  ;;  %v13220_v38 = vld [vmem:[%s17879_s4 + $0x400] ss:$8 sps:$4 sm:$0xff]  }
 0x841   : > { %7906 = vmatprep.subr.bf16.mxu1 %v13210_v57  ;;  %v13225_v57 = vld [vmem:[%s17879_s4 + $0x414] ss:$8 sps:$4 sm:$0xff]  }
 0x842   : > { %9321 = vmatpush1.bf16.msra.mxu0 %v13181_v55  ;;  %v13223_v55 = vld [vmem:[%s17879_s4 + $0x410] ss:$8 sps:$4 sm:$0xff]  }
 0x843   : > { %9322 = vmatprep.subr.bf16.mxu0 %v13186_v32  ;;  %v13231_v32 = vld [vmem:[%s17879_s4 + $0x434] ss:$8 sps:$4 sm:$0xff]  }
 0x844   : > { %7907 = vmatpush1.bf16.msra.mxu1 %v13208_v46  ;;  %v13234_v46 = vld [vmem:[%s17879_s4 + $0x444] ss:$8 sps:$4 sm:$0xff]  }
 0x845   : > { %9013 = vmatmul.mubr.bf16.gmra.mrb[40].mxu0 %v16773_v43  ;;  %7908 = vmatprep.subr.bf16.mxu1 %v13216_v1  ;;  %v13237_v1 = vld [vmem:[%s17879_s4 + $0x454] ss:$8 sps:$4 sm:$0xff]  }
 0x846   : > { %9022 = vmatprep.mubr.bf16.mxu0 %v18543_v8  ;;  %9323 = vmatpush1.bf16.msra.mxu0 %v13184_v5  ;;  %v13240_v5 = vld [vmem:[%s17879_s4 + $0x464] ss:$8 sps:$4 sm:$0xff]  }
 0x847   : > { %7605 = vmatmul.mubr.bf16.gmra.mrb[76].mxu1 %v17106_v42  ;;  %9324 = vmatprep.subr.bf16.mxu0 %v13189_v44  ;;  %v13243_v44 = vld [vmem:[%s17879_s4 + $0x474] ss:$8 sps:$4 sm:$0xff]  }
 0x848   : > { %7614 = vmatprep.mubr.bf16.mxu1 %v18543_v8  ;;  %7909 = vmatpush1.bf16.msra.mxu1 %v13214_v49 }
 0x849   : > { %7910 = vmatprep.subr.bf16.mxu1 %v13219_v18 }
 0x84a   : > { %9325 = vmatpush1.bf16.msra.mxu0 %v13187_v51 }
 0x84b   : > { %9326 = vmatprep.subr.bf16.mxu0 %v13198_v52 }
 0x84c   : > { %7911 = vmatpush1.bf16.msra.mxu1 %v13217_v29 }
 0x84d   : > { %9023 = vmatmul.mubr.bf16.gmra.mrb[44].mxu0 %v16768_v36 }
 0x84e   : > { %9032 = vmatprep.mubr.bf16.mxu0 %v18543_v8  ;;  %9327 = vmatpush1.bf16.msra.mxu0 %v13196_v63 }
 0x84f   : > { %7615 = vmatmul.mubr.bf16.gmra.mrb[80].mxu1 %v17135_v50  ;;  %9328 = vmatprep.subr.bf16.mxu0 %v13213_v6 }
 0x850   : > { %7624 = vmatprep.mubr.bf16.mxu1 %v18543_v8 }
 0x852   : > { %9329 = vmatpush1.bf16.msra.mxu0 %v13211_v11 }
 0x853   : > { %9668 = vmatprep.subr.bf16.mxu0 %v13222_v19 }
 0x855   : > { %9033 = vmatmul.mubr.bf16.gmra.mrb[48].mxu0 %v16814_v13 }
 0x856   : > { %9042 = vmatprep.mubr.bf16.mxu0 %v18543_v8 }
 0x857   : > { %7625 = vmatmul.mubr.bf16.gmra.mrb[84].mxu1 %v17149_v0 }
 0x858   : > { %7634 = vmatprep.mubr.bf16.mxu1 %v18543_v8 }
 0x85d   : > { %9043 = vmatmul.mubr.bf16.gmra.mrb[52].mxu0 %v16808_v17 }
 0x85e   : > { %9052 = vmatprep.mubr.bf16.mxu0 %v18543_v8 }
 0x85f   : > { %7635 = vmatmul.mubr.bf16.gmra.mrb[88].mxu1 %v17157_v7 }
 0x860   : > { %7644 = vmatprep.mubr.bf16.mxu1 %v18543_v8 }
 0x865   : > { %9053 = vmatmul.mubr.bf16.gmra.mrb[56].mxu0 %v16854_v54 }
 0x866   : > { %9062 = vmatprep.mubr.bf16.mxu0 %v18543_v8 }
 0x867   : > { %7645 = vmatmul.mubr.bf16.gmra.mrb[92].mxu1 %v17165_v59 }
 0x868   : > { %7654 = vmatprep.mubr.bf16.mxu1 %v18543_v8 }
 0x86d   : > { %9063 = vmatmul.mubr.bf16.gmra.mrb[60].mxu0 %v16848_v12 }
 0x86e   : > { %9072 = vmatprep.mubr.bf16.mxu0 %v18543_v8 }
 0x86f   : > { %7655 = vmatmul.mubr.bf16.gmra.mrb[96].mxu1 %v17173_v41 }
 0x870   : > { %7664 = vmatprep.mubr.bf16.mxu1 %v18543_v8 }
 0x875   : > { %9073 = vmatmul.mubr.bf16.gmra.mrb[64].mxu0 %v16887_v39 }
 0x876   : > { %9082 = vmatprep.mubr.bf16.mxu0 %v18543_v8 }
 0x877   : > { %7665 = vmatmul.mubr.bf16.gmra.mrb[100].mxu1 %v17181_v35 }
 0x878   : > { %7674 = vmatprep.mubr.bf16.mxu1 %v18543_v8 }
 0x87d   : > { %9083 = vmatmul.mubr.bf16.gmra.mrb[68].mxu0 %v16884_v20 }
 0x87e   : > { %9092 = vmatprep.mubr.bf16.mxu0 %v18543_v8 }
 0x87f   : > { %7675 = vmatmul.mubr.bf16.gmra.mrb[104].mxu1 %v17189_v58 }
 0x880   : > { %7684 = vmatprep.mubr.bf16.mxu1 %v18543_v8 }
 0x885   : > { %9093 = vmatmul.mubr.bf16.gmra.mrb[72].mxu0 %v16909_v31 }
 0x886   : > { %9102 = vmatprep.mubr.bf16.mxu0 %v18543_v8 }
 0x887   : > { %7685 = vmatmul.mubr.bf16.gmra.mrb[108].mxu1 %v17197_v53 }
 0x888   : > { %7694 = vmatprep.mubr.bf16.mxu1 %v18543_v8 }
 0x88d   : > { %9103 = vmatmul.mubr.bf16.gmra.mrb[76].mxu0 %v16906_v26 }
 0x88e   : > { %9112 = vmatprep.mubr.bf16.mxu0 %v18543_v8 }
 0x88f   : > { %7695 = vmatmul.mubr.bf16.gmra.mrb[112].mxu1 %v17205_v48 }
 0x890   : > { %7704 = vmatprep.mubr.bf16.mxu1 %v18543_v8 }
 0x895   : > { %9113 = vmatmul.mubr.bf16.gmra.mrb[80].mxu0 %v16927_v33 }
 0x896   : > { %9122 = vmatprep.mubr.bf16.mxu0 %v18543_v8 }
 0x897   : > { %7705 = vmatmul.mubr.bf16.gmra.mrb[116].mxu1 %v17216_v21 }
 0x898   : > { %7714 = vmatprep.mubr.bf16.mxu1 %v18543_v8 }
 0x89d   : > { %9123 = vmatmul.mubr.bf16.gmra.mrb[84].mxu0 %v16924_v27 }
 0x89e   : > { %9132 = vmatprep.mubr.bf16.mxu0 %v18543_v8 }
 0x89f   : > { %7715 = vmatmul.mubr.bf16.gmra.mrb[120].mxu1 %v17224_v45 }
 0x8a0   : > { %7724 = vmatprep.mubr.bf16.mxu1 %v18543_v8 }
 0x8a5   : > { %9133 = vmatmul.mubr.bf16.gmra.mrb[88].mxu0 %v18571_v25 }
 0x8a6   : > { %9142 = vmatprep.mubr.bf16.mxu0 %v18543_v8 }
 0x8a7   : > { %7725 = vmatmul.mubr.bf16.gmra.mrb[124].mxu1 %v17232_v2 }
 0x8a8   : > { %7928 = vmatprep.mubr.bf16.mxu1 %v18543_v8 }
 0x8ad   : > { %9143 = vmatmul.mubr.bf16.gmra.mrb[92].mxu0 %v18571_v25 }
 0x8ae   : > { %9346 = vmatprep.mubr.bf16.mxu0 %v18543_v8 }
 0x8af   : > { %7929 = vmatmul.mubr.bf16.vlgmr.msra.gmra.mrb[64].mxu1 %v16723_v3  ;;  %v13228_v3 = vld [vmem:[%s17879_s4 + $0x424] ss:$8 sps:$4 sm:$0xff]  }
 0x8b0   : > { %7938 = vmatprep.mubr.bf16.mxu1 %v18543_v8 }
 0x8b5   : > { %9347 = vmatmul.mubr.bf16.vlgmr.msra.gmra.mrb[32].mxu0 %v16802_v15  ;;  %v13226_v15 = vld [vmem:[%s17879_s4 + $0x420] ss:$8 sps:$4 sm:$0xff]  }
 0x8b6   : > { %9669 = vmatpush1.bf16.msra.mxu0 %v13220_v38  ;;  %9356 = vmatprep.mubr.bf16.mxu0 %v18543_v8 }
 0x8b7   : > { %7939 = vmatmul.mubr.bf16.gmra.mrb[68].mxu1 %v16742_v10  ;;  %9670 = vmatprep.subr.bf16.mxu0 %v13225_v57  ;;  %v13229_v10 = vld [vmem:[%s17879_s4 + $0x430] ss:$8 sps:$4 sm:$0xff]  }
 0x8b8   : > { %7948 = vmatprep.mubr.bf16.mxu1 %v18543_v8 }
 0x8ba   : > { %9671 = vmatpush1.bf16.msra.mxu0 %v13223_v55 }
 0x8bb   : > { %9672 = vmatprep.subr.bf16.mxu0 %v13228_v3 }
 0x8bd   : > { %9357 = vmatmul.mubr.bf16.gmra.mrb[36].mxu0 %v16843_v4  ;;  %v13232_v4 = vld [vmem:[%s17879_s4 + $0x440] ss:$8 sps:$4 sm:$0xff]  }
 0x8be   : > { %9366 = vmatprep.mubr.bf16.mxu0 %v18543_v8  ;;  %9673 = vmatpush1.bf16.msra.mxu0 %v13226_v15 }
 0x8bf   : > { %7949 = vmatmul.mubr.bf16.gmra.mrb[72].mxu1 %v16737_v23  ;;  %9674 = vmatprep.subr.bf16.mxu0 %v13231_v32  ;;  %v13235_v23 = vld [vmem:[%s17879_s4 + $0x450] ss:$8 sps:$4 sm:$0xff]  }
 0x8c0   : > { %7958 = vmatprep.mubr.bf16.mxu1 %v18543_v8 }
 0x8c2   : > { %9675 = vmatpush1.bf16.msra.mxu0 %v13229_v10 }
 0x8c3   : > { %9676 = vmatprep.subr.bf16.mxu0 %v13234_v46 }
 0x8c5   : > { %9367 = vmatmul.mubr.bf16.gmra.mrb[40].mxu0 %v16881_v47  ;;  %v13238_v47 = vld [vmem:[%s17879_s4 + $0x460] ss:$8 sps:$4 sm:$0xff]  }
 0x8c6   : > { %9376 = vmatprep.mubr.bf16.mxu0 %v18543_v8  ;;  %9677 = vmatpush1.bf16.msra.mxu0 %v13232_v4 }
 0x8c7   : > { %7959 = vmatmul.mubr.bf16.gmra.mrb[76].mxu1 %v16773_v43  ;;  %9678 = vmatprep.subr.bf16.mxu0 %v13237_v1  ;;  %v13241_v43 = vld [vmem:[%s17879_s4 + $0x470] ss:$8 sps:$4 sm:$0xff]  }
 0x8c8   : > { %7968 = vmatprep.mubr.bf16.mxu1 %v18543_v8 }
 0x8ca   : > { %9679 = vmatpush1.bf16.msra.mxu0 %v13235_v23 }
 0x8cb   : > { %9680 = vmatprep.subr.bf16.mxu0 %v13240_v5 }
 0x8cd   : > { %9377 = vmatmul.mubr.bf16.gmra.mrb[44].mxu0 %v16904_v34 }
 0x8ce   : > { %9386 = vmatprep.mubr.bf16.mxu0 %v18543_v8  ;;  %9681 = vmatpush1.bf16.msra.mxu0 %v13238_v47 }
 0x8cf   : > { %7969 = vmatmul.mubr.bf16.gmra.mrb[80].mxu1 %v16768_v36  ;;  %9682 = vmatprep.subr.bf16.mxu0 %v13243_v44  ;;  %v9927_v44 = vlaneseq }
 0x8d0   : > { %7978 = vmatprep.mubr.bf16.mxu1 %v18543_v8 }
 0x8d2   : > { %9683 = vmatpush1.bf16.msra.mxu0 %v13241_v43 }
 0x8d5   : > { %9387 = vmatmul.mubr.bf16.gmra.mrb[48].mxu0 %v16921_v60 }
 0x8d6   : > { %9396 = vmatprep.mubr.bf16.mxu0 %v18543_v8 }
 0x8d7   : > { %7979 = vmatmul.mubr.bf16.gmra.mrb[84].mxu1 %v16814_v13 }
 0x8d8   : > { %7988 = vmatprep.mubr.bf16.mxu1 %v18543_v8 }
 0x8dd   : > { %9397 = vmatmul.mubr.bf16.gmra.mrb[52].mxu0 %v16934_v24 }
 0x8de   : > { %9406 = vmatprep.mubr.bf16.mxu0 %v18543_v8 }
 0x8df   : > { %7989 = vmatmul.mubr.bf16.gmra.mrb[88].mxu1 %v16808_v17 }
 0x8e0   : > { %7998 = vmatprep.mubr.bf16.mxu1 %v18543_v8 }
 0x8e5   : > { %9407 = vmatmul.mubr.bf16.gmra.mrb[56].mxu0 %v16943_v61 }
 0x8e6   : > { %9416 = vmatprep.mubr.bf16.mxu0 %v18543_v8 }
 0x8e7   : > { %7999 = vmatmul.mubr.bf16.gmra.mrb[92].mxu1 %v16854_v54 }
 0x8e8   : > { %8008 = vmatprep.mubr.bf16.mxu1 %v18543_v8 }
 0x8ed   : > { %9417 = vmatmul.mubr.bf16.gmra.mrb[60].mxu0 %v16952_v22 }
 0x8ee   : > { %9426 = vmatprep.mubr.bf16.mxu0 %v18543_v8 }
 0x8ef   : > { %8009 = vmatmul.mubr.bf16.gmra.mrb[96].mxu1 %v16848_v12 }
 0x8f0   : > { %8018 = vmatprep.mubr.bf16.mxu1 %v18543_v8 }
 0x8f5   : > { %9427 = vmatmul.mubr.bf16.gmra.mrb[64].mxu0 %v16961_v56 }
 0x8f6   : > { %9436 = vmatprep.mubr.bf16.mxu0 %v18543_v8 }
 0x8f7   : > { %8019 = vmatmul.mubr.bf16.gmra.mrb[100].mxu1 %v16887_v39 }
 0x8f8   : > { %8028 = vmatprep.mubr.bf16.mxu1 %v18543_v8 }
 0x8fd   : > { %9437 = vmatmul.mubr.bf16.gmra.mrb[68].mxu0 %v16970_v14 }
 0x8fe   : > { %9446 = vmatprep.mubr.bf16.mxu0 %v18543_v8 }
 0x8ff   : > { %8029 = vmatmul.mubr.bf16.gmra.mrb[104].mxu1 %v16884_v20 }
 0x900   : > { %8038 = vmatprep.mubr.bf16.mxu1 %v18543_v8 }
 0x905   : > { %9447 = vmatmul.mubr.bf16.gmra.mrb[72].mxu0 %v16979_v28 }
 0x906   : > { %9456 = vmatprep.mubr.bf16.mxu0 %v18543_v8 }
 0x907   : > { %8039 = vmatmul.mubr.bf16.gmra.mrb[108].mxu1 %v16909_v31 }
 0x908   : > { %8048 = vmatprep.mubr.bf16.mxu1 %v18543_v8 }
 0x90d   : > { %9457 = vmatmul.mubr.bf16.gmra.mrb[76].mxu0 %v16991_v62 }
 0x90e   : > { %9466 = vmatprep.mubr.bf16.mxu0 %v18543_v8 }
 0x90f   : > { %8049 = vmatmul.mubr.bf16.gmra.mrb[112].mxu1 %v16906_v26 }
 0x910   : > { %8058 = vmatprep.mubr.bf16.mxu1 %v18543_v8 }
 0x915   : > { %9467 = vmatmul.mubr.bf16.gmra.mrb[80].mxu0 %v17000_v30 }
 0x916   : > { %9476 = vmatprep.mubr.bf16.mxu0 %v18543_v8 }
 0x917   : > { %8059 = vmatmul.mubr.bf16.gmra.mrb[116].mxu1 %v16927_v33 }
 0x918   : > { %8068 = vmatprep.mubr.bf16.mxu1 %v18543_v8 }
 0x91d   : > { %9477 = vmatmul.mubr.bf16.gmra.mrb[84].mxu0 %v17009_v16 }
 0x91e   : > { %9486 = vmatprep.mubr.bf16.mxu0 %v18543_v8 }
 0x91f   : > { %8069 = vmatmul.mubr.bf16.gmra.mrb[120].mxu1 %v16924_v27 }
 0x920   : > { %8078 = vmatprep.mubr.bf16.mxu1 %v18543_v8 }
 0x925   : > { %9487 = vmatmul.mubr.bf16.gmra.mrb[88].mxu0 %v15578_v9 }
 0x926   : > { %9496 = vmatprep.mubr.bf16.mxu0 %v18543_v8 }
 0x927   : > { %8079 = vmatmul.mubr.bf16.gmra.mrb[124].mxu1 %v18571_v25 }
 0x92d   : > { %9497 = vmatmul.mubr.bf16.gmra.mrb[92].mxu0 %v15578_v9 }
 0x92e   : > { %9700 = vmatprep.mubr.bf16.mxu0 %v18543_v8 }
 0x935   : > { %9701 = vmatmul.mubr.bf16.vlgmr.msra.gmra.mrb[32].mxu0 %v17074_v40 }
 0x936   : > { %9710 = vmatprep.mubr.bf16.mxu0 %v18543_v8 }
 0x93d   : > { %9711 = vmatmul.mubr.bf16.gmra.mrb[36].mxu0 %v17106_v42 }
 0x93e   : > { %9720 = vmatprep.mubr.bf16.mxu0 %v18543_v8 }
 0x945   : > { %9721 = vmatmul.mubr.bf16.gmra.mrb[40].mxu0 %v17135_v50 }
 0x946   : > { %9730 = vmatprep.mubr.bf16.mxu0 %v18543_v8 }
 0x94d   : > { %9731 = vmatmul.mubr.bf16.gmra.mrb[44].mxu0 %v17149_v0 }
 0x94e   : > { %9740 = vmatprep.mubr.bf16.mxu0 %v18543_v8 }
 0x955   : > { %9741 = vmatmul.mubr.bf16.gmra.mrb[48].mxu0 %v17157_v7 }
 0x956   : > { %9750 = vmatprep.mubr.bf16.mxu0 %v18543_v8 }
 0x95d   : > { %9751 = vmatmul.mubr.bf16.gmra.mrb[52].mxu0 %v17165_v59 }
 0x95e   : > { %9760 = vmatprep.mubr.bf16.mxu0 %v18543_v8 }
 0x965   : > { %9761 = vmatmul.mubr.bf16.gmra.mrb[56].mxu0 %v17173_v41 }
 0x966   : > { %9770 = vmatprep.mubr.bf16.mxu0 %v18543_v8 }
 0x96d   : > { %9771 = vmatmul.mubr.bf16.gmra.mrb[60].mxu0 %v17181_v35 }
 0x96e   : > { %9780 = vmatprep.mubr.bf16.mxu0 %v18543_v8 }
 0x975   : > { %9781 = vmatmul.mubr.bf16.gmra.mrb[64].mxu0 %v17189_v58 }
 0x976   : > { %9790 = vmatprep.mubr.bf16.mxu0 %v18543_v8 }
 0x97d   : > { %9791 = vmatmul.mubr.bf16.gmra.mrb[68].mxu0 %v17197_v53 }
 0x97e   : > { %9800 = vmatprep.mubr.bf16.mxu0 %v18543_v8 }
 0x982   : > { %v17528_v9 = vpop.f32.mrb[64].mxu1 }
 0x983   : > { %v17530_v25 = vpop.f32.mrb[65].mxu1 }
 0x984   : > { %v17532_v36 = vpop.f32.mrb[66].mxu1 }
 0x985   : > { %v17534_v17 = vpop.f32.mrb[67].mxu1  ;;  %9801 = vmatmul.mubr.bf16.gmra.mrb[72].mxu0 %v17205_v48 }
 0x986   : > { %9810 = vmatprep.mubr.bf16.mxu0 %v18543_v8 }
 0x98a   : > { %v17538_v13 = vpop.f32.mrb[68].mxu1 }
 0x98b   : > { %v17540_v12 = vpop.f32.mrb[69].mxu1 }
 0x98c   : > { %v17542_v54 = vpop.f32.mrb[70].mxu1 }
 0x98d   : > { %v17544_v20 = vpop.f32.mrb[71].mxu1  ;;  %9811 = vmatmul.mubr.bf16.gmra.mrb[76].mxu0 %v17216_v21 }
 0x98e   : > { %9820 = vmatprep.mubr.bf16.mxu0 %v18543_v8 }
 0x992   : > { %v17548_v39 = vpop.f32.mrb[72].mxu1 }
 0x993   : > { %v17550_v34 = vpop.f32.mrb[73].mxu1 }
 0x994   : > { %v17552_v26 = vpop.f32.mrb[74].mxu1 }
 0x995   : > { %v17554_v31 = vpop.f32.mrb[75].mxu1  ;;  %9821 = vmatmul.mubr.bf16.gmra.mrb[80].mxu0 %v17224_v45 }
 0x996   : > { %9830 = vmatprep.mubr.bf16.mxu0 %v18543_v8 }
 0x99a   : > { %v17558_v60 = vpop.f32.mrb[76].mxu1 }
 0x99b   : > { %v17560_v27 = vpop.f32.mrb[77].mxu1 }
 0x99c   : > { %v17562_v33 = vpop.f32.mrb[78].mxu1 }
 0x99d   : > { %v17564_v24 = vpop.f32.mrb[79].mxu1  ;;  %9831 = vmatmul.mubr.bf16.gmra.mrb[84].mxu0 %v17232_v2 }
 0x99e   : > { %9840 = vmatprep.mubr.bf16.mxu0 %v18543_v8 }
 0x9a2   : > { %v17568_v61 = vpop.f32.mrb[80].mxu1 }
 0x9a3   : > { %v17570_v22 = vpop.f32.mrb[81].mxu1 }
 0x9a4   : > { %v17572_v56 = vpop.f32.mrb[82].mxu1 }
 0x9a5   : > { %v17574_v14 = vpop.f32.mrb[83].mxu1  ;;  %9841 = vmatmul.mubr.bf16.gmra.mrb[88].mxu0 %v15680_v37 }
 0x9a6   : > { %9850 = vmatprep.mubr.bf16.mxu0 %v18543_v8 }
 0x9aa   : > { %v17578_v28 = vpop.f32.mrb[84].mxu1 }
 0x9ab   : > { %v17580_v62 = vpop.f32.mrb[85].mxu1 }
 0x9ac   : > { %v17582_v30 = vpop.f32.mrb[86].mxu1 }
 0x9ad   : > { %v17584_v16 = vpop.f32.mrb[87].mxu1  ;;  %9851 = vmatmul.mubr.bf16.gmra.mrb[92].mxu0 %v15680_v37 }
 0x9b2   : > { %v17587_v40 = vpop.f32.mrb[88].mxu1 }
 0x9b3   : > { %v17589_v42 = vpop.f32.mrb[89].mxu1 }
 0x9b4   : > { %v17591_v50 = vpop.f32.mrb[90].mxu1 }
 0x9b5   : > { %v17593_v0 = vpop.f32.mrb[91].mxu1 }
 0x9ba   : > { %v17595_v7 = vpop.f32.mrb[92].mxu1 }
 0x9bb   : > { %v17597_v8 = vpop.f32.mrb[93].mxu1 }
 0x9bc   : > { %v17599_v59 = vpop.f32.mrb[94].mxu1 }
 0x9bd   : > { %v17601_v41 = vpop.f32.mrb[95].mxu1 }
 0x9c2   : > { %v17603_v35 = vpop.f32.mrb[96].mxu1 }
 0x9c3   : > { %v17605_v58 = vpop.f32.mrb[97].mxu1 }
 0x9c4   : > { %v17607_v37 = vpop.f32.mrb[98].mxu1 }
 0x9c5   : > { %v17609_v53 = vpop.f32.mrb[99].mxu1 }
 0x9ca   : > { %v17611_v48 = vpop.f32.mrb[100].mxu1 }
 0x9cb   : > { %v17613_v21 = vpop.f32.mrb[101].mxu1 }
 0x9cc   : > { %v17615_v45 = vpop.f32.mrb[102].mxu1 }
 0x9cd   : > { %v17617_v2 = vpop.f32.mrb[103].mxu1 }
 0x9d2   : > { %v17619_v49 = vpop.f32.mrb[104].mxu1 }
 0x9d3   : > { %v17621_v18 = vpop.f32.mrb[105].mxu1 }
 0x9d4   : > { %v17623_v51 = vpop.f32.mrb[106].mxu1 }
 0x9d5   : > { %v17625_v52 = vpop.f32.mrb[107].mxu1 }
 0x9da   : > { %v17627_v29 = vpop.f32.mrb[108].mxu1 }
 0x9db   : > { %v17629_v63 = vpop.f32.mrb[109].mxu1 }
 0x9dc   : > { %v17631_v6 = vpop.f32.mrb[110].mxu1 }
 0x9dd   : > { %v17633_v11 = vpop.f32.mrb[111].mxu1 }
 0x9e2   : > { %v17635_v19 = vpop.f32.mrb[112].mxu1 }
 0x9e3   : > { %v17637_v38 = vpop.f32.mrb[113].mxu1 }
 0x9e4   : > { %v17639_v57 = vpop.f32.mrb[114].mxu1 }
 0x9e5   : > { %18588 = vst [vmem:[#allocation4_spill] sm:$0xff] %v17639_v57  ;;  %v17641_v55 = vpop.f32.mrb[115].mxu1 }
 0x9e6   : > { %18589 = vst [vmem:[#allocation6_spill] sm:$0xff] %v17641_v55 }
 0x9ea   : > { %v17643_v3 = vpop.f32.mrb[116].mxu1 }
 0x9eb   : > { %18590 = vst [vmem:[#allocation33_spill] sm:$0xff] %v17643_v3  ;;  %v17645_v15 = vpop.f32.mrb[117].mxu1 }
 0x9ec   : > { %18591 = vst [vmem:[#allocation31_spill] sm:$0xff] %v17645_v15  ;;  %v17647_v32 = vpop.f32.mrb[118].mxu1 }
 0x9ed   : > { %18592 = vst [vmem:[#allocation65_spill] sm:$0xff] %v17647_v32  ;;  %v17649_v10 = vpop.f32.mrb[119].mxu1  ;;  %v9928_v32 = vshrl.u32 %v9927_v44, 7 }
 0x9ee   : > { %18593 = vst [vmem:[#allocation30_spill] sm:$0xff] %v17649_v10 }
 0x9ef   : > { %v9929_v10 = vsub.s32 0, %v9928_v32 }
 0x9f2   : > { %v17651_v46 = vpop.f32.mrb[120].mxu1 }
 0x9f3   : > { %18594 = vst [vmem:[#allocation64_spill] sm:$0xff] %v17651_v46  ;;  %v17653_v4 = vpop.f32.mrb[121].mxu1  ;;  %v9925_v46 = vld [vmem:[%s17883_s8] sm:$0x3] }
 0x9f4   : > { %18595 = vst [vmem:[#allocation16_spill] sm:$0xff] %v17653_v4  ;;  %v17655_v1 = vpop.f32.mrb[122].mxu1  ;;  %v9933_v4 = vsub.s32 1, %v9928_v32  ;;  %v17670_v3 = vrot.slane %v9925_v46, %v9929_v10 }
 0x9f5   : > { %18596 = vst [vmem:[#allocation17_spill] sm:$0xff] %v17655_v1  ;;  %v17657_v23 = vpop.f32.mrb[123].mxu1 }
 0x9f6   : > { %18597 = vst [vmem:[#allocation24_spill] sm:$0xff] %v17657_v23  ;;  %v17672_v23 = vrot.slane %v9925_v46, %v9933_v4 }
 0x9fa   : > { %v17659_v5 = vpop.f32.mrb[124].mxu1 }
 0x9fb   : > { %18598 = vst [vmem:[#allocation23_spill] sm:$0xff] %v17659_v5  ;;  %v17661_v47 = vpop.f32.mrb[125].mxu1 }
 0x9fc   : > { %18599 = vst [vmem:[#allocation32_spill] sm:$0xff] %v17661_v47  ;;  %v17663_v43 = vpop.f32.mrb[126].mxu1 }
 0x9fd   : > { %18600 = vst [vmem:[#allocation15_spill] sm:$0xff] %v17663_v43  ;;  %v17665_v15 = vpop.f32.mrb[127].mxu1 }
 0x9fe   : > { %18601 = vst [vmem:[#allocation28_spill] sm:$0xff] %v17665_v15 }
 0xa08   : > { %v9702_v1 = vpop.f32.mrb[32].mxu0 }
 0xa09   : > { %v11969_v47 = vadd.f32 %v9702_v1, %v17528_v9  ;;  %v9704_v5 = vpop.f32.mrb[33].mxu0 }
 0xa0a   : > { %v11970_v43 = vadd.f32 %v9704_v5, %v17530_v25  ;;  %v9706_v55 = vpop.f32.mrb[34].mxu0 }
 0xa0b   : > { %v9937_v44 = vadd.f32 %v11969_v47, %v17670_v3  ;;  %v11971_v15 = vadd.f32 %v9706_v55, %v17532_v36  ;;  %v9708_v57 = vpop.f32.mrb[35].mxu0 }
 0xa0c   : > { %v9938_v9 = vadd.f32 %v11970_v43, %v17672_v23  ;;  %v11972_v32 = vadd.f32 %v9708_v57, %v17534_v17 }
 0xa0d   : > { %v10001_v25 = vmax.f32 %v9937_v44, 0.0  ;;  %v9939_v10 = vadd.f32 %v11971_v15, %v17670_v3 }
 0xa0e   : > { %v10002_v46 = vmax.f32 %v9938_v9, 0.0  ;;  %v9940_v36 = vadd.f32 %v11972_v32, %v17672_v23 }
 0xa0f   : > { %10065 = vst [vmem:[%s17682_s25] sm:$0xff] %v10001_v25  ;;  %v10003_v55 = vmax.f32 %v9939_v10, 0.0 }
 0xa10   : > { %10066 = vst [vmem:[%s17682_s25 + $0x8] sm:$0xff] %v10002_v46  ;;  %v10004_v4 = vmax.f32 %v9940_v36, 0.0  ;;  %v9712_v1 = vpop.f32.mrb[36].mxu0 }
 0xa11   : > { %10067 = vst [vmem:[%s17682_s25 + $0x10] sm:$0xff] %v10003_v55  ;;  %v11973_v5 = vadd.f32 %v9712_v1, %v17538_v13  ;;  %v9714_v47 = vpop.f32.mrb[37].mxu0 }
 0xa12   : > { %10068 = vst [vmem:[%s17682_s25 + $0x18] sm:$0xff] %v10004_v4  ;;  %v11974_v17 = vadd.f32 %v9714_v47, %v17540_v12  ;;  %v9716_v57 = vpop.f32.mrb[38].mxu0 }
 0xa13   : > { %v9941_v15 = vadd.f32 %v11973_v5, %v17670_v3  ;;  %v11975_v43 = vadd.f32 %v9716_v57, %v17542_v54  ;;  %v9718_v44 = vpop.f32.mrb[39].mxu0 }
 0xa14   : > { %v9942_v9 = vadd.f32 %v11974_v17, %v17672_v23  ;;  %v11976_v32 = vadd.f32 %v9718_v44, %v17544_v20 }
 0xa15   : > { %v10005_v25 = vmax.f32 %v9941_v15, 0.0  ;;  %v9943_v13 = vadd.f32 %v11975_v43, %v17670_v3 }
 0xa16   : > { %v10006_v10 = vmax.f32 %v9942_v9, 0.0  ;;  %v9944_v46 = vadd.f32 %v11976_v32, %v17672_v23 }
 0xa17   : > { %10069 = vst [vmem:[%s17682_s25 + $0x20] sm:$0xff] %v10005_v25  ;;  %v10007_v12 = vmax.f32 %v9943_v13, 0.0 }
 0xa18   : > { %10070 = vst [vmem:[%s17682_s25 + $0x28] sm:$0xff] %v10006_v10  ;;  %v10008_v36 = vmax.f32 %v9944_v46, 0.0  ;;  %v9722_v55 = vpop.f32.mrb[40].mxu0 }
 0xa19   : > { %10071 = vst [vmem:[%s17682_s25 + $0x30] sm:$0xff] %v10007_v12  ;;  %v11977_v54 = vadd.f32 %v9722_v55, %v17548_v39  ;;  %v9724_v4 = vpop.f32.mrb[41].mxu0 }
 0xa1a   : > { %10072 = vst [vmem:[%s17682_s25 + $0x38] sm:$0xff] %v10008_v36  ;;  %v11978_v20 = vadd.f32 %v9724_v4, %v17550_v34  ;;  %v9726_v1 = vpop.f32.mrb[42].mxu0 }
 0xa1b   : > { %v9945_v5 = vadd.f32 %v11977_v54, %v17670_v3  ;;  %v11979_v47 = vadd.f32 %v9726_v1, %v17552_v26  ;;  %v9728_v17 = vpop.f32.mrb[43].mxu0 }
 0xa1c   : > { %v9946_v57 = vadd.f32 %v11978_v20, %v17672_v23  ;;  %v11980_v15 = vadd.f32 %v9728_v17, %v17554_v31 }
 0xa1d   : > { %v10009_v43 = vmax.f32 %v9945_v5, 0.0  ;;  %v9947_v39 = vadd.f32 %v11979_v47, %v17670_v3 }
 0xa1e   : > { %v10010_v44 = vmax.f32 %v9946_v57, 0.0  ;;  %v9948_v9 = vadd.f32 %v11980_v15, %v17672_v23 }
 0xa1f   : > { %10073 = vst [vmem:[%s17682_s25 + $0x40] sm:$0xff] %v10009_v43  ;;  %v10011_v34 = vmax.f32 %v9947_v39, 0.0 }
 0xa20   : > { %10074 = vst [vmem:[%s17682_s25 + $0x48] sm:$0xff] %v10010_v44  ;;  %v10012_v32 = vmax.f32 %v9948_v9, 0.0  ;;  %v9732_v25 = vpop.f32.mrb[44].mxu0 }
 0xa21   : > { %10075 = vst [vmem:[%s17682_s25 + $0x50] sm:$0xff] %v10011_v34  ;;  %v11981_v26 = vadd.f32 %v9732_v25, %v17558_v60  ;;  %v9734_v13 = vpop.f32.mrb[45].mxu0 }
 0xa22   : > { %10076 = vst [vmem:[%s17682_s25 + $0x58] sm:$0xff] %v10012_v32  ;;  %v11982_v31 = vadd.f32 %v9734_v13, %v17560_v27  ;;  %v9736_v10 = vpop.f32.mrb[46].mxu0 }
 0xa23   : > { %v9949_v46 = vadd.f32 %v11981_v26, %v17670_v3  ;;  %v11983_v12 = vadd.f32 %v9736_v10, %v17562_v33  ;;  %v9738_v36 = vpop.f32.mrb[47].mxu0 }
 0xa24   : > { %v9950_v55 = vadd.f32 %v11982_v31, %v17672_v23  ;;  %v11984_v54 = vadd.f32 %v9738_v36, %v17564_v24 }
 0xa25   : > { %v10013_v4 = vmax.f32 %v9949_v46, 0.0  ;;  %v9951_v60 = vadd.f32 %v11983_v12, %v17670_v3 }
 0xa26   : > { %v10014_v20 = vmax.f32 %v9950_v55, 0.0  ;;  %v9952_v1 = vadd.f32 %v11984_v54, %v17672_v23 }
 0xa27   : > { %10077 = vst [vmem:[%s17682_s25 + $0x60] sm:$0xff] %v10013_v4  ;;  %v10015_v27 = vmax.f32 %v9951_v60, 0.0 }
 0xa28   : > { %10078 = vst [vmem:[%s17682_s25 + $0x68] sm:$0xff] %v10014_v20  ;;  %v10016_v5 = vmax.f32 %v9952_v1, 0.0  ;;  %v9742_v47 = vpop.f32.mrb[48].mxu0 }
 0xa29   : > { %10079 = vst [vmem:[%s17682_s25 + $0x70] sm:$0xff] %v10015_v27  ;;  %v11985_v33 = vadd.f32 %v9742_v47, %v17568_v61  ;;  %v9744_v17 = vpop.f32.mrb[49].mxu0 }
 0xa2a   : > { %10080 = vst [vmem:[%s17682_s25 + $0x78] sm:$0xff] %v10016_v5  ;;  %v11986_v24 = vadd.f32 %v9744_v17, %v17570_v22  ;;  %v9746_v57 = vpop.f32.mrb[50].mxu0 }
 0xa2b   : > { %v9953_v15 = vadd.f32 %v11985_v33, %v17670_v3  ;;  %v11987_v43 = vadd.f32 %v9746_v57, %v17572_v56  ;;  %v9748_v39 = vpop.f32.mrb[51].mxu0 }
 0xa2c   : > { %v9954_v44 = vadd.f32 %v11986_v24, %v17672_v23  ;;  %v11988_v9 = vadd.f32 %v9748_v39, %v17574_v14 }
 0xa2d   : > { %v10017_v34 = vmax.f32 %v9953_v15, 0.0  ;;  %v9955_v61 = vadd.f32 %v11987_v43, %v17670_v3 }
 0xa2e   : > { %v10018_v32 = vmax.f32 %v9954_v44, 0.0  ;;  %v9956_v25 = vadd.f32 %v11988_v9, %v17672_v23 }
 0xa2f   : > { %10081 = vst [vmem:[%s17682_s25 + $0x80] sm:$0xff] %v10017_v34  ;;  %v10019_v22 = vmax.f32 %v9955_v61, 0.0 }
 0xa30   : > { %10082 = vst [vmem:[%s17682_s25 + $0x88] sm:$0xff] %v10018_v32  ;;  %v10020_v26 = vmax.f32 %v9956_v25, 0.0  ;;  %v9752_v13 = vpop.f32.mrb[52].mxu0 }
 0xa31   : > { %10083 = vst [vmem:[%s17682_s25 + $0x90] sm:$0xff] %v10019_v22  ;;  %v11989_v56 = vadd.f32 %v9752_v13, %v17578_v28  ;;  %v9754_v31 = vpop.f32.mrb[53].mxu0 }
 0xa32   : > { %10084 = vst [vmem:[%s17682_s25 + $0x98] sm:$0xff] %v10020_v26  ;;  %v11990_v14 = vadd.f32 %v9754_v31, %v17580_v62  ;;  %v9756_v10 = vpop.f32.mrb[54].mxu0 }
 0xa33   : > { %v9957_v46 = vadd.f32 %v11989_v56, %v17670_v3  ;;  %v11991_v12 = vadd.f32 %v9756_v10, %v17582_v30  ;;  %v9758_v36 = vpop.f32.mrb[55].mxu0 }
 0xa34   : > { %v9958_v55 = vadd.f32 %v11990_v14, %v17672_v23  ;;  %v11992_v54 = vadd.f32 %v9758_v36, %v17584_v16 }
 0xa35   : > { %v10021_v4 = vmax.f32 %v9957_v46, 0.0  ;;  %v9959_v28 = vadd.f32 %v11991_v12, %v17670_v3 }
 0xa36   : > { %v10022_v60 = vmax.f32 %v9958_v55, 0.0  ;;  %v9960_v20 = vadd.f32 %v11992_v54, %v17672_v23 }
 0xa37   : > { %10085 = vst [vmem:[%s17682_s25 + $0xa0] sm:$0xff] %v10021_v4  ;;  %v10023_v62 = vmax.f32 %v9959_v28, 0.0 }
 0xa38   : > { %10086 = vst [vmem:[%s17682_s25 + $0xa8] sm:$0xff] %v10022_v60  ;;  %v10024_v1 = vmax.f32 %v9960_v20, 0.0  ;;  %v9762_v27 = vpop.f32.mrb[56].mxu0 }
 0xa39   : > { %10087 = vst [vmem:[%s17682_s25 + $0xb0] sm:$0xff] %v10023_v62  ;;  %v11993_v30 = vadd.f32 %v9762_v27, %v17587_v40  ;;  %v9764_v5 = vpop.f32.mrb[57].mxu0 }
 0xa3a   : > { %10088 = vst [vmem:[%s17682_s25 + $0xb8] sm:$0xff] %v10024_v1  ;;  %v11994_v16 = vadd.f32 %v9764_v5, %v17589_v42  ;;  %v9766_v47 = vpop.f32.mrb[58].mxu0 }
 0xa3b   : > { %v9961_v33 = vadd.f32 %v11993_v30, %v17670_v3  ;;  %v11995_v17 = vadd.f32 %v9766_v47, %v17591_v50  ;;  %v9768_v24 = vpop.f32.mrb[59].mxu0 }
 0xa3c   : > { %v9962_v57 = vadd.f32 %v11994_v16, %v17672_v23  ;;  %v11996_v15 = vadd.f32 %v9768_v24, %v17593_v0 }
 0xa3d   : > { %v10025_v43 = vmax.f32 %v9961_v33, 0.0  ;;  %v9963_v40 = vadd.f32 %v11995_v17, %v17670_v3 }
 0xa3e   : > { %v10026_v39 = vmax.f32 %v9962_v57, 0.0  ;;  %v9964_v44 = vadd.f32 %v11996_v15, %v17672_v23 }
 0xa3f   : > { %10089 = vst [vmem:[%s17682_s25 + $0xc0] sm:$0xff] %v10025_v43  ;;  %v10027_v42 = vmax.f32 %v9963_v40, 0.0 }
 0xa40   : > { %10090 = vst [vmem:[%s17682_s25 + $0xc8] sm:$0xff] %v10026_v39  ;;  %v10028_v9 = vmax.f32 %v9964_v44, 0.0  ;;  %v9772_v34 = vpop.f32.mrb[60].mxu0 }
 0xa41   : > { %10091 = vst [vmem:[%s17682_s25 + $0xd0] sm:$0xff] %v10027_v42  ;;  %v11997_v50 = vadd.f32 %v9772_v34, %v17595_v7  ;;  %v9774_v61 = vpop.f32.mrb[61].mxu0 }
 0xa42   : > { %10092 = vst [vmem:[%s17682_s25 + $0xd8] sm:$0xff] %v10028_v9  ;;  %v11998_v0 = vadd.f32 %v9774_v61, %v17597_v8  ;;  %v9776_v32 = vpop.f32.mrb[62].mxu0 }
 0xa43   : > { %v9965_v25 = vadd.f32 %v11997_v50, %v17670_v3  ;;  %v11999_v22 = vadd.f32 %v9776_v32, %v17599_v59  ;;  %v9778_v26 = vpop.f32.mrb[63].mxu0 }
 0xa44   : > { %v9966_v13 = vadd.f32 %v11998_v0, %v17672_v23  ;;  %v12000_v56 = vadd.f32 %v9778_v26, %v17601_v41 }
 0xa45   : > { %v10029_v31 = vmax.f32 %v9965_v25, 0.0  ;;  %v9967_v7 = vadd.f32 %v11999_v22, %v17670_v3 }
 0xa46   : > { %v10030_v14 = vmax.f32 %v9966_v13, 0.0  ;;  %v9968_v10 = vadd.f32 %v12000_v56, %v17672_v23 }
 0xa47   : > { %10093 = vst [vmem:[%s17682_s25 + $0xe0] sm:$0xff] %v10029_v31  ;;  %v10031_v8 = vmax.f32 %v9967_v7, 0.0 }
 0xa48   : > { %10094 = vst [vmem:[%s17682_s25 + $0xe8] sm:$0xff] %v10030_v14  ;;  %v10032_v46 = vmax.f32 %v9968_v10, 0.0  ;;  %v9782_v12 = vpop.f32.mrb[64].mxu0 }
 0xa49   : > { %10095 = vst [vmem:[%s17682_s25 + $0xf0] sm:$0xff] %v10031_v8  ;;  %v12001_v59 = vadd.f32 %v9782_v12, %v17603_v35  ;;  %v9784_v36 = vpop.f32.mrb[65].mxu0 }
 0xa4a   : > { %10096 = vst [vmem:[%s17682_s25 + $0xf8] sm:$0xff] %v10032_v46  ;;  %v12002_v41 = vadd.f32 %v9784_v36, %v17605_v58  ;;  %v9786_v55 = vpop.f32.mrb[66].mxu0 }
 0xa4b   : > { %v9969_v54 = vadd.f32 %v12001_v59, %v17670_v3  ;;  %v12003_v4 = vadd.f32 %v9786_v55, %v17607_v37  ;;  %v9788_v28 = vpop.f32.mrb[67].mxu0 }
 0xa4c   : > { %v9970_v60 = vadd.f32 %v12002_v41, %v17672_v23  ;;  %v12004_v20 = vadd.f32 %v9788_v28, %v17609_v53 }
 0xa4d   : > { %v10033_v62 = vmax.f32 %v9969_v54, 0.0  ;;  %v9971_v35 = vadd.f32 %v12003_v4, %v17670_v3 }
 0xa4e   : > { %v10034_v1 = vmax.f32 %v9970_v60, 0.0  ;;  %v9972_v27 = vadd.f32 %v12004_v20, %v17672_v23 }
 0xa4f   : > { %10097 = vst [vmem:[%s17682_s25 + $0x100] sm:$0xff] %v10033_v62  ;;  %v10035_v58 = vmax.f32 %v9971_v35, 0.0  ;;  %v18602_v62 = vld [vmem:[#allocation4_spill] sm:$0xff] }
 0xa50   : > { %10098 = vst [vmem:[%s17682_s25 + $0x108] sm:$0xff] %v10034_v1  ;;  %v10036_v30 = vmax.f32 %v9972_v27, 0.0  ;;  %v9792_v5 = vpop.f32.mrb[68].mxu0 }
 0xa51   : > { %10099 = vst [vmem:[%s17682_s25 + $0x110] sm:$0xff] %v10035_v58  ;;  %v12005_v37 = vadd.f32 %v9792_v5, %v17611_v48  ;;  %v9794_v16 = vpop.f32.mrb[69].mxu0  ;;  %v18603_v58 = vld [vmem:[#allocation6_spill] sm:$0xff] }
 0xa52   : > { %10100 = vst [vmem:[%s17682_s25 + $0x118] sm:$0xff] %v10036_v30  ;;  %v12006_v53 = vadd.f32 %v9794_v16, %v17613_v21  ;;  %v9796_v47 = vpop.f32.mrb[70].mxu0 }
 0xa53   : > { %v9973_v33 = vadd.f32 %v12005_v37, %v17670_v3  ;;  %v12007_v17 = vadd.f32 %v9796_v47, %v17615_v45  ;;  %v9798_v24 = vpop.f32.mrb[71].mxu0 }
 0xa54   : > { %v9974_v57 = vadd.f32 %v12006_v53, %v17672_v23  ;;  %v12008_v15 = vadd.f32 %v9798_v24, %v17617_v2 }
 0xa55   : > { %v10037_v43 = vmax.f32 %v9973_v33, 0.0  ;;  %v9975_v48 = vadd.f32 %v12007_v17, %v17670_v3  ;;  %v18604_v33 = vld [vmem:[#allocation33_spill] sm:$0xff] }
 0xa56   : > { %v10038_v40 = vmax.f32 %v9974_v57, 0.0  ;;  %v9976_v39 = vadd.f32 %v12008_v15, %v17672_v23  ;;  %v18605_v57 = vld [vmem:[#allocation31_spill] sm:$0xff] }
 0xa57   : > { %10101 = vst [vmem:[%s17682_s25 + $0x120] sm:$0xff] %v10037_v43  ;;  %v10039_v21 = vmax.f32 %v9975_v48, 0.0 }
 0xa58   : > { %10102 = vst [vmem:[%s17682_s25 + $0x128] sm:$0xff] %v10038_v40  ;;  %v10040_v44 = vmax.f32 %v9976_v39, 0.0  ;;  %v9802_v42 = vpop.f32.mrb[72].mxu0  ;;  %v18606_v40 = vld [vmem:[#allocation65_spill] sm:$0xff] }
 0xa59   : > { %10103 = vst [vmem:[%s17682_s25 + $0x130] sm:$0xff] %v10039_v21  ;;  %v12009_v45 = vadd.f32 %v9802_v42, %v17619_v49  ;;  %v9804_v9 = vpop.f32.mrb[73].mxu0  ;;  %v18607_v42 = vld [vmem:[#allocation30_spill] sm:$0xff] }
 0xa5a   : > { %10104 = vst [vmem:[%s17682_s25 + $0x138] sm:$0xff] %v10040_v44  ;;  %v12010_v2 = vadd.f32 %v9804_v9, %v17621_v18  ;;  %v9806_v34 = vpop.f32.mrb[74].mxu0 }
 0xa5b   : > { %v9977_v50 = vadd.f32 %v12009_v45, %v17670_v3  ;;  %v12011_v61 = vadd.f32 %v9806_v34, %v17623_v51  ;;  %v9808_v0 = vpop.f32.mrb[75].mxu0 }
 0xa5c   : > { %v9978_v32 = vadd.f32 %v12010_v2, %v17672_v23  ;;  %v12012_v25 = vadd.f32 %v9808_v0, %v17625_v52 }
 0xa5d   : > { %v10041_v22 = vmax.f32 %v9977_v50, 0.0  ;;  %v9979_v49 = vadd.f32 %v12011_v61, %v17670_v3 }
 0xa5e   : > { %v10042_v26 = vmax.f32 %v9978_v32, 0.0  ;;  %v9980_v13 = vadd.f32 %v12012_v25, %v17672_v23  ;;  %v18608_v25 = vld [vmem:[#allocation64_spill] sm:$0xff] }
 0xa5f   : > { %10105 = vst [vmem:[%s17682_s25 + $0x140] sm:$0xff] %v10041_v22  ;;  %v10043_v18 = vmax.f32 %v9979_v49, 0.0 }
 0xa60   : > { %10106 = vst [vmem:[%s17682_s25 + $0x148] sm:$0xff] %v10042_v26  ;;  %v10044_v56 = vmax.f32 %v9980_v13, 0.0  ;;  %v9812_v31 = vpop.f32.mrb[76].mxu0  ;;  %v18609_v26 = vld [vmem:[#allocation16_spill] sm:$0xff] }
 0xa61   : > { %10107 = vst [vmem:[%s17682_s25 + $0x150] sm:$0xff] %v10043_v18  ;;  %v12013_v51 = vadd.f32 %v9812_v31, %v17627_v29  ;;  %v9814_v7 = vpop.f32.mrb[77].mxu0  ;;  %v18610_v31 = vld [vmem:[#allocation17_spill] sm:$0xff] }
 0xa62   : > { %10108 = vst [vmem:[%s17682_s25 + $0x158] sm:$0xff] %v10044_v56  ;;  %v12014_v52 = vadd.f32 %v9814_v7, %v17629_v63  ;;  %v9816_v14 = vpop.f32.mrb[78].mxu0 }
 0xa63   : > { %v9981_v10 = vadd.f32 %v12013_v51, %v17670_v3  ;;  %v12015_v8 = vadd.f32 %v9816_v14, %v17631_v6  ;;  %v9818_v46 = vpop.f32.mrb[79].mxu0  ;;  %v18611_v14 = vld [vmem:[#allocation24_spill] sm:$0xff] }
 0xa64   : > { %v9982_v12 = vadd.f32 %v12014_v52, %v17672_v23  ;;  %v12016_v59 = vadd.f32 %v9818_v46, %v17633_v11 }
 0xa65   : > { %v10045_v36 = vmax.f32 %v9981_v10, 0.0  ;;  %v9983_v29 = vadd.f32 %v12015_v8, %v17670_v3 }
 0xa66   : > { %v10046_v41 = vmax.f32 %v9982_v12, 0.0  ;;  %v9984_v55 = vadd.f32 %v12016_v59, %v17672_v23 }
 0xa67   : > { %10109 = vst [vmem:[%s17682_s25 + $0x160] sm:$0xff] %v10045_v36  ;;  %v10047_v63 = vmax.f32 %v9983_v29, 0.0 }
 0xa68   : > { %10110 = vst [vmem:[%s17682_s25 + $0x168] sm:$0xff] %v10046_v41  ;;  %v10048_v54 = vmax.f32 %v9984_v55, 0.0  ;;  %v9822_v4 = vpop.f32.mrb[80].mxu0  ;;  %v18612_v55 = vld [vmem:[#allocation23_spill] sm:$0xff] }
 0xa69   : > { %10111 = vst [vmem:[%s17682_s25 + $0x170] sm:$0xff] %v10047_v63  ;;  %v12017_v6 = vadd.f32 %v9822_v4, %v17635_v19  ;;  %v9824_v28 = vpop.f32.mrb[81].mxu0  ;;  %v18613_v4 = vld [vmem:[#allocation32_spill] sm:$0xff] }
 0xa6a   : > { %10112 = vst [vmem:[%s17682_s25 + $0x178] sm:$0xff] %v10048_v54  ;;  %v12018_v11 = vadd.f32 %v9824_v28, %v17637_v38  ;;  %v9826_v60 = vpop.f32.mrb[82].mxu0 }
 0xa6b   : > { %v9985_v20 = vadd.f32 %v12017_v6, %v17670_v3  ;;  %v12019_v35 = vadd.f32 %v9826_v60, %v18602_v62  ;;  %v9828_v1 = vpop.f32.mrb[83].mxu0  ;;  %v18614_v60 = vld [vmem:[#allocation15_spill] sm:$0xff] }
 0xa6c   : > { %v9986_v27 = vadd.f32 %v12018_v11, %v17672_v23  ;;  %v12020_v30 = vadd.f32 %v9828_v1, %v18603_v58  ;;  %v18615_v1 = vld [vmem:[#allocation28_spill] sm:$0xff] }
 0xa6d   : > { %v10049_v5 = vmax.f32 %v9985_v20, 0.0  ;;  %v9987_v19 = vadd.f32 %v12019_v35, %v17670_v3 }
 0xa6e   : > { %v10050_v37 = vmax.f32 %v9986_v27, 0.0  ;;  %v9988_v16 = vadd.f32 %v12020_v30, %v17672_v23 }
 0xa6f   : > { %10113 = vst [vmem:[%s17682_s25 + $0x180] sm:$0xff] %v10049_v5  ;;  %v10051_v38 = vmax.f32 %v9987_v19, 0.0 }
 0xa70   : > { %10114 = vst [vmem:[%s17682_s25 + $0x188] sm:$0xff] %v10050_v37  ;;  %v10052_v53 = vmax.f32 %v9988_v16, 0.0  ;;  %v9832_v47 = vpop.f32.mrb[84].mxu0 }
 0xa71   : > { %10115 = vst [vmem:[%s17682_s25 + $0x190] sm:$0xff] %v10051_v38  ;;  %v12021_v17 = vadd.f32 %v9832_v47, %v18604_v33  ;;  %v9834_v24 = vpop.f32.mrb[85].mxu0 }
 0xa72   : > { %10116 = vst [vmem:[%s17682_s25 + $0x198] sm:$0xff] %v10052_v53  ;;  %v12022_v15 = vadd.f32 %v9834_v24, %v18605_v57  ;;  %v9836_v43 = vpop.f32.mrb[86].mxu0 }
 0xa73   : > { %v9989_v48 = vadd.f32 %v12021_v17, %v17670_v3  ;;  %v12023_v39 = vadd.f32 %v9836_v43, %v18606_v40  ;;  %v9838_v21 = vpop.f32.mrb[87].mxu0 }
 0xa74   : > { %v9990_v44 = vadd.f32 %v12022_v15, %v17672_v23  ;;  %v12024_v45 = vadd.f32 %v9838_v21, %v18607_v42 }
 0xa75   : > { %v10053_v9 = vmax.f32 %v9989_v48, 0.0  ;;  %v9991_v2 = vadd.f32 %v12023_v39, %v17670_v3 }
 0xa76   : > { %v10054_v34 = vmax.f32 %v9990_v44, 0.0  ;;  %v9992_v50 = vadd.f32 %v12024_v45, %v17672_v23 }
 0xa77   : > { %10117 = vst [vmem:[%s17682_s25 + $0x1a0] sm:$0xff] %v10053_v9  ;;  %v10055_v61 = vmax.f32 %v9991_v2, 0.0 }
 0xa78   : > { %10118 = vst [vmem:[%s17682_s25 + $0x1a8] sm:$0xff] %v10054_v34  ;;  %v10056_v0 = vmax.f32 %v9992_v50, 0.0  ;;  %v9842_v32 = vpop.f32.mrb[88].mxu0 }
 0xa79   : > { %10119 = vst [vmem:[%s17682_s25 + $0x1b0] sm:$0xff] %v10055_v61  ;;  %v12025_v22 = vadd.f32 %v9842_v32, %v18608_v25  ;;  %v9844_v49 = vpop.f32.mrb[89].mxu0 }
 0xa7a   : > { %10120 = vst [vmem:[%s17682_s25 + $0x1b8] sm:$0xff] %v10056_v0  ;;  %v12026_v13 = vadd.f32 %v9844_v49, %v18609_v26  ;;  %v9846_v18 = vpop.f32.mrb[90].mxu0 }
 0xa7b   : > { %v9993_v56 = vadd.f32 %v12025_v22, %v17670_v3  ;;  %v12027_v51 = vadd.f32 %v9846_v18, %v18610_v31  ;;  %v9848_v7 = vpop.f32.mrb[91].mxu0 }
 0xa7c   : > { %v9994_v52 = vadd.f32 %v12026_v13, %v17672_v23  ;;  %v12028_v10 = vadd.f32 %v9848_v7, %v18611_v14 }
 0xa7d   : > { %v10057_v8 = vmax.f32 %v9993_v56, 0.0  ;;  %v9995_v46 = vadd.f32 %v12027_v51, %v17670_v3 }
 0xa7e   : > { %v10058_v12 = vmax.f32 %v9994_v52, 0.0  ;;  %v9996_v59 = vadd.f32 %v12028_v10, %v17672_v23 }
 0xa7f   : > { %10121 = vst [vmem:[%s17682_s25 + $0x1c0] sm:$0xff] %v10057_v8  ;;  %v10059_v36 = vmax.f32 %v9995_v46, 0.0 }
 0xa80   : > { %10122 = vst [vmem:[%s17682_s25 + $0x1c8] sm:$0xff] %v10058_v12  ;;  %v10060_v29 = vmax.f32 %v9996_v59, 0.0  ;;  %v9852_v41 = vpop.f32.mrb[92].mxu0 }
 0xa81   : > { %10123 = vst [vmem:[%s17682_s25 + $0x1d0] sm:$0xff] %v10059_v36  ;;  %v12029_v63 = vadd.f32 %v9852_v41, %v18612_v55  ;;  %v9854_v54 = vpop.f32.mrb[93].mxu0 }
 0xa82   : > { %10124 = vst [vmem:[%s17682_s25 + $0x1d8] sm:$0xff] %v10060_v29  ;;  %v12030_v6 = vadd.f32 %v9854_v54, %v18613_v4  ;;  %v9856_v28 = vpop.f32.mrb[94].mxu0 }
 0xa83   : > { %v9997_v11 = vadd.f32 %v12029_v63, %v17670_v3  ;;  %v12031_v20 = vadd.f32 %v9856_v28, %v18614_v60  ;;  %v9858_v62 = vpop.f32.mrb[95].mxu0 }
 0xa84   : > { %v9998_v35 = vadd.f32 %v12030_v6, %v17672_v23  ;;  %v12032_v27 = vadd.f32 %v9858_v62, %v18615_v1 }
 0xa85   : > { %v10061_v58 = vmax.f32 %v9997_v11, 0.0  ;;  %v9999_v30 = vadd.f32 %v12031_v20, %v17670_v3 }
 0xa86   : > { %v10062_v5 = vmax.f32 %v9998_v35, 0.0  ;;  %v10000_v19 = vadd.f32 %v12032_v27, %v17672_v23 }
 0xa87   : > { %10125 = vst [vmem:[%s17682_s25 + $0x1e0] sm:$0xff] %v10061_v58  ;;  %v10063_v37 = vmax.f32 %v9999_v30, 0.0 }
 0xa88   : > { %10126 = vst [vmem:[%s17682_s25 + $0x1e8] sm:$0xff] %v10062_v5  ;;  %v10064_v16 = vmax.f32 %v10000_v19, 0.0 }
 0xa89   : > { %10127 = vst [vmem:[%s17682_s25 + $0x1f0] sm:$0xff] %v10063_v37 }
 0xa8a   : > { %10128 = vst [vmem:[%s17682_s25 + $0x1f8] sm:$0xff] %v10064_v16 }
 0xa8b PF: > { %s19_s30 = sadd.s32 1, %s13261_s30  }
 0xa8c   : > { %p16_p4 = scmp.ge.s32.totalorder %s19_s30, 4  }
 0xa8e   :  { %18 = sbr.rel (!%p16_p4) target bundleno = 1 (0x1), region = 110 }

</bundles_post_ra>
